<compile_context>
chip_gen: v6e
topology: v6e:2x2x1
jax: 0.10.0
libtpu: 0.0.40
codegen_flags: <defaults>
</compile_context>

<pallas_src>
from functools import partial

import jax
import jax.numpy as jnp
from jax import lax
from jax.experimental import pallas as pl
from jax.experimental.pallas import tpu as pltpu


def _round_up(x, m):
    return (x + m - 1) // m * m


def _pad2(w, rows, cols):
    """Zero-pad a 2-D array to (rows, cols)."""
    out = jnp.zeros((rows, cols), jnp.float32)
    return out.at[:w.shape[0], :w.shape[1]].set(w)


def _prep_gru(wih, whh, bih, bhh, H, H_pad, dtype):
    """Fuse both GRU matmuls into one (2*H_pad, 4*H_pad) weight.

    Row block 0 = x rows, row block 1 = h rows.  Column blocks (each width
    H_pad, zero-padded per gate so padded lanes stay exactly zero):
      0: r-gate (Wih_r ; Whh_r)    1: z-gate (Wih_z ; Whh_z)
      2: gi_n   (Wih_n ; 0)        3: gh_n   (0     ; Whh_n)
    Bias blocks: r/z biases pre-summed; gi_n = bih_n; gh_n = bhh_n.  This lets
    the kernel compute n = tanh(gi_n + r * gh_n) exactly (PyTorch GRU) with a
    single MXU issue per recurrent step.
    """
    w = jnp.zeros((2 * H_pad, 4 * H_pad), jnp.float32)
    b = jnp.zeros((1, 4 * H_pad), jnp.float32)
    for g in range(2):  # r, z gates
        w = w.at[:H, g * H_pad:g * H_pad + H].set(wih[:, g * H:(g + 1) * H])
        w = w.at[H_pad:H_pad + H, g * H_pad:g * H_pad + H].set(
            whh[:, g * H:(g + 1) * H])
        b = b.at[:, g * H_pad:g * H_pad + H].set(
            bih[:, g * H:(g + 1) * H] + bhh[:, g * H:(g + 1) * H])
    w = w.at[:H, 2 * H_pad:2 * H_pad + H].set(wih[:, 2 * H:3 * H])          # gi_n
    w = w.at[H_pad:H_pad + H, 3 * H_pad:3 * H_pad + H].set(whh[:, 2 * H:3 * H])  # gh_n
    b = b.at[:, 2 * H_pad:2 * H_pad + H].set(bih[:, 2 * H:3 * H])
    b = b.at[:, 3 * H_pad:3 * H_pad + H].set(bhh[:, 2 * H:3 * H])
    return w.astype(dtype), b          # weights in dtype (bf16 fast path), bias f32


def _resident_spec(shape):
    """Full-array block with a constant index_map (resident across the grid)."""
    return pl.BlockSpec(shape, lambda i: (0,) * len(shape))


# ----------------------------------------------------------------------------
# Fused kernel: full encoder recurrence + greedy decode in one invocation.
# ----------------------------------------------------------------------------
def _seq2seq_kernel(enc_x_ref, x0_ref,
                    enc_w_ref, enc_b_ref,
                    dec_w_ref, dec_b_ref,
                    wout_ref, bout_ref, emb_ref,
                    out_ref, xh_scr, *, H, V):
    S = enc_x_ref.shape[0]          # source length
    T = out_ref.shape[1]            # max decode length
    B = xh_scr.shape[0]             # padded batch
    V_pad = out_ref.shape[-1]

    def gru_step(w_ref, b_ref):
        # xh_scr holds [x_t | h_{t-1}] in f32; one fused MXU matmul per step.
        xh = xh_scr[...]
        g = jnp.dot(xh.astype(w_ref.dtype), w_ref[...],
                    preferred_element_type=jnp.float32) + b_ref[...]
        r = jax.nn.sigmoid(g[:, 0 * H:1 * H])
        z = jax.nn.sigmoid(g[:, 1 * H:2 * H])
        n = jnp.tanh(g[:, 2 * H:3 * H] + r * g[:, 3 * H:4 * H])   # gi_n + r*gh_n
        h_new = (1.0 - z) * n + z * xh[:, H:]
        xh_scr[:, H:] = h_new
        return h_new

    # ---------------- encoder: h0 = 0, stream embedded source tokens ---------
    xh_scr[...] = jnp.zeros_like(xh_scr)

    def enc_body(t, carry):
        xh_scr[:, :H] = enc_x_ref[t].astype(jnp.float32)
        gru_step(enc_w_ref, enc_b_ref)
        return carry

    lax.fori_loop(0, S, enc_body, 0, unroll=True)

    # ---------------- greedy decoder: hidden already sits in xh[:, H:] -------
    xh_scr[:, :H] = x0_ref[...].astype(jnp.float32)        # relu(dec_emb[sow])
    lane = lax.broadcasted_iota(jnp.int32, (B, V_pad), 1)   # hoisted once

    for t in range(T):   # static unroll -> static, lane-dense logits stores
        h_new = gru_step(dec_w_ref, dec_b_ref)
        logits = jnp.dot(h_new.astype(wout_ref.dtype), wout_ref[...],
                         preferred_element_type=jnp.float32) + bout_ref[...]
        out_ref[:, t:t + 1, :] = logits[:, None, :]

        # Greedy next input: first-argmax over the *real* vocab (padded lanes
        # masked to -inf), then one-hot @ relu(embedding table) on the MXU.
        masked = jnp.where(lane < V, logits, -jnp.inf)
        mx = jnp.max(masked, axis=-1, keepdims=True)
        idx = jnp.min(jnp.where(masked == mx, lane, V_pad),
                      axis=-1, keepdims=True)
        onehot = (lane == idx).astype(emb_ref.dtype)
        xh_scr[:, :H] = jnp.dot(onehot, emb_ref[...],
                                preferred_element_type=jnp.float32)


# ----------------------------------------------------------------------------
# Seq2Seq forward (target=None greedy path of the PyTorch module)
# ----------------------------------------------------------------------------
@partial(jax.jit, static_argnames=("sow_token", "max_length", "weight_dtype"))
def seq2seq_forward(params, source, *, sow_token, max_length,
                    weight_dtype=jnp.bfloat16):
    """source: (B, S) int32 token ids -> (B, max_length, V) float32 logits."""
    B, S = source.shape
    V, H = params["enc_embedding"].shape
    H_pad = _round_up(H, 128)
    V_pad = _round_up(V, 128)
    B_pad = max(_round_up(B, 8), 8)      # full sublanes; rows are independent

    enc_w, enc_b = _prep_gru(params["enc_wih"], params["enc_whh"],
                             params["enc_bih"], params["enc_bhh"],
                             H, H_pad, weight_dtype)
    dec_w, dec_b = _prep_gru(params["dec_wih"], params["dec_whh"],
                             params["dec_bih"], params["dec_bhh"],
                             H, H_pad, weight_dtype)
    w_out = _pad2(params["dec_wout"], H_pad, V_pad).astype(weight_dtype)
    b_out = _pad2(params["dec_bout"], 1, V_pad)
    emb_relu = _pad2(jax.nn.relu(params["dec_embedding"]),
                     V_pad, H_pad).astype(weight_dtype)
    enc_emb = _pad2(params["enc_embedding"], V, H_pad).astype(weight_dtype)

    # Gather encoder inputs directly in (S, B_pad, H_pad) order from the padded
    # table: no zeros().at[].set + transpose glue around the kernel.
    source_p = jnp.zeros((B_pad, S), source.dtype).at[:B, :].set(source)
    enc_x = enc_emb[source_p.T]                                  # (S, B_pad, H_pad)
    x0 = jnp.broadcast_to(emb_relu[sow_token], (B_pad, H_pad))   # relu(emb[sow])

    ins = (enc_x, x0, enc_w, enc_b, dec_w, dec_b, w_out, b_out, emb_relu)

    # Explicit scoped-VMEM budget from the actual resident footprint (+headroom).
    in_bytes = sum(int(a.size) * a.dtype.itemsize for a in ins)
    out_bytes = B_pad * max_length * V_pad * 4
    vmem_limit = int(min(64 << 20,
                         max(32 << 20, 2 * (in_bytes + out_bytes) + (4 << 20))))

    logits = pl.pallas_call(
        partial(_seq2seq_kernel, H=H_pad, V=V),
        out_shape=jax.ShapeDtypeStruct((B_pad, max_length, V_pad), jnp.float32),
        grid_spec=pltpu.PrefetchScalarGridSpec(
            num_scalar_prefetch=0,
            grid=(1,),                 # whole problem resident; loops run in-kernel
            in_specs=[_resident_spec(a.shape) for a in ins],
            out_specs=pl.BlockSpec((B_pad, max_length, V_pad),
                                   lambda i: (0, 0, 0)),
            scratch_shapes=[pltpu.VMEM((B_pad, 2 * H_pad), jnp.float32)],  # [x|h]
        ),
        compiler_params=pltpu.CompilerParams(
            dimension_semantics=("arbitrary",),
            vmem_limit_bytes=vmem_limit),
    )(*ins)

    # Output is already in (B, T, V) order -> just strip padding.
    return logits[:B, :, :V]


# ----------------------------------------------------------------------------
# Deterministic parameter construction (unpadded, PyTorch-like shapes)
# ----------------------------------------------------------------------------
def init_params(key, vocab_size, hidden_size):
    ks = jax.random.split(key, 10)
    s = 0.1
    return {
        "enc_embedding": s * jax.random.normal(ks[0], (vocab_size, hidden_size), jnp.float32),
        "enc_wih": s * jax.random.normal(ks[1], (hidden_size, 3 * hidden_size), jnp.float32),
        "enc_whh": s * jax.random.normal(ks[2], (hidden_size, 3 * hidden_size), jnp.float32),
        "enc_bih": s * jax.random.normal(ks[3], (1, 3 * hidden_size), jnp.float32),
        "enc_bhh": s * jax.random.normal(ks[4], (1, 3 * hidden_size), jnp.float32),
        "dec_embedding": s * jax.random.normal(ks[5], (vocab_size, hidden_size), jnp.float32),
        "dec_wih": s * jax.random.normal(ks[6], (hidden_size, 3 * hidden_size), jnp.float32),
        "dec_whh": s * jax.random.normal(ks[7], (hidden_size, 3 * hidden_size), jnp.float32),
        "dec_bih": s * jax.random.normal(ks[8], (1, 3 * hidden_size), jnp.float32),
        "dec_bhh": jnp.zeros((1, 3 * hidden_size), jnp.float32),
        "dec_wout": s * jax.random.normal(ks[9], (hidden_size, vocab_size), jnp.float32),
        "dec_bout": jnp.zeros((1, vocab_size), jnp.float32),
    }


# ----------------------------------------------------------------------------
# Pure-JAX reference (PyTorch GRU semantics).  weight_dtype=bfloat16 emulates
# the kernel's bf16 weight/activation rounding (bf16 products are exact in f32,
# so kernel and reference then differ only by accumulation order).
# ----------------------------------------------------------------------------
def _reference_forward(params, source, *, sow_token, max_length,
                       weight_dtype=jnp.float32):
    B, S = source.shape
    V, H = params["enc_embedding"].shape

    def q(a):
        return a.astype(weight_dtype).astype(jnp.float32)

    def gru(x, h, wih, whh, bih, bhh):
        gi = jnp.dot(q(x), q(wih), preferred_element_type=jnp.float32) + bih
        gh = jnp.dot(q(h), q(whh), preferred_element_type=jnp.float32) + bhh
        r = jax.nn.sigmoid(gi[:, :H] + gh[:, :H])
        z = jax.nn.sigmoid(gi[:, H:2 * H] + gh[:, H:2 * H])
        n = jnp.tanh(gi[:, 2 * H:] + r * gh[:, 2 * H:])
        return (1.0 - z) * n + z * h

    enc_emb = q(params["enc_embedding"])
    dec_emb_relu = q(jax.nn.relu(params["dec_embedding"]))

    h = jnp.zeros((B, H), jnp.float32)
    for i in range(S):
        h = gru(enc_emb[source[:, i]], h, params["enc_wih"], params["enc_whh"],
                params["enc_bih"], params["enc_bhh"])

    tok = jnp.full((B,), sow_token, jnp.int32)
    outs = []
    for _ in range(max_length):
        x = dec_emb_relu[tok]
        h = gru(x, h, params["dec_wih"], params["dec_whh"],
                params["dec_bih"], params["dec_bhh"])
        logits = jnp.dot(q(h), q(params["dec_wout"]),
                         preferred_element_type=jnp.float32) + params["dec_bout"]
        outs.append(logits[:, None, :])
        tok = jnp.argmax(logits, axis=-1).astype(jnp.int32)
    return jnp.concatenate(outs, axis=1)


if __name__ == "__main__":
    B, S, H, V = 2, 8, 32, 16
    SOW_TOKEN = 1
    MAX_LENGTH = 6

    key = jax.random.PRNGKey(0)
    pkey, skey = jax.random.split(key)
    params = init_params(pkey, vocab_size=V, hidden_size=H)
    source = jax.random.randint(skey, (B, S), 0, V, dtype=jnp.int32)

    # Exact-precision path: f32 weights, checked against the pure reference.
    out_f32 = jax.block_until_ready(
        seq2seq_forward(params, source, sow_token=SOW_TOKEN,
                        max_length=MAX_LENGTH, weight_dtype=jnp.float32))
    assert out_f32.shape == (B, MAX_LENGTH, V), out_f32.shape
    assert bool(jnp.isfinite(out_f32).all())
    ref_f32 = _reference_forward(params, source, sow_token=SOW_TOKEN,
                                 max_length=MAX_LENGTH, weight_dtype=jnp.float32)
    err_f32 = float(jnp.abs(out_f32 - ref_f32).max())
    assert bool(jnp.allclose(out_f32, ref_f32, atol=1e-4, rtol=1e-3)), err_f32

    # Default fast path: bf16 resident weights (f32 accumulation), checked
    # against the bf16-rounding-emulating reference.
    out_bf16 = jax.block_until_ready(
        seq2seq_forward(params, source, sow_token=SOW_TOKEN,
                        max_length=MAX_LENGTH))
    assert out_bf16.shape == (B, MAX_LENGTH, V), out_bf16.shape
    assert bool(jnp.isfinite(out_bf16).all())
    ref_bf16 = _reference_forward(params, source, sow_token=SOW_TOKEN,
                                  max_length=MAX_LENGTH,
                                  weight_dtype=jnp.bfloat16)
    err_bf16 = float(jnp.abs(out_bf16 - ref_bf16).max())
    assert bool(jnp.allclose(out_bf16, ref_bf16, atol=2e-3, rtol=1e-2)), err_bf16

    print("KERNEL_OK")
</pallas_src>

<mosaic_0001>
module attributes {stable_mosaic.version = 11 : i64} {
  func.func @_seq2seq_kernel(%arg0: i32, %arg1: memref<8x8x128xf32, #tpu.memory_space<vmem>>, %arg2: memref<8x128xf32, #tpu.memory_space<vmem>>, %arg3: memref<256x512xf32, #tpu.memory_space<vmem>>, %arg4: memref<1x512xf32, #tpu.memory_space<vmem>>, %arg5: memref<256x512xf32, #tpu.memory_space<vmem>>, %arg6: memref<1x512xf32, #tpu.memory_space<vmem>>, %arg7: memref<128x128xf32, #tpu.memory_space<vmem>>, %arg8: memref<1x128xf32, #tpu.memory_space<vmem>>, %arg9: memref<128x128xf32, #tpu.memory_space<vmem>>, %arg10: memref<8x6x128xf32, #tpu.memory_space<vmem>>, %arg11: memref<8x256xf32, #tpu.memory_space<vmem>>) attributes {dimension_semantics = [#tpu.dimension_semantics<arbitrary>], iteration_bounds = array<i64: 1>, scalar_prefetch = 0 : i64, scratch_operands = 1 : i64, tpu.core_type = #tpu.core_type<tc>, window_params = [{pipeline_mode = #tpu.pipeline_mode<synchronous>, transform_indices = @transform_0, window_bounds = array<i64: 8, 8, 128>}, {pipeline_mode = #tpu.pipeline_mode<synchronous>, transform_indices = @transform_1, window_bounds = array<i64: 8, 128>}, {pipeline_mode = #tpu.pipeline_mode<synchronous>, transform_indices = @transform_2, window_bounds = array<i64: 256, 512>}, {pipeline_mode = #tpu.pipeline_mode<synchronous>, transform_indices = @transform_3, window_bounds = array<i64: 1, 512>}, {pipeline_mode = #tpu.pipeline_mode<synchronous>, transform_indices = @transform_4, window_bounds = array<i64: 256, 512>}, {pipeline_mode = #tpu.pipeline_mode<synchronous>, transform_indices = @transform_5, window_bounds = array<i64: 1, 512>}, {pipeline_mode = #tpu.pipeline_mode<synchronous>, transform_indices = @transform_6, window_bounds = array<i64: 128, 128>}, {pipeline_mode = #tpu.pipeline_mode<synchronous>, transform_indices = @transform_7, window_bounds = array<i64: 1, 128>}, {pipeline_mode = #tpu.pipeline_mode<synchronous>, transform_indices = @transform_8, window_bounds = array<i64: 128, 128>}, {pipeline_mode = #tpu.pipeline_mode<synchronous>, transform_indices = @transform_9, window_bounds = array<i64: 8, 6, 128>}]} {
    %cst = arith.constant 0.000000e+00 : f32
    %0 = vector.broadcast %cst : f32 to vector<8x256xf32>
    %c0 = arith.constant 0 : index
    %c0_0 = arith.constant 0 : index
    %1 = vector.load %arg11[%c0, %c0_0] : memref<8x256xf32, #tpu.memory_space<vmem>>, vector<8x256xf32>
    tpu.vector_store %arg11[%c0, %c0_0], %0 {strides = array<i32>} : memref<8x256xf32, #tpu.memory_space<vmem>>, vector<8x256xf32>,
    %c0_i32 = arith.constant 0 : i32
    %2 = arith.index_cast %c0_i32 : i32 to index
    %c0_1 = arith.constant 0 : index
    %c0_2 = arith.constant 0 : index
    %3 = vector.load %arg1[%2, %c0_1, %c0_2] : memref<8x8x128xf32, #tpu.memory_space<vmem>>, vector<1x8x128xf32>
    %4 = vector.shape_cast %3 : vector<1x8x128xf32> to vector<8x128xf32>
    %c0_3 = arith.constant 0 : index
    %c0_4 = arith.constant 0 : index
    %5 = vector.load %arg11[%c0_3, %c0_4] : memref<8x256xf32, #tpu.memory_space<vmem>>, vector<8x128xf32>
    tpu.vector_store %arg11[%c0_3, %c0_4], %4 {strides = array<i32>} : memref<8x256xf32, #tpu.memory_space<vmem>>, vector<8x128xf32>,
    %c0_5 = arith.constant 0 : index
    %c0_6 = arith.constant 0 : index
    %6 = vector.load %arg11[%c0_5, %c0_6] : memref<8x256xf32, #tpu.memory_space<vmem>>, vector<8x256xf32>
    %c0_7 = arith.constant 0 : index
    %c0_8 = arith.constant 0 : index
    %7 = vector.load %arg3[%c0_7, %c0_8] : memref<256x512xf32, #tpu.memory_space<vmem>>, vector<256x512xf32>
    %cst_9 = arith.constant dense<0.000000e+00> : vector<8x512xf32>
    %8 = tpu.matmul %6, %7, %cst_9 {dimension_numbers = #tpu.dot_dimension_numbers<[1], [0], [0], [1], [0, 0, 1, 1], [], []>} : vector<8x256xf32>, vector<256x512xf32>, vector<8x512xf32> -> vector<8x512xf32>
    %c0_10 = arith.constant 0 : index
    %c0_11 = arith.constant 0 : index
    %9 = vector.load %arg4[%c0_10, %c0_11] : memref<1x512xf32, #tpu.memory_space<vmem>>, vector<1x512xf32>
    %10 = vector.broadcast %9 : vector<1x512xf32> to vector<8x512xf32>
    %11 = arith.addf %8, %10 : vector<8x512xf32>
    %12 = vector.extract_strided_slice %11 {offsets = [0, 0], sizes = [8, 128], strides = [1, 1]} : vector<8x512xf32> to vector<8x128xf32>
    %13 = arith.negf %12 : vector<8x128xf32>
    %14 = math.exp %13 : vector<8x128xf32>
    %cst_12 = arith.constant 1.000000e+00 : f32
    %15 = vector.broadcast %cst_12 : f32 to vector<8x128xf32>
    %16 = arith.addf %15, %14 : vector<8x128xf32>
    %17 = arith.divf %15, %16 : vector<8x128xf32>
    %18 = vector.extract_strided_slice %11 {offsets = [0, 128], sizes = [8, 128], strides = [1, 1]} : vector<8x512xf32> to vector<8x128xf32>
    %19 = arith.negf %18 : vector<8x128xf32>
    %20 = math.exp %19 : vector<8x128xf32>
    %cst_13 = arith.constant 1.000000e+00 : f32
    %21 = vector.broadcast %cst_13 : f32 to vector<8x128xf32>
    %22 = arith.addf %21, %20 : vector<8x128xf32>
    %23 = arith.divf %21, %22 : vector<8x128xf32>
    %24 = vector.extract_strided_slice %11 {offsets = [0, 256], sizes = [8, 128], strides = [1, 1]} : vector<8x512xf32> to vector<8x128xf32>
    %25 = vector.extract_strided_slice %11 {offsets = [0, 384], sizes = [8, 128], strides = [1, 1]} : vector<8x512xf32> to vector<8x128xf32>
    %26 = arith.mulf %17, %25 : vector<8x128xf32>
    %27 = arith.addf %24, %26 : vector<8x128xf32>
    %28 = math.tanh %27 : vector<8x128xf32>
    %cst_14 = arith.constant 1.000000e+00 : f32
    %29 = vector.broadcast %cst_14 : f32 to vector<8x128xf32>
    %30 = arith.subf %29, %23 : vector<8x128xf32>
    %31 = arith.mulf %30, %28 : vector<8x128xf32>
    %32 = vector.extract_strided_slice %6 {offsets = [0, 128], sizes = [8, 128], strides = [1, 1]} : vector<8x256xf32> to vector<8x128xf32>
    %33 = arith.mulf %23, %32 : vector<8x128xf32>
    %34 = arith.addf %31, %33 : vector<8x128xf32>
    %c0_15 = arith.constant 0 : index
    %c128 = arith.constant 128 : index
    %35 = vector.load %arg11[%c0_15, %c128] : memref<8x256xf32, #tpu.memory_space<vmem>>, vector<8x128xf32>
    tpu.vector_store %arg11[%c0_15, %c128], %34 {strides = array<i32>} : memref<8x256xf32, #tpu.memory_space<vmem>>, vector<8x128xf32>,
    %c1_i32 = arith.constant 1 : i32
    %36 = arith.index_cast %c1_i32 : i32 to index
    %c0_16 = arith.constant 0 : index
    %c0_17 = arith.constant 0 : index
    %37 = vector.load %arg1[%36, %c0_16, %c0_17] : memref<8x8x128xf32, #tpu.memory_space<vmem>>, vector<1x8x128xf32>
    %38 = vector.shape_cast %37 : vector<1x8x128xf32> to vector<8x128xf32>
    %c0_18 = arith.constant 0 : index
    %c0_19 = arith.constant 0 : index
    %39 = vector.load %arg11[%c0_18, %c0_19] : memref<8x256xf32, #tpu.memory_space<vmem>>, vector<8x128xf32>
    tpu.vector_store %arg11[%c0_18, %c0_19], %38 {strides = array<i32>} : memref<8x256xf32, #tpu.memory_space<vmem>>, vector<8x128xf32>,
    %c0_20 = arith.constant 0 : index
    %c0_21 = arith.constant 0 : index
    %40 = vector.load %arg11[%c0_20, %c0_21] : memref<8x256xf32, #tpu.memory_space<vmem>>, vector<8x256xf32>
    %c0_22 = arith.constant 0 : index
    %c0_23 = arith.constant 0 : index
    %41 = vector.load %arg3[%c0_22, %c0_23] : memref<256x512xf32, #tpu.memory_space<vmem>>, vector<256x512xf32>
    %cst_24 = arith.constant dense<0.000000e+00> : vector<8x512xf32>
    %42 = tpu.matmul %40, %41, %cst_24 {dimension_numbers = #tpu.dot_dimension_numbers<[1], [0], [0], [1], [0, 0, 1, 1], [], []>} : vector<8x256xf32>, vector<256x512xf32>, vector<8x512xf32> -> vector<8x512xf32>
    %c0_25 = arith.constant 0 : index
    %c0_26 = arith.constant 0 : index
    %43 = vector.load %arg4[%c0_25, %c0_26] : memref<1x512xf32, #tpu.memory_space<vmem>>, vector<1x512xf32>
    %44 = vector.broadcast %43 : vector<1x512xf32> to vector<8x512xf32>
    %45 = arith.addf %42, %44 : vector<8x512xf32>
    %46 = vector.extract_strided_slice %45 {offsets = [0, 0], sizes = [8, 128], strides = [1, 1]} : vector<8x512xf32> to vector<8x128xf32>
    %47 = arith.negf %46 : vector<8x128xf32>
    %48 = math.exp %47 : vector<8x128xf32>
    %cst_27 = arith.constant 1.000000e+00 : f32
    %49 = vector.broadcast %cst_27 : f32 to vector<8x128xf32>
    %50 = arith.addf %49, %48 : vector<8x128xf32>
    %51 = arith.divf %49, %50 : vector<8x128xf32>
    %52 = vector.extract_strided_slice %45 {offsets = [0, 128], sizes = [8, 128], strides = [1, 1]} : vector<8x512xf32> to vector<8x128xf32>
    %53 = arith.negf %52 : vector<8x128xf32>
    %54 = math.exp %53 : vector<8x128xf32>
    %cst_28 = arith.constant 1.000000e+00 : f32
    %55 = vector.broadcast %cst_28 : f32 to vector<8x128xf32>
    %56 = arith.addf %55, %54 : vector<8x128xf32>
    %57 = arith.divf %55, %56 : vector<8x128xf32>
    %58 = vector.extract_strided_slice %45 {offsets = [0, 256], sizes = [8, 128], strides = [1, 1]} : vector<8x512xf32> to vector<8x128xf32>
    %59 = vector.extract_strided_slice %45 {offsets = [0, 384], sizes = [8, 128], strides = [1, 1]} : vector<8x512xf32> to vector<8x128xf32>
    %60 = arith.mulf %51, %59 : vector<8x128xf32>
    %61 = arith.addf %58, %60 : vector<8x128xf32>
    %62 = math.tanh %61 : vector<8x128xf32>
    %cst_29 = arith.constant 1.000000e+00 : f32
    %63 = vector.broadcast %cst_29 : f32 to vector<8x128xf32>
    %64 = arith.subf %63, %57 : vector<8x128xf32>
    %65 = arith.mulf %64, %62 : vector<8x128xf32>
    %66 = vector.extract_strided_slice %40 {offsets = [0, 128], sizes = [8, 128], strides = [1, 1]} : vector<8x256xf32> to vector<8x128xf32>
    %67 = arith.mulf %57, %66 : vector<8x128xf32>
    %68 = arith.addf %65, %67 : vector<8x128xf32>
    %c0_30 = arith.constant 0 : index
    %c128_31 = arith.constant 128 : index
    %69 = vector.load %arg11[%c0_30, %c128_31] : memref<8x256xf32, #tpu.memory_space<vmem>>, vector<8x128xf32>
    tpu.vector_store %arg11[%c0_30, %c128_31], %68 {strides = array<i32>} : memref<8x256xf32, #tpu.memory_space<vmem>>, vector<8x128xf32>,
    %c2_i32 = arith.constant 2 : i32
    %70 = arith.index_cast %c2_i32 : i32 to index
    %c0_32 = arith.constant 0 : index
    %c0_33 = arith.constant 0 : index
    %71 = vector.load %arg1[%70, %c0_32, %c0_33] : memref<8x8x128xf32, #tpu.memory_space<vmem>>, vector<1x8x128xf32>
    %72 = vector.shape_cast %71 : vector<1x8x128xf32> to vector<8x128xf32>
    %c0_34 = arith.constant 0 : index
    %c0_35 = arith.constant 0 : index
    %73 = vector.load %arg11[%c0_34, %c0_35] : memref<8x256xf32, #tpu.memory_space<vmem>>, vector<8x128xf32>
    tpu.vector_store %arg11[%c0_34, %c0_35], %72 {strides = array<i32>} : memref<8x256xf32, #tpu.memory_space<vmem>>, vector<8x128xf32>,
    %c0_36 = arith.constant 0 : index
    %c0_37 = arith.constant 0 : index
    %74 = vector.load %arg11[%c0_36, %c0_37] : memref<8x256xf32, #tpu.memory_space<vmem>>, vector<8x256xf32>
    %c0_38 = arith.constant 0 : index
    %c0_39 = arith.constant 0 : index
    %75 = vector.load %arg3[%c0_38, %c0_39] : memref<256x512xf32, #tpu.memory_space<vmem>>, vector<256x512xf32>
    %cst_40 = arith.constant dense<0.000000e+00> : vector<8x512xf32>
    %76 = tpu.matmul %74, %75, %cst_40 {dimension_numbers = #tpu.dot_dimension_numbers<[1], [0], [0], [1], [0, 0, 1, 1], [], []>} : vector<8x256xf32>, vector<256x512xf32>, vector<8x512xf32> -> vector<8x512xf32>
    %c0_41 = arith.constant 0 : index
    %c0_42 = arith.constant 0 : index
    %77 = vector.load %arg4[%c0_41, %c0_42] : memref<1x512xf32, #tpu.memory_space<vmem>>, vector<1x512xf32>
    %78 = vector.broadcast %77 : vector<1x512xf32> to vector<8x512xf32>
    %79 = arith.addf %76, %78 : vector<8x512xf32>
    %80 = vector.extract_strided_slice %79 {offsets = [0, 0], sizes = [8, 128], strides = [1, 1]} : vector<8x512xf32> to vector<8x128xf32>
    %81 = arith.negf %80 : vector<8x128xf32>
    %82 = math.exp %81 : vector<8x128xf32>
    %cst_43 = arith.constant 1.000000e+00 : f32
    %83 = vector.broadcast %cst_43 : f32 to vector<8x128xf32>
    %84 = arith.addf %83, %82 : vector<8x128xf32>
    %85 = arith.divf %83, %84 : vector<8x128xf32>
    %86 = vector.extract_strided_slice %79 {offsets = [0, 128], sizes = [8, 128], strides = [1, 1]} : vector<8x512xf32> to vector<8x128xf32>
    %87 = arith.negf %86 : vector<8x128xf32>
    %88 = math.exp %87 : vector<8x128xf32>
    %cst_44 = arith.constant 1.000000e+00 : f32
    %89 = vector.broadcast %cst_44 : f32 to vector<8x128xf32>
    %90 = arith.addf %89, %88 : vector<8x128xf32>
    %91 = arith.divf %89, %90 : vector<8x128xf32>
    %92 = vector.extract_strided_slice %79 {offsets = [0, 256], sizes = [8, 128], strides = [1, 1]} : vector<8x512xf32> to vector<8x128xf32>
    %93 = vector.extract_strided_slice %79 {offsets = [0, 384], sizes = [8, 128], strides = [1, 1]} : vector<8x512xf32> to vector<8x128xf32>
    %94 = arith.mulf %85, %93 : vector<8x128xf32>
    %95 = arith.addf %92, %94 : vector<8x128xf32>
    %96 = math.tanh %95 : vector<8x128xf32>
    %cst_45 = arith.constant 1.000000e+00 : f32
    %97 = vector.broadcast %cst_45 : f32 to vector<8x128xf32>
    %98 = arith.subf %97, %91 : vector<8x128xf32>
    %99 = arith.mulf %98, %96 : vector<8x128xf32>
    %100 = vector.extract_strided_slice %74 {offsets = [0, 128], sizes = [8, 128], strides = [1, 1]} : vector<8x256xf32> to vector<8x128xf32>
    %101 = arith.mulf %91, %100 : vector<8x128xf32>
    %102 = arith.addf %99, %101 : vector<8x128xf32>
    %c0_46 = arith.constant 0 : index
    %c128_47 = arith.constant 128 : index
    %103 = vector.load %arg11[%c0_46, %c128_47] : memref<8x256xf32, #tpu.memory_space<vmem>>, vector<8x128xf32>
    tpu.vector_store %arg11[%c0_46, %c128_47], %102 {strides = array<i32>} : memref<8x256xf32, #tpu.memory_space<vmem>>, vector<8x128xf32>,
    %c3_i32 = arith.constant 3 : i32
    %104 = arith.index_cast %c3_i32 : i32 to index
    %c0_48 = arith.constant 0 : index
    %c0_49 = arith.constant 0 : index
    %105 = vector.load %arg1[%104, %c0_48, %c0_49] : memref<8x8x128xf32, #tpu.memory_space<vmem>>, vector<1x8x128xf32>
    %106 = vector.shape_cast %105 : vector<1x8x128xf32> to vector<8x128xf32>
    %c0_50 = arith.constant 0 : index
    %c0_51 = arith.constant 0 : index
    %107 = vector.load %arg11[%c0_50, %c0_51] : memref<8x256xf32, #tpu.memory_space<vmem>>, vector<8x128xf32>
    tpu.vector_store %arg11[%c0_50, %c0_51], %106 {strides = array<i32>} : memref<8x256xf32, #tpu.memory_space<vmem>>, vector<8x128xf32>,
    %c0_52 = arith.constant 0 : index
    %c0_53 = arith.constant 0 : index
    %108 = vector.load %arg11[%c0_52, %c0_53] : memref<8x256xf32, #tpu.memory_space<vmem>>, vector<8x256xf32>
    %c0_54 = arith.constant 0 : index
    %c0_55 = arith.constant 0 : index
    %109 = vector.load %arg3[%c0_54, %c0_55] : memref<256x512xf32, #tpu.memory_space<vmem>>, vector<256x512xf32>
    %cst_56 = arith.constant dense<0.000000e+00> : vector<8x512xf32>
    %110 = tpu.matmul %108, %109, %cst_56 {dimension_numbers = #tpu.dot_dimension_numbers<[1], [0], [0], [1], [0, 0, 1, 1], [], []>} : vector<8x256xf32>, vector<256x512xf32>, vector<8x512xf32> -> vector<8x512xf32>
    %c0_57 = arith.constant 0 : index
    %c0_58 = arith.constant 0 : index
    %111 = vector.load %arg4[%c0_57, %c0_58] : memref<1x512xf32, #tpu.memory_space<vmem>>, vector<1x512xf32>
    %112 = vector.broadcast %111 : vector<1x512xf32> to vector<8x512xf32>
    %113 = arith.addf %110, %112 : vector<8x512xf32>
    %114 = vector.extract_strided_slice %113 {offsets = [0, 0], sizes = [8, 128], strides = [1, 1]} : vector<8x512xf32> to vector<8x128xf32>
    %115 = arith.negf %114 : vector<8x128xf32>
    %116 = math.exp %115 : vector<8x128xf32>
    %cst_59 = arith.constant 1.000000e+00 : f32
    %117 = vector.broadcast %cst_59 : f32 to vector<8x128xf32>
    %118 = arith.addf %117, %116 : vector<8x128xf32>
    %119 = arith.divf %117, %118 : vector<8x128xf32>
    %120 = vector.extract_strided_slice %113 {offsets = [0, 128], sizes = [8, 128], strides = [1, 1]} : vector<8x512xf32> to vector<8x128xf32>
    %121 = arith.negf %120 : vector<8x128xf32>
    %122 = math.exp %121 : vector<8x128xf32>
    %cst_60 = arith.constant 1.000000e+00 : f32
    %123 = vector.broadcast %cst_60 : f32 to vector<8x128xf32>
    %124 = arith.addf %123, %122 : vector<8x128xf32>
    %125 = arith.divf %123, %124 : vector<8x128xf32>
    %126 = vector.extract_strided_slice %113 {offsets = [0, 256], sizes = [8, 128], strides = [1, 1]} : vector<8x512xf32> to vector<8x128xf32>
    %127 = vector.extract_strided_slice %113 {offsets = [0, 384], sizes = [8, 128], strides = [1, 1]} : vector<8x512xf32> to vector<8x128xf32>
    %128 = arith.mulf %119, %127 : vector<8x128xf32>
    %129 = arith.addf %126, %128 : vector<8x128xf32>
    %130 = math.tanh %129 : vector<8x128xf32>
    %cst_61 = arith.constant 1.000000e+00 : f32
    %131 = vector.broadcast %cst_61 : f32 to vector<8x128xf32>
    %132 = arith.subf %131, %125 : vector<8x128xf32>
    %133 = arith.mulf %132, %130 : vector<8x128xf32>
    %134 = vector.extract_strided_slice %108 {offsets = [0, 128], sizes = [8, 128], strides = [1, 1]} : vector<8x256xf32> to vector<8x128xf32>
    %135 = arith.mulf %125, %134 : vector<8x128xf32>
    %136 = arith.addf %133, %135 : vector<8x128xf32>
    %c0_62 = arith.constant 0 : index
    %c128_63 = arith.constant 128 : index
    %137 = vector.load %arg11[%c0_62, %c128_63] : memref<8x256xf32, #tpu.memory_space<vmem>>, vector<8x128xf32>
    tpu.vector_store %arg11[%c0_62, %c128_63], %136 {strides = array<i32>} : memref<8x256xf32, #tpu.memory_space<vmem>>, vector<8x128xf32>,
    %c4_i32 = arith.constant 4 : i32
    %138 = arith.index_cast %c4_i32 : i32 to index
    %c0_64 = arith.constant 0 : index
    %c0_65 = arith.constant 0 : index
    %139 = vector.load %arg1[%138, %c0_64, %c0_65] : memref<8x8x128xf32, #tpu.memory_space<vmem>>, vector<1x8x128xf32>
    %140 = vector.shape_cast %139 : vector<1x8x128xf32> to vector<8x128xf32>
    %c0_66 = arith.constant 0 : index
    %c0_67 = arith.constant 0 : index
    %141 = vector.load %arg11[%c0_66, %c0_67] : memref<8x256xf32, #tpu.memory_space<vmem>>, vector<8x128xf32>
    tpu.vector_store %arg11[%c0_66, %c0_67], %140 {strides = array<i32>} : memref<8x256xf32, #tpu.memory_space<vmem>>, vector<8x128xf32>,
    %c0_68 = arith.constant 0 : index
    %c0_69 = arith.constant 0 : index
    %142 = vector.load %arg11[%c0_68, %c0_69] : memref<8x256xf32, #tpu.memory_space<vmem>>, vector<8x256xf32>
    %c0_70 = arith.constant 0 : index
    %c0_71 = arith.constant 0 : index
    %143 = vector.load %arg3[%c0_70, %c0_71] : memref<256x512xf32, #tpu.memory_space<vmem>>, vector<256x512xf32>
    %cst_72 = arith.constant dense<0.000000e+00> : vector<8x512xf32>
    %144 = tpu.matmul %142, %143, %cst_72 {dimension_numbers = #tpu.dot_dimension_numbers<[1], [0], [0], [1], [0, 0, 1, 1], [], []>} : vector<8x256xf32>, vector<256x512xf32>, vector<8x512xf32> -> vector<8x512xf32>
    %c0_73 = arith.constant 0 : index
    %c0_74 = arith.constant 0 : index
    %145 = vector.load %arg4[%c0_73, %c0_74] : memref<1x512xf32, #tpu.memory_space<vmem>>, vector<1x512xf32>
    %146 = vector.broadcast %145 : vector<1x512xf32> to vector<8x512xf32>
    %147 = arith.addf %144, %146 : vector<8x512xf32>
    %148 = vector.extract_strided_slice %147 {offsets = [0, 0], sizes = [8, 128], strides = [1, 1]} : vector<8x512xf32> to vector<8x128xf32>
    %149 = arith.negf %148 : vector<8x128xf32>
    %150 = math.exp %149 : vector<8x128xf32>
    %cst_75 = arith.constant 1.000000e+00 : f32
    %151 = vector.broadcast %cst_75 : f32 to vector<8x128xf32>
    %152 = arith.addf %151, %150 : vector<8x128xf32>
    %153 = arith.divf %151, %152 : vector<8x128xf32>
    %154 = vector.extract_strided_slice %147 {offsets = [0, 128], sizes = [8, 128], strides = [1, 1]} : vector<8x512xf32> to vector<8x128xf32>
    %155 = arith.negf %154 : vector<8x128xf32>
    %156 = math.exp %155 : vector<8x128xf32>
    %cst_76 = arith.constant 1.000000e+00 : f32
    %157 = vector.broadcast %cst_76 : f32 to vector<8x128xf32>
    %158 = arith.addf %157, %156 : vector<8x128xf32>
    %159 = arith.divf %157, %158 : vector<8x128xf32>
    %160 = vector.extract_strided_slice %147 {offsets = [0, 256], sizes = [8, 128], strides = [1, 1]} : vector<8x512xf32> to vector<8x128xf32>
    %161 = vector.extract_strided_slice %147 {offsets = [0, 384], sizes = [8, 128], strides = [1, 1]} : vector<8x512xf32> to vector<8x128xf32>
    %162 = arith.mulf %153, %161 : vector<8x128xf32>
    %163 = arith.addf %160, %162 : vector<8x128xf32>
    %164 = math.tanh %163 : vector<8x128xf32>
    %cst_77 = arith.constant 1.000000e+00 : f32
    %165 = vector.broadcast %cst_77 : f32 to vector<8x128xf32>
    %166 = arith.subf %165, %159 : vector<8x128xf32>
    %167 = arith.mulf %166, %164 : vector<8x128xf32>
    %168 = vector.extract_strided_slice %142 {offsets = [0, 128], sizes = [8, 128], strides = [1, 1]} : vector<8x256xf32> to vector<8x128xf32>
    %169 = arith.mulf %159, %168 : vector<8x128xf32>
    %170 = arith.addf %167, %169 : vector<8x128xf32>
    %c0_78 = arith.constant 0 : index
    %c128_79 = arith.constant 128 : index
    %171 = vector.load %arg11[%c0_78, %c128_79] : memref<8x256xf32, #tpu.memory_space<vmem>>, vector<8x128xf32>
    tpu.vector_store %arg11[%c0_78, %c128_79], %170 {strides = array<i32>} : memref<8x256xf32, #tpu.memory_space<vmem>>, vector<8x128xf32>,
    %c5_i32 = arith.constant 5 : i32
    %172 = arith.index_cast %c5_i32 : i32 to index
    %c0_80 = arith.constant 0 : index
    %c0_81 = arith.constant 0 : index
    %173 = vector.load %arg1[%172, %c0_80, %c0_81] : memref<8x8x128xf32, #tpu.memory_space<vmem>>, vector<1x8x128xf32>
    %174 = vector.shape_cast %173 : vector<1x8x128xf32> to vector<8x128xf32>
    %c0_82 = arith.constant 0 : index
    %c0_83 = arith.constant 0 : index
    %175 = vector.load %arg11[%c0_82, %c0_83] : memref<8x256xf32, #tpu.memory_space<vmem>>, vector<8x128xf32>
    tpu.vector_store %arg11[%c0_82, %c0_83], %174 {strides = array<i32>} : memref<8x256xf32, #tpu.memory_space<vmem>>, vector<8x128xf32>,
    %c0_84 = arith.constant 0 : index
    %c0_85 = arith.constant 0 : index
    %176 = vector.load %arg11[%c0_84, %c0_85] : memref<8x256xf32, #tpu.memory_space<vmem>>, vector<8x256xf32>
    %c0_86 = arith.constant 0 : index
    %c0_87 = arith.constant 0 : index
    %177 = vector.load %arg3[%c0_86, %c0_87] : memref<256x512xf32, #tpu.memory_space<vmem>>, vector<256x512xf32>
    %cst_88 = arith.constant dense<0.000000e+00> : vector<8x512xf32>
    %178 = tpu.matmul %176, %177, %cst_88 {dimension_numbers = #tpu.dot_dimension_numbers<[1], [0], [0], [1], [0, 0, 1, 1], [], []>} : vector<8x256xf32>, vector<256x512xf32>, vector<8x512xf32> -> vector<8x512xf32>
    %c0_89 = arith.constant 0 : index
    %c0_90 = arith.constant 0 : index
    %179 = vector.load %arg4[%c0_89, %c0_90] : memref<1x512xf32, #tpu.memory_space<vmem>>, vector<1x512xf32>
    %180 = vector.broadcast %179 : vector<1x512xf32> to vector<8x512xf32>
    %181 = arith.addf %178, %180 : vector<8x512xf32>
    %182 = vector.extract_strided_slice %181 {offsets = [0, 0], sizes = [8, 128], strides = [1, 1]} : vector<8x512xf32> to vector<8x128xf32>
    %183 = arith.negf %182 : vector<8x128xf32>
    %184 = math.exp %183 : vector<8x128xf32>
    %cst_91 = arith.constant 1.000000e+00 : f32
    %185 = vector.broadcast %cst_91 : f32 to vector<8x128xf32>
    %186 = arith.addf %185, %184 : vector<8x128xf32>
    %187 = arith.divf %185, %186 : vector<8x128xf32>
    %188 = vector.extract_strided_slice %181 {offsets = [0, 128], sizes = [8, 128], strides = [1, 1]} : vector<8x512xf32> to vector<8x128xf32>
    %189 = arith.negf %188 : vector<8x128xf32>
    %190 = math.exp %189 : vector<8x128xf32>
    %cst_92 = arith.constant 1.000000e+00 : f32
    %191 = vector.broadcast %cst_92 : f32 to vector<8x128xf32>
    %192 = arith.addf %191, %190 : vector<8x128xf32>
    %193 = arith.divf %191, %192 : vector<8x128xf32>
    %194 = vector.extract_strided_slice %181 {offsets = [0, 256], sizes = [8, 128], strides = [1, 1]} : vector<8x512xf32> to vector<8x128xf32>
    %195 = vector.extract_strided_slice %181 {offsets = [0, 384], sizes = [8, 128], strides = [1, 1]} : vector<8x512xf32> to vector<8x128xf32>
    %196 = arith.mulf %187, %195 : vector<8x128xf32>
    %197 = arith.addf %194, %196 : vector<8x128xf32>
    %198 = math.tanh %197 : vector<8x128xf32>
    %cst_93 = arith.constant 1.000000e+00 : f32
    %199 = vector.broadcast %cst_93 : f32 to vector<8x128xf32>
    %200 = arith.subf %199, %193 : vector<8x128xf32>
    %201 = arith.mulf %200, %198 : vector<8x128xf32>
    %202 = vector.extract_strided_slice %176 {offsets = [0, 128], sizes = [8, 128], strides = [1, 1]} : vector<8x256xf32> to vector<8x128xf32>
    %203 = arith.mulf %193, %202 : vector<8x128xf32>
    %204 = arith.addf %201, %203 : vector<8x128xf32>
    %c0_94 = arith.constant 0 : index
    %c128_95 = arith.constant 128 : index
    %205 = vector.load %arg11[%c0_94, %c128_95] : memref<8x256xf32, #tpu.memory_space<vmem>>, vector<8x128xf32>
    tpu.vector_store %arg11[%c0_94, %c128_95], %204 {strides = array<i32>} : memref<8x256xf32, #tpu.memory_space<vmem>>, vector<8x128xf32>,
    %c6_i32 = arith.constant 6 : i32
    %206 = arith.index_cast %c6_i32 : i32 to index
    %c0_96 = arith.constant 0 : index
    %c0_97 = arith.constant 0 : index
    %207 = vector.load %arg1[%206, %c0_96, %c0_97] : memref<8x8x128xf32, #tpu.memory_space<vmem>>, vector<1x8x128xf32>
    %208 = vector.shape_cast %207 : vector<1x8x128xf32> to vector<8x128xf32>
    %c0_98 = arith.constant 0 : index
    %c0_99 = arith.constant 0 : index
    %209 = vector.load %arg11[%c0_98, %c0_99] : memref<8x256xf32, #tpu.memory_space<vmem>>, vector<8x128xf32>
    tpu.vector_store %arg11[%c0_98, %c0_99], %208 {strides = array<i32>} : memref<8x256xf32, #tpu.memory_space<vmem>>, vector<8x128xf32>,
    %c0_100 = arith.constant 0 : index
    %c0_101 = arith.constant 0 : index
    %210 = vector.load %arg11[%c0_100, %c0_101] : memref<8x256xf32, #tpu.memory_space<vmem>>, vector<8x256xf32>
    %c0_102 = arith.constant 0 : index
    %c0_103 = arith.constant 0 : index
    %211 = vector.load %arg3[%c0_102, %c0_103] : memref<256x512xf32, #tpu.memory_space<vmem>>, vector<256x512xf32>
    %cst_104 = arith.constant dense<0.000000e+00> : vector<8x512xf32>
    %212 = tpu.matmul %210, %211, %cst_104 {dimension_numbers = #tpu.dot_dimension_numbers<[1], [0], [0], [1], [0, 0, 1, 1], [], []>} : vector<8x256xf32>, vector<256x512xf32>, vector<8x512xf32> -> vector<8x512xf32>
    %c0_105 = arith.constant 0 : index
    %c0_106 = arith.constant 0 : index
    %213 = vector.load %arg4[%c0_105, %c0_106] : memref<1x512xf32, #tpu.memory_space<vmem>>, vector<1x512xf32>
    %214 = vector.broadcast %213 : vector<1x512xf32> to vector<8x512xf32>
    %215 = arith.addf %212, %214 : vector<8x512xf32>
    %216 = vector.extract_strided_slice %215 {offsets = [0, 0], sizes = [8, 128], strides = [1, 1]} : vector<8x512xf32> to vector<8x128xf32>
    %217 = arith.negf %216 : vector<8x128xf32>
    %218 = math.exp %217 : vector<8x128xf32>
    %cst_107 = arith.constant 1.000000e+00 : f32
    %219 = vector.broadcast %cst_107 : f32 to vector<8x128xf32>
    %220 = arith.addf %219, %218 : vector<8x128xf32>
    %221 = arith.divf %219, %220 : vector<8x128xf32>
    %222 = vector.extract_strided_slice %215 {offsets = [0, 128], sizes = [8, 128], strides = [1, 1]} : vector<8x512xf32> to vector<8x128xf32>
    %223 = arith.negf %222 : vector<8x128xf32>
    %224 = math.exp %223 : vector<8x128xf32>
    %cst_108 = arith.constant 1.000000e+00 : f32
    %225 = vector.broadcast %cst_108 : f32 to vector<8x128xf32>
    %226 = arith.addf %225, %224 : vector<8x128xf32>
    %227 = arith.divf %225, %226 : vector<8x128xf32>
    %228 = vector.extract_strided_slice %215 {offsets = [0, 256], sizes = [8, 128], strides = [1, 1]} : vector<8x512xf32> to vector<8x128xf32>
    %229 = vector.extract_strided_slice %215 {offsets = [0, 384], sizes = [8, 128], strides = [1, 1]} : vector<8x512xf32> to vector<8x128xf32>
    %230 = arith.mulf %221, %229 : vector<8x128xf32>
    %231 = arith.addf %228, %230 : vector<8x128xf32>
    %232 = math.tanh %231 : vector<8x128xf32>
    %cst_109 = arith.constant 1.000000e+00 : f32
    %233 = vector.broadcast %cst_109 : f32 to vector<8x128xf32>
    %234 = arith.subf %233, %227 : vector<8x128xf32>
    %235 = arith.mulf %234, %232 : vector<8x128xf32>
    %236 = vector.extract_strided_slice %210 {offsets = [0, 128], sizes = [8, 128], strides = [1, 1]} : vector<8x256xf32> to vector<8x128xf32>
    %237 = arith.mulf %227, %236 : vector<8x128xf32>
    %238 = arith.addf %235, %237 : vector<8x128xf32>
    %c0_110 = arith.constant 0 : index
    %c128_111 = arith.constant 128 : index
    %239 = vector.load %arg11[%c0_110, %c128_111] : memref<8x256xf32, #tpu.memory_space<vmem>>, vector<8x128xf32>
    tpu.vector_store %arg11[%c0_110, %c128_111], %238 {strides = array<i32>} : memref<8x256xf32, #tpu.memory_space<vmem>>, vector<8x128xf32>,
    %c7_i32 = arith.constant 7 : i32
    %240 = arith.index_cast %c7_i32 : i32 to index
    %c0_112 = arith.constant 0 : index
    %c0_113 = arith.constant 0 : index
    %241 = vector.load %arg1[%240, %c0_112, %c0_113] : memref<8x8x128xf32, #tpu.memory_space<vmem>>, vector<1x8x128xf32>
    %242 = vector.shape_cast %241 : vector<1x8x128xf32> to vector<8x128xf32>
    %c0_114 = arith.constant 0 : index
    %c0_115 = arith.constant 0 : index
    %243 = vector.load %arg11[%c0_114, %c0_115] : memref<8x256xf32, #tpu.memory_space<vmem>>, vector<8x128xf32>
    tpu.vector_store %arg11[%c0_114, %c0_115], %242 {strides = array<i32>} : memref<8x256xf32, #tpu.memory_space<vmem>>, vector<8x128xf32>,
    %c0_116 = arith.constant 0 : index
    %c0_117 = arith.constant 0 : index
    %244 = vector.load %arg11[%c0_116, %c0_117] : memref<8x256xf32, #tpu.memory_space<vmem>>, vector<8x256xf32>
    %c0_118 = arith.constant 0 : index
    %c0_119 = arith.constant 0 : index
    %245 = vector.load %arg3[%c0_118, %c0_119] : memref<256x512xf32, #tpu.memory_space<vmem>>, vector<256x512xf32>
    %cst_120 = arith.constant dense<0.000000e+00> : vector<8x512xf32>
    %246 = tpu.matmul %244, %245, %cst_120 {dimension_numbers = #tpu.dot_dimension_numbers<[1], [0], [0], [1], [0, 0, 1, 1], [], []>} : vector<8x256xf32>, vector<256x512xf32>, vector<8x512xf32> -> vector<8x512xf32>
    %c0_121 = arith.constant 0 : index
    %c0_122 = arith.constant 0 : index
    %247 = vector.load %arg4[%c0_121, %c0_122] : memref<1x512xf32, #tpu.memory_space<vmem>>, vector<1x512xf32>
    %248 = vector.broadcast %247 : vector<1x512xf32> to vector<8x512xf32>
    %249 = arith.addf %246, %248 : vector<8x512xf32>
    %250 = vector.extract_strided_slice %249 {offsets = [0, 0], sizes = [8, 128], strides = [1, 1]} : vector<8x512xf32> to vector<8x128xf32>
    %251 = arith.negf %250 : vector<8x128xf32>
    %252 = math.exp %251 : vector<8x128xf32>
    %cst_123 = arith.constant 1.000000e+00 : f32
    %253 = vector.broadcast %cst_123 : f32 to vector<8x128xf32>
    %254 = arith.addf %253, %252 : vector<8x128xf32>
    %255 = arith.divf %253, %254 : vector<8x128xf32>
    %256 = vector.extract_strided_slice %249 {offsets = [0, 128], sizes = [8, 128], strides = [1, 1]} : vector<8x512xf32> to vector<8x128xf32>
    %257 = arith.negf %256 : vector<8x128xf32>
    %258 = math.exp %257 : vector<8x128xf32>
    %cst_124 = arith.constant 1.000000e+00 : f32
    %259 = vector.broadcast %cst_124 : f32 to vector<8x128xf32>
    %260 = arith.addf %259, %258 : vector<8x128xf32>
    %261 = arith.divf %259, %260 : vector<8x128xf32>
    %262 = vector.extract_strided_slice %249 {offsets = [0, 256], sizes = [8, 128], strides = [1, 1]} : vector<8x512xf32> to vector<8x128xf32>
    %263 = vector.extract_strided_slice %249 {offsets = [0, 384], sizes = [8, 128], strides = [1, 1]} : vector<8x512xf32> to vector<8x128xf32>
    %264 = arith.mulf %255, %263 : vector<8x128xf32>
    %265 = arith.addf %262, %264 : vector<8x128xf32>
    %266 = math.tanh %265 : vector<8x128xf32>
    %cst_125 = arith.constant 1.000000e+00 : f32
    %267 = vector.broadcast %cst_125 : f32 to vector<8x128xf32>
    %268 = arith.subf %267, %261 : vector<8x128xf32>
    %269 = arith.mulf %268, %266 : vector<8x128xf32>
    %270 = vector.extract_strided_slice %244 {offsets = [0, 128], sizes = [8, 128], strides = [1, 1]} : vector<8x256xf32> to vector<8x128xf32>
    %271 = arith.mulf %261, %270 : vector<8x128xf32>
    %272 = arith.addf %269, %271 : vector<8x128xf32>
    %c0_126 = arith.constant 0 : index
    %c128_127 = arith.constant 128 : index
    %273 = vector.load %arg11[%c0_126, %c128_127] : memref<8x256xf32, #tpu.memory_space<vmem>>, vector<8x128xf32>
    tpu.vector_store %arg11[%c0_126, %c128_127], %272 {strides = array<i32>} : memref<8x256xf32, #tpu.memory_space<vmem>>, vector<8x128xf32>,
    %c8_i32 = arith.constant 8 : i32
    %c0_128 = arith.constant 0 : index
    %c0_129 = arith.constant 0 : index
    %274 = vector.load %arg2[%c0_128, %c0_129] : memref<8x128xf32, #tpu.memory_space<vmem>>, vector<8x128xf32>
    %c0_130 = arith.constant 0 : index
    %c0_131 = arith.constant 0 : index
    %275 = vector.load %arg11[%c0_130, %c0_131] : memref<8x256xf32, #tpu.memory_space<vmem>>, vector<8x128xf32>
    tpu.vector_store %arg11[%c0_130, %c0_131], %274 {strides = array<i32>} : memref<8x256xf32, #tpu.memory_space<vmem>>, vector<8x128xf32>,
    %276 = tpu.iota {dimensions = array<i32: 1>} : vector<8x128xi32>
    %c0_132 = arith.constant 0 : index
    %c0_133 = arith.constant 0 : index
    %277 = vector.load %arg11[%c0_132, %c0_133] : memref<8x256xf32, #tpu.memory_space<vmem>>, vector<8x256xf32>
    %c0_134 = arith.constant 0 : index
    %c0_135 = arith.constant 0 : index
    %278 = vector.load %arg5[%c0_134, %c0_135] : memref<256x512xf32, #tpu.memory_space<vmem>>, vector<256x512xf32>
    %cst_136 = arith.constant dense<0.000000e+00> : vector<8x512xf32>
    %279 = tpu.matmul %277, %278, %cst_136 {dimension_numbers = #tpu.dot_dimension_numbers<[1], [0], [0], [1], [0, 0, 1, 1], [], []>} : vector<8x256xf32>, vector<256x512xf32>, vector<8x512xf32> -> vector<8x512xf32>
    %c0_137 = arith.constant 0 : index
    %c0_138 = arith.constant 0 : index
    %280 = vector.load %arg6[%c0_137, %c0_138] : memref<1x512xf32, #tpu.memory_space<vmem>>, vector<1x512xf32>
    %281 = vector.broadcast %280 : vector<1x512xf32> to vector<8x512xf32>
    %282 = arith.addf %279, %281 : vector<8x512xf32>
    %283 = vector.extract_strided_slice %282 {offsets = [0, 0], sizes = [8, 128], strides = [1, 1]} : vector<8x512xf32> to vector<8x128xf32>
    %284 = arith.negf %283 : vector<8x128xf32>
    %285 = math.exp %284 : vector<8x128xf32>
    %cst_139 = arith.constant 1.000000e+00 : f32
    %286 = vector.broadcast %cst_139 : f32 to vector<8x128xf32>
    %287 = arith.addf %286, %285 : vector<8x128xf32>
    %288 = arith.divf %286, %287 : vector<8x128xf32>
    %289 = vector.extract_strided_slice %282 {offsets = [0, 128], sizes = [8, 128], strides = [1, 1]} : vector<8x512xf32> to vector<8x128xf32>
    %290 = arith.negf %289 : vector<8x128xf32>
    %291 = math.exp %290 : vector<8x128xf32>
    %cst_140 = arith.constant 1.000000e+00 : f32
    %292 = vector.broadcast %cst_140 : f32 to vector<8x128xf32>
    %293 = arith.addf %292, %291 : vector<8x128xf32>
    %294 = arith.divf %292, %293 : vector<8x128xf32>
    %295 = vector.extract_strided_slice %282 {offsets = [0, 256], sizes = [8, 128], strides = [1, 1]} : vector<8x512xf32> to vector<8x128xf32>
    %296 = vector.extract_strided_slice %282 {offsets = [0, 384], sizes = [8, 128], strides = [1, 1]} : vector<8x512xf32> to vector<8x128xf32>
    %297 = arith.mulf %288, %296 : vector<8x128xf32>
    %298 = arith.addf %295, %297 : vector<8x128xf32>
    %299 = math.tanh %298 : vector<8x128xf32>
    %cst_141 = arith.constant 1.000000e+00 : f32
    %300 = vector.broadcast %cst_141 : f32 to vector<8x128xf32>
    %301 = arith.subf %300, %294 : vector<8x128xf32>
    %302 = arith.mulf %301, %299 : vector<8x128xf32>
    %303 = vector.extract_strided_slice %277 {offsets = [0, 128], sizes = [8, 128], strides = [1, 1]} : vector<8x256xf32> to vector<8x128xf32>
    %304 = arith.mulf %294, %303 : vector<8x128xf32>
    %305 = arith.addf %302, %304 : vector<8x128xf32>
    %c0_142 = arith.constant 0 : index
    %c128_143 = arith.constant 128 : index
    %306 = vector.load %arg11[%c0_142, %c128_143] : memref<8x256xf32, #tpu.memory_space<vmem>>, vector<8x128xf32>
    tpu.vector_store %arg11[%c0_142, %c128_143], %305 {strides = array<i32>} : memref<8x256xf32, #tpu.memory_space<vmem>>, vector<8x128xf32>,
    %c0_144 = arith.constant 0 : index
    %c0_145 = arith.constant 0 : index
    %307 = vector.load %arg7[%c0_144, %c0_145] : memref<128x128xf32, #tpu.memory_space<vmem>>, vector<128x128xf32>
    %cst_146 = arith.constant dense<0.000000e+00> : vector<8x128xf32>
    %308 = tpu.matmul %305, %307, %cst_146 {dimension_numbers = #tpu.dot_dimension_numbers<[1], [0], [0], [1], [0, 0, 1, 1], [], []>} : vector<8x128xf32>, vector<128x128xf32>, vector<8x128xf32> -> vector<8x128xf32>
    %c0_147 = arith.constant 0 : index
    %c0_148 = arith.constant 0 : index
    %309 = vector.load %arg8[%c0_147, %c0_148] : memref<1x128xf32, #tpu.memory_space<vmem>>, vector<1x128xf32>
    %310 = vector.broadcast %309 : vector<1x128xf32> to vector<8x128xf32>
    %311 = arith.addf %308, %310 : vector<8x128xf32>
    %312 = vector.shape_cast %311 : vector<8x128xf32> to vector<8x1x128xf32>
    %c0_149 = arith.constant 0 : index
    %c0_150 = arith.constant 0 : index
    %c0_151 = arith.constant 0 : index
    %313 = vector.load %arg10[%c0_149, %c0_150, %c0_151] : memref<8x6x128xf32, #tpu.memory_space<vmem>>, vector<8x1x128xf32>
    tpu.vector_store %arg10[%c0_149, %c0_150, %c0_151], %312 {strides = array<i32>} : memref<8x6x128xf32, #tpu.memory_space<vmem>>, vector<8x1x128xf32>,
    %c16_i32 = arith.constant 16 : i32
    %314 = vector.broadcast %c16_i32 : i32 to vector<8x128xi32>
    %315 = arith.cmpi slt, %276, %314 : vector<8x128xi32>
    %cst_152 = arith.constant 0xFF800000 : f32
    %316 = vector.broadcast %cst_152 : f32 to vector<8x128xf32>
    %317 = arith.select %315, %311, %316 : vector<8x128xi1>, vector<8x128xf32>
    %cst_153 = arith.constant dense<0xFF800000> : vector<8xf32>
    %318 = vector.multi_reduction <maximumf>, %317, %cst_153 [1] : vector<8x128xf32> to vector<8xf32>
    %319 = vector.shape_cast %318 : vector<8xf32> to vector<8x1xf32>
    %320 = vector.broadcast %319 : vector<8x1xf32> to vector<8x128xf32>
    %321 = arith.cmpf oeq, %317, %320 : vector<8x128xf32>
    %c128_i32 = arith.constant 128 : i32
    %322 = vector.broadcast %c128_i32 : i32 to vector<8x128xi32>
    %323 = arith.select %321, %276, %322 : vector<8x128xi1>, vector<8x128xi32>
    %cst_154 = arith.constant dense<2147483647> : vector<8xi32>
    %324 = vector.multi_reduction <minsi>, %323, %cst_154 [1] : vector<8x128xi32> to vector<8xi32>
    %325 = vector.shape_cast %324 : vector<8xi32> to vector<8x1xi32>
    %326 = vector.broadcast %325 : vector<8x1xi32> to vector<8x128xi32>
    %327 = arith.cmpi eq, %276, %326 : vector<8x128xi32>
    %328 = arith.extui %327 : vector<8x128xi1> to vector<8x128xi32>
    %329 = arith.sitofp %328 : vector<8x128xi32> to vector<8x128xf32>
    %c0_155 = arith.constant 0 : index
    %c0_156 = arith.constant 0 : index
    %330 = vector.load %arg9[%c0_155, %c0_156] : memref<128x128xf32, #tpu.memory_space<vmem>>, vector<128x128xf32>
    %cst_157 = arith.constant dense<0.000000e+00> : vector<8x128xf32>
    %331 = tpu.matmul %329, %330, %cst_157 {dimension_numbers = #tpu.dot_dimension_numbers<[1], [0], [0], [1], [0, 0, 1, 1], [], []>} : vector<8x128xf32>, vector<128x128xf32>, vector<8x128xf32> -> vector<8x128xf32>
    %c0_158 = arith.constant 0 : index
    %c0_159 = arith.constant 0 : index
    %332 = vector.load %arg11[%c0_158, %c0_159] : memref<8x256xf32, #tpu.memory_space<vmem>>, vector<8x128xf32>
    tpu.vector_store %arg11[%c0_158, %c0_159], %331 {strides = array<i32>} : memref<8x256xf32, #tpu.memory_space<vmem>>, vector<8x128xf32>,
    %c0_160 = arith.constant 0 : index
    %c0_161 = arith.constant 0 : index
    %333 = vector.load %arg11[%c0_160, %c0_161] : memref<8x256xf32, #tpu.memory_space<vmem>>, vector<8x256xf32>
    %c0_162 = arith.constant 0 : index
    %c0_163 = arith.constant 0 : index
    %334 = vector.load %arg5[%c0_162, %c0_163] : memref<256x512xf32, #tpu.memory_space<vmem>>, vector<256x512xf32>
    %cst_164 = arith.constant dense<0.000000e+00> : vector<8x512xf32>
    %335 = tpu.matmul %333, %334, %cst_164 {dimension_numbers = #tpu.dot_dimension_numbers<[1], [0], [0], [1], [0, 0, 1, 1], [], []>} : vector<8x256xf32>, vector<256x512xf32>, vector<8x512xf32> -> vector<8x512xf32>
    %c0_165 = arith.constant 0 : index
    %c0_166 = arith.constant 0 : index
    %336 = vector.load %arg6[%c0_165, %c0_166] : memref<1x512xf32, #tpu.memory_space<vmem>>, vector<1x512xf32>
    %337 = vector.broadcast %336 : vector<1x512xf32> to vector<8x512xf32>
    %338 = arith.addf %335, %337 : vector<8x512xf32>
    %339 = vector.extract_strided_slice %338 {offsets = [0, 0], sizes = [8, 128], strides = [1, 1]} : vector<8x512xf32> to vector<8x128xf32>
    %340 = arith.negf %339 : vector<8x128xf32>
    %341 = math.exp %340 : vector<8x128xf32>
    %cst_167 = arith.constant 1.000000e+00 : f32
    %342 = vector.broadcast %cst_167 : f32 to vector<8x128xf32>
    %343 = arith.addf %342, %341 : vector<8x128xf32>
    %344 = arith.divf %342, %343 : vector<8x128xf32>
    %345 = vector.extract_strided_slice %338 {offsets = [0, 128], sizes = [8, 128], strides = [1, 1]} : vector<8x512xf32> to vector<8x128xf32>
    %346 = arith.negf %345 : vector<8x128xf32>
    %347 = math.exp %346 : vector<8x128xf32>
    %cst_168 = arith.constant 1.000000e+00 : f32
    %348 = vector.broadcast %cst_168 : f32 to vector<8x128xf32>
    %349 = arith.addf %348, %347 : vector<8x128xf32>
    %350 = arith.divf %348, %349 : vector<8x128xf32>
    %351 = vector.extract_strided_slice %338 {offsets = [0, 256], sizes = [8, 128], strides = [1, 1]} : vector<8x512xf32> to vector<8x128xf32>
    %352 = vector.extract_strided_slice %338 {offsets = [0, 384], sizes = [8, 128], strides = [1, 1]} : vector<8x512xf32> to vector<8x128xf32>
    %353 = arith.mulf %344, %352 : vector<8x128xf32>
    %354 = arith.addf %351, %353 : vector<8x128xf32>
    %355 = math.tanh %354 : vector<8x128xf32>
    %cst_169 = arith.constant 1.000000e+00 : f32
    %356 = vector.broadcast %cst_169 : f32 to vector<8x128xf32>
    %357 = arith.subf %356, %350 : vector<8x128xf32>
    %358 = arith.mulf %357, %355 : vector<8x128xf32>
    %359 = vector.extract_strided_slice %333 {offsets = [0, 128], sizes = [8, 128], strides = [1, 1]} : vector<8x256xf32> to vector<8x128xf32>
    %360 = arith.mulf %350, %359 : vector<8x128xf32>
    %361 = arith.addf %358, %360 : vector<8x128xf32>
    %c0_170 = arith.constant 0 : index
    %c128_171 = arith.constant 128 : index
    %362 = vector.load %arg11[%c0_170, %c128_171] : memref<8x256xf32, #tpu.memory_space<vmem>>, vector<8x128xf32>
    tpu.vector_store %arg11[%c0_170, %c128_171], %361 {strides = array<i32>} : memref<8x256xf32, #tpu.memory_space<vmem>>, vector<8x128xf32>,
    %c0_172 = arith.constant 0 : index
    %c0_173 = arith.constant 0 : index
    %363 = vector.load %arg7[%c0_172, %c0_173] : memref<128x128xf32, #tpu.memory_space<vmem>>, vector<128x128xf32>
    %cst_174 = arith.constant dense<0.000000e+00> : vector<8x128xf32>
    %364 = tpu.matmul %361, %363, %cst_174 {dimension_numbers = #tpu.dot_dimension_numbers<[1], [0], [0], [1], [0, 0, 1, 1], [], []>} : vector<8x128xf32>, vector<128x128xf32>, vector<8x128xf32> -> vector<8x128xf32>
    %c0_175 = arith.constant 0 : index
    %c0_176 = arith.constant 0 : index
    %365 = vector.load %arg8[%c0_175, %c0_176] : memref<1x128xf32, #tpu.memory_space<vmem>>, vector<1x128xf32>
    %366 = vector.broadcast %365 : vector<1x128xf32> to vector<8x128xf32>
    %367 = arith.addf %364, %366 : vector<8x128xf32>
    %368 = vector.shape_cast %367 : vector<8x128xf32> to vector<8x1x128xf32>
    %c0_177 = arith.constant 0 : index
    %c1 = arith.constant 1 : index
    %c0_178 = arith.constant 0 : index
    %369 = vector.load %arg10[%c0_177, %c1, %c0_178] : memref<8x6x128xf32, #tpu.memory_space<vmem>>, vector<8x1x128xf32>
    tpu.vector_store %arg10[%c0_177, %c1, %c0_178], %368 {strides = array<i32>} : memref<8x6x128xf32, #tpu.memory_space<vmem>>, vector<8x1x128xf32>,
    %c16_i32_179 = arith.constant 16 : i32
    %370 = vector.broadcast %c16_i32_179 : i32 to vector<8x128xi32>
    %371 = arith.cmpi slt, %276, %370 : vector<8x128xi32>
    %cst_180 = arith.constant 0xFF800000 : f32
    %372 = vector.broadcast %cst_180 : f32 to vector<8x128xf32>
    %373 = arith.select %371, %367, %372 : vector<8x128xi1>, vector<8x128xf32>
    %cst_181 = arith.constant dense<0xFF800000> : vector<8xf32>
    %374 = vector.multi_reduction <maximumf>, %373, %cst_181 [1] : vector<8x128xf32> to vector<8xf32>
    %375 = vector.shape_cast %374 : vector<8xf32> to vector<8x1xf32>
    %376 = vector.broadcast %375 : vector<8x1xf32> to vector<8x128xf32>
    %377 = arith.cmpf oeq, %373, %376 : vector<8x128xf32>
    %c128_i32_182 = arith.constant 128 : i32
    %378 = vector.broadcast %c128_i32_182 : i32 to vector<8x128xi32>
    %379 = arith.select %377, %276, %378 : vector<8x128xi1>, vector<8x128xi32>
    %cst_183 = arith.constant dense<2147483647> : vector<8xi32>
    %380 = vector.multi_reduction <minsi>, %379, %cst_183 [1] : vector<8x128xi32> to vector<8xi32>
    %381 = vector.shape_cast %380 : vector<8xi32> to vector<8x1xi32>
    %382 = vector.broadcast %381 : vector<8x1xi32> to vector<8x128xi32>
    %383 = arith.cmpi eq, %276, %382 : vector<8x128xi32>
    %384 = arith.extui %383 : vector<8x128xi1> to vector<8x128xi32>
    %385 = arith.sitofp %384 : vector<8x128xi32> to vector<8x128xf32>
    %c0_184 = arith.constant 0 : index
    %c0_185 = arith.constant 0 : index
    %386 = vector.load %arg9[%c0_184, %c0_185] : memref<128x128xf32, #tpu.memory_space<vmem>>, vector<128x128xf32>
    %cst_186 = arith.constant dense<0.000000e+00> : vector<8x128xf32>
    %387 = tpu.matmul %385, %386, %cst_186 {dimension_numbers = #tpu.dot_dimension_numbers<[1], [0], [0], [1], [0, 0, 1, 1], [], []>} : vector<8x128xf32>, vector<128x128xf32>, vector<8x128xf32> -> vector<8x128xf32>
    %c0_187 = arith.constant 0 : index
    %c0_188 = arith.constant 0 : index
    %388 = vector.load %arg11[%c0_187, %c0_188] : memref<8x256xf32, #tpu.memory_space<vmem>>, vector<8x128xf32>
    tpu.vector_store %arg11[%c0_187, %c0_188], %387 {strides = array<i32>} : memref<8x256xf32, #tpu.memory_space<vmem>>, vector<8x128xf32>,
    %c0_189 = arith.constant 0 : index
    %c0_190 = arith.constant 0 : index
    %389 = vector.load %arg11[%c0_189, %c0_190] : memref<8x256xf32, #tpu.memory_space<vmem>>, vector<8x256xf32>
    %c0_191 = arith.constant 0 : index
    %c0_192 = arith.constant 0 : index
    %390 = vector.load %arg5[%c0_191, %c0_192] : memref<256x512xf32, #tpu.memory_space<vmem>>, vector<256x512xf32>
    %cst_193 = arith.constant dense<0.000000e+00> : vector<8x512xf32>
    %391 = tpu.matmul %389, %390, %cst_193 {dimension_numbers = #tpu.dot_dimension_numbers<[1], [0], [0], [1], [0, 0, 1, 1], [], []>} : vector<8x256xf32>, vector<256x512xf32>, vector<8x512xf32> -> vector<8x512xf32>
    %c0_194 = arith.constant 0 : index
    %c0_195 = arith.constant 0 : index
    %392 = vector.load %arg6[%c0_194, %c0_195] : memref<1x512xf32, #tpu.memory_space<vmem>>, vector<1x512xf32>
    %393 = vector.broadcast %392 : vector<1x512xf32> to vector<8x512xf32>
    %394 = arith.addf %391, %393 : vector<8x512xf32>
    %395 = vector.extract_strided_slice %394 {offsets = [0, 0], sizes = [8, 128], strides = [1, 1]} : vector<8x512xf32> to vector<8x128xf32>
    %396 = arith.negf %395 : vector<8x128xf32>
    %397 = math.exp %396 : vector<8x128xf32>
    %cst_196 = arith.constant 1.000000e+00 : f32
    %398 = vector.broadcast %cst_196 : f32 to vector<8x128xf32>
    %399 = arith.addf %398, %397 : vector<8x128xf32>
    %400 = arith.divf %398, %399 : vector<8x128xf32>
    %401 = vector.extract_strided_slice %394 {offsets = [0, 128], sizes = [8, 128], strides = [1, 1]} : vector<8x512xf32> to vector<8x128xf32>
    %402 = arith.negf %401 : vector<8x128xf32>
    %403 = math.exp %402 : vector<8x128xf32>
    %cst_197 = arith.constant 1.000000e+00 : f32
    %404 = vector.broadcast %cst_197 : f32 to vector<8x128xf32>
    %405 = arith.addf %404, %403 : vector<8x128xf32>
    %406 = arith.divf %404, %405 : vector<8x128xf32>
    %407 = vector.extract_strided_slice %394 {offsets = [0, 256], sizes = [8, 128], strides = [1, 1]} : vector<8x512xf32> to vector<8x128xf32>
    %408 = vector.extract_strided_slice %394 {offsets = [0, 384], sizes = [8, 128], strides = [1, 1]} : vector<8x512xf32> to vector<8x128xf32>
    %409 = arith.mulf %400, %408 : vector<8x128xf32>
    %410 = arith.addf %407, %409 : vector<8x128xf32>
    %411 = math.tanh %410 : vector<8x128xf32>
    %cst_198 = arith.constant 1.000000e+00 : f32
    %412 = vector.broadcast %cst_198 : f32 to vector<8x128xf32>
    %413 = arith.subf %412, %406 : vector<8x128xf32>
    %414 = arith.mulf %413, %411 : vector<8x128xf32>
    %415 = vector.extract_strided_slice %389 {offsets = [0, 128], sizes = [8, 128], strides = [1, 1]} : vector<8x256xf32> to vector<8x128xf32>
    %416 = arith.mulf %406, %415 : vector<8x128xf32>
    %417 = arith.addf %414, %416 : vector<8x128xf32>
    %c0_199 = arith.constant 0 : index
    %c128_200 = arith.constant 128 : index
    %418 = vector.load %arg11[%c0_199, %c128_200] : memref<8x256xf32, #tpu.memory_space<vmem>>, vector<8x128xf32>
    tpu.vector_store %arg11[%c0_199, %c128_200], %417 {strides = array<i32>} : memref<8x256xf32, #tpu.memory_space<vmem>>, vector<8x128xf32>,
    %c0_201 = arith.constant 0 : index
    %c0_202 = arith.constant 0 : index
    %419 = vector.load %arg7[%c0_201, %c0_202] : memref<128x128xf32, #tpu.memory_space<vmem>>, vector<128x128xf32>
    %cst_203 = arith.constant dense<0.000000e+00> : vector<8x128xf32>
    %420 = tpu.matmul %417, %419, %cst_203 {dimension_numbers = #tpu.dot_dimension_numbers<[1], [0], [0], [1], [0, 0, 1, 1], [], []>} : vector<8x128xf32>, vector<128x128xf32>, vector<8x128xf32> -> vector<8x128xf32>
    %c0_204 = arith.constant 0 : index
    %c0_205 = arith.constant 0 : index
    %421 = vector.load %arg8[%c0_204, %c0_205] : memref<1x128xf32, #tpu.memory_space<vmem>>, vector<1x128xf32>
    %422 = vector.broadcast %421 : vector<1x128xf32> to vector<8x128xf32>
    %423 = arith.addf %420, %422 : vector<8x128xf32>
    %424 = vector.shape_cast %423 : vector<8x128xf32> to vector<8x1x128xf32>
    %c0_206 = arith.constant 0 : index
    %c2 = arith.constant 2 : index
    %c0_207 = arith.constant 0 : index
    %425 = vector.load %arg10[%c0_206, %c2, %c0_207] : memref<8x6x128xf32, #tpu.memory_space<vmem>>, vector<8x1x128xf32>
    tpu.vector_store %arg10[%c0_206, %c2, %c0_207], %424 {strides = array<i32>} : memref<8x6x128xf32, #tpu.memory_space<vmem>>, vector<8x1x128xf32>,
    %c16_i32_208 = arith.constant 16 : i32
    %426 = vector.broadcast %c16_i32_208 : i32 to vector<8x128xi32>
    %427 = arith.cmpi slt, %276, %426 : vector<8x128xi32>
    %cst_209 = arith.constant 0xFF800000 : f32
    %428 = vector.broadcast %cst_209 : f32 to vector<8x128xf32>
    %429 = arith.select %427, %423, %428 : vector<8x128xi1>, vector<8x128xf32>
    %cst_210 = arith.constant dense<0xFF800000> : vector<8xf32>
    %430 = vector.multi_reduction <maximumf>, %429, %cst_210 [1] : vector<8x128xf32> to vector<8xf32>
    %431 = vector.shape_cast %430 : vector<8xf32> to vector<8x1xf32>
    %432 = vector.broadcast %431 : vector<8x1xf32> to vector<8x128xf32>
    %433 = arith.cmpf oeq, %429, %432 : vector<8x128xf32>
    %c128_i32_211 = arith.constant 128 : i32
    %434 = vector.broadcast %c128_i32_211 : i32 to vector<8x128xi32>
    %435 = arith.select %433, %276, %434 : vector<8x128xi1>, vector<8x128xi32>
    %cst_212 = arith.constant dense<2147483647> : vector<8xi32>
    %436 = vector.multi_reduction <minsi>, %435, %cst_212 [1] : vector<8x128xi32> to vector<8xi32>
    %437 = vector.shape_cast %436 : vector<8xi32> to vector<8x1xi32>
    %438 = vector.broadcast %437 : vector<8x1xi32> to vector<8x128xi32>
    %439 = arith.cmpi eq, %276, %438 : vector<8x128xi32>
    %440 = arith.extui %439 : vector<8x128xi1> to vector<8x128xi32>
    %441 = arith.sitofp %440 : vector<8x128xi32> to vector<8x128xf32>
    %c0_213 = arith.constant 0 : index
    %c0_214 = arith.constant 0 : index
    %442 = vector.load %arg9[%c0_213, %c0_214] : memref<128x128xf32, #tpu.memory_space<vmem>>, vector<128x128xf32>
    %cst_215 = arith.constant dense<0.000000e+00> : vector<8x128xf32>
    %443 = tpu.matmul %441, %442, %cst_215 {dimension_numbers = #tpu.dot_dimension_numbers<[1], [0], [0], [1], [0, 0, 1, 1], [], []>} : vector<8x128xf32>, vector<128x128xf32>, vector<8x128xf32> -> vector<8x128xf32>
    %c0_216 = arith.constant 0 : index
    %c0_217 = arith.constant 0 : index
    %444 = vector.load %arg11[%c0_216, %c0_217] : memref<8x256xf32, #tpu.memory_space<vmem>>, vector<8x128xf32>
    tpu.vector_store %arg11[%c0_216, %c0_217], %443 {strides = array<i32>} : memref<8x256xf32, #tpu.memory_space<vmem>>, vector<8x128xf32>,
    %c0_218 = arith.constant 0 : index
    %c0_219 = arith.constant 0 : index
    %445 = vector.load %arg11[%c0_218, %c0_219] : memref<8x256xf32, #tpu.memory_space<vmem>>, vector<8x256xf32>
    %c0_220 = arith.constant 0 : index
    %c0_221 = arith.constant 0 : index
    %446 = vector.load %arg5[%c0_220, %c0_221] : memref<256x512xf32, #tpu.memory_space<vmem>>, vector<256x512xf32>
    %cst_222 = arith.constant dense<0.000000e+00> : vector<8x512xf32>
    %447 = tpu.matmul %445, %446, %cst_222 {dimension_numbers = #tpu.dot_dimension_numbers<[1], [0], [0], [1], [0, 0, 1, 1], [], []>} : vector<8x256xf32>, vector<256x512xf32>, vector<8x512xf32> -> vector<8x512xf32>
    %c0_223 = arith.constant 0 : index
    %c0_224 = arith.constant 0 : index
    %448 = vector.load %arg6[%c0_223, %c0_224] : memref<1x512xf32, #tpu.memory_space<vmem>>, vector<1x512xf32>
    %449 = vector.broadcast %448 : vector<1x512xf32> to vector<8x512xf32>
    %450 = arith.addf %447, %449 : vector<8x512xf32>
    %451 = vector.extract_strided_slice %450 {offsets = [0, 0], sizes = [8, 128], strides = [1, 1]} : vector<8x512xf32> to vector<8x128xf32>
    %452 = arith.negf %451 : vector<8x128xf32>
    %453 = math.exp %452 : vector<8x128xf32>
    %cst_225 = arith.constant 1.000000e+00 : f32
    %454 = vector.broadcast %cst_225 : f32 to vector<8x128xf32>
    %455 = arith.addf %454, %453 : vector<8x128xf32>
    %456 = arith.divf %454, %455 : vector<8x128xf32>
    %457 = vector.extract_strided_slice %450 {offsets = [0, 128], sizes = [8, 128], strides = [1, 1]} : vector<8x512xf32> to vector<8x128xf32>
    %458 = arith.negf %457 : vector<8x128xf32>
    %459 = math.exp %458 : vector<8x128xf32>
    %cst_226 = arith.constant 1.000000e+00 : f32
    %460 = vector.broadcast %cst_226 : f32 to vector<8x128xf32>
    %461 = arith.addf %460, %459 : vector<8x128xf32>
    %462 = arith.divf %460, %461 : vector<8x128xf32>
    %463 = vector.extract_strided_slice %450 {offsets = [0, 256], sizes = [8, 128], strides = [1, 1]} : vector<8x512xf32> to vector<8x128xf32>
    %464 = vector.extract_strided_slice %450 {offsets = [0, 384], sizes = [8, 128], strides = [1, 1]} : vector<8x512xf32> to vector<8x128xf32>
    %465 = arith.mulf %456, %464 : vector<8x128xf32>
    %466 = arith.addf %463, %465 : vector<8x128xf32>
    %467 = math.tanh %466 : vector<8x128xf32>
    %cst_227 = arith.constant 1.000000e+00 : f32
    %468 = vector.broadcast %cst_227 : f32 to vector<8x128xf32>
    %469 = arith.subf %468, %462 : vector<8x128xf32>
    %470 = arith.mulf %469, %467 : vector<8x128xf32>
    %471 = vector.extract_strided_slice %445 {offsets = [0, 128], sizes = [8, 128], strides = [1, 1]} : vector<8x256xf32> to vector<8x128xf32>
    %472 = arith.mulf %462, %471 : vector<8x128xf32>
    %473 = arith.addf %470, %472 : vector<8x128xf32>
    %c0_228 = arith.constant 0 : index
    %c128_229 = arith.constant 128 : index
    %474 = vector.load %arg11[%c0_228, %c128_229] : memref<8x256xf32, #tpu.memory_space<vmem>>, vector<8x128xf32>
    tpu.vector_store %arg11[%c0_228, %c128_229], %473 {strides = array<i32>} : memref<8x256xf32, #tpu.memory_space<vmem>>, vector<8x128xf32>,
    %c0_230 = arith.constant 0 : index
    %c0_231 = arith.constant 0 : index
    %475 = vector.load %arg7[%c0_230, %c0_231] : memref<128x128xf32, #tpu.memory_space<vmem>>, vector<128x128xf32>
    %cst_232 = arith.constant dense<0.000000e+00> : vector<8x128xf32>
    %476 = tpu.matmul %473, %475, %cst_232 {dimension_numbers = #tpu.dot_dimension_numbers<[1], [0], [0], [1], [0, 0, 1, 1], [], []>} : vector<8x128xf32>, vector<128x128xf32>, vector<8x128xf32> -> vector<8x128xf32>
    %c0_233 = arith.constant 0 : index
    %c0_234 = arith.constant 0 : index
    %477 = vector.load %arg8[%c0_233, %c0_234] : memref<1x128xf32, #tpu.memory_space<vmem>>, vector<1x128xf32>
    %478 = vector.broadcast %477 : vector<1x128xf32> to vector<8x128xf32>
    %479 = arith.addf %476, %478 : vector<8x128xf32>
    %480 = vector.shape_cast %479 : vector<8x128xf32> to vector<8x1x128xf32>
    %c0_235 = arith.constant 0 : index
    %c3 = arith.constant 3 : index
    %c0_236 = arith.constant 0 : index
    %481 = vector.load %arg10[%c0_235, %c3, %c0_236] : memref<8x6x128xf32, #tpu.memory_space<vmem>>, vector<8x1x128xf32>
    tpu.vector_store %arg10[%c0_235, %c3, %c0_236], %480 {strides = array<i32>} : memref<8x6x128xf32, #tpu.memory_space<vmem>>, vector<8x1x128xf32>,
    %c16_i32_237 = arith.constant 16 : i32
    %482 = vector.broadcast %c16_i32_237 : i32 to vector<8x128xi32>
    %483 = arith.cmpi slt, %276, %482 : vector<8x128xi32>
    %cst_238 = arith.constant 0xFF800000 : f32
    %484 = vector.broadcast %cst_238 : f32 to vector<8x128xf32>
    %485 = arith.select %483, %479, %484 : vector<8x128xi1>, vector<8x128xf32>
    %cst_239 = arith.constant dense<0xFF800000> : vector<8xf32>
    %486 = vector.multi_reduction <maximumf>, %485, %cst_239 [1] : vector<8x128xf32> to vector<8xf32>
    %487 = vector.shape_cast %486 : vector<8xf32> to vector<8x1xf32>
    %488 = vector.broadcast %487 : vector<8x1xf32> to vector<8x128xf32>
    %489 = arith.cmpf oeq, %485, %488 : vector<8x128xf32>
    %c128_i32_240 = arith.constant 128 : i32
    %490 = vector.broadcast %c128_i32_240 : i32 to vector<8x128xi32>
    %491 = arith.select %489, %276, %490 : vector<8x128xi1>, vector<8x128xi32>
    %cst_241 = arith.constant dense<2147483647> : vector<8xi32>
    %492 = vector.multi_reduction <minsi>, %491, %cst_241 [1] : vector<8x128xi32> to vector<8xi32>
    %493 = vector.shape_cast %492 : vector<8xi32> to vector<8x1xi32>
    %494 = vector.broadcast %493 : vector<8x1xi32> to vector<8x128xi32>
    %495 = arith.cmpi eq, %276, %494 : vector<8x128xi32>
    %496 = arith.extui %495 : vector<8x128xi1> to vector<8x128xi32>
    %497 = arith.sitofp %496 : vector<8x128xi32> to vector<8x128xf32>
    %c0_242 = arith.constant 0 : index
    %c0_243 = arith.constant 0 : index
    %498 = vector.load %arg9[%c0_242, %c0_243] : memref<128x128xf32, #tpu.memory_space<vmem>>, vector<128x128xf32>
    %cst_244 = arith.constant dense<0.000000e+00> : vector<8x128xf32>
    %499 = tpu.matmul %497, %498, %cst_244 {dimension_numbers = #tpu.dot_dimension_numbers<[1], [0], [0], [1], [0, 0, 1, 1], [], []>} : vector<8x128xf32>, vector<128x128xf32>, vector<8x128xf32> -> vector<8x128xf32>
    %c0_245 = arith.constant 0 : index
    %c0_246 = arith.constant 0 : index
    %500 = vector.load %arg11[%c0_245, %c0_246] : memref<8x256xf32, #tpu.memory_space<vmem>>, vector<8x128xf32>
    tpu.vector_store %arg11[%c0_245, %c0_246], %499 {strides = array<i32>} : memref<8x256xf32, #tpu.memory_space<vmem>>, vector<8x128xf32>,
    %c0_247 = arith.constant 0 : index
    %c0_248 = arith.constant 0 : index
    %501 = vector.load %arg11[%c0_247, %c0_248] : memref<8x256xf32, #tpu.memory_space<vmem>>, vector<8x256xf32>
    %c0_249 = arith.constant 0 : index
    %c0_250 = arith.constant 0 : index
    %502 = vector.load %arg5[%c0_249, %c0_250] : memref<256x512xf32, #tpu.memory_space<vmem>>, vector<256x512xf32>
    %cst_251 = arith.constant dense<0.000000e+00> : vector<8x512xf32>
    %503 = tpu.matmul %501, %502, %cst_251 {dimension_numbers = #tpu.dot_dimension_numbers<[1], [0], [0], [1], [0, 0, 1, 1], [], []>} : vector<8x256xf32>, vector<256x512xf32>, vector<8x512xf32> -> vector<8x512xf32>
    %c0_252 = arith.constant 0 : index
    %c0_253 = arith.constant 0 : index
    %504 = vector.load %arg6[%c0_252, %c0_253] : memref<1x512xf32, #tpu.memory_space<vmem>>, vector<1x512xf32>
    %505 = vector.broadcast %504 : vector<1x512xf32> to vector<8x512xf32>
    %506 = arith.addf %503, %505 : vector<8x512xf32>
    %507 = vector.extract_strided_slice %506 {offsets = [0, 0], sizes = [8, 128], strides = [1, 1]} : vector<8x512xf32> to vector<8x128xf32>
    %508 = arith.negf %507 : vector<8x128xf32>
    %509 = math.exp %508 : vector<8x128xf32>
    %cst_254 = arith.constant 1.000000e+00 : f32
    %510 = vector.broadcast %cst_254 : f32 to vector<8x128xf32>
    %511 = arith.addf %510, %509 : vector<8x128xf32>
    %512 = arith.divf %510, %511 : vector<8x128xf32>
    %513 = vector.extract_strided_slice %506 {offsets = [0, 128], sizes = [8, 128], strides = [1, 1]} : vector<8x512xf32> to vector<8x128xf32>
    %514 = arith.negf %513 : vector<8x128xf32>
    %515 = math.exp %514 : vector<8x128xf32>
    %cst_255 = arith.constant 1.000000e+00 : f32
    %516 = vector.broadcast %cst_255 : f32 to vector<8x128xf32>
    %517 = arith.addf %516, %515 : vector<8x128xf32>
    %518 = arith.divf %516, %517 : vector<8x128xf32>
    %519 = vector.extract_strided_slice %506 {offsets = [0, 256], sizes = [8, 128], strides = [1, 1]} : vector<8x512xf32> to vector<8x128xf32>
    %520 = vector.extract_strided_slice %506 {offsets = [0, 384], sizes = [8, 128], strides = [1, 1]} : vector<8x512xf32> to vector<8x128xf32>
    %521 = arith.mulf %512, %520 : vector<8x128xf32>
    %522 = arith.addf %519, %521 : vector<8x128xf32>
    %523 = math.tanh %522 : vector<8x128xf32>
    %cst_256 = arith.constant 1.000000e+00 : f32
    %524 = vector.broadcast %cst_256 : f32 to vector<8x128xf32>
    %525 = arith.subf %524, %518 : vector<8x128xf32>
    %526 = arith.mulf %525, %523 : vector<8x128xf32>
    %527 = vector.extract_strided_slice %501 {offsets = [0, 128], sizes = [8, 128], strides = [1, 1]} : vector<8x256xf32> to vector<8x128xf32>
    %528 = arith.mulf %518, %527 : vector<8x128xf32>
    %529 = arith.addf %526, %528 : vector<8x128xf32>
    %c0_257 = arith.constant 0 : index
    %c128_258 = arith.constant 128 : index
    %530 = vector.load %arg11[%c0_257, %c128_258] : memref<8x256xf32, #tpu.memory_space<vmem>>, vector<8x128xf32>
    tpu.vector_store %arg11[%c0_257, %c128_258], %529 {strides = array<i32>} : memref<8x256xf32, #tpu.memory_space<vmem>>, vector<8x128xf32>,
    %c0_259 = arith.constant 0 : index
    %c0_260 = arith.constant 0 : index
    %531 = vector.load %arg7[%c0_259, %c0_260] : memref<128x128xf32, #tpu.memory_space<vmem>>, vector<128x128xf32>
    %cst_261 = arith.constant dense<0.000000e+00> : vector<8x128xf32>
    %532 = tpu.matmul %529, %531, %cst_261 {dimension_numbers = #tpu.dot_dimension_numbers<[1], [0], [0], [1], [0, 0, 1, 1], [], []>} : vector<8x128xf32>, vector<128x128xf32>, vector<8x128xf32> -> vector<8x128xf32>
    %c0_262 = arith.constant 0 : index
    %c0_263 = arith.constant 0 : index
    %533 = vector.load %arg8[%c0_262, %c0_263] : memref<1x128xf32, #tpu.memory_space<vmem>>, vector<1x128xf32>
    %534 = vector.broadcast %533 : vector<1x128xf32> to vector<8x128xf32>
    %535 = arith.addf %532, %534 : vector<8x128xf32>
    %536 = vector.shape_cast %535 : vector<8x128xf32> to vector<8x1x128xf32>
    %c0_264 = arith.constant 0 : index
    %c4 = arith.constant 4 : index
    %c0_265 = arith.constant 0 : index
    %537 = vector.load %arg10[%c0_264, %c4, %c0_265] : memref<8x6x128xf32, #tpu.memory_space<vmem>>, vector<8x1x128xf32>
    tpu.vector_store %arg10[%c0_264, %c4, %c0_265], %536 {strides = array<i32>} : memref<8x6x128xf32, #tpu.memory_space<vmem>>, vector<8x1x128xf32>,
    %c16_i32_266 = arith.constant 16 : i32
    %538 = vector.broadcast %c16_i32_266 : i32 to vector<8x128xi32>
    %539 = arith.cmpi slt, %276, %538 : vector<8x128xi32>
    %cst_267 = arith.constant 0xFF800000 : f32
    %540 = vector.broadcast %cst_267 : f32 to vector<8x128xf32>
    %541 = arith.select %539, %535, %540 : vector<8x128xi1>, vector<8x128xf32>
    %cst_268 = arith.constant dense<0xFF800000> : vector<8xf32>
    %542 = vector.multi_reduction <maximumf>, %541, %cst_268 [1] : vector<8x128xf32> to vector<8xf32>
    %543 = vector.shape_cast %542 : vector<8xf32> to vector<8x1xf32>
    %544 = vector.broadcast %543 : vector<8x1xf32> to vector<8x128xf32>
    %545 = arith.cmpf oeq, %541, %544 : vector<8x128xf32>
    %c128_i32_269 = arith.constant 128 : i32
    %546 = vector.broadcast %c128_i32_269 : i32 to vector<8x128xi32>
    %547 = arith.select %545, %276, %546 : vector<8x128xi1>, vector<8x128xi32>
    %cst_270 = arith.constant dense<2147483647> : vector<8xi32>
    %548 = vector.multi_reduction <minsi>, %547, %cst_270 [1] : vector<8x128xi32> to vector<8xi32>
    %549 = vector.shape_cast %548 : vector<8xi32> to vector<8x1xi32>
    %550 = vector.broadcast %549 : vector<8x1xi32> to vector<8x128xi32>
    %551 = arith.cmpi eq, %276, %550 : vector<8x128xi32>
    %552 = arith.extui %551 : vector<8x128xi1> to vector<8x128xi32>
    %553 = arith.sitofp %552 : vector<8x128xi32> to vector<8x128xf32>
    %c0_271 = arith.constant 0 : index
    %c0_272 = arith.constant 0 : index
    %554 = vector.load %arg9[%c0_271, %c0_272] : memref<128x128xf32, #tpu.memory_space<vmem>>, vector<128x128xf32>
    %cst_273 = arith.constant dense<0.000000e+00> : vector<8x128xf32>
    %555 = tpu.matmul %553, %554, %cst_273 {dimension_numbers = #tpu.dot_dimension_numbers<[1], [0], [0], [1], [0, 0, 1, 1], [], []>} : vector<8x128xf32>, vector<128x128xf32>, vector<8x128xf32> -> vector<8x128xf32>
    %c0_274 = arith.constant 0 : index
    %c0_275 = arith.constant 0 : index
    %556 = vector.load %arg11[%c0_274, %c0_275] : memref<8x256xf32, #tpu.memory_space<vmem>>, vector<8x128xf32>
    tpu.vector_store %arg11[%c0_274, %c0_275], %555 {strides = array<i32>} : memref<8x256xf32, #tpu.memory_space<vmem>>, vector<8x128xf32>,
    %c0_276 = arith.constant 0 : index
    %c0_277 = arith.constant 0 : index
    %557 = vector.load %arg11[%c0_276, %c0_277] : memref<8x256xf32, #tpu.memory_space<vmem>>, vector<8x256xf32>
    %c0_278 = arith.constant 0 : index
    %c0_279 = arith.constant 0 : index
    %558 = vector.load %arg5[%c0_278, %c0_279] : memref<256x512xf32, #tpu.memory_space<vmem>>, vector<256x512xf32>
    %cst_280 = arith.constant dense<0.000000e+00> : vector<8x512xf32>
    %559 = tpu.matmul %557, %558, %cst_280 {dimension_numbers = #tpu.dot_dimension_numbers<[1], [0], [0], [1], [0, 0, 1, 1], [], []>} : vector<8x256xf32>, vector<256x512xf32>, vector<8x512xf32> -> vector<8x512xf32>
    %c0_281 = arith.constant 0 : index
    %c0_282 = arith.constant 0 : index
    %560 = vector.load %arg6[%c0_281, %c0_282] : memref<1x512xf32, #tpu.memory_space<vmem>>, vector<1x512xf32>
    %561 = vector.broadcast %560 : vector<1x512xf32> to vector<8x512xf32>
    %562 = arith.addf %559, %561 : vector<8x512xf32>
    %563 = vector.extract_strided_slice %562 {offsets = [0, 0], sizes = [8, 128], strides = [1, 1]} : vector<8x512xf32> to vector<8x128xf32>
    %564 = arith.negf %563 : vector<8x128xf32>
    %565 = math.exp %564 : vector<8x128xf32>
    %cst_283 = arith.constant 1.000000e+00 : f32
    %566 = vector.broadcast %cst_283 : f32 to vector<8x128xf32>
    %567 = arith.addf %566, %565 : vector<8x128xf32>
    %568 = arith.divf %566, %567 : vector<8x128xf32>
    %569 = vector.extract_strided_slice %562 {offsets = [0, 128], sizes = [8, 128], strides = [1, 1]} : vector<8x512xf32> to vector<8x128xf32>
    %570 = arith.negf %569 : vector<8x128xf32>
    %571 = math.exp %570 : vector<8x128xf32>
    %cst_284 = arith.constant 1.000000e+00 : f32
    %572 = vector.broadcast %cst_284 : f32 to vector<8x128xf32>
    %573 = arith.addf %572, %571 : vector<8x128xf32>
    %574 = arith.divf %572, %573 : vector<8x128xf32>
    %575 = vector.extract_strided_slice %562 {offsets = [0, 256], sizes = [8, 128], strides = [1, 1]} : vector<8x512xf32> to vector<8x128xf32>
    %576 = vector.extract_strided_slice %562 {offsets = [0, 384], sizes = [8, 128], strides = [1, 1]} : vector<8x512xf32> to vector<8x128xf32>
    %577 = arith.mulf %568, %576 : vector<8x128xf32>
    %578 = arith.addf %575, %577 : vector<8x128xf32>
    %579 = math.tanh %578 : vector<8x128xf32>
    %cst_285 = arith.constant 1.000000e+00 : f32
    %580 = vector.broadcast %cst_285 : f32 to vector<8x128xf32>
    %581 = arith.subf %580, %574 : vector<8x128xf32>
    %582 = arith.mulf %581, %579 : vector<8x128xf32>
    %583 = vector.extract_strided_slice %557 {offsets = [0, 128], sizes = [8, 128], strides = [1, 1]} : vector<8x256xf32> to vector<8x128xf32>
    %584 = arith.mulf %574, %583 : vector<8x128xf32>
    %585 = arith.addf %582, %584 : vector<8x128xf32>
    %c0_286 = arith.constant 0 : index
    %c128_287 = arith.constant 128 : index
    %586 = vector.load %arg11[%c0_286, %c128_287] : memref<8x256xf32, #tpu.memory_space<vmem>>, vector<8x128xf32>
    tpu.vector_store %arg11[%c0_286, %c128_287], %585 {strides = array<i32>} : memref<8x256xf32, #tpu.memory_space<vmem>>, vector<8x128xf32>,
    %c0_288 = arith.constant 0 : index
    %c0_289 = arith.constant 0 : index
    %587 = vector.load %arg7[%c0_288, %c0_289] : memref<128x128xf32, #tpu.memory_space<vmem>>, vector<128x128xf32>
    %cst_290 = arith.constant dense<0.000000e+00> : vector<8x128xf32>
    %588 = tpu.matmul %585, %587, %cst_290 {dimension_numbers = #tpu.dot_dimension_numbers<[1], [0], [0], [1], [0, 0, 1, 1], [], []>} : vector<8x128xf32>, vector<128x128xf32>, vector<8x128xf32> -> vector<8x128xf32>
    %c0_291 = arith.constant 0 : index
    %c0_292 = arith.constant 0 : index
    %589 = vector.load %arg8[%c0_291, %c0_292] : memref<1x128xf32, #tpu.memory_space<vmem>>, vector<1x128xf32>
    %590 = vector.broadcast %589 : vector<1x128xf32> to vector<8x128xf32>
    %591 = arith.addf %588, %590 : vector<8x128xf32>
    %592 = vector.shape_cast %591 : vector<8x128xf32> to vector<8x1x128xf32>
    %c0_293 = arith.constant 0 : index
    %c5 = arith.constant 5 : index
    %c0_294 = arith.constant 0 : index
    %593 = vector.load %arg10[%c0_293, %c5, %c0_294] : memref<8x6x128xf32, #tpu.memory_space<vmem>>, vector<8x1x128xf32>
    tpu.vector_store %arg10[%c0_293, %c5, %c0_294], %592 {strides = array<i32>} : memref<8x6x128xf32, #tpu.memory_space<vmem>>, vector<8x1x128xf32>,
    %c16_i32_295 = arith.constant 16 : i32
    %594 = vector.broadcast %c16_i32_295 : i32 to vector<8x128xi32>
    %595 = arith.cmpi slt, %276, %594 : vector<8x128xi32>
    %cst_296 = arith.constant 0xFF800000 : f32
    %596 = vector.broadcast %cst_296 : f32 to vector<8x128xf32>
    %597 = arith.select %595, %591, %596 : vector<8x128xi1>, vector<8x128xf32>
    %cst_297 = arith.constant dense<0xFF800000> : vector<8xf32>
    %598 = vector.multi_reduction <maximumf>, %597, %cst_297 [1] : vector<8x128xf32> to vector<8xf32>
    %599 = vector.shape_cast %598 : vector<8xf32> to vector<8x1xf32>
    %600 = vector.broadcast %599 : vector<8x1xf32> to vector<8x128xf32>
    %601 = arith.cmpf oeq, %597, %600 : vector<8x128xf32>
    %c128_i32_298 = arith.constant 128 : i32
    %602 = vector.broadcast %c128_i32_298 : i32 to vector<8x128xi32>
    %603 = arith.select %601, %276, %602 : vector<8x128xi1>, vector<8x128xi32>
    %cst_299 = arith.constant dense<2147483647> : vector<8xi32>
    %604 = vector.multi_reduction <minsi>, %603, %cst_299 [1] : vector<8x128xi32> to vector<8xi32>
    %605 = vector.shape_cast %604 : vector<8xi32> to vector<8x1xi32>
    %606 = vector.broadcast %605 : vector<8x1xi32> to vector<8x128xi32>
    %607 = arith.cmpi eq, %276, %606 : vector<8x128xi32>
    %608 = arith.extui %607 : vector<8x128xi1> to vector<8x128xi32>
    %609 = arith.sitofp %608 : vector<8x128xi32> to vector<8x128xf32>
    %c0_300 = arith.constant 0 : index
    %c0_301 = arith.constant 0 : index
    %610 = vector.load %arg9[%c0_300, %c0_301] : memref<128x128xf32, #tpu.memory_space<vmem>>, vector<128x128xf32>
    %cst_302 = arith.constant dense<0.000000e+00> : vector<8x128xf32>
    %611 = tpu.matmul %609, %610, %cst_302 {dimension_numbers = #tpu.dot_dimension_numbers<[1], [0], [0], [1], [0, 0, 1, 1], [], []>} : vector<8x128xf32>, vector<128x128xf32>, vector<8x128xf32> -> vector<8x128xf32>
    %c0_303 = arith.constant 0 : index
    %c0_304 = arith.constant 0 : index
    %612 = vector.load %arg11[%c0_303, %c0_304] : memref<8x256xf32, #tpu.memory_space<vmem>>, vector<8x128xf32>
    tpu.vector_store %arg11[%c0_303, %c0_304], %611 {strides = array<i32>} : memref<8x256xf32, #tpu.memory_space<vmem>>, vector<8x128xf32>,
    return
  }
  func.func @transform_0(%arg0: i32) -> (i32, i32, i32) {
    %c0_i32 = arith.constant 0 : i32
    %c0_i32_0 = arith.constant 0 : i32
    %c0_i32_1 = arith.constant 0 : i32
    %c0_i32_2 = arith.constant 0 : i32
    return %c0_i32, %c0_i32_0, %c0_i32_1 : i32, i32, i32
  }
  func.func @transform_1(%arg0: i32) -> (i32, i32) {
    %c0_i32 = arith.constant 0 : i32
    %c0_i32_0 = arith.constant 0 : i32
    %c0_i32_1 = arith.constant 0 : i32
    return %c0_i32, %c0_i32_0 : i32, i32
  }
  func.func @transform_2(%arg0: i32) -> (i32, i32) {
    %c0_i32 = arith.constant 0 : i32
    %c0_i32_0 = arith.constant 0 : i32
    %c0_i32_1 = arith.constant 0 : i32
    return %c0_i32, %c0_i32_0 : i32, i32
  }
  func.func @transform_3(%arg0: i32) -> (i32, i32) {
    %c0_i32 = arith.constant 0 : i32
    %c0_i32_0 = arith.constant 0 : i32
    %c0_i32_1 = arith.constant 0 : i32
    return %c0_i32, %c0_i32_0 : i32, i32
  }
  func.func @transform_4(%arg0: i32) -> (i32, i32) {
    %c0_i32 = arith.constant 0 : i32
    %c0_i32_0 = arith.constant 0 : i32
    %c0_i32_1 = arith.constant 0 : i32
    return %c0_i32, %c0_i32_0 : i32, i32
  }
  func.func @transform_5(%arg0: i32) -> (i32, i32) {
    %c0_i32 = arith.constant 0 : i32
    %c0_i32_0 = arith.constant 0 : i32
    %c0_i32_1 = arith.constant 0 : i32
    return %c0_i32, %c0_i32_0 : i32, i32
  }
  func.func @transform_6(%arg0: i32) -> (i32, i32) {
    %c0_i32 = arith.constant 0 : i32
    %c0_i32_0 = arith.constant 0 : i32
    %c0_i32_1 = arith.constant 0 : i32
    return %c0_i32, %c0_i32_0 : i32, i32
  }
  func.func @transform_7(%arg0: i32) -> (i32, i32) {
    %c0_i32 = arith.constant 0 : i32
    %c0_i32_0 = arith.constant 0 : i32
    %c0_i32_1 = arith.constant 0 : i32
    return %c0_i32, %c0_i32_0 : i32, i32
  }
  func.func @transform_8(%arg0: i32) -> (i32, i32) {
    %c0_i32 = arith.constant 0 : i32
    %c0_i32_0 = arith.constant 0 : i32
    %c0_i32_1 = arith.constant 0 : i32
    return %c0_i32, %c0_i32_0 : i32, i32
  }
  func.func @transform_9(%arg0: i32) -> (i32, i32, i32) {
    %c0_i32 = arith.constant 0 : i32
    %c0_i32_0 = arith.constant 0 : i32
    %c0_i32_1 = arith.constant 0 : i32
    %c0_i32_2 = arith.constant 0 : i32
    return %c0_i32, %c0_i32_0, %c0_i32_1 : i32, i32, i32
  }
}

</mosaic_0001>

<bundles_post_ra>
// kernel: seq2seq_forward.1
= control target key start
LH: loop header
LB: loop body
LE: loop exit
PB: predicated region body
PF: predicated region fallthrough
CT: control target
= control target key end

     0   :  { %v14590_v3 = vmov 0.0   ;;  %vm6916_vm0 = vmmov 0   ;;  %s14580_s2 = inlined_call_operand.vmem [shape: f32[256,512], index: 2, kind: input, shape index: {}]   ;;  %s14581_s0 = inlined_call_operand.vmem [shape: f32[8,8,128], index: 0, kind: input, shape index: {}]   ;;  %s14582_s3 = inlined_call_operand.vmem [shape: f32[1,512], index: 3, kind: input, shape index: {}]   ;;  %s14583_s4 = inlined_call_operand.vmem [shape: f32[256,512], index: 4, kind: input, shape index: {}]   ;;  %s14584_s1 = inlined_call_operand.vmem [shape: f32[8,128], index: 1, kind: input, shape index: {}]   ;;  %s14585_s6 = inlined_call_operand.vmem [shape: f32[128,128], index: 6, kind: input, shape index: {}]   ;;  %s14586_s5 = inlined_call_operand.vmem [shape: f32[1,512], index: 5, kind: input, shape index: {}]   ;;  %s14587_s7 = inlined_call_operand.vmem [shape: f32[1,128], index: 7, kind: input, shape index: {}]   ;;  %s14588_s9 = inlined_call_operand.vmem [shape: f32[8,6,128], index: 9, kind: output, shape index: {}]   ;;  %s14589_s8 = inlined_call_operand.vmem [shape: f32[128,128], index: 8, kind: input, shape index: {}]  }
   0x1   :  { %v6972_v0 = vld [vmem:[%s14580_s2 + $0x1e8] sm:$0xff]  ;;  %v6977_v1 = vld [vmem:[%s14580_s2 + $0x1e0] sm:$0xff]  ;;  %252 = vmatprep.mubr.f32.mxu0 %v14590_v3  ;;  %323 = vmatprep.mubr.f32.mxu1 %v14590_v3  ;;  %v7043_v13 = vld [vmem:[%s14580_s2 + $0x1f8] sm:$0xff] }
   0x2   :  { %v6982_v2 = vld [vmem:[%s14580_s2 + $0x1c8] sm:$0xff]  ;;  %188 = vmatprep.subr.mxu0 %v6972_v0  ;;  %v6990_v4 = vld [vmem:[%s14580_s2 + $0x1c0] sm:$0xff]  ;;  %259 = vmatprep.subr.mxu1 %v7043_v13  ;;  %v7055_v15 = vld [vmem:[%s14580_s2 + $0x1f0] sm:$0xff] }
   0x3   :  { %189 = vmatpush1.msra.mxu0 %v6977_v1  ;;  %v6996_v5 = vld [vmem:[%s14580_s2 + $0x1a8] sm:$0xff]  ;;  %v7002_v6 = vld [vmem:[%s14580_s2 + $0x1a0] sm:$0xff]  ;;  %260 = vmatpush1.msra.mxu1 %v7055_v15  ;;  %v7067_v17 = vld [vmem:[%s14580_s2 + $0x1d8] sm:$0xff] }
   0x4   :  { %190 = vmatprep.subr.mxu0 %v6982_v2  ;;  %v7008_v7 = vld [vmem:[%s14580_s2 + $0x188] sm:$0xff]  ;;  %v7014_v8 = vld [vmem:[%s14580_s2 + $0x180] sm:$0xff]  ;;  %v7072_v18 = vld [vmem:[%s14580_s2 + $0x1d0] sm:$0xff]  ;;  %261 = vmatprep.subr.mxu1 %v7067_v17 }
   0x5   :  { %191 = vmatpush1.msra.mxu0 %v6990_v4  ;;  %v7020_v9 = vld [vmem:[%s14580_s2 + $0x168] sm:$0xff]  ;;  %v7026_v10 = vld [vmem:[%s14580_s2 + $0x160] sm:$0xff]  ;;  %v7084_v20 = vld [vmem:[%s14580_s2 + $0x1b8] sm:$0xff]  ;;  %262 = vmatpush1.msra.mxu1 %v7072_v18 }
   0x6   :  { %192 = vmatprep.subr.mxu0 %v6996_v5  ;;  %v7032_v11 = vld [vmem:[%s14580_s2 + $0x148] sm:$0xff]  ;;  %v7038_v12 = vld [vmem:[%s14580_s2 + $0x140] sm:$0xff]  ;;  %v7096_v22 = vld [vmem:[%s14580_s2 + $0x1b0] sm:$0xff]  ;;  %263 = vmatprep.subr.mxu1 %v7084_v20 }
   0x7   :  { %193 = vmatpush1.msra.mxu0 %v7002_v6  ;;  %v7049_v14 = vld [vmem:[%s14580_s2 + $0x128] sm:$0xff]  ;;  %v7061_v16 = vld [vmem:[%s14580_s2 + $0x120] sm:$0xff]  ;;  %v7101_v23 = vld [vmem:[%s14580_s2 + $0x198] sm:$0xff]  ;;  %264 = vmatpush1.msra.mxu1 %v7096_v22 }
   0x8   :  { %194 = vmatprep.subr.mxu0 %v7008_v7  ;;  %v7078_v19 = vld [vmem:[%s14580_s2 + $0x108] sm:$0xff]  ;;  %v7090_v21 = vld [vmem:[%s14580_s2 + $0x100] sm:$0xff]  ;;  %v7113_v25 = vld [vmem:[%s14580_s2 + $0x190] sm:$0xff]  ;;  %265 = vmatprep.subr.mxu1 %v7101_v23 }
   0x9   :  { %195 = vmatpush1.msra.mxu0 %v7014_v8  ;;  %v7107_v24 = vld [vmem:[%s14580_s2 + $0xe8] sm:$0xff]  ;;  %v7119_v26 = vld [vmem:[%s14580_s2 + $0xe0] sm:$0xff]  ;;  %v7125_v27 = vld [vmem:[%s14580_s2 + $0x178] sm:$0xff]  ;;  %266 = vmatpush1.msra.mxu1 %v7113_v25 }
   0xa   :  { %196 = vmatprep.subr.mxu0 %v7020_v9  ;;  %v7131_v28 = vld [vmem:[%s14580_s2 + $0xc8] sm:$0xff]  ;;  %v7137_v29 = vld [vmem:[%s14580_s2 + $0x170] sm:$0xff]  ;;  %v7143_v30 = vld [vmem:[%s14580_s2 + $0xc0] sm:$0xff]  ;;  %267 = vmatprep.subr.mxu1 %v7125_v27 }
   0xb   :  { %197 = vmatpush1.msra.mxu0 %v7026_v10  ;;  %v7149_v31 = vld [vmem:[%s14580_s2 + $0x158] sm:$0xff]  ;;  %v7155_v32 = vld [vmem:[%s14580_s2 + $0xa8] sm:$0xff]  ;;  %v7161_v33 = vld [vmem:[%s14580_s2 + $0x150] sm:$0xff]  ;;  %268 = vmatpush1.msra.mxu1 %v7137_v29 }
   0xc   :  { %198 = vmatprep.subr.mxu0 %v7032_v11  ;;  %v7167_v34 = vld [vmem:[%s14580_s2 + $0xa0] sm:$0xff]  ;;  %v7173_v35 = vld [vmem:[%s14580_s2 + $0x138] sm:$0xff]  ;;  %v7179_v36 = vld [vmem:[%s14580_s2 + $0x88] sm:$0xff]  ;;  %269 = vmatprep.subr.mxu1 %v7149_v31 }
   0xd   :  { %199 = vmatpush1.msra.mxu0 %v7038_v12  ;;  %v7185_v37 = vld [vmem:[%s14580_s2 + $0x130] sm:$0xff]  ;;  %v7191_v38 = vld [vmem:[%s14580_s2 + $0x80] sm:$0xff]  ;;  %270 = vmatpush1.msra.mxu1 %v7161_v33  ;;  %v7197_v39 = vld [vmem:[%s14580_s2 + $0x118] sm:$0xff] }
   0xe   :  { %200 = vmatprep.subr.mxu0 %v7049_v14  ;;  %v7203_v40 = vld [vmem:[%s14580_s2 + $0x68] sm:$0xff]  ;;  %271 = vmatprep.subr.mxu1 %v7173_v35  ;;  %v7209_v41 = vld [vmem:[%s14580_s2 + $0x110] sm:$0xff]  ;;  %v7215_v42 = vld [vmem:[%s14580_s2 + $0x60] sm:$0xff] }
   0xf   :  { %201 = vmatpush1.msra.mxu0 %v7061_v16  ;;  %272 = vmatpush1.msra.mxu1 %v7185_v37  ;;  %v7221_v43 = vld [vmem:[%s14580_s2 + $0xf8] sm:$0xff]  ;;  %v7227_v44 = vld [vmem:[%s14580_s2 + $0x48] sm:$0xff]  ;;  %v7233_v45 = vld [vmem:[%s14580_s2 + $0xf0] sm:$0xff] }
  0x10   :  { %202 = vmatprep.subr.mxu0 %v7078_v19  ;;  %273 = vmatprep.subr.mxu1 %v7197_v39  ;;  %v7239_v46 = vld [vmem:[%s14580_s2 + $0x40] sm:$0xff]  ;;  %v7245_v47 = vld [vmem:[%s14580_s2 + $0xd8] sm:$0xff]  ;;  %v7251_v48 = vld [vmem:[%s14580_s2 + $0x28] sm:$0xff] }
  0x11   :  { %203 = vmatpush1.msra.mxu0 %v7090_v21  ;;  %274 = vmatpush1.msra.mxu1 %v7209_v41  ;;  %v7257_v49 = vld [vmem:[%s14580_s2 + $0xd0] sm:$0xff]  ;;  %v7263_v50 = vld [vmem:[%s14580_s2 + $0x20] sm:$0xff]  ;;  %v7269_v51 = vld [vmem:[%s14580_s2 + $0xb8] sm:$0xff] }
  0x12   :  { %204 = vmatprep.subr.mxu0 %v7107_v24  ;;  %275 = vmatprep.subr.mxu1 %v7221_v43  ;;  %v7275_v52 = vld [vmem:[%s14580_s2 + $0x8] sm:$0xff]  ;;  %v7281_v53 = vld [vmem:[%s14580_s2 + $0xb0] sm:$0xff]  ;;  %v7287_v54 = vld [vmem:[%s14580_s2] sm:$0xff] }
  0x13   :  { %205 = vmatpush1.msra.mxu0 %v7119_v26  ;;  %276 = vmatpush1.msra.mxu1 %v7233_v45  ;;  %v7293_v55 = vld [vmem:[%s14580_s2 + $0x98] sm:$0xff]  ;;  %v7299_v56 = vld [vmem:[%s14580_s2 + $0x3e8] sm:$0xff]  ;;  %v7305_v57 = vld [vmem:[%s14580_s2 + $0x90] sm:$0xff] }
  0x14   :  { %206 = vmatprep.subr.mxu0 %v7131_v28  ;;  %277 = vmatprep.subr.mxu1 %v7245_v47  ;;  %15209 = vst [vmem:[#allocation3_spill] sm:$0xff] %v7299_v56  ;;  %15210 = vst [vmem:[#allocation4_spill] sm:$0xff] %v7305_v57  ;;  %v7311_v58 = vld [vmem:[%s14580_s2 + $0x3e0] sm:$0xff]  ;;  %v7317_v59 = vld [vmem:[%s14580_s2 + $0x78] sm:$0xff] }
  0x15   :  { %207 = vmatpush1.msra.mxu0 %v7143_v30  ;;  %278 = vmatpush1.msra.mxu1 %v7257_v49  ;;  %15211 = vst [vmem:[#allocation5_spill] sm:$0xff] %v7311_v58  ;;  %15212 = vst [vmem:[#allocation6_spill] sm:$0xff] %v7317_v59  ;;  %v7323_v60 = vld [vmem:[%s14580_s2 + $0x3c8] sm:$0xff]  ;;  %v7329_v61 = vld [vmem:[%s14580_s2 + $0x70] sm:$0xff] }
  0x16   :  { %208 = vmatprep.subr.mxu0 %v7155_v32  ;;  %279 = vmatprep.subr.mxu1 %v7269_v51  ;;  %15213 = vst [vmem:[#allocation7_spill] sm:$0xff] %v7323_v60  ;;  %15214 = vst [vmem:[#allocation8_spill] sm:$0xff] %v7329_v61  ;;  %v7335_v62 = vld [vmem:[%s14580_s2 + $0x3c0] sm:$0xff]  ;;  %v7341_v63 = vld [vmem:[%s14580_s2 + $0x58] sm:$0xff] }
  0x17   :  { %209 = vmatpush1.msra.mxu0 %v7167_v34  ;;  %280 = vmatpush1.msra.mxu1 %v7281_v53  ;;  %15215 = vst [vmem:[#allocation9_spill] sm:$0xff] %v7335_v62  ;;  %15216 = vst [vmem:[#allocation10_spill] sm:$0xff] %v7341_v63  ;;  %v7347_v3 = vld [vmem:[%s14580_s2 + $0x3a8] sm:$0xff] }
  0x18   :  { %210 = vmatprep.subr.mxu0 %v7179_v36  ;;  %281 = vmatprep.subr.mxu1 %v7293_v55  ;;  %15217 = vst [vmem:[#allocation11_spill] sm:$0xff] %v7347_v3 }
  0x19   :  { %211 = vmatpush1.msra.mxu0 %v7191_v38  ;;  %282 = vmatpush1.msra.mxu1 %v7305_v57  ;;  %v7359_v57 = vld [vmem:[%s14580_s2 + $0x3a0] sm:$0xff] }
  0x1a   :  { %212 = vmatprep.subr.mxu0 %v7203_v40  ;;  %283 = vmatprep.subr.mxu1 %v7317_v59  ;;  %15219 = vst [vmem:[#allocation13_spill] sm:$0xff] %v7359_v57  ;;  %v7371_v59 = vld [vmem:[%s14580_s2 + $0x388] sm:$0xff] }
  0x1b   :  { %213 = vmatpush1.msra.mxu0 %v7215_v42  ;;  %284 = vmatpush1.msra.mxu1 %v7329_v61  ;;  %15221 = vst [vmem:[#allocation15_spill] sm:$0xff] %v7371_v59  ;;  %v7383_v61 = vld [vmem:[%s14580_s2 + $0x380] sm:$0xff] }
  0x1c   :  { %214 = vmatprep.subr.mxu0 %v7227_v44  ;;  %285 = vmatprep.subr.mxu1 %v7341_v63  ;;  %15223 = vst [vmem:[#allocation17_spill] sm:$0xff] %v7383_v61  ;;  %v7395_v63 = vld [vmem:[%s14580_s2 + $0x368] sm:$0xff] }
  0x1d   :  { %215 = vmatpush1.msra.mxu0 %v7239_v46  ;;  %15225 = vst [vmem:[#allocation19_spill] sm:$0xff] %v7395_v63 }
  0x1e   :  { %216 = vmatprep.subr.mxu0 %v7251_v48 }
  0x1f   :  { %217 = vmatpush1.msra.mxu0 %v7263_v50 }
  0x20   :  { %218 = vmatprep.subr.mxu0 %v7275_v52 }
  0x21   :  { %219 = vmatpush1.msra.mxu0 %v7287_v54 }
  0x22   :  { %220 = vmatprep.subr.mxu0 %v7299_v56  ;;  %v7353_v56 = vld [vmem:[%s14580_s2 + $0x50] sm:$0xff] }
  0x23   :  { %221 = vmatpush2.msra.mxu0 %v7311_v58  ;;  %15218 = vst [vmem:[#allocation12_spill] sm:$0xff] %v7353_v56  ;;  %v7365_v58 = vld [vmem:[%s14580_s2 + $0x38] sm:$0xff]  ;;  %286 = vmatpush1.msra.mxu1 %v7353_v56  ;;  %v7407_v56 = vld [vmem:[%s14580_s2 + $0x360] sm:$0xff] }
  0x24   :  { %222 = vmatprep.subr.mxu0 %v7323_v60  ;;  %15220 = vst [vmem:[#allocation14_spill] sm:$0xff] %v7365_v58  ;;  %v7377_v60 = vld [vmem:[%s14580_s2 + $0x30] sm:$0xff]  ;;  %287 = vmatprep.subr.mxu1 %v7365_v58  ;;  %15227 = vst [vmem:[#allocation21_spill] sm:$0xff] %v7407_v56  ;;  %v7419_v58 = vld [vmem:[%s14580_s2 + $0x348] sm:$0xff] }
  0x25   :  { %223 = vmatpush2.msra.mxu0 %v7335_v62  ;;  %15222 = vst [vmem:[#allocation16_spill] sm:$0xff] %v7377_v60  ;;  %v7389_v62 = vld [vmem:[%s14580_s2 + $0x18] sm:$0xff]  ;;  %288 = vmatpush1.msra.mxu1 %v7377_v60  ;;  %15229 = vst [vmem:[#allocation23_spill] sm:$0xff] %v7419_v58  ;;  %v7431_v60 = vld [vmem:[%s14580_s2 + $0x340] sm:$0xff] }
  0x26   :  { %224 = vmatprep.subr.mxu0 %v7347_v3  ;;  %15224 = vst [vmem:[#allocation18_spill] sm:$0xff] %v7389_v62  ;;  %v7401_v3 = vld [vmem:[%s14580_s2 + $0x10] sm:$0xff]  ;;  %289 = vmatprep.subr.mxu1 %v7389_v62  ;;  %15231 = vst [vmem:[#allocation25_spill] sm:$0xff] %v7431_v60  ;;  %v7443_v62 = vld [vmem:[%s14580_s2 + $0x328] sm:$0xff] }
  0x27   :  { %225 = vmatpush2.msra.mxu0 %v7359_v57  ;;  %15226 = vst [vmem:[#allocation20_spill] sm:$0xff] %v7401_v3  ;;  %v7413_v57 = vld [vmem:[%s14580_s2 + $0x3f8] sm:$0xff]  ;;  %290 = vmatpush1.msra.mxu1 %v7401_v3  ;;  %15233 = vst [vmem:[#allocation27_spill] sm:$0xff] %v7443_v62  ;;  %v7455_v3 = vld [vmem:[%s14580_s2 + $0x320] sm:$0xff] }
  0x28   :  { %226 = vmatprep.subr.mxu0 %v7371_v59  ;;  %15228 = vst [vmem:[#allocation22_spill] sm:$0xff] %v7413_v57  ;;  %v7425_v59 = vld [vmem:[%s14580_s2 + $0x3f0] sm:$0xff]  ;;  %291 = vmatprep.subr.mxu1 %v7413_v57  ;;  %15235 = vst [vmem:[#allocation29_spill] sm:$0xff] %v7455_v3  ;;  %v7467_v57 = vld [vmem:[%s14580_s2 + $0x308] sm:$0xff] }
  0x29   :  { %227 = vmatpush2.msra.mxu0 %v7383_v61  ;;  %15230 = vst [vmem:[#allocation24_spill] sm:$0xff] %v7425_v59  ;;  %v7437_v61 = vld [vmem:[%s14580_s2 + $0x3d8] sm:$0xff]  ;;  %292 = vmatpush2.msra.mxu1 %v7425_v59  ;;  %15237 = vst [vmem:[#allocation31_spill] sm:$0xff] %v7467_v57  ;;  %v7479_v59 = vld [vmem:[%s14580_s2 + $0x300] sm:$0xff] }
  0x2a   :  { %228 = vmatprep.subr.mxu0 %v7395_v63  ;;  %15232 = vst [vmem:[#allocation26_spill] sm:$0xff] %v7437_v61  ;;  %v7449_v63 = vld [vmem:[%s14580_s2 + $0x3d0] sm:$0xff]  ;;  %293 = vmatprep.subr.mxu1 %v7437_v61  ;;  %15239 = vst [vmem:[#allocation33_spill] sm:$0xff] %v7479_v59  ;;  %v7491_v61 = vld [vmem:[%s14580_s2 + $0x2e8] sm:$0xff] }
  0x2b   :  { %229 = vmatpush2.msra.mxu0 %v7407_v56  ;;  %15234 = vst [vmem:[#allocation28_spill] sm:$0xff] %v7449_v63  ;;  %v7461_v56 = vld [vmem:[%s14580_s2 + $0x3b8] sm:$0xff]  ;;  %294 = vmatpush2.msra.mxu1 %v7449_v63  ;;  %15241 = vst [vmem:[#allocation35_spill] sm:$0xff] %v7491_v61  ;;  %v7503_v63 = vld [vmem:[%s14580_s2 + $0x2e0] sm:$0xff] }
  0x2c   :  { %230 = vmatprep.subr.mxu0 %v7419_v58  ;;  %15236 = vst [vmem:[#allocation30_spill] sm:$0xff] %v7461_v56  ;;  %v7473_v58 = vld [vmem:[%s14580_s2 + $0x3b0] sm:$0xff]  ;;  %295 = vmatprep.subr.mxu1 %v7461_v56  ;;  %15243 = vst [vmem:[#allocation37_spill] sm:$0xff] %v7503_v63  ;;  %v7515_v56 = vld [vmem:[%s14580_s2 + $0x2c8] sm:$0xff] }
  0x2d   :  { %231 = vmatpush2.msra.mxu0 %v7431_v60  ;;  %15238 = vst [vmem:[#allocation32_spill] sm:$0xff] %v7473_v58  ;;  %v7485_v60 = vld [vmem:[%s14580_s2 + $0x398] sm:$0xff]  ;;  %296 = vmatpush2.msra.mxu1 %v7473_v58  ;;  %15245 = vst [vmem:[#allocation39_spill] sm:$0xff] %v7515_v56  ;;  %v7527_v58 = vld [vmem:[%s14580_s2 + $0x2c0] sm:$0xff] }
  0x2e   :  { %232 = vmatprep.subr.mxu0 %v7443_v62  ;;  %15240 = vst [vmem:[#allocation34_spill] sm:$0xff] %v7485_v60  ;;  %v7497_v62 = vld [vmem:[%s14580_s2 + $0x390] sm:$0xff]  ;;  %297 = vmatprep.subr.mxu1 %v7485_v60  ;;  %15247 = vst [vmem:[#allocation41_spill] sm:$0xff] %v7527_v58  ;;  %v7539_v60 = vld [vmem:[%s14580_s2 + $0x2a8] sm:$0xff] }
  0x2f   :  { %233 = vmatpush2.msra.mxu0 %v7455_v3  ;;  %15242 = vst [vmem:[#allocation36_spill] sm:$0xff] %v7497_v62  ;;  %v7509_v3 = vld [vmem:[%s14580_s2 + $0x378] sm:$0xff]  ;;  %298 = vmatpush2.msra.mxu1 %v7497_v62  ;;  %15249 = vst [vmem:[#allocation43_spill] sm:$0xff] %v7539_v60  ;;  %v7551_v62 = vld [vmem:[%s14580_s2 + $0x2a0] sm:$0xff] }
  0x30   :  { %234 = vmatprep.subr.mxu0 %v7467_v57  ;;  %15244 = vst [vmem:[#allocation38_spill] sm:$0xff] %v7509_v3  ;;  %v7521_v57 = vld [vmem:[%s14580_s2 + $0x370] sm:$0xff]  ;;  %299 = vmatprep.subr.mxu1 %v7509_v3  ;;  %15251 = vst [vmem:[#allocation45_spill] sm:$0xff] %v7551_v62  ;;  %v7563_v3 = vld [vmem:[%s14580_s2 + $0x288] sm:$0xff] }
  0x31   :  { %235 = vmatpush2.msra.mxu0 %v7479_v59  ;;  %15246 = vst [vmem:[#allocation40_spill] sm:$0xff] %v7521_v57  ;;  %v7533_v59 = vld [vmem:[%s14580_s2 + $0x358] sm:$0xff]  ;;  %300 = vmatpush2.msra.mxu1 %v7521_v57  ;;  %15253 = vst [vmem:[#allocation47_spill] sm:$0xff] %v7563_v3  ;;  %v7575_v57 = vld [vmem:[%s14580_s2 + $0x280] sm:$0xff] }
  0x32   :  { %236 = vmatprep.subr.mxu0 %v7491_v61  ;;  %15248 = vst [vmem:[#allocation42_spill] sm:$0xff] %v7533_v59  ;;  %v7545_v61 = vld [vmem:[%s14580_s2 + $0x350] sm:$0xff]  ;;  %301 = vmatprep.subr.mxu1 %v7533_v59  ;;  %15255 = vst [vmem:[#allocation49_spill] sm:$0xff] %v7575_v57  ;;  %v7587_v59 = vld [vmem:[%s14580_s2 + $0x268] sm:$0xff] }
  0x33   :  { %237 = vmatpush2.msra.mxu0 %v7503_v63  ;;  %15250 = vst [vmem:[#allocation44_spill] sm:$0xff] %v7545_v61  ;;  %v7557_v63 = vld [vmem:[%s14580_s2 + $0x338] sm:$0xff]  ;;  %302 = vmatpush2.msra.mxu1 %v7545_v61  ;;  %15257 = vst [vmem:[#allocation51_spill] sm:$0xff] %v7587_v59  ;;  %v7599_v61 = vld [vmem:[%s14580_s2 + $0x260] sm:$0xff] }
  0x34   :  { %238 = vmatprep.subr.mxu0 %v7515_v56  ;;  %15252 = vst [vmem:[#allocation46_spill] sm:$0xff] %v7557_v63  ;;  %v7569_v56 = vld [vmem:[%s14580_s2 + $0x330] sm:$0xff]  ;;  %303 = vmatprep.subr.mxu1 %v7557_v63  ;;  %15259 = vst [vmem:[#allocation53_spill] sm:$0xff] %v7599_v61  ;;  %v7611_v63 = vld [vmem:[%s14580_s2 + $0x248] sm:$0xff] }
  0x35   :  { %239 = vmatpush2.msra.mxu0 %v7527_v58  ;;  %15254 = vst [vmem:[#allocation48_spill] sm:$0xff] %v7569_v56  ;;  %v7581_v58 = vld [vmem:[%s14580_s2 + $0x318] sm:$0xff]  ;;  %304 = vmatpush2.msra.mxu1 %v7569_v56  ;;  %15261 = vst [vmem:[#allocation55_spill] sm:$0xff] %v7611_v63  ;;  %v7623_v56 = vld [vmem:[%s14580_s2 + $0x240] sm:$0xff] }
  0x36   :  { %240 = vmatprep.subr.mxu0 %v7539_v60  ;;  %15256 = vst [vmem:[#allocation50_spill] sm:$0xff] %v7581_v58  ;;  %v7593_v60 = vld [vmem:[%s14580_s2 + $0x310] sm:$0xff]  ;;  %305 = vmatprep.subr.mxu1 %v7581_v58  ;;  %15263 = vst [vmem:[#allocation57_spill] sm:$0xff] %v7623_v56  ;;  %v7635_v58 = vld [vmem:[%s14580_s2 + $0x228] sm:$0xff] }
  0x37   :  { %241 = vmatpush2.msra.mxu0 %v7551_v62  ;;  %15258 = vst [vmem:[#allocation52_spill] sm:$0xff] %v7593_v60  ;;  %v7605_v62 = vld [vmem:[%s14580_s2 + $0x2f8] sm:$0xff]  ;;  %306 = vmatpush2.msra.mxu1 %v7593_v60  ;;  %15265 = vst [vmem:[#allocation59_spill] sm:$0xff] %v7635_v58  ;;  %v7647_v60 = vld [vmem:[%s14580_s2 + $0x220] sm:$0xff] }
  0x38   :  { %242 = vmatprep.subr.mxu0 %v7563_v3  ;;  %15260 = vst [vmem:[#allocation54_spill] sm:$0xff] %v7605_v62  ;;  %v7617_v3 = vld [vmem:[%s14580_s2 + $0x2f0] sm:$0xff]  ;;  %307 = vmatprep.subr.mxu1 %v7605_v62  ;;  %v7659_v62 = vld [vmem:[%s14580_s2 + $0x208] sm:$0xff] }
  0x39   :  { %243 = vmatpush2.msra.mxu0 %v7575_v57  ;;  %15262 = vst [vmem:[#allocation56_spill] sm:$0xff] %v7617_v3  ;;  %v7629_v57 = vld [vmem:[%s14580_s2 + $0x2d8] sm:$0xff]  ;;  %308 = vmatpush2.msra.mxu1 %v7617_v3  ;;  %v7671_v3 = vld [vmem:[%s14580_s2 + $0x200] sm:$0xff] }
  0x3a   :  { %244 = vmatprep.subr.mxu0 %v7587_v59  ;;  %15264 = vst [vmem:[#allocation58_spill] sm:$0xff] %v7629_v57  ;;  %v7641_v59 = vld [vmem:[%s14580_s2 + $0x2d0] sm:$0xff]  ;;  %309 = vmatprep.subr.mxu1 %v7629_v57  ;;  %15269 = vst [vmem:[#allocation63_spill] sm:$0xff] %v7671_v3  ;;  %v34_v57 = vld [vmem:[%s14581_s0] sm:$0xff] }
  0x3b   :  { %245 = vmatpush2.msra.mxu0 %v7599_v61  ;;  %15266 = vst [vmem:[#allocation60_spill] sm:$0xff] %v7641_v59  ;;  %v7653_v61 = vld [vmem:[%s14580_s2 + $0x2b8] sm:$0xff]  ;;  %310 = vmatpush2.msra.mxu1 %v7641_v59 }
  0x3c   :  { %246 = vmatprep.subr.mxu0 %v7611_v63  ;;  %15267 = vst [vmem:[#allocation61_spill] sm:$0xff] %v7653_v61  ;;  %v7665_v63 = vld [vmem:[%s14580_s2 + $0x2b0] sm:$0xff]  ;;  %311 = vmatprep.subr.mxu1 %v7653_v61  ;;  %v7694_v59 = vld [vmem:[%s14580_s2 + $0x278] sm:$0xff] }
  0x3d   :  { %247 = vmatpush2.msra.mxu0 %v7623_v56  ;;  %15268 = vst [vmem:[#allocation62_spill] sm:$0xff] %v7665_v63  ;;  %v7677_v56 = vld [vmem:[%s14580_s2 + $0x298] sm:$0xff]  ;;  %312 = vmatpush2.msra.mxu1 %v7665_v63  ;;  %15271 = vst [vmem:[#allocation65_spill] sm:$0xff] %v7694_v59  ;;  %v7701_v61 = vld [vmem:[%s14580_s2 + $0x270] sm:$0xff] }
  0x3e   :  { %248 = vmatprep.subr.mxu0 %v7635_v58  ;;  %v7687_v58 = vld [vmem:[%s14580_s2 + $0x290] sm:$0xff]  ;;  %313 = vmatprep.subr.mxu1 %v7677_v56  ;;  %v7707_v63 = vld [vmem:[%s14580_s2 + $0x258] sm:$0xff] }
  0x3f   :  { %249 = vmatpush2.msra.mxu0 %v7647_v60  ;;  %15270 = vst [vmem:[#allocation64_spill] sm:$0xff] %v7687_v58  ;;  %314 = vmatpush2.msra.mxu1 %v7687_v58  ;;  %v7720_v58 = vld [vmem:[%s14580_s2 + $0x238] sm:$0xff] }
  0x40   :  { %250 = vmatprep.subr.mxu0 %v7659_v62  ;;  %315 = vmatprep.subr.mxu1 %v7694_v59  ;;  %v7727_v59 = vld [vmem:[%s14580_s2 + $0x230] sm:$0xff] }
  0x41   :  { %251 = vmatpush2.msra.mxu0 %v7671_v3  ;;  %v7713_v3 = vld [vmem:[%s14580_s2 + $0x250] sm:$0xff]  ;;  %316 = vmatpush2.msra.mxu1 %v7701_v61 }
  0x42   :  { %253 = vmatmul.mubr.f32.vlgmr.msra.gmra.mxu0 %v34_v57  ;;  %505 = vmatprep.subr.mxu0 %v6972_v0  ;;  %v7734_v0 = vld [vmem:[%s14580_s2 + $0x218] sm:$0xff] }
  0x43   :  { %506 = vmatpush1.msra.mxu0 %v6977_v1  ;;  %317 = vmatprep.subr.mxu1 %v7707_v63  ;;  %v7741_v1 = vld [vmem:[%s14580_s2 + $0x210] sm:$0xff] }
  0x44   :  { %507 = vmatprep.subr.mxu0 %v6982_v2  ;;  %318 = vmatpush2.msra.mxu1 %v7713_v3  ;;  %v15272_v2 = vld [vmem:[#allocation3_spill] sm:$0xff] }
  0x45   :  { %508 = vmatpush1.msra.mxu0 %v6990_v4  ;;  %319 = vmatprep.subr.mxu1 %v7720_v58  ;;  %v15273_v4 = vld [vmem:[#allocation4_spill] sm:$0xff] }
  0x46   :  { %509 = vmatprep.subr.mxu0 %v6996_v5  ;;  %320 = vmatpush2.msra.mxu1 %v7727_v59  ;;  %v15274_v5 = vld [vmem:[#allocation5_spill] sm:$0xff] }
  0x47   :  { %510 = vmatpush1.msra.mxu0 %v7002_v6  ;;  %321 = vmatprep.subr.mxu1 %v7734_v0  ;;  %v15275_v6 = vld [vmem:[#allocation6_spill] sm:$0xff] }
  0x48   :  { %511 = vmatprep.subr.mxu0 %v7008_v7  ;;  %322 = vmatpush2.msra.mxu1 %v7741_v1  ;;  %v15276_v7 = vld [vmem:[#allocation7_spill] sm:$0xff] }
  0x49   :  { %512 = vmatpush1.msra.mxu0 %v7014_v8  ;;  %324 = vmatmul.mubr.f32.vlgmr.msra.gmra.mxu1 %v34_v57  ;;  %v15277_v8 = vld [vmem:[#allocation8_spill] sm:$0xff] }
  0x4a   :  { %513 = vmatprep.subr.mxu0 %v7020_v9  ;;  %576 = vmatprep.subr.mxu1 %v7043_v13  ;;  %v15278_v9 = vld [vmem:[#allocation9_spill] sm:$0xff]  ;;  %v15325_v57 = vld [vmem:[#allocation56_spill] sm:$0xff] }
  0x4b   :  { %514 = vmatpush1.msra.mxu0 %v7026_v10  ;;  %577 = vmatpush1.msra.mxu1 %v7055_v15  ;;  %v15279_v10 = vld [vmem:[#allocation10_spill] sm:$0xff]  ;;  %v15282_v13 = vld [vmem:[#allocation13_spill] sm:$0xff]  ;;  %v15284_v15 = vld [vmem:[#allocation15_spill] sm:$0xff] }
  0x4c   :  { %515 = vmatprep.subr.mxu0 %v7032_v11  ;;  %578 = vmatprep.subr.mxu1 %v7067_v17  ;;  %v15280_v11 = vld [vmem:[#allocation11_spill] sm:$0xff]  ;;  %v15286_v17 = vld [vmem:[#allocation17_spill] sm:$0xff] }
  0x4d   :  { %516 = vmatpush1.msra.mxu0 %v7038_v12  ;;  %579 = vmatpush1.msra.mxu1 %v7072_v18  ;;  %v15281_v12 = vld [vmem:[#allocation12_spill] sm:$0xff]  ;;  %v15287_v18 = vld [vmem:[#allocation18_spill] sm:$0xff] }
  0x4e   :  { %517 = vmatprep.subr.mxu0 %v7049_v14  ;;  %580 = vmatprep.subr.mxu1 %v7084_v20  ;;  %v15283_v14 = vld [vmem:[#allocation14_spill] sm:$0xff]  ;;  %v15289_v20 = vld [vmem:[#allocation20_spill] sm:$0xff] }
  0x4f   :  { %518 = vmatpush1.msra.mxu0 %v7061_v16  ;;  %581 = vmatpush1.msra.mxu1 %v7096_v22  ;;  %v15285_v16 = vld [vmem:[#allocation16_spill] sm:$0xff]  ;;  %v15291_v22 = vld [vmem:[#allocation22_spill] sm:$0xff] }
  0x50   :  { %519 = vmatprep.subr.mxu0 %v7078_v19  ;;  %582 = vmatprep.subr.mxu1 %v7101_v23  ;;  %v15288_v19 = vld [vmem:[#allocation19_spill] sm:$0xff] }
  0x51   :  { %520 = vmatpush1.msra.mxu0 %v7090_v21  ;;  %583 = vmatpush1.msra.mxu1 %v7113_v25  ;;  %v15290_v21 = vld [vmem:[#allocation21_spill] sm:$0xff]  ;;  %v15292_v23 = vld [vmem:[#allocation23_spill] sm:$0xff] }
  0x52   :  { %521 = vmatprep.subr.mxu0 %v7107_v24  ;;  %584 = vmatprep.subr.mxu1 %v7125_v27  ;;  %v15293_v24 = vld [vmem:[#allocation24_spill] sm:$0xff]  ;;  %v15294_v25 = vld [vmem:[#allocation25_spill] sm:$0xff]  ;;  %v15296_v27 = vld [vmem:[#allocation27_spill] sm:$0xff] }
  0x53   :  { %522 = vmatpush1.msra.mxu0 %v7119_v26  ;;  %585 = vmatpush1.msra.mxu1 %v7137_v29  ;;  %v15295_v26 = vld [vmem:[#allocation26_spill] sm:$0xff]  ;;  %v15298_v29 = vld [vmem:[#allocation29_spill] sm:$0xff] }
  0x54   :  { %523 = vmatprep.subr.mxu0 %v7131_v28  ;;  %586 = vmatprep.subr.mxu1 %v7149_v31  ;;  %v15297_v28 = vld [vmem:[#allocation28_spill] sm:$0xff]  ;;  %v15300_v31 = vld [vmem:[#allocation31_spill] sm:$0xff] }
  0x55   :  { %524 = vmatpush1.msra.mxu0 %v7143_v30  ;;  %587 = vmatpush1.msra.mxu1 %v7161_v33  ;;  %v15299_v30 = vld [vmem:[#allocation30_spill] sm:$0xff]  ;;  %v15302_v33 = vld [vmem:[#allocation33_spill] sm:$0xff] }
  0x56   :  { %525 = vmatprep.subr.mxu0 %v7155_v32  ;;  %588 = vmatprep.subr.mxu1 %v7173_v35  ;;  %v15301_v32 = vld [vmem:[#allocation32_spill] sm:$0xff]  ;;  %v15304_v35 = vld [vmem:[#allocation35_spill] sm:$0xff] }
  0x57   :  { %526 = vmatpush1.msra.mxu0 %v7167_v34  ;;  %589 = vmatpush1.msra.mxu1 %v7185_v37  ;;  %v15303_v34 = vld [vmem:[#allocation34_spill] sm:$0xff]  ;;  %v15306_v37 = vld [vmem:[#allocation37_spill] sm:$0xff] }
  0x58   :  { %527 = vmatprep.subr.mxu0 %v7179_v36  ;;  %590 = vmatprep.subr.mxu1 %v7197_v39  ;;  %v15305_v36 = vld [vmem:[#allocation36_spill] sm:$0xff]  ;;  %v15308_v39 = vld [vmem:[#allocation39_spill] sm:$0xff] }
  0x59   :  { %528 = vmatpush1.msra.mxu0 %v7191_v38  ;;  %591 = vmatpush1.msra.mxu1 %v7209_v41  ;;  %v15307_v38 = vld [vmem:[#allocation38_spill] sm:$0xff]  ;;  %v15310_v41 = vld [vmem:[#allocation41_spill] sm:$0xff] }
  0x5a   :  { %529 = vmatprep.subr.mxu0 %v7203_v40  ;;  %592 = vmatprep.subr.mxu1 %v7221_v43  ;;  %v15309_v40 = vld [vmem:[#allocation40_spill] sm:$0xff]  ;;  %v15312_v43 = vld [vmem:[#allocation43_spill] sm:$0xff] }
  0x5b   :  { %530 = vmatpush1.msra.mxu0 %v7215_v42  ;;  %593 = vmatpush1.msra.mxu1 %v7233_v45  ;;  %v15311_v42 = vld [vmem:[#allocation42_spill] sm:$0xff]  ;;  %v15314_v45 = vld [vmem:[#allocation45_spill] sm:$0xff] }
  0x5c   :  { %531 = vmatprep.subr.mxu0 %v7227_v44  ;;  %594 = vmatprep.subr.mxu1 %v7245_v47  ;;  %v15313_v44 = vld [vmem:[#allocation44_spill] sm:$0xff]  ;;  %v15316_v47 = vld [vmem:[#allocation47_spill] sm:$0xff] }
  0x5d   :  { %532 = vmatpush1.msra.mxu0 %v7239_v46  ;;  %595 = vmatpush1.msra.mxu1 %v7257_v49  ;;  %v15315_v46 = vld [vmem:[#allocation46_spill] sm:$0xff]  ;;  %v15318_v49 = vld [vmem:[#allocation49_spill] sm:$0xff] }
  0x5e   :  { %533 = vmatprep.subr.mxu0 %v7251_v48  ;;  %596 = vmatprep.subr.mxu1 %v7269_v51  ;;  %v15317_v48 = vld [vmem:[#allocation48_spill] sm:$0xff]  ;;  %v15320_v51 = vld [vmem:[#allocation51_spill] sm:$0xff] }
  0x5f   :  { %534 = vmatpush1.msra.mxu0 %v7263_v50  ;;  %597 = vmatpush1.msra.mxu1 %v7281_v53  ;;  %v15319_v50 = vld [vmem:[#allocation50_spill] sm:$0xff]  ;;  %v15322_v53 = vld [vmem:[#allocation53_spill] sm:$0xff] }
  0x60   :  { %535 = vmatprep.subr.mxu0 %v7275_v52  ;;  %598 = vmatprep.subr.mxu1 %v7293_v55  ;;  %v15321_v52 = vld [vmem:[#allocation52_spill] sm:$0xff]  ;;  %v15324_v55 = vld [vmem:[#allocation55_spill] sm:$0xff] }
  0x61   :  { %536 = vmatpush1.msra.mxu0 %v7287_v54  ;;  %599 = vmatpush1.msra.mxu1 %v15273_v4  ;;  %v15323_v54 = vld [vmem:[#allocation54_spill] sm:$0xff] }
  0x62   :  { %537 = vmatprep.subr.mxu0 %v15272_v2  ;;  %600 = vmatprep.subr.mxu1 %v15275_v6  ;;  %v15326_v2 = vld [vmem:[#allocation57_spill] sm:$0xff]  ;;  %v15327_v4 = vld [vmem:[#allocation58_spill] sm:$0xff]  ;;  %v15329_v6 = vld [vmem:[#allocation60_spill] sm:$0xff] }
  0x63   :  { %538 = vmatpush2.msra.mxu0 %v15274_v5  ;;  %601 = vmatpush1.msra.mxu1 %v15277_v8  ;;  %v15328_v5 = vld [vmem:[#allocation59_spill] sm:$0xff]  ;;  %v15331_v8 = vld [vmem:[#allocation62_spill] sm:$0xff] }
  0x64   :  { %539 = vmatprep.subr.mxu0 %v15276_v7  ;;  %602 = vmatprep.subr.mxu1 %v15279_v10  ;;  %v15330_v7 = vld [vmem:[#allocation61_spill] sm:$0xff]  ;;  %v15333_v10 = vld [vmem:[#allocation64_spill] sm:$0xff] }
  0x65   :  { %540 = vmatpush2.msra.mxu0 %v15278_v9  ;;  %603 = vmatpush1.msra.mxu1 %v15281_v12  ;;  %v15332_v9 = vld [vmem:[#allocation63_spill] sm:$0xff] }
  0x66   :  { %541 = vmatprep.subr.mxu0 %v15280_v11  ;;  %604 = vmatprep.subr.mxu1 %v15283_v14  ;;  %v15334_v11 = vld [vmem:[#allocation65_spill] sm:$0xff] }
  0x67   :  { %542 = vmatpush2.msra.mxu0 %v15282_v13  ;;  %605 = vmatpush1.msra.mxu1 %v15285_v16 }
  0x68   :  { %543 = vmatprep.subr.mxu0 %v15284_v15  ;;  %606 = vmatprep.subr.mxu1 %v15287_v18 }
  0x69   :  { %544 = vmatpush2.msra.mxu0 %v15286_v17  ;;  %607 = vmatpush1.msra.mxu1 %v15289_v20 }
  0x6a   :  { %545 = vmatprep.subr.mxu0 %v15288_v19  ;;  %608 = vmatprep.subr.mxu1 %v15291_v22 }
  0x6b   :  { %546 = vmatpush2.msra.mxu0 %v15290_v21  ;;  %609 = vmatpush2.msra.mxu1 %v15293_v24 }
  0x6c   :  { %547 = vmatprep.subr.mxu0 %v15292_v23  ;;  %610 = vmatprep.subr.mxu1 %v15295_v26 }
  0x6d   :  { %548 = vmatpush2.msra.mxu0 %v15294_v25  ;;  %611 = vmatpush2.msra.mxu1 %v15297_v28 }
  0x6e   :  { %549 = vmatprep.subr.mxu0 %v15296_v27  ;;  %612 = vmatprep.subr.mxu1 %v15299_v30 }
  0x6f   :  { %550 = vmatpush2.msra.mxu0 %v15298_v29  ;;  %613 = vmatpush2.msra.mxu1 %v15301_v32 }
  0x70   :  { %551 = vmatprep.subr.mxu0 %v15300_v31  ;;  %614 = vmatprep.subr.mxu1 %v15303_v34 }
  0x71   :  { %552 = vmatpush2.msra.mxu0 %v15302_v33  ;;  %615 = vmatpush2.msra.mxu1 %v15305_v36 }
  0x72   :  { %553 = vmatprep.subr.mxu0 %v15304_v35  ;;  %616 = vmatprep.subr.mxu1 %v15307_v38  ;;  %v7906_v38 = vld [vmem:[%s14580_s2 + $0x1e0] sm:$0xff] }
  0x73   :  { %554 = vmatpush2.msra.mxu0 %v15306_v37  ;;  %617 = vmatpush2.msra.mxu1 %v15309_v40  ;;  %v6072_v37 = vld [vmem:[%s14581_s0 + $0x8] sm:$0xff]  ;;  %v7918_v40 = vld [vmem:[%s14580_s2 + $0x1c0] sm:$0xff] }
  0x74   :  { %555 = vmatprep.subr.mxu0 %v15308_v39  ;;  %618 = vmatprep.subr.mxu1 %v15311_v42  ;;  %v7913_v39 = vld [vmem:[%s14580_s2 + $0x1c8] sm:$0xff]  ;;  %v7930_v42 = vld [vmem:[%s14580_s2 + $0x1a0] sm:$0xff] }
  0x75   :  { %556 = vmatpush2.msra.mxu0 %v15310_v41  ;;  %619 = vmatpush2.msra.mxu1 %v15313_v44  ;;  %v7924_v41 = vld [vmem:[%s14580_s2 + $0x1a8] sm:$0xff]  ;;  %v7944_v44 = vld [vmem:[%s14580_s2 + $0x180] sm:$0xff] }
  0x76   :  { %557 = vmatprep.subr.mxu0 %v15312_v43  ;;  %620 = vmatprep.subr.mxu1 %v15315_v46  ;;  %v7938_v43 = vld [vmem:[%s14580_s2 + $0x188] sm:$0xff]  ;;  %v7956_v46 = vld [vmem:[%s14580_s2 + $0x160] sm:$0xff] }
  0x77   :  { %558 = vmatpush2.msra.mxu0 %v15314_v45  ;;  %621 = vmatpush2.msra.mxu1 %v15317_v48  ;;  %v7950_v45 = vld [vmem:[%s14580_s2 + $0x168] sm:$0xff]  ;;  %v7968_v48 = vld [vmem:[%s14580_s2 + $0x140] sm:$0xff] }
  0x78   :  { %559 = vmatprep.subr.mxu0 %v15316_v47  ;;  %622 = vmatprep.subr.mxu1 %v15319_v50  ;;  %v7962_v47 = vld [vmem:[%s14580_s2 + $0x148] sm:$0xff]  ;;  %v7980_v50 = vld [vmem:[%s14580_s2 + $0x120] sm:$0xff] }
  0x79   :  { %560 = vmatpush2.msra.mxu0 %v15318_v49  ;;  %623 = vmatpush2.msra.mxu1 %v15321_v52  ;;  %v7974_v49 = vld [vmem:[%s14580_s2 + $0x128] sm:$0xff]  ;;  %v7992_v52 = vld [vmem:[%s14580_s2 + $0x100] sm:$0xff] }
  0x7a   :  { %561 = vmatprep.subr.mxu0 %v15320_v51  ;;  %624 = vmatprep.subr.mxu1 %v15323_v54  ;;  %v7986_v51 = vld [vmem:[%s14580_s2 + $0x108] sm:$0xff]  ;;  %v8004_v54 = vld [vmem:[%s14580_s2 + $0xe0] sm:$0xff] }
  0x7b   :  { %562 = vmatpush2.msra.mxu0 %v15322_v53  ;;  %625 = vmatpush2.msra.mxu1 %v15325_v57  ;;  %v7998_v53 = vld [vmem:[%s14580_s2 + $0xe8] sm:$0xff]  ;;  %v8016_v57 = vld [vmem:[%s14580_s2 + $0xc0] sm:$0xff] }
  0x7c   :  { %563 = vmatprep.subr.mxu0 %v15324_v55  ;;  %626 = vmatprep.subr.mxu1 %v15327_v4  ;;  %v8010_v55 = vld [vmem:[%s14580_s2 + $0xc8] sm:$0xff]  ;;  %v8028_v4 = vld [vmem:[%s14580_s2 + $0xa0] sm:$0xff] }
  0x7d   :  { %564 = vmatpush2.msra.mxu0 %v15326_v2  ;;  %627 = vmatpush2.msra.mxu1 %v15329_v6  ;;  %v8022_v2 = vld [vmem:[%s14580_s2 + $0xa8] sm:$0xff]  ;;  %v8040_v6 = vld [vmem:[%s14580_s2 + $0x80] sm:$0xff] }
  0x7e   :  { %565 = vmatprep.subr.mxu0 %v15328_v5  ;;  %628 = vmatprep.subr.mxu1 %v15330_v7  ;;  %v8034_v5 = vld [vmem:[%s14580_s2 + $0x88] sm:$0xff]  ;;  %15338 = vst [vmem:[#allocation6_spill] sm:$0xff] %v8040_v6 }
  0x7f   :  { %566 = vmatpush2.msra.mxu0 %v7647_v60  ;;  %629 = vmatpush2.msra.mxu1 %v15331_v8  ;;  %v14655_v60 = vlaneseq  ;;  %v8046_v7 = vld [vmem:[%s14580_s2 + $0x68] sm:$0xff]  ;;  %v8052_v8 = vld [vmem:[%s14580_s2 + $0x60] sm:$0xff] }
  0x80   :  { %567 = vmatprep.subr.mxu0 %v7659_v62  ;;  %630 = vmatprep.subr.mxu1 %v7677_v56  ;;  %v7873_v56 = vld [vmem:[%s14580_s2 + $0x1e8] sm:$0xff]  ;;  %15339 = vst [vmem:[#allocation7_spill] sm:$0xff] %v8046_v7  ;;  %15340 = vst [vmem:[#allocation8_spill] sm:$0xff] %v8052_v8 }
  0x81   :  { %568 = vmatpush2.msra.mxu0 %v15332_v9  ;;  %631 = vmatpush2.msra.mxu1 %v15333_v10  ;;  %v8058_v9 = vld [vmem:[%s14580_s2 + $0x48] sm:$0xff]  ;;  %v8064_v10 = vld [vmem:[%s14580_s2 + $0x40] sm:$0xff] }
  0x82   :  { %632 = vmatprep.subr.mxu1 %v15334_v11  ;;  %822 = vmatprep.subr.mxu0 %v7873_v56  ;;  %15341 = vst [vmem:[#allocation9_spill] sm:$0xff] %v8058_v9  ;;  %15342 = vst [vmem:[#allocation10_spill] sm:$0xff] %v8064_v10  ;;  %v8070_v11 = vld [vmem:[%s14580_s2 + $0x28] sm:$0xff] }
  0x83   :  { %633 = vmatpush2.msra.mxu1 %v7701_v61  ;;  %v7877_v61 = vshrl.u32 %v14655_v60, 7  ;;  %15343 = vst [vmem:[#allocation11_spill] sm:$0xff] %v8070_v11  ;;  %v8243_v60 = vld [vmem:[%s14580_s2 + $0x118] sm:$0xff] }
  0x84   :  { %634 = vmatprep.subr.mxu1 %v7707_v63 }
  0x85   :  { %635 = vmatpush2.msra.mxu1 %v7713_v3  ;;  %15335 = vst [vmem:[#allocation3_spill] sm:$0xff] %v7877_v61  ;;  %v7880_v3 = vsub.s32 0, %v7877_v61  ;;  %v7887_v62 = vsub.s32 1, %v7877_v61  ;;  %v7891_v18 = vsub.s32 3, %v7877_v61  ;;  %v7894_v20 = vsub.s32 2, %v7877_v61  ;;  %v8250_v61 = vld [vmem:[%s14580_s2 + $0x340] sm:$0xff] }
  0x86   :  { %636 = vmatprep.subr.mxu1 %v7720_v58  ;;  %v166_v58 = vld [vmem:[%s14582_s3] sm:$0xf]  ;;  %15358 = vst [vmem:[#allocation26_spill] sm:$0xff] %v8250_v61 }
  0x87   :  { %637 = vmatpush2.msra.mxu1 %v7727_v59  ;;  %15336 = vst [vmem:[#allocation4_spill] sm:$0xff] %v7880_v3  ;;  %v171_v59 = vrot.slane %v166_v58, %v7880_v3  ;;  %15337 = vst [vmem:[#allocation5_spill] sm:$0xff] %v7887_v62  ;;  %v175_v12 = vrot.slane %v166_v58, %v7887_v62  ;;  %v183_v22 = vrot.slane %v166_v58, %v7891_v18 }
  0x88   :  { %638 = vmatprep.subr.mxu1 %v7734_v0  ;;  %v179_v25 = vrot.slane %v166_v58, %v7894_v20  ;;  %v8075_v58 = vld [vmem:[%s14580_s2 + $0x1f8] sm:$0xff] }
  0x89   :  { %639 = vmatpush2.msra.mxu1 %v7741_v1 }
  0x8a   :  { %893 = vmatprep.subr.mxu1 %v8075_v58 }
 0x102   :  { %v254_v63 = vpop.f32.mrf.mxu0 }
 0x103   :  { %v255_v0 = vadd.f32 %v254_v63, %v171_v59  ;;  %v8082_v59 = vld [vmem:[%s14580_s2 + $0x20] sm:$0xff]  ;;  %v8087_v63 = vld [vmem:[%s14580_s2 + $0x1f0] sm:$0xff] }
 0x104   :  { %v256_v13 = vpop.f32.mrf.mxu0  ;;  %15344 = vst [vmem:[#allocation12_spill] sm:$0xff] %v8082_v59 }
 0x105   :  { %v6070_v1 = vmul.f32 -1.442695, %v255_v0  ;;  %v257_v14 = vadd.f32 %v256_v13, %v175_v12  ;;  %v8094_v0 = vld [vmem:[%s14580_s2 + $0x8] sm:$0xff]  ;;  %v8104_v12 = vld [vmem:[%s14580_s2] sm:$0xff]  ;;  %v8111_v13 = vld [vmem:[%s14580_s2 + $0x1d0] sm:$0xff] }
 0x106   :  { %15345 = vst [vmem:[#allocation13_spill] sm:$0xff] %v8094_v0  ;;  %15346 = vst [vmem:[#allocation14_spill] sm:$0xff] %v8104_v12 }
 0x107   :  { %6775 = vpow2.f32 %v6070_v1  ;;  %v6071_v15 = vmul.f32 -1.442695, %v257_v14  ;;  %v8099_v1 = vld [vmem:[%s14580_s2 + $0x1d8] sm:$0xff]  ;;  %v8116_v14 = vld [vmem:[%s14580_s2 + $0x3e8] sm:$0xff] }
 0x108   :  { %15347 = vst [vmem:[#allocation15_spill] sm:$0xff] %v8116_v14 }
 0x109   :  { %6777 = vpow2.f32 %v6071_v15  ;;  %v325_v19 = vpop.f32.mrf.mxu1  ;;  %v8121_v15 = vld [vmem:[%s14580_s2 + $0x1b8] sm:$0xff] }
 0x10a   :  { %v326_v28 = vadd.f32 %v325_v19, %v179_v25  ;;  %v8138_v19 = vld [vmem:[%s14580_s2 + $0x3c8] sm:$0xff]  ;;  %v8171_v25 = vld [vmem:[%s14580_s2 + $0x178] sm:$0xff] }
 0x10b   :  { %v327_v23 = vpop.f32.mrf.mxu1  ;;  %15349 = vst [vmem:[#allocation17_spill] sm:$0xff] %v8138_v19 }
 0x10c   :  { %v328_v26 = vadd.f32 %v327_v23, %v183_v22  ;;  %v8150_v22 = vld [vmem:[%s14580_s2 + $0x3c0] sm:$0xff]  ;;  %v8155_v23 = vld [vmem:[%s14580_s2 + $0x190] sm:$0xff] }
 0x10d   :  { %15350 = vst [vmem:[#allocation18_spill] sm:$0xff] %v8150_v22 }
 0x114   :  { %v6776_v16 = vpop.eup %6775 }
 0x115   :  { %v333_v17 = vadd.f32 1.0, %v6776_v16  ;;  %v8128_v16 = vld [vmem:[%s14580_s2 + $0x3e0] sm:$0xff] }
 0x116   :  { %v6778_v21 = vpop.eup %6777  ;;  %15348 = vst [vmem:[#allocation16_spill] sm:$0xff] %v8128_v16 }
 0x117   :  { %6779 = vrcp.f32 %v333_v17  ;;  %v339_v24 = vadd.f32 1.0, %v6778_v21  ;;  %v8133_v17 = vld [vmem:[%s14580_s2 + $0x1b0] sm:$0xff]  ;;  %v8145_v21 = vld [vmem:[%s14580_s2 + $0x198] sm:$0xff] }
 0x119   :  { %6781 = vrcp.f32 %v339_v24  ;;  %v8166_v24 = vld [vmem:[%s14580_s2 + $0x3a8] sm:$0xff] }
 0x11a   :  { %15351 = vst [vmem:[#allocation19_spill] sm:$0xff] %v8166_v24 }
 0x124   :  { %v6780_v27 = vpop.eup %6779 }
 0x125   :  { %v342_v29 = vmul.f32 %v6780_v27, %v328_v26  ;;  %v8178_v26 = vld [vmem:[%s14580_s2 + $0x3a0] sm:$0xff]  ;;  %v8183_v27 = vld [vmem:[%s14580_s2 + $0x170] sm:$0xff] }
 0x126   :  { %v6782_v31 = vpop.eup %6781  ;;  %15352 = vst [vmem:[#allocation20_spill] sm:$0xff] %v8178_v26 }
 0x127   :  { %v343_v30 = vadd.f32 %v342_v29, %v326_v28  ;;  %v345_v32 = vsub.f32 1.0, %v6782_v31  ;;  %v347_v35 = vmul.f32 0.0, %v6782_v31  ;;  %v8190_v28 = vld [vmem:[%s14580_s2 + $0x388] sm:$0xff]  ;;  %v8195_v29 = vld [vmem:[%s14580_s2 + $0x158] sm:$0xff]  ;;  %v8207_v31 = vld [vmem:[%s14580_s2 + $0x150] sm:$0xff] }
 0x128   :  { %15353 = vst [vmem:[#allocation21_spill] sm:$0xff] %v8190_v28 }
 0x129   :  { %6783 = vtanh.f32 %v343_v30  ;;  %v8202_v30 = vld [vmem:[%s14580_s2 + $0x380] sm:$0xff] }
 0x12a   :  { %15354 = vst [vmem:[#allocation22_spill] sm:$0xff] %v8202_v30 }
 0x136   :  { %v6784_v33 = vpop.eup %6783 }
 0x137   :  { %v346_v34 = vmul.f32 %v6784_v33, %v345_v32  ;;  %v8214_v32 = vld [vmem:[%s14580_s2 + $0x368] sm:$0xff]  ;;  %v8219_v33 = vld [vmem:[%s14580_s2 + $0x138] sm:$0xff] }
 0x138   :  { %15355 = vst [vmem:[#allocation23_spill] sm:$0xff] %v8214_v32 }
 0x139   :  { %v7898_v36 = vadd.f32 %v347_v35, %v346_v34  ;;  %v8226_v34 = vld [vmem:[%s14580_s2 + $0x360] sm:$0xff]  ;;  %v8231_v35 = vld [vmem:[%s14580_s2 + $0x130] sm:$0xff] }
 0x13a   :  { %15356 = vst [vmem:[#allocation24_spill] sm:$0xff] %v8226_v34 }
 0x13b   :  { %569 = vmatprep.mubr.f32.mxu0 %v7898_v36  ;;  %640 = vmatprep.mubr.f32.mxu1 %v7898_v36 }
 0x13c   :  { %570 = vmatmul.mubr.f32.vlgmr.msra.gmra.mxu0 %v6072_v37  ;;  %641 = vmatmul.mubr.f32.vlgmr.msra.gmra.mxu1 %v6072_v37  ;;  %v8238_v37 = vld [vmem:[%s14580_s2 + $0x348] sm:$0xff] }
 0x13d   :  { %823 = vmatpush1.msra.mxu0 %v7906_v38  ;;  %894 = vmatpush1.msra.mxu1 %v8087_v63  ;;  %15357 = vst [vmem:[#allocation25_spill] sm:$0xff] %v8238_v37 }
 0x13e   :  { %824 = vmatprep.subr.mxu0 %v7913_v39  ;;  %895 = vmatprep.subr.mxu1 %v8099_v1 }
 0x13f   :  { %825 = vmatpush1.msra.mxu0 %v7918_v40  ;;  %896 = vmatpush1.msra.mxu1 %v8111_v13 }
 0x140   :  { %826 = vmatprep.subr.mxu0 %v7924_v41  ;;  %897 = vmatprep.subr.mxu1 %v8121_v15 }
 0x141   :  { %827 = vmatpush1.msra.mxu0 %v7930_v42  ;;  %898 = vmatpush1.msra.mxu1 %v8133_v17 }
 0x142   :  { %828 = vmatprep.subr.mxu0 %v7938_v43  ;;  %899 = vmatprep.subr.mxu1 %v8145_v21 }
 0x143   :  { %829 = vmatpush1.msra.mxu0 %v7944_v44  ;;  %900 = vmatpush1.msra.mxu1 %v8155_v23 }
 0x144   :  { %830 = vmatprep.subr.mxu0 %v7950_v45  ;;  %901 = vmatprep.subr.mxu1 %v8171_v25 }
 0x145   :  { %831 = vmatpush1.msra.mxu0 %v7956_v46  ;;  %902 = vmatpush1.msra.mxu1 %v8183_v27 }
 0x146   :  { %832 = vmatprep.subr.mxu0 %v7962_v47  ;;  %903 = vmatprep.subr.mxu1 %v8195_v29 }
 0x147   :  { %833 = vmatpush1.msra.mxu0 %v7968_v48  ;;  %904 = vmatpush1.msra.mxu1 %v8207_v31 }
 0x148   :  { %834 = vmatprep.subr.mxu0 %v7974_v49  ;;  %905 = vmatprep.subr.mxu1 %v8219_v33 }
 0x149   :  { %835 = vmatpush1.msra.mxu0 %v7980_v50  ;;  %906 = vmatpush1.msra.mxu1 %v8231_v35 }
 0x14a   :  { %836 = vmatprep.subr.mxu0 %v7986_v51  ;;  %907 = vmatprep.subr.mxu1 %v8243_v60 }
 0x14b   :  { %837 = vmatpush1.msra.mxu0 %v7992_v52 }
 0x14c   :  { %838 = vmatprep.subr.mxu0 %v7998_v53 }
 0x14d   :  { %839 = vmatpush1.msra.mxu0 %v8004_v54 }
 0x14e   :  { %840 = vmatprep.subr.mxu0 %v8010_v55 }
 0x14f   :  { %841 = vmatpush1.msra.mxu0 %v8016_v57 }
 0x150   :  { %842 = vmatprep.subr.mxu0 %v8022_v2 }
 0x151   :  { %843 = vmatpush1.msra.mxu0 %v8028_v4 }
 0x152   :  { %844 = vmatprep.subr.mxu0 %v8034_v5 }
 0x153   :  { %845 = vmatpush1.msra.mxu0 %v8040_v6 }
 0x154   :  { %846 = vmatprep.subr.mxu0 %v8046_v7 }
 0x155   :  { %847 = vmatpush1.msra.mxu0 %v8052_v8 }
 0x156   :  { %848 = vmatprep.subr.mxu0 %v8058_v9  ;;  %v8407_v9 = vld [vmem:[%s14580_s2 + $0x38] sm:$0xff] }
 0x157   :  { %849 = vmatpush1.msra.mxu0 %v8064_v10  ;;  %v8395_v10 = vld [vmem:[%s14580_s2 + $0x50] sm:$0xff]  ;;  %15378 = vst [vmem:[#allocation46_spill] sm:$0xff] %v8407_v9 }
 0x158   :  { %850 = vmatprep.subr.mxu0 %v8070_v11  ;;  %v8383_v11 = vld [vmem:[%s14580_s2 + $0x58] sm:$0xff]  ;;  %15376 = vst [vmem:[#allocation44_spill] sm:$0xff] %v8395_v10 }
 0x159   :  { %851 = vmatpush1.msra.mxu0 %v8082_v59  ;;  %v8371_v59 = vld [vmem:[%s14580_s2 + $0x70] sm:$0xff]  ;;  %15374 = vst [vmem:[#allocation42_spill] sm:$0xff] %v8383_v11 }
 0x15a   :  { %852 = vmatprep.subr.mxu0 %v8094_v0  ;;  %v8359_v0 = vld [vmem:[%s14580_s2 + $0x78] sm:$0xff]  ;;  %15372 = vst [vmem:[#allocation40_spill] sm:$0xff] %v8371_v59 }
 0x15b   :  { %853 = vmatpush1.msra.mxu0 %v8104_v12  ;;  %v8347_v12 = vld [vmem:[%s14580_s2 + $0x90] sm:$0xff]  ;;  %15370 = vst [vmem:[#allocation38_spill] sm:$0xff] %v8359_v0 }
 0x15c   :  { %854 = vmatprep.subr.mxu0 %v8116_v14  ;;  %v8342_v14 = vld [vmem:[%s14580_s2 + $0x2c0] sm:$0xff]  ;;  %15368 = vst [vmem:[#allocation36_spill] sm:$0xff] %v8347_v12 }
 0x15d   :  { %855 = vmatpush2.msra.mxu0 %v8128_v16  ;;  %v8330_v16 = vld [vmem:[%s14580_s2 + $0x2c8] sm:$0xff]  ;;  %15367 = vst [vmem:[#allocation35_spill] sm:$0xff] %v8342_v14 }
 0x15e   :  { %856 = vmatprep.subr.mxu0 %v8138_v19  ;;  %v8325_v19 = vld [vmem:[%s14580_s2 + $0xb0] sm:$0xff]  ;;  %15365 = vst [vmem:[#allocation33_spill] sm:$0xff] %v8330_v16 }
 0x15f   :  { %857 = vmatpush2.msra.mxu0 %v8150_v22  ;;  %v8313_v22 = vld [vmem:[%s14580_s2 + $0xb8] sm:$0xff] }
 0x160   :  { %858 = vmatprep.subr.mxu0 %v8166_v24  ;;  %v8308_v24 = vld [vmem:[%s14580_s2 + $0x2e8] sm:$0xff] }
 0x161   :  { %859 = vmatpush2.msra.mxu0 %v8178_v26  ;;  %v8296_v26 = vld [vmem:[%s14580_s2 + $0x300] sm:$0xff]  ;;  %15363 = vst [vmem:[#allocation31_spill] sm:$0xff] %v8308_v24 }
 0x162   :  { %860 = vmatprep.subr.mxu0 %v8190_v28  ;;  %v8291_v28 = vld [vmem:[%s14580_s2 + $0xd8] sm:$0xff]  ;;  %15362 = vst [vmem:[#allocation30_spill] sm:$0xff] %v8296_v26 }
 0x163   :  { %861 = vmatpush2.msra.mxu0 %v8202_v30  ;;  %v8279_v30 = vld [vmem:[%s14580_s2 + $0xf0] sm:$0xff] }
 0x164   :  { %862 = vmatprep.subr.mxu0 %v8214_v32  ;;  %v8267_v32 = vld [vmem:[%s14580_s2 + $0xf8] sm:$0xff] }
 0x165   :  { %863 = vmatpush2.msra.mxu0 %v8226_v34  ;;  %v8255_v34 = vld [vmem:[%s14580_s2 + $0x110] sm:$0xff] }
 0x166   :  { %864 = vmatprep.subr.mxu0 %v8238_v37  ;;  %908 = vmatpush1.msra.mxu1 %v8255_v34  ;;  %v8262_v37 = vld [vmem:[%s14580_s2 + $0x328] sm:$0xff] }
 0x167   :  { %865 = vmatpush2.msra.mxu0 %v8250_v61  ;;  %15359 = vst [vmem:[#allocation27_spill] sm:$0xff] %v8262_v37  ;;  %909 = vmatprep.subr.mxu1 %v8267_v32  ;;  %v8274_v61 = vld [vmem:[%s14580_s2 + $0x320] sm:$0xff] }
 0x168   :  { %866 = vmatprep.subr.mxu0 %v8262_v37  ;;  %15360 = vst [vmem:[#allocation28_spill] sm:$0xff] %v8274_v61  ;;  %910 = vmatpush1.msra.mxu1 %v8279_v30  ;;  %v8286_v37 = vld [vmem:[%s14580_s2 + $0x308] sm:$0xff] }
 0x169   :  { %867 = vmatpush2.msra.mxu0 %v8274_v61  ;;  %15361 = vst [vmem:[#allocation29_spill] sm:$0xff] %v8286_v37  ;;  %911 = vmatprep.subr.mxu1 %v8291_v28  ;;  %v8303_v61 = vld [vmem:[%s14580_s2 + $0xd0] sm:$0xff] }
 0x16a   :  { %868 = vmatprep.subr.mxu0 %v8286_v37  ;;  %912 = vmatpush1.msra.mxu1 %v8303_v61  ;;  %v8320_v37 = vld [vmem:[%s14580_s2 + $0x2e0] sm:$0xff] }
 0x16b   :  { %869 = vmatpush2.msra.mxu0 %v8296_v26  ;;  %15364 = vst [vmem:[#allocation32_spill] sm:$0xff] %v8320_v37  ;;  %913 = vmatprep.subr.mxu1 %v8313_v22  ;;  %v8337_v26 = vld [vmem:[%s14580_s2 + $0x98] sm:$0xff] }
 0x16c   :  { %870 = vmatprep.subr.mxu0 %v8308_v24  ;;  %15366 = vst [vmem:[#allocation34_spill] sm:$0xff] %v8337_v26  ;;  %914 = vmatpush1.msra.mxu1 %v8325_v19  ;;  %v8354_v24 = vld [vmem:[%s14580_s2 + $0x2a8] sm:$0xff] }
 0x16d   :  { %871 = vmatpush2.msra.mxu0 %v8320_v37  ;;  %15369 = vst [vmem:[#allocation37_spill] sm:$0xff] %v8354_v24  ;;  %915 = vmatprep.subr.mxu1 %v8337_v26  ;;  %v8366_v37 = vld [vmem:[%s14580_s2 + $0x2a0] sm:$0xff] }
 0x16e   :  { %872 = vmatprep.subr.mxu0 %v8330_v16  ;;  %15371 = vst [vmem:[#allocation39_spill] sm:$0xff] %v8366_v37  ;;  %916 = vmatpush1.msra.mxu1 %v8347_v12  ;;  %v8378_v16 = vld [vmem:[%s14580_s2 + $0x288] sm:$0xff] }
 0x16f   :  { %873 = vmatpush2.msra.mxu0 %v8342_v14  ;;  %15373 = vst [vmem:[#allocation41_spill] sm:$0xff] %v8378_v16  ;;  %917 = vmatprep.subr.mxu1 %v8359_v0  ;;  %v8390_v14 = vld [vmem:[%s14580_s2 + $0x280] sm:$0xff] }
 0x170   :  { %874 = vmatprep.subr.mxu0 %v8354_v24  ;;  %15375 = vst [vmem:[#allocation43_spill] sm:$0xff] %v8390_v14  ;;  %918 = vmatpush1.msra.mxu1 %v8371_v59  ;;  %v8402_v24 = vld [vmem:[%s14580_s2 + $0x268] sm:$0xff]  ;;  %v8419_v59 = vld [vmem:[%s14580_s2 + $0x30] sm:$0xff] }
 0x171   :  { %875 = vmatpush2.msra.mxu0 %v8366_v37  ;;  %15377 = vst [vmem:[#allocation45_spill] sm:$0xff] %v8402_v24  ;;  %919 = vmatprep.subr.mxu1 %v8383_v11  ;;  %v8414_v37 = vld [vmem:[%s14580_s2 + $0x260] sm:$0xff]  ;;  %15380 = vst [vmem:[#allocation48_spill] sm:$0xff] %v8419_v59  ;;  %v8431_v11 = vld [vmem:[%s14580_s2 + $0x18] sm:$0xff] }
 0x172   :  { %876 = vmatprep.subr.mxu0 %v8378_v16  ;;  %15379 = vst [vmem:[#allocation47_spill] sm:$0xff] %v8414_v37  ;;  %920 = vmatpush1.msra.mxu1 %v8395_v10  ;;  %v8426_v16 = vld [vmem:[%s14580_s2 + $0x248] sm:$0xff]  ;;  %15382 = vst [vmem:[#allocation50_spill] sm:$0xff] %v8431_v11  ;;  %v8443_v10 = vld [vmem:[%s14580_s2 + $0x10] sm:$0xff] }
 0x173   :  { %877 = vmatpush2.msra.mxu0 %v8390_v14  ;;  %15381 = vst [vmem:[#allocation49_spill] sm:$0xff] %v8426_v16  ;;  %921 = vmatprep.subr.mxu1 %v8407_v9  ;;  %v8438_v14 = vld [vmem:[%s14580_s2 + $0x240] sm:$0xff]  ;;  %15384 = vst [vmem:[#allocation52_spill] sm:$0xff] %v8443_v10  ;;  %v8455_v9 = vld [vmem:[%s14580_s2 + $0x3f8] sm:$0xff] }
 0x174   :  { %878 = vmatprep.subr.mxu0 %v8402_v24  ;;  %15383 = vst [vmem:[#allocation51_spill] sm:$0xff] %v8438_v14  ;;  %922 = vmatpush1.msra.mxu1 %v8419_v59  ;;  %v8450_v24 = vld [vmem:[%s14580_s2 + $0x228] sm:$0xff]  ;;  %15386 = vst [vmem:[#allocation54_spill] sm:$0xff] %v8455_v9  ;;  %v8467_v59 = vld [vmem:[%s14580_s2 + $0x3f0] sm:$0xff] }
 0x175   :  { %879 = vmatpush2.msra.mxu0 %v8414_v37  ;;  %15385 = vst [vmem:[#allocation53_spill] sm:$0xff] %v8450_v24  ;;  %923 = vmatprep.subr.mxu1 %v8431_v11  ;;  %v8462_v37 = vld [vmem:[%s14580_s2 + $0x220] sm:$0xff]  ;;  %15388 = vst [vmem:[#allocation56_spill] sm:$0xff] %v8467_v59  ;;  %v8479_v11 = vld [vmem:[%s14580_s2 + $0x3d8] sm:$0xff] }
 0x176   :  { %880 = vmatprep.subr.mxu0 %v8426_v16  ;;  %15387 = vst [vmem:[#allocation55_spill] sm:$0xff] %v8462_v37  ;;  %924 = vmatpush1.msra.mxu1 %v8443_v10  ;;  %v8474_v16 = vld [vmem:[%s14580_s2 + $0x208] sm:$0xff]  ;;  %15390 = vst [vmem:[#allocation58_spill] sm:$0xff] %v8479_v11  ;;  %v8495_v10 = vld [vmem:[%s14580_s2 + $0x3d0] sm:$0xff] }
 0x177   :  { %881 = vmatpush2.msra.mxu0 %v8438_v14  ;;  %15389 = vst [vmem:[#allocation57_spill] sm:$0xff] %v8474_v16  ;;  %925 = vmatprep.subr.mxu1 %v8455_v9  ;;  %v8486_v14 = vld [vmem:[%s14580_s2 + $0x200] sm:$0xff]  ;;  %15392 = vst [vmem:[#allocation60_spill] sm:$0xff] %v8495_v10 }
 0x178   :  { %882 = vmatprep.subr.mxu0 %v8450_v24  ;;  %15391 = vst [vmem:[#allocation59_spill] sm:$0xff] %v8486_v14  ;;  %926 = vmatpush2.msra.mxu1 %v8467_v59  ;;  %v8502_v24 = vld [vmem:[%s14580_s2 + $0x3b8] sm:$0xff] }
 0x179   :  { %883 = vmatpush2.msra.mxu0 %v8462_v37  ;;  %927 = vmatprep.subr.mxu1 %v8479_v11  ;;  %15393 = vst [vmem:[#allocation61_spill] sm:$0xff] %v8502_v24  ;;  %v8513_v37 = vld [vmem:[%s14580_s2 + $0x398] sm:$0xff] }
 0x17a   :  { %884 = vmatprep.subr.mxu0 %v8474_v16  ;;  %928 = vmatpush2.msra.mxu1 %v8495_v10  ;;  %v8508_v16 = vld [vmem:[%s14580_s2 + $0x3b0] sm:$0xff]  ;;  %15395 = vst [vmem:[#allocation63_spill] sm:$0xff] %v8513_v37 }
 0x17b   :  { %885 = vmatpush2.msra.mxu0 %v8486_v14  ;;  %929 = vmatprep.subr.mxu1 %v8502_v24  ;;  %15394 = vst [vmem:[#allocation62_spill] sm:$0xff] %v8508_v16  ;;  %v8518_v14 = vld [vmem:[%s14580_s2 + $0x390] sm:$0xff]  ;;  %v8525_v24 = vld [vmem:[%s14580_s2 + $0x378] sm:$0xff] }
 0x17c   :  { %15396 = vst [vmem:[#allocation64_spill] sm:$0xff] %v8518_v14  ;;  %1139 = vmatprep.subr.mxu0 %v7873_v56  ;;  %930 = vmatpush2.msra.mxu1 %v8508_v16  ;;  %15397 = vst [vmem:[#allocation65_spill] sm:$0xff] %v8525_v24  ;;  %v8531_v10 = vld [vmem:[%s14580_s2 + $0x370] sm:$0xff]  ;;  %v8537_v56 = vld [vmem:[%s14580_s2 + $0x358] sm:$0xff] }
 0x17d   :  { %931 = vmatprep.subr.mxu1 %v8513_v37  ;;  %15398 = vst [vmem:[#allocation66_spill] sm:$0xff] %v8531_v10  ;;  %15399 = vst [vmem:[#allocation67_spill] sm:$0xff] %v8537_v56  ;;  %v8543_v16 = vld [vmem:[%s14580_s2 + $0x350] sm:$0xff]  ;;  %v8549_v37 = vld [vmem:[%s14580_s2 + $0x338] sm:$0xff] }
 0x17e   :  { %932 = vmatpush2.msra.mxu1 %v8518_v14  ;;  %15400 = vst [vmem:[#allocation68_spill] sm:$0xff] %v8543_v16  ;;  %15401 = vst [vmem:[#allocation69_spill] sm:$0xff] %v8549_v37  ;;  %v8555_v14 = vld [vmem:[%s14580_s2 + $0x330] sm:$0xff] }
 0x17f   :  { %933 = vmatprep.subr.mxu1 %v8525_v24  ;;  %15402 = vst [vmem:[#allocation70_spill] sm:$0xff] %v8555_v14  ;;  %v8561_v24 = vld [vmem:[%s14580_s2 + $0x318] sm:$0xff] }
 0x180   :  { %934 = vmatpush2.msra.mxu1 %v8531_v10  ;;  %15403 = vst [vmem:[#allocation71_spill] sm:$0xff] %v8561_v24  ;;  %v8567_v10 = vld [vmem:[%s14580_s2 + $0x310] sm:$0xff] }
 0x181   :  { %935 = vmatprep.subr.mxu1 %v8537_v56  ;;  %15404 = vst [vmem:[#allocation72_spill] sm:$0xff] %v8567_v10  ;;  %v8573_v56 = vld [vmem:[%s14580_s2 + $0x2f8] sm:$0xff] }
 0x182   :  { %936 = vmatpush2.msra.mxu1 %v8543_v16  ;;  %15405 = vst [vmem:[#allocation73_spill] sm:$0xff] %v8573_v56  ;;  %v8579_v16 = vld [vmem:[%s14580_s2 + $0x2f0] sm:$0xff] }
 0x183   :  { %937 = vmatprep.subr.mxu1 %v8549_v37  ;;  %15406 = vst [vmem:[#allocation74_spill] sm:$0xff] %v8579_v16  ;;  %v8585_v37 = vld [vmem:[%s14580_s2 + $0x2d8] sm:$0xff] }
 0x184   :  { %938 = vmatpush2.msra.mxu1 %v8555_v14  ;;  %15407 = vst [vmem:[#allocation75_spill] sm:$0xff] %v8585_v37  ;;  %v8591_v14 = vld [vmem:[%s14580_s2 + $0x2d0] sm:$0xff] }
 0x185   :  { %939 = vmatprep.subr.mxu1 %v8561_v24  ;;  %15408 = vst [vmem:[#allocation76_spill] sm:$0xff] %v8591_v14  ;;  %v8597_v24 = vld [vmem:[%s14580_s2 + $0x2b8] sm:$0xff] }
 0x186   :  { %940 = vmatpush2.msra.mxu1 %v8567_v10  ;;  %15409 = vst [vmem:[#allocation77_spill] sm:$0xff] %v8597_v24  ;;  %v8603_v10 = vld [vmem:[%s14580_s2 + $0x2b0] sm:$0xff] }
 0x187   :  { %941 = vmatprep.subr.mxu1 %v8573_v56  ;;  %15410 = vst [vmem:[#allocation78_spill] sm:$0xff] %v8603_v10  ;;  %v8609_v56 = vld [vmem:[%s14580_s2 + $0x298] sm:$0xff] }
 0x188   :  { %942 = vmatpush2.msra.mxu1 %v8579_v16  ;;  %15411 = vst [vmem:[#allocation79_spill] sm:$0xff] %v8609_v56  ;;  %v8615_v16 = vld [vmem:[%s14580_s2 + $0x290] sm:$0xff] }
 0x189   :  { %943 = vmatprep.subr.mxu1 %v8585_v37  ;;  %15412 = vst [vmem:[#allocation80_spill] sm:$0xff] %v8615_v16  ;;  %v8621_v37 = vld [vmem:[%s14580_s2 + $0x278] sm:$0xff] }
 0x18a   :  { %944 = vmatpush2.msra.mxu1 %v8591_v14  ;;  %15413 = vst [vmem:[#allocation81_spill] sm:$0xff] %v8621_v37  ;;  %v8627_v14 = vld [vmem:[%s14580_s2 + $0x270] sm:$0xff] }
 0x18b   :  { %945 = vmatprep.subr.mxu1 %v8597_v24  ;;  %15414 = vst [vmem:[#allocation82_spill] sm:$0xff] %v8627_v14  ;;  %v8633_v24 = vld [vmem:[%s14580_s2 + $0x258] sm:$0xff] }
 0x18c   :  { %946 = vmatpush2.msra.mxu1 %v8603_v10  ;;  %15415 = vst [vmem:[#allocation83_spill] sm:$0xff] %v8633_v24  ;;  %v8639_v10 = vld [vmem:[%s14580_s2 + $0x250] sm:$0xff] }
 0x18d   :  { %947 = vmatprep.subr.mxu1 %v8609_v56  ;;  %15416 = vst [vmem:[#allocation84_spill] sm:$0xff] %v8639_v10  ;;  %v8645_v56 = vld [vmem:[%s14580_s2 + $0x238] sm:$0xff] }
 0x18e   :  { %948 = vmatpush2.msra.mxu1 %v8615_v16  ;;  %15417 = vst [vmem:[#allocation85_spill] sm:$0xff] %v8645_v56  ;;  %v8651_v16 = vld [vmem:[%s14580_s2 + $0x230] sm:$0xff] }
 0x18f   :  { %949 = vmatprep.subr.mxu1 %v8621_v37  ;;  %15418 = vst [vmem:[#allocation86_spill] sm:$0xff] %v8651_v16  ;;  %v8657_v37 = vld [vmem:[%s14580_s2 + $0x218] sm:$0xff] }
 0x190   :  { %950 = vmatpush2.msra.mxu1 %v8627_v14  ;;  %15419 = vst [vmem:[#allocation87_spill] sm:$0xff] %v8657_v37  ;;  %v8663_v14 = vld [vmem:[%s14580_s2 + $0x210] sm:$0xff] }
 0x191   :  { %951 = vmatprep.subr.mxu1 %v8633_v24  ;;  %15420 = vst [vmem:[#allocation88_spill] sm:$0xff] %v8663_v14 }
 0x192   :  { %952 = vmatpush2.msra.mxu1 %v8639_v10  ;;  %v483_v10 = vld [vmem:[%s14582_s3] sm:$0xf] }
 0x193   :  { %953 = vmatprep.subr.mxu1 %v8645_v56  ;;  %v488_v24 = vrot.slane %v483_v10, %v7880_v3  ;;  %v492_v9 = vrot.slane %v483_v10, %v7887_v62  ;;  %v500_v12 = vrot.slane %v483_v10, %v7891_v18  ;;  %v496_v3 = vrot.slane %v483_v10, %v7894_v20  ;;  %v15449_v10 = vld [vmem:[#allocation61_spill] sm:$0xff] }
 0x194   :  { %954 = vmatpush2.msra.mxu1 %v8651_v16 }
 0x195   :  { %955 = vmatprep.subr.mxu1 %v8657_v37 }
 0x196   :  { %956 = vmatpush2.msra.mxu1 %v8663_v14 }
 0x197   :  { %1210 = vmatprep.subr.mxu1 %v8075_v58 }
 0x1fc   :  { %v571_v56 = vpop.f32.mrf.mxu0  ;;  %v642_v58 = vpop.f32.mrf.mxu1 }
 0x1fd   :  { %v572_v11 = vadd.f32 %v571_v56, %v488_v24  ;;  %v643_v56 = vadd.f32 %v642_v58, %v496_v3  ;;  %v15422_v3 = vld [vmem:[#allocation6_spill] sm:$0xff]  ;;  %v15471_v58 = vld [vmem:[#allocation72_spill] sm:$0xff] }
 0x1fe   :  { %v573_v8 = vpop.f32.mrf.mxu0  ;;  %v644_v6 = vpop.f32.mrf.mxu1 }
 0x1ff   :  { %v6073_v59 = vmul.f32 -1.442695, %v572_v11  ;;  %v574_v16 = vadd.f32 %v573_v8, %v492_v9  ;;  %v645_v24 = vadd.f32 %v644_v6, %v500_v12  ;;  %v15448_v6 = vld [vmem:[#allocation19_spill] sm:$0xff]  ;;  %v15452_v12 = vld [vmem:[#allocation21_spill] sm:$0xff] }
 0x201   :  { %6785 = vpow2.f32 %v6073_v59  ;;  %v6074_v0 = vmul.f32 -1.442695, %v574_v16 }
 0x203   :  { %6787 = vpow2.f32 %v6074_v0 }
 0x20e   :  { %v6786_v37 = vpop.eup %6785 }
 0x20f   :  { %v650_v14 = vadd.f32 1.0, %v6786_v37 }
 0x210   :  { %v6788_v7 = vpop.eup %6787 }
 0x211   :  { %6789 = vrcp.f32 %v650_v14  ;;  %v656_v26 = vadd.f32 1.0, %v6788_v7  ;;  %v6075_v7 = vld [vmem:[%s14581_s0 + $0x10] sm:$0xff] }
 0x213   :  { %6791 = vrcp.f32 %v656_v26  ;;  %v15461_v26 = vld [vmem:[#allocation67_spill] sm:$0xff] }
 0x21e   :  { %v6790_v11 = vpop.eup %6789 }
 0x21f   :  { %v659_v62 = vmul.f32 %v6790_v11, %v645_v24  ;;  %v15472_v24 = vld [vmem:[#allocation31_spill] sm:$0xff]  ;;  %v15473_v11 = vld [vmem:[#allocation73_spill] sm:$0xff] }
 0x220   :  { %v6792_v8 = vpop.eup %6791 }
 0x221   :  { %v660_v59 = vadd.f32 %v659_v62, %v643_v56  ;;  %v662_v9 = vsub.f32 1.0, %v6792_v8  ;;  %v664_v14 = vmul.f32 %v6792_v8, %v7898_v36  ;;  %v15423_v62 = vld [vmem:[#allocation36_spill] sm:$0xff]  ;;  %v15424_v36 = vld [vmem:[#allocation7_spill] sm:$0xff]  ;;  %v15476_v8 = vld [vmem:[#allocation33_spill] sm:$0xff] }
 0x222   :  { %v15474_v56 = vld [vmem:[#allocation32_spill] sm:$0xff] }
 0x223   :  { %6793 = vtanh.f32 %v660_v59  ;;  %v15475_v59 = vld [vmem:[#allocation74_spill] sm:$0xff] }
 0x230   :  { %v6794_v0 = vpop.eup %6793 }
 0x231   :  { %v663_v16 = vmul.f32 %v6794_v0, %v662_v9  ;;  %v15477_v9 = vld [vmem:[#allocation75_spill] sm:$0xff] }
 0x232   :  { %v15478_v0 = vld [vmem:[#allocation35_spill] sm:$0xff] }
 0x233   :  { %v8677_v37 = vadd.f32 %v664_v14, %v663_v16  ;;  %v15479_v16 = vld [vmem:[#allocation76_spill] sm:$0xff]  ;;  %v15480_v14 = vld [vmem:[#allocation37_spill] sm:$0xff] }
 0x235   :  { %886 = vmatprep.mubr.f32.mxu0 %v8677_v37  ;;  %957 = vmatprep.mubr.f32.mxu1 %v8677_v37 }
 0x236   :  { %887 = vmatmul.mubr.f32.vlgmr.msra.gmra.mxu0 %v6075_v7  ;;  %958 = vmatmul.mubr.f32.vlgmr.msra.gmra.mxu1 %v6075_v7  ;;  %v15481_v7 = vld [vmem:[#allocation77_spill] sm:$0xff] }
 0x237   :  { %1140 = vmatpush1.msra.mxu0 %v7906_v38  ;;  %1211 = vmatpush1.msra.mxu1 %v8087_v63  ;;  %v15425_v38 = vld [vmem:[#allocation38_spill] sm:$0xff]  ;;  %v15450_v63 = vld [vmem:[#allocation20_spill] sm:$0xff] }
 0x238   :  { %1141 = vmatprep.subr.mxu0 %v7913_v39  ;;  %1212 = vmatprep.subr.mxu1 %v8099_v1  ;;  %v15427_v39 = vld [vmem:[#allocation40_spill] sm:$0xff]  ;;  %v15451_v1 = vld [vmem:[#allocation62_spill] sm:$0xff] }
 0x239   :  { %1142 = vmatpush1.msra.mxu0 %v7918_v40  ;;  %1213 = vmatpush1.msra.mxu1 %v8111_v13  ;;  %v15428_v40 = vld [vmem:[#allocation9_spill] sm:$0xff]  ;;  %v15453_v13 = vld [vmem:[#allocation63_spill] sm:$0xff] }
 0x23a   :  { %1143 = vmatprep.subr.mxu0 %v7924_v41  ;;  %1214 = vmatprep.subr.mxu1 %v8121_v15  ;;  %v15429_v41 = vld [vmem:[#allocation42_spill] sm:$0xff] }
 0x23b   :  { %1144 = vmatpush1.msra.mxu0 %v7930_v42  ;;  %1215 = vmatpush1.msra.mxu1 %v8133_v17  ;;  %v15430_v42 = vld [vmem:[#allocation10_spill] sm:$0xff]  ;;  %v15455_v17 = vld [vmem:[#allocation64_spill] sm:$0xff] }
 0x23c   :  { %1145 = vmatprep.subr.mxu0 %v7938_v43  ;;  %1216 = vmatprep.subr.mxu1 %v8145_v21  ;;  %v15431_v43 = vld [vmem:[#allocation44_spill] sm:$0xff]  ;;  %v15454_v15 = vld [vmem:[#allocation22_spill] sm:$0xff]  ;;  %v15457_v21 = vld [vmem:[#allocation65_spill] sm:$0xff] }
 0x23d   :  { %1146 = vmatpush1.msra.mxu0 %v7944_v44  ;;  %1217 = vmatpush1.msra.mxu1 %v8155_v23  ;;  %v15432_v44 = vld [vmem:[#allocation11_spill] sm:$0xff]  ;;  %v15459_v23 = vld [vmem:[#allocation66_spill] sm:$0xff] }
 0x23e   :  { %1147 = vmatprep.subr.mxu0 %v7950_v45  ;;  %1218 = vmatprep.subr.mxu1 %v8171_v25  ;;  %v15433_v45 = vld [vmem:[#allocation46_spill] sm:$0xff]  ;;  %v15460_v25 = vld [vmem:[#allocation25_spill] sm:$0xff] }
 0x23f   :  { %1148 = vmatpush1.msra.mxu0 %v7956_v46  ;;  %1219 = vmatpush1.msra.mxu1 %v8183_v27  ;;  %v15434_v46 = vld [vmem:[#allocation12_spill] sm:$0xff]  ;;  %v15462_v27 = vld [vmem:[#allocation26_spill] sm:$0xff] }
 0x240   :  { %1149 = vmatprep.subr.mxu0 %v7962_v47  ;;  %1220 = vmatprep.subr.mxu1 %v8195_v29  ;;  %v15435_v47 = vld [vmem:[#allocation48_spill] sm:$0xff]  ;;  %v15464_v29 = vld [vmem:[#allocation27_spill] sm:$0xff] }
 0x241   :  { %1150 = vmatpush1.msra.mxu0 %v7968_v48  ;;  %1221 = vmatpush1.msra.mxu1 %v8207_v31  ;;  %v15436_v48 = vld [vmem:[#allocation13_spill] sm:$0xff]  ;;  %v15466_v31 = vld [vmem:[#allocation28_spill] sm:$0xff] }
 0x242   :  { %1151 = vmatprep.subr.mxu0 %v7974_v49  ;;  %1222 = vmatprep.subr.mxu1 %v8219_v33  ;;  %v15437_v49 = vld [vmem:[#allocation50_spill] sm:$0xff]  ;;  %v15468_v33 = vld [vmem:[#allocation29_spill] sm:$0xff] }
 0x243   :  { %1152 = vmatpush1.msra.mxu0 %v7980_v50  ;;  %1223 = vmatpush1.msra.mxu1 %v8231_v35  ;;  %v15438_v50 = vld [vmem:[#allocation14_spill] sm:$0xff] }
 0x244   :  { %1153 = vmatprep.subr.mxu0 %v7986_v51  ;;  %1224 = vmatprep.subr.mxu1 %v8243_v60  ;;  %v15421_v60 = vld [vmem:[#allocation34_spill] sm:$0xff]  ;;  %v15439_v51 = vld [vmem:[#allocation52_spill] sm:$0xff] }
 0x245   :  { %1154 = vmatpush1.msra.mxu0 %v7992_v52  ;;  %1225 = vmatpush1.msra.mxu1 %v8255_v34  ;;  %v15440_v52 = vld [vmem:[#allocation15_spill] sm:$0xff]  ;;  %v15470_v35 = vld [vmem:[#allocation30_spill] sm:$0xff] }
 0x246   :  { %1155 = vmatprep.subr.mxu0 %v7998_v53  ;;  %1226 = vmatprep.subr.mxu1 %v8267_v32  ;;  %v15441_v53 = vld [vmem:[#allocation54_spill] sm:$0xff]  ;;  %v15469_v34 = vld [vmem:[#allocation71_spill] sm:$0xff] }
 0x247   :  { %1156 = vmatpush1.msra.mxu0 %v8004_v54  ;;  %1227 = vmatpush1.msra.mxu1 %v8279_v30  ;;  %v15442_v54 = vld [vmem:[#allocation16_spill] sm:$0xff]  ;;  %v15465_v30 = vld [vmem:[#allocation69_spill] sm:$0xff]  ;;  %v15467_v32 = vld [vmem:[#allocation70_spill] sm:$0xff] }
 0x248   :  { %1157 = vmatprep.subr.mxu0 %v8010_v55  ;;  %1228 = vmatprep.subr.mxu1 %v8291_v28  ;;  %v15443_v55 = vld [vmem:[#allocation56_spill] sm:$0xff] }
 0x249   :  { %1158 = vmatpush1.msra.mxu0 %v8016_v57  ;;  %1229 = vmatpush1.msra.mxu1 %v8303_v61  ;;  %v15426_v61 = vld [vmem:[#allocation8_spill] sm:$0xff]  ;;  %v15444_v57 = vld [vmem:[#allocation17_spill] sm:$0xff] }
 0x24a   :  { %1159 = vmatprep.subr.mxu0 %v8022_v2  ;;  %1230 = vmatprep.subr.mxu1 %v8313_v22  ;;  %v15445_v2 = vld [vmem:[#allocation58_spill] sm:$0xff]  ;;  %v15458_v22 = vld [vmem:[#allocation24_spill] sm:$0xff] }
 0x24b   :  { %1160 = vmatpush1.msra.mxu0 %v8028_v4  ;;  %1231 = vmatpush1.msra.mxu1 %v8325_v19  ;;  %v15446_v4 = vld [vmem:[#allocation18_spill] sm:$0xff]  ;;  %v15456_v19 = vld [vmem:[#allocation23_spill] sm:$0xff]  ;;  %v15463_v28 = vld [vmem:[#allocation68_spill] sm:$0xff] }
 0x24c   :  { %1161 = vmatprep.subr.mxu0 %v8034_v5  ;;  %1232 = vmatprep.subr.mxu1 %v15421_v60  ;;  %v15447_v5 = vld [vmem:[#allocation60_spill] sm:$0xff]  ;;  %v15482_v60 = vld [vmem:[#allocation39_spill] sm:$0xff] }
 0x24d   :  { %1162 = vmatpush1.msra.mxu0 %v15422_v3  ;;  %1233 = vmatpush1.msra.mxu1 %v15423_v62  ;;  %v15483_v3 = vld [vmem:[#allocation78_spill] sm:$0xff]  ;;  %v15484_v62 = vld [vmem:[#allocation41_spill] sm:$0xff] }
 0x24e   :  { %1163 = vmatprep.subr.mxu0 %v15424_v36  ;;  %1234 = vmatprep.subr.mxu1 %v15425_v38  ;;  %v15485_v36 = vld [vmem:[#allocation79_spill] sm:$0xff] }
 0x24f   :  { %1164 = vmatpush1.msra.mxu0 %v15426_v61  ;;  %1235 = vmatpush1.msra.mxu1 %v15427_v39  ;;  %v15486_v38 = vld [vmem:[#allocation43_spill] sm:$0xff]  ;;  %v15487_v61 = vld [vmem:[#allocation80_spill] sm:$0xff]  ;;  %v15488_v39 = vld [vmem:[#allocation45_spill] sm:$0xff] }
 0x250   :  { %1165 = vmatprep.subr.mxu0 %v15428_v40  ;;  %1236 = vmatprep.subr.mxu1 %v15429_v41  ;;  %v15489_v40 = vld [vmem:[#allocation81_spill] sm:$0xff]  ;;  %v15490_v41 = vld [vmem:[#allocation47_spill] sm:$0xff] }
 0x251   :  { %1166 = vmatpush1.msra.mxu0 %v15430_v42  ;;  %1237 = vmatpush1.msra.mxu1 %v15431_v43  ;;  %v15491_v42 = vld [vmem:[#allocation82_spill] sm:$0xff]  ;;  %v15492_v43 = vld [vmem:[#allocation49_spill] sm:$0xff] }
 0x252   :  { %1167 = vmatprep.subr.mxu0 %v15432_v44  ;;  %1238 = vmatprep.subr.mxu1 %v15433_v45  ;;  %v15493_v44 = vld [vmem:[#allocation83_spill] sm:$0xff] }
 0x253   :  { %1168 = vmatpush1.msra.mxu0 %v15434_v46  ;;  %1239 = vmatpush1.msra.mxu1 %v15435_v47  ;;  %v15494_v45 = vld [vmem:[#allocation51_spill] sm:$0xff]  ;;  %v15495_v46 = vld [vmem:[#allocation84_spill] sm:$0xff]  ;;  %v15496_v47 = vld [vmem:[#allocation53_spill] sm:$0xff] }
 0x254   :  { %1169 = vmatprep.subr.mxu0 %v15436_v48  ;;  %1240 = vmatprep.subr.mxu1 %v15437_v49  ;;  %v15497_v48 = vld [vmem:[#allocation85_spill] sm:$0xff]  ;;  %v15498_v49 = vld [vmem:[#allocation55_spill] sm:$0xff] }
 0x255   :  { %1170 = vmatpush1.msra.mxu0 %v15438_v50  ;;  %1241 = vmatpush1.msra.mxu1 %v15439_v51  ;;  %v15499_v50 = vld [vmem:[#allocation86_spill] sm:$0xff]  ;;  %v15500_v51 = vld [vmem:[#allocation57_spill] sm:$0xff] }
 0x256   :  { %1171 = vmatprep.subr.mxu0 %v15440_v52  ;;  %1242 = vmatprep.subr.mxu1 %v15441_v53  ;;  %v15501_v52 = vld [vmem:[#allocation87_spill] sm:$0xff] }
 0x257   :  { %1172 = vmatpush2.msra.mxu0 %v15442_v54  ;;  %1243 = vmatpush2.msra.mxu1 %v15443_v55  ;;  %v15502_v53 = vld [vmem:[#allocation59_spill] sm:$0xff]  ;;  %v15503_v54 = vld [vmem:[#allocation88_spill] sm:$0xff] }
 0x258   :  { %1173 = vmatprep.subr.mxu0 %v15444_v57  ;;  %1244 = vmatprep.subr.mxu1 %v15445_v2  ;;  %v8813_v55 = vld [vmem:[%s14580_s2 + $0x1e8] sm:$0xff]  ;;  %v800_v57 = vld [vmem:[%s14582_s3] sm:$0xf] }
 0x259   :  { %1174 = vmatpush2.msra.mxu0 %v15446_v4  ;;  %1245 = vmatpush2.msra.mxu1 %v15447_v5  ;;  %v15504_v2 = vld [vmem:[#allocation4_spill] sm:$0xff] }
 0x25a   :  { %1175 = vmatprep.subr.mxu0 %v15448_v6  ;;  %1246 = vmatprep.subr.mxu1 %v15449_v10  ;;  %v805_v4 = vrot.slane %v800_v57, %v15504_v2 }
 0x25b   :  { %1176 = vmatpush2.msra.mxu0 %v15450_v63  ;;  %1247 = vmatpush2.msra.mxu1 %v15451_v1  ;;  %v15505_v63 = vld [vmem:[#allocation5_spill] sm:$0xff] }
 0x25c   :  { %1177 = vmatprep.subr.mxu0 %v15452_v12  ;;  %1248 = vmatprep.subr.mxu1 %v15453_v13  ;;  %v809_v1 = vrot.slane %v800_v57, %v15505_v63 }
 0x25d   :  { %1178 = vmatpush2.msra.mxu0 %v15454_v15  ;;  %1249 = vmatpush2.msra.mxu1 %v15455_v17 }
 0x25e   :  { %1179 = vmatprep.subr.mxu0 %v15456_v19  ;;  %1250 = vmatprep.subr.mxu1 %v15457_v21 }
 0x25f   :  { %1180 = vmatpush2.msra.mxu0 %v15458_v22  ;;  %1251 = vmatpush2.msra.mxu1 %v15459_v23  ;;  %v817_v23 = vrot.slane %v800_v57, %v7891_v18 }
 0x260   :  { %1181 = vmatprep.subr.mxu0 %v15460_v25  ;;  %1252 = vmatprep.subr.mxu1 %v15461_v26 }
 0x261   :  { %1182 = vmatpush2.msra.mxu0 %v15462_v27  ;;  %1253 = vmatpush2.msra.mxu1 %v15463_v28  ;;  %v813_v27 = vrot.slane %v800_v57, %v7894_v20  ;;  %v9013_v57 = vld [vmem:[%s14580_s2 + $0x1f0] sm:$0xff] }
 0x262   :  { %1183 = vmatprep.subr.mxu0 %v15464_v29  ;;  %1254 = vmatprep.subr.mxu1 %v15465_v30 }
 0x263   :  { %1184 = vmatpush2.msra.mxu0 %v15466_v31  ;;  %1255 = vmatpush2.msra.mxu1 %v15467_v32 }
 0x264   :  { %1185 = vmatprep.subr.mxu0 %v15468_v33  ;;  %1256 = vmatprep.subr.mxu1 %v15469_v34 }
 0x265   :  { %1186 = vmatpush2.msra.mxu0 %v15470_v35  ;;  %1257 = vmatpush2.msra.mxu1 %v15471_v58 }
 0x266   :  { %1187 = vmatprep.subr.mxu0 %v15472_v24  ;;  %1258 = vmatprep.subr.mxu1 %v15473_v11 }
 0x267   :  { %1188 = vmatpush2.msra.mxu0 %v15474_v56  ;;  %1259 = vmatpush2.msra.mxu1 %v15475_v59  ;;  %v6078_v56 = vld [vmem:[%s14581_s0 + $0x18] sm:$0xff]  ;;  %v8832_v59 = vld [vmem:[%s14580_s2 + $0x1e0] sm:$0xff] }
 0x268   :  { %1189 = vmatprep.subr.mxu0 %v15476_v8  ;;  %1260 = vmatprep.subr.mxu1 %v15477_v9  ;;  %v8839_v8 = vld [vmem:[%s14580_s2 + $0x1c8] sm:$0xff] }
 0x269   :  { %1190 = vmatpush2.msra.mxu0 %v15478_v0  ;;  %1261 = vmatpush2.msra.mxu1 %v15479_v16  ;;  %v8850_v9 = vld [vmem:[%s14580_s2 + $0x1a8] sm:$0xff]  ;;  %v8856_v0 = vld [vmem:[%s14580_s2 + $0x1a0] sm:$0xff] }
 0x26a   :  { %1191 = vmatprep.subr.mxu0 %v15480_v14  ;;  %1262 = vmatprep.subr.mxu1 %v15481_v7  ;;  %v8864_v16 = vld [vmem:[%s14580_s2 + $0x188] sm:$0xff]  ;;  %v8870_v14 = vld [vmem:[%s14580_s2 + $0x180] sm:$0xff] }
 0x26b   :  { %1192 = vmatpush2.msra.mxu0 %v15482_v60  ;;  %1263 = vmatpush2.msra.mxu1 %v15483_v3  ;;  %v8876_v7 = vld [vmem:[%s14580_s2 + $0x168] sm:$0xff]  ;;  %v8882_v60 = vld [vmem:[%s14580_s2 + $0x160] sm:$0xff] }
 0x26c   :  { %1193 = vmatprep.subr.mxu0 %v15484_v62  ;;  %1264 = vmatprep.subr.mxu1 %v15485_v36  ;;  %v8888_v3 = vld [vmem:[%s14580_s2 + $0x148] sm:$0xff]  ;;  %v8894_v62 = vld [vmem:[%s14580_s2 + $0x140] sm:$0xff] }
 0x26d   :  { %1194 = vmatpush2.msra.mxu0 %v15486_v38  ;;  %1265 = vmatpush2.msra.mxu1 %v15487_v61  ;;  %v8900_v36 = vld [vmem:[%s14580_s2 + $0x128] sm:$0xff]  ;;  %v8906_v38 = vld [vmem:[%s14580_s2 + $0x120] sm:$0xff] }
 0x26e   :  { %1195 = vmatprep.subr.mxu0 %v15488_v39  ;;  %1266 = vmatprep.subr.mxu1 %v15489_v40  ;;  %v8912_v61 = vld [vmem:[%s14580_s2 + $0x108] sm:$0xff]  ;;  %v8918_v39 = vld [vmem:[%s14580_s2 + $0x100] sm:$0xff] }
 0x26f   :  { %1196 = vmatpush2.msra.mxu0 %v15490_v41  ;;  %1267 = vmatpush2.msra.mxu1 %v15491_v42  ;;  %v8924_v40 = vld [vmem:[%s14580_s2 + $0xe8] sm:$0xff]  ;;  %v8930_v41 = vld [vmem:[%s14580_s2 + $0xe0] sm:$0xff] }
 0x270   :  { %1197 = vmatprep.subr.mxu0 %v15492_v43  ;;  %1268 = vmatprep.subr.mxu1 %v15493_v44  ;;  %v8936_v42 = vld [vmem:[%s14580_s2 + $0xc8] sm:$0xff]  ;;  %v8942_v43 = vld [vmem:[%s14580_s2 + $0xc0] sm:$0xff] }
 0x271   :  { %1198 = vmatpush2.msra.mxu0 %v15494_v45  ;;  %1269 = vmatpush2.msra.mxu1 %v15495_v46  ;;  %v8948_v44 = vld [vmem:[%s14580_s2 + $0xa8] sm:$0xff]  ;;  %v8954_v45 = vld [vmem:[%s14580_s2 + $0xa0] sm:$0xff] }
 0x272   :  { %1199 = vmatprep.subr.mxu0 %v15496_v47  ;;  %1270 = vmatprep.subr.mxu1 %v15497_v48  ;;  %v8960_v46 = vld [vmem:[%s14580_s2 + $0x88] sm:$0xff]  ;;  %v8966_v47 = vld [vmem:[%s14580_s2 + $0x80] sm:$0xff] }
 0x273   :  { %1200 = vmatpush2.msra.mxu0 %v15498_v49  ;;  %1271 = vmatpush2.msra.mxu1 %v15499_v50  ;;  %15506 = vst [vmem:[#allocation34_spill] sm:$0xff] %v8966_v47  ;;  %v8972_v48 = vld [vmem:[%s14580_s2 + $0x68] sm:$0xff]  ;;  %v8978_v49 = vld [vmem:[%s14580_s2 + $0x60] sm:$0xff] }
 0x274   :  { %1201 = vmatprep.subr.mxu0 %v15500_v51  ;;  %1272 = vmatprep.subr.mxu1 %v15501_v52  ;;  %15507 = vst [vmem:[#allocation6_spill] sm:$0xff] %v8972_v48  ;;  %15508 = vst [vmem:[#allocation36_spill] sm:$0xff] %v8978_v49  ;;  %v8984_v50 = vld [vmem:[%s14580_s2 + $0x48] sm:$0xff]  ;;  %v8990_v51 = vld [vmem:[%s14580_s2 + $0x40] sm:$0xff] }
 0x275   :  { %1202 = vmatpush2.msra.mxu0 %v15502_v53  ;;  %1273 = vmatpush2.msra.mxu1 %v15503_v54  ;;  %15509 = vst [vmem:[#allocation7_spill] sm:$0xff] %v8984_v50  ;;  %15510 = vst [vmem:[#allocation38_spill] sm:$0xff] %v8990_v51  ;;  %v8996_v52 = vld [vmem:[%s14580_s2 + $0x28] sm:$0xff]  ;;  %v9001_v53 = vld [vmem:[%s14580_s2 + $0x1f8] sm:$0xff] }
 0x276   :  { %1456 = vmatprep.subr.mxu0 %v8813_v55  ;;  %15511 = vst [vmem:[#allocation8_spill] sm:$0xff] %v8996_v52  ;;  %1527 = vmatprep.subr.mxu1 %v9001_v53  ;;  %v9008_v54 = vld [vmem:[%s14580_s2 + $0x20] sm:$0xff] }
 0x277   :  { %15512 = vst [vmem:[#allocation40_spill] sm:$0xff] %v9008_v54 }
 0x2f6   :  { %v888_v5 = vpop.f32.mrf.mxu0  ;;  %v959_v21 = vpop.f32.mrf.mxu1 }
 0x2f7   :  { %v889_v6 = vadd.f32 %v888_v5, %v805_v4  ;;  %v960_v30 = vadd.f32 %v959_v21, %v813_v27  ;;  %v9020_v4 = vld [vmem:[%s14580_s2 + $0x8] sm:$0xff]  ;;  %v9025_v5 = vld [vmem:[%s14580_s2 + $0x1d8] sm:$0xff]  ;;  %v9076_v21 = vld [vmem:[%s14580_s2 + $0x3c0] sm:$0xff] }
 0x2f8   :  { %v890_v12 = vpop.f32.mrf.mxu0  ;;  %v961_v25 = vpop.f32.mrf.mxu1  ;;  %15513 = vst [vmem:[#allocation9_spill] sm:$0xff] %v9020_v4  ;;  %15518 = vst [vmem:[#allocation46_spill] sm:$0xff] %v9076_v21  ;;  %v9109_v27 = vld [vmem:[%s14580_s2 + $0x170] sm:$0xff] }
 0x2f9   :  { %v6076_v10 = vmul.f32 -1.442695, %v889_v6  ;;  %v891_v13 = vadd.f32 %v890_v12, %v809_v1  ;;  %v962_v28 = vadd.f32 %v961_v25, %v817_v23  ;;  %v9030_v6 = vld [vmem:[%s14580_s2] sm:$0xff]  ;;  %v9042_v1 = vld [vmem:[%s14580_s2 + $0x3e8] sm:$0xff]  ;;  %v9047_v12 = vld [vmem:[%s14580_s2 + $0x1b8] sm:$0xff] }
 0x2fa   :  { %15514 = vst [vmem:[#allocation42_spill] sm:$0xff] %v9030_v6  ;;  %15515 = vst [vmem:[#allocation10_spill] sm:$0xff] %v9042_v1  ;;  %v9092_v23 = vld [vmem:[%s14580_s2 + $0x3a8] sm:$0xff]  ;;  %v9097_v25 = vld [vmem:[%s14580_s2 + $0x178] sm:$0xff] }
 0x2fb   :  { %6795 = vpow2.f32 %v6076_v10  ;;  %v6077_v15 = vmul.f32 -1.442695, %v891_v13  ;;  %v9037_v10 = vld [vmem:[%s14580_s2 + $0x1d0] sm:$0xff]  ;;  %v9054_v13 = vld [vmem:[%s14580_s2 + $0x3e0] sm:$0xff]  ;;  %15519 = vst [vmem:[#allocation12_spill] sm:$0xff] %v9092_v23 }
 0x2fc   :  { %15516 = vst [vmem:[#allocation44_spill] sm:$0xff] %v9054_v13 }
 0x2fd   :  { %6797 = vpow2.f32 %v6077_v15  ;;  %v9059_v15 = vld [vmem:[%s14580_s2 + $0x1b0] sm:$0xff] }
 0x308   :  { %v6796_v17 = vpop.eup %6795 }
 0x309   :  { %v967_v19 = vadd.f32 1.0, %v6796_v17  ;;  %v9064_v17 = vld [vmem:[%s14580_s2 + $0x3c8] sm:$0xff] }
 0x30a   :  { %v6798_v22 = vpop.eup %6797  ;;  %15517 = vst [vmem:[#allocation11_spill] sm:$0xff] %v9064_v17 }
 0x30b   :  { %6799 = vrcp.f32 %v967_v19  ;;  %v973_v26 = vadd.f32 1.0, %v6798_v22  ;;  %v9071_v19 = vld [vmem:[%s14580_s2 + $0x198] sm:$0xff]  ;;  %v9081_v22 = vld [vmem:[%s14580_s2 + $0x190] sm:$0xff] }
 0x30d   :  { %6801 = vrcp.f32 %v973_v26  ;;  %v9104_v26 = vld [vmem:[%s14580_s2 + $0x3a0] sm:$0xff] }
 0x30e   :  { %15520 = vst [vmem:[#allocation48_spill] sm:$0xff] %v9104_v26 }
 0x318   :  { %v6800_v29 = vpop.eup %6799 }
 0x319   :  { %v976_v31 = vmul.f32 %v6800_v29, %v962_v28  ;;  %v9116_v28 = vld [vmem:[%s14580_s2 + $0x388] sm:$0xff]  ;;  %v9121_v29 = vld [vmem:[%s14580_s2 + $0x158] sm:$0xff] }
 0x31a   :  { %v6802_v33 = vpop.eup %6801  ;;  %15521 = vst [vmem:[#allocation13_spill] sm:$0xff] %v9116_v28 }
 0x31b   :  { %v977_v32 = vadd.f32 %v976_v31, %v960_v30  ;;  %v979_v34 = vsub.f32 1.0, %v6802_v33  ;;  %v981_v24 = vmul.f32 %v6802_v33, %v8677_v37  ;;  %v8844_v37 = vld [vmem:[%s14580_s2 + $0x1c0] sm:$0xff]  ;;  %v9133_v31 = vld [vmem:[%s14580_s2 + $0x150] sm:$0xff]  ;;  %v9145_v33 = vld [vmem:[%s14580_s2 + $0x138] sm:$0xff] }
 0x31c   :  { %v9128_v30 = vld [vmem:[%s14580_s2 + $0x380] sm:$0xff] }
 0x31d   :  { %6803 = vtanh.f32 %v977_v32  ;;  %15522 = vst [vmem:[#allocation50_spill] sm:$0xff] %v9128_v30  ;;  %v9140_v32 = vld [vmem:[%s14580_s2 + $0x368] sm:$0xff] }
 0x31e   :  { %15523 = vst [vmem:[#allocation14_spill] sm:$0xff] %v9140_v32 }
 0x32a   :  { %v6804_v35 = vpop.eup %6803 }
 0x32b   :  { %v980_v58 = vmul.f32 %v6804_v35, %v979_v34  ;;  %v9152_v34 = vld [vmem:[%s14580_s2 + $0x360] sm:$0xff]  ;;  %v9157_v35 = vld [vmem:[%s14580_s2 + $0x130] sm:$0xff] }
 0x32c   :  { %15524 = vst [vmem:[#allocation52_spill] sm:$0xff] %v9152_v34 }
 0x32d   :  { %v8824_v11 = vadd.f32 %v981_v24, %v980_v58  ;;  %v9164_v58 = vld [vmem:[%s14580_s2 + $0x348] sm:$0xff]  ;;  %v9169_v24 = vld [vmem:[%s14580_s2 + $0x118] sm:$0xff] }
 0x32e   :  { %15525 = vst [vmem:[#allocation15_spill] sm:$0xff] %v9164_v58 }
 0x32f   :  { %1203 = vmatprep.mubr.f32.mxu0 %v8824_v11  ;;  %1274 = vmatprep.mubr.f32.mxu1 %v8824_v11 }
 0x330   :  { %1204 = vmatmul.mubr.f32.vlgmr.msra.gmra.mxu0 %v6078_v56  ;;  %1275 = vmatmul.mubr.f32.vlgmr.msra.gmra.mxu1 %v6078_v56  ;;  %v9176_v56 = vld [vmem:[%s14580_s2 + $0x340] sm:$0xff] }
 0x331   :  { %1457 = vmatpush1.msra.mxu0 %v8832_v59  ;;  %1528 = vmatpush1.msra.mxu1 %v9013_v57  ;;  %15526 = vst [vmem:[#allocation54_spill] sm:$0xff] %v9176_v56 }
 0x332   :  { %1458 = vmatprep.subr.mxu0 %v8839_v8  ;;  %1529 = vmatprep.subr.mxu1 %v9025_v5 }
 0x333   :  { %1459 = vmatpush1.msra.mxu0 %v8844_v37  ;;  %1530 = vmatpush1.msra.mxu1 %v9037_v10 }
 0x334   :  { %1460 = vmatprep.subr.mxu0 %v8850_v9  ;;  %1531 = vmatprep.subr.mxu1 %v9047_v12 }
 0x335   :  { %1461 = vmatpush1.msra.mxu0 %v8856_v0  ;;  %1532 = vmatpush1.msra.mxu1 %v9059_v15 }
 0x336   :  { %1462 = vmatprep.subr.mxu0 %v8864_v16  ;;  %1533 = vmatprep.subr.mxu1 %v9071_v19 }
 0x337   :  { %1463 = vmatpush1.msra.mxu0 %v8870_v14  ;;  %1534 = vmatpush1.msra.mxu1 %v9081_v22 }
 0x338   :  { %1464 = vmatprep.subr.mxu0 %v8876_v7  ;;  %1535 = vmatprep.subr.mxu1 %v9097_v25 }
 0x339   :  { %1465 = vmatpush1.msra.mxu0 %v8882_v60  ;;  %1536 = vmatpush1.msra.mxu1 %v9109_v27 }
 0x33a   :  { %1466 = vmatprep.subr.mxu0 %v8888_v3  ;;  %1537 = vmatprep.subr.mxu1 %v9121_v29 }
 0x33b   :  { %1467 = vmatpush1.msra.mxu0 %v8894_v62  ;;  %1538 = vmatpush1.msra.mxu1 %v9133_v31 }
 0x33c   :  { %1468 = vmatprep.subr.mxu0 %v8900_v36  ;;  %1539 = vmatprep.subr.mxu1 %v9145_v33 }
 0x33d   :  { %1469 = vmatpush1.msra.mxu0 %v8906_v38  ;;  %1540 = vmatpush1.msra.mxu1 %v9157_v35 }
 0x33e   :  { %1470 = vmatprep.subr.mxu0 %v8912_v61  ;;  %1541 = vmatprep.subr.mxu1 %v9169_v24 }
 0x33f   :  { %1471 = vmatpush1.msra.mxu0 %v8918_v39 }
 0x340   :  { %1472 = vmatprep.subr.mxu0 %v8924_v40 }
 0x341   :  { %1473 = vmatpush1.msra.mxu0 %v8930_v41 }
 0x342   :  { %1474 = vmatprep.subr.mxu0 %v8936_v42 }
 0x343   :  { %1475 = vmatpush1.msra.mxu0 %v8942_v43 }
 0x344   :  { %1476 = vmatprep.subr.mxu0 %v8948_v44 }
 0x345   :  { %1477 = vmatpush1.msra.mxu0 %v8954_v45 }
 0x346   :  { %1478 = vmatprep.subr.mxu0 %v8960_v46 }
 0x347   :  { %1479 = vmatpush1.msra.mxu0 %v8966_v47 }
 0x348   :  { %1480 = vmatprep.subr.mxu0 %v8972_v48 }
 0x349   :  { %1481 = vmatpush1.msra.mxu0 %v8978_v49 }
 0x34a   :  { %1482 = vmatprep.subr.mxu0 %v8984_v50  ;;  %v9333_v50 = vld [vmem:[%s14580_s2 + $0x38] sm:$0xff] }
 0x34b   :  { %1483 = vmatpush1.msra.mxu0 %v8990_v51  ;;  %v9321_v51 = vld [vmem:[%s14580_s2 + $0x50] sm:$0xff]  ;;  %15546 = vst [vmem:[#allocation67_spill] sm:$0xff] %v9333_v50 }
 0x34c   :  { %1484 = vmatprep.subr.mxu0 %v8996_v52  ;;  %v9309_v52 = vld [vmem:[%s14580_s2 + $0x58] sm:$0xff]  ;;  %15544 = vst [vmem:[#allocation66_spill] sm:$0xff] %v9321_v51 }
 0x34d   :  { %1485 = vmatpush1.msra.mxu0 %v9008_v54  ;;  %v9297_v54 = vld [vmem:[%s14580_s2 + $0x70] sm:$0xff]  ;;  %15542 = vst [vmem:[#allocation65_spill] sm:$0xff] %v9309_v52 }
 0x34e   :  { %1486 = vmatprep.subr.mxu0 %v9020_v4  ;;  %v9285_v4 = vld [vmem:[%s14580_s2 + $0x78] sm:$0xff]  ;;  %15540 = vst [vmem:[#allocation64_spill] sm:$0xff] %v9297_v54 }
 0x34f   :  { %1487 = vmatpush1.msra.mxu0 %v9030_v6  ;;  %v9273_v6 = vld [vmem:[%s14580_s2 + $0x90] sm:$0xff]  ;;  %15538 = vst [vmem:[#allocation63_spill] sm:$0xff] %v9285_v4 }
 0x350   :  { %1488 = vmatprep.subr.mxu0 %v9042_v1  ;;  %v9268_v1 = vld [vmem:[%s14580_s2 + $0x2c0] sm:$0xff]  ;;  %15536 = vst [vmem:[#allocation62_spill] sm:$0xff] %v9273_v6 }
 0x351   :  { %1489 = vmatpush2.msra.mxu0 %v9054_v13  ;;  %v9256_v13 = vld [vmem:[%s14580_s2 + $0x2c8] sm:$0xff]  ;;  %15535 = vst [vmem:[#allocation20_spill] sm:$0xff] %v9268_v1 }
 0x352   :  { %1490 = vmatprep.subr.mxu0 %v9064_v17  ;;  %v9251_v17 = vld [vmem:[%s14580_s2 + $0xb0] sm:$0xff]  ;;  %15533 = vst [vmem:[#allocation19_spill] sm:$0xff] %v9256_v13 }
 0x353   :  { %1491 = vmatpush2.msra.mxu0 %v9076_v21  ;;  %v9239_v21 = vld [vmem:[%s14580_s2 + $0xb8] sm:$0xff] }
 0x354   :  { %1492 = vmatprep.subr.mxu0 %v9092_v23  ;;  %v9234_v23 = vld [vmem:[%s14580_s2 + $0x2e8] sm:$0xff] }
 0x355   :  { %1493 = vmatpush2.msra.mxu0 %v9104_v26  ;;  %v9222_v26 = vld [vmem:[%s14580_s2 + $0x300] sm:$0xff]  ;;  %15531 = vst [vmem:[#allocation18_spill] sm:$0xff] %v9234_v23 }
 0x356   :  { %1494 = vmatprep.subr.mxu0 %v9116_v28  ;;  %v9217_v28 = vld [vmem:[%s14580_s2 + $0xd8] sm:$0xff]  ;;  %15530 = vst [vmem:[#allocation58_spill] sm:$0xff] %v9222_v26 }
 0x357   :  { %1495 = vmatpush2.msra.mxu0 %v9128_v30  ;;  %v9205_v30 = vld [vmem:[%s14580_s2 + $0xf0] sm:$0xff] }
 0x358   :  { %1496 = vmatprep.subr.mxu0 %v9140_v32  ;;  %v9193_v32 = vld [vmem:[%s14580_s2 + $0xf8] sm:$0xff] }
 0x359   :  { %1497 = vmatpush2.msra.mxu0 %v9152_v34  ;;  %v9181_v34 = vld [vmem:[%s14580_s2 + $0x110] sm:$0xff] }
 0x35a   :  { %1498 = vmatprep.subr.mxu0 %v9164_v58  ;;  %1542 = vmatpush1.msra.mxu1 %v9181_v34  ;;  %v9188_v58 = vld [vmem:[%s14580_s2 + $0x328] sm:$0xff] }
 0x35b   :  { %1499 = vmatpush2.msra.mxu0 %v9176_v56  ;;  %15527 = vst [vmem:[#allocation16_spill] sm:$0xff] %v9188_v58  ;;  %1543 = vmatprep.subr.mxu1 %v9193_v32  ;;  %v9200_v56 = vld [vmem:[%s14580_s2 + $0x320] sm:$0xff] }
 0x35c   :  { %1500 = vmatprep.subr.mxu0 %v9188_v58  ;;  %15528 = vst [vmem:[#allocation56_spill] sm:$0xff] %v9200_v56  ;;  %1544 = vmatpush1.msra.mxu1 %v9205_v30  ;;  %v9212_v58 = vld [vmem:[%s14580_s2 + $0x308] sm:$0xff] }
 0x35d   :  { %1501 = vmatpush2.msra.mxu0 %v9200_v56  ;;  %15529 = vst [vmem:[#allocation17_spill] sm:$0xff] %v9212_v58  ;;  %1545 = vmatprep.subr.mxu1 %v9217_v28  ;;  %v9229_v56 = vld [vmem:[%s14580_s2 + $0xd0] sm:$0xff] }
 0x35e   :  { %1502 = vmatprep.subr.mxu0 %v9212_v58  ;;  %1546 = vmatpush1.msra.mxu1 %v9229_v56  ;;  %v9246_v58 = vld [vmem:[%s14580_s2 + $0x2e0] sm:$0xff] }
 0x35f   :  { %1503 = vmatpush2.msra.mxu0 %v9222_v26  ;;  %15532 = vst [vmem:[#allocation60_spill] sm:$0xff] %v9246_v58  ;;  %1547 = vmatprep.subr.mxu1 %v9239_v21  ;;  %v9263_v26 = vld [vmem:[%s14580_s2 + $0x98] sm:$0xff] }
 0x360   :  { %1504 = vmatprep.subr.mxu0 %v9234_v23  ;;  %15534 = vst [vmem:[#allocation61_spill] sm:$0xff] %v9263_v26  ;;  %1548 = vmatpush1.msra.mxu1 %v9251_v17  ;;  %v9280_v23 = vld [vmem:[%s14580_s2 + $0x2a8] sm:$0xff] }
 0x361   :  { %1505 = vmatpush2.msra.mxu0 %v9246_v58  ;;  %15537 = vst [vmem:[#allocation21_spill] sm:$0xff] %v9280_v23  ;;  %1549 = vmatprep.subr.mxu1 %v9263_v26  ;;  %v9292_v58 = vld [vmem:[%s14580_s2 + $0x2a0] sm:$0xff] }
 0x362   :  { %1506 = vmatprep.subr.mxu0 %v9256_v13  ;;  %15539 = vst [vmem:[#allocation22_spill] sm:$0xff] %v9292_v58  ;;  %1550 = vmatpush1.msra.mxu1 %v9273_v6  ;;  %v9304_v13 = vld [vmem:[%s14580_s2 + $0x288] sm:$0xff] }
 0x363   :  { %1507 = vmatpush2.msra.mxu0 %v9268_v1  ;;  %15541 = vst [vmem:[#allocation23_spill] sm:$0xff] %v9304_v13  ;;  %1551 = vmatprep.subr.mxu1 %v9285_v4  ;;  %v9316_v1 = vld [vmem:[%s14580_s2 + $0x280] sm:$0xff] }
 0x364   :  { %1508 = vmatprep.subr.mxu0 %v9280_v23  ;;  %15543 = vst [vmem:[#allocation24_spill] sm:$0xff] %v9316_v1  ;;  %1552 = vmatpush1.msra.mxu1 %v9297_v54  ;;  %v9328_v23 = vld [vmem:[%s14580_s2 + $0x268] sm:$0xff]  ;;  %v9345_v54 = vld [vmem:[%s14580_s2 + $0x30] sm:$0xff] }
 0x365   :  { %1509 = vmatpush2.msra.mxu0 %v9292_v58  ;;  %15545 = vst [vmem:[#allocation25_spill] sm:$0xff] %v9328_v23  ;;  %1553 = vmatprep.subr.mxu1 %v9309_v52  ;;  %v9340_v58 = vld [vmem:[%s14580_s2 + $0x260] sm:$0xff]  ;;  %15548 = vst [vmem:[#allocation68_spill] sm:$0xff] %v9345_v54  ;;  %v9357_v52 = vld [vmem:[%s14580_s2 + $0x18] sm:$0xff] }
 0x366   :  { %1510 = vmatprep.subr.mxu0 %v9304_v13  ;;  %15547 = vst [vmem:[#allocation26_spill] sm:$0xff] %v9340_v58  ;;  %1554 = vmatpush1.msra.mxu1 %v9321_v51  ;;  %v9352_v13 = vld [vmem:[%s14580_s2 + $0x248] sm:$0xff]  ;;  %15550 = vst [vmem:[#allocation69_spill] sm:$0xff] %v9357_v52  ;;  %v9369_v51 = vld [vmem:[%s14580_s2 + $0x10] sm:$0xff] }
 0x367   :  { %1511 = vmatpush2.msra.mxu0 %v9316_v1  ;;  %15549 = vst [vmem:[#allocation27_spill] sm:$0xff] %v9352_v13  ;;  %1555 = vmatprep.subr.mxu1 %v9333_v50  ;;  %v9364_v1 = vld [vmem:[%s14580_s2 + $0x240] sm:$0xff]  ;;  %15552 = vst [vmem:[#allocation70_spill] sm:$0xff] %v9369_v51  ;;  %v9381_v50 = vld [vmem:[%s14580_s2 + $0x3f8] sm:$0xff] }
 0x368   :  { %1512 = vmatprep.subr.mxu0 %v9328_v23  ;;  %15551 = vst [vmem:[#allocation28_spill] sm:$0xff] %v9364_v1  ;;  %1556 = vmatpush1.msra.mxu1 %v9345_v54  ;;  %v9376_v23 = vld [vmem:[%s14580_s2 + $0x228] sm:$0xff]  ;;  %15554 = vst [vmem:[#allocation71_spill] sm:$0xff] %v9381_v50  ;;  %v9393_v54 = vld [vmem:[%s14580_s2 + $0x3f0] sm:$0xff] }
 0x369   :  { %1513 = vmatpush2.msra.mxu0 %v9340_v58  ;;  %15553 = vst [vmem:[#allocation29_spill] sm:$0xff] %v9376_v23  ;;  %1557 = vmatprep.subr.mxu1 %v9357_v52  ;;  %v9388_v58 = vld [vmem:[%s14580_s2 + $0x220] sm:$0xff]  ;;  %15556 = vst [vmem:[#allocation72_spill] sm:$0xff] %v9393_v54  ;;  %v9405_v52 = vld [vmem:[%s14580_s2 + $0x3d8] sm:$0xff] }
 0x36a   :  { %1514 = vmatprep.subr.mxu0 %v9352_v13  ;;  %15555 = vst [vmem:[#allocation30_spill] sm:$0xff] %v9388_v58  ;;  %1558 = vmatpush1.msra.mxu1 %v9369_v51  ;;  %v9400_v13 = vld [vmem:[%s14580_s2 + $0x208] sm:$0xff]  ;;  %15558 = vst [vmem:[#allocation73_spill] sm:$0xff] %v9405_v52  ;;  %v9421_v51 = vld [vmem:[%s14580_s2 + $0x3d0] sm:$0xff] }
 0x36b   :  { %1515 = vmatpush2.msra.mxu0 %v9364_v1  ;;  %15557 = vst [vmem:[#allocation31_spill] sm:$0xff] %v9400_v13  ;;  %1559 = vmatprep.subr.mxu1 %v9381_v50  ;;  %v9412_v1 = vld [vmem:[%s14580_s2 + $0x200] sm:$0xff]  ;;  %15560 = vst [vmem:[#allocation74_spill] sm:$0xff] %v9421_v51 }
 0x36c   :  { %1516 = vmatprep.subr.mxu0 %v9376_v23  ;;  %15559 = vst [vmem:[#allocation32_spill] sm:$0xff] %v9412_v1  ;;  %1560 = vmatpush2.msra.mxu1 %v9393_v54  ;;  %v9428_v23 = vld [vmem:[%s14580_s2 + $0x3b8] sm:$0xff] }
 0x36d   :  { %1517 = vmatpush2.msra.mxu0 %v9388_v58  ;;  %1561 = vmatprep.subr.mxu1 %v9405_v52  ;;  %15561 = vst [vmem:[#allocation33_spill] sm:$0xff] %v9428_v23  ;;  %v9439_v58 = vld [vmem:[%s14580_s2 + $0x398] sm:$0xff] }
 0x36e   :  { %1518 = vmatprep.subr.mxu0 %v9400_v13  ;;  %1562 = vmatpush2.msra.mxu1 %v9421_v51  ;;  %v9434_v13 = vld [vmem:[%s14580_s2 + $0x3b0] sm:$0xff]  ;;  %15563 = vst [vmem:[#allocation35_spill] sm:$0xff] %v9439_v58 }
 0x36f   :  { %1519 = vmatpush2.msra.mxu0 %v9412_v1  ;;  %1563 = vmatprep.subr.mxu1 %v9428_v23  ;;  %15562 = vst [vmem:[#allocation75_spill] sm:$0xff] %v9434_v13  ;;  %v9444_v1 = vld [vmem:[%s14580_s2 + $0x390] sm:$0xff]  ;;  %v9451_v23 = vld [vmem:[%s14580_s2 + $0x378] sm:$0xff] }
 0x370   :  { %15564 = vst [vmem:[#allocation76_spill] sm:$0xff] %v9444_v1  ;;  %1773 = vmatprep.subr.mxu0 %v8813_v55  ;;  %1564 = vmatpush2.msra.mxu1 %v9434_v13  ;;  %15565 = vst [vmem:[#allocation37_spill] sm:$0xff] %v9451_v23  ;;  %v9457_v51 = vld [vmem:[%s14580_s2 + $0x370] sm:$0xff]  ;;  %v9463_v55 = vld [vmem:[%s14580_s2 + $0x358] sm:$0xff] }
 0x371   :  { %1565 = vmatprep.subr.mxu1 %v9439_v58  ;;  %15566 = vst [vmem:[#allocation77_spill] sm:$0xff] %v9457_v51  ;;  %15567 = vst [vmem:[#allocation39_spill] sm:$0xff] %v9463_v55  ;;  %v9469_v13 = vld [vmem:[%s14580_s2 + $0x350] sm:$0xff]  ;;  %v9475_v58 = vld [vmem:[%s14580_s2 + $0x338] sm:$0xff] }
 0x372   :  { %1566 = vmatpush2.msra.mxu1 %v9444_v1  ;;  %15568 = vst [vmem:[#allocation78_spill] sm:$0xff] %v9469_v13  ;;  %15569 = vst [vmem:[#allocation41_spill] sm:$0xff] %v9475_v58  ;;  %v9481_v1 = vld [vmem:[%s14580_s2 + $0x330] sm:$0xff] }
 0x373   :  { %1567 = vmatprep.subr.mxu1 %v9451_v23  ;;  %15570 = vst [vmem:[#allocation79_spill] sm:$0xff] %v9481_v1  ;;  %v9487_v23 = vld [vmem:[%s14580_s2 + $0x318] sm:$0xff] }
 0x374   :  { %1568 = vmatpush2.msra.mxu1 %v9457_v51  ;;  %15571 = vst [vmem:[#allocation43_spill] sm:$0xff] %v9487_v23  ;;  %v9493_v51 = vld [vmem:[%s14580_s2 + $0x310] sm:$0xff] }
 0x375   :  { %1569 = vmatprep.subr.mxu1 %v9463_v55  ;;  %15572 = vst [vmem:[#allocation80_spill] sm:$0xff] %v9493_v51  ;;  %v9499_v55 = vld [vmem:[%s14580_s2 + $0x2f8] sm:$0xff] }
 0x376   :  { %1570 = vmatpush2.msra.mxu1 %v9469_v13  ;;  %15573 = vst [vmem:[#allocation45_spill] sm:$0xff] %v9499_v55  ;;  %v9505_v13 = vld [vmem:[%s14580_s2 + $0x2f0] sm:$0xff] }
 0x377   :  { %1571 = vmatprep.subr.mxu1 %v9475_v58  ;;  %15574 = vst [vmem:[#allocation81_spill] sm:$0xff] %v9505_v13  ;;  %v9511_v58 = vld [vmem:[%s14580_s2 + $0x2d8] sm:$0xff] }
 0x378   :  { %1572 = vmatpush2.msra.mxu1 %v9481_v1  ;;  %15575 = vst [vmem:[#allocation47_spill] sm:$0xff] %v9511_v58  ;;  %v9517_v1 = vld [vmem:[%s14580_s2 + $0x2d0] sm:$0xff] }
 0x379   :  { %1573 = vmatprep.subr.mxu1 %v9487_v23  ;;  %15576 = vst [vmem:[#allocation82_spill] sm:$0xff] %v9517_v1  ;;  %v9523_v23 = vld [vmem:[%s14580_s2 + $0x2b8] sm:$0xff] }
 0x37a   :  { %1574 = vmatpush2.msra.mxu1 %v9493_v51  ;;  %15577 = vst [vmem:[#allocation49_spill] sm:$0xff] %v9523_v23  ;;  %v9529_v51 = vld [vmem:[%s14580_s2 + $0x2b0] sm:$0xff] }
 0x37b   :  { %1575 = vmatprep.subr.mxu1 %v9499_v55  ;;  %15578 = vst [vmem:[#allocation83_spill] sm:$0xff] %v9529_v51  ;;  %v9535_v55 = vld [vmem:[%s14580_s2 + $0x298] sm:$0xff] }
 0x37c   :  { %1576 = vmatpush2.msra.mxu1 %v9505_v13  ;;  %15579 = vst [vmem:[#allocation51_spill] sm:$0xff] %v9535_v55  ;;  %v9541_v13 = vld [vmem:[%s14580_s2 + $0x290] sm:$0xff] }
 0x37d   :  { %1577 = vmatprep.subr.mxu1 %v9511_v58  ;;  %15580 = vst [vmem:[#allocation84_spill] sm:$0xff] %v9541_v13  ;;  %v9547_v58 = vld [vmem:[%s14580_s2 + $0x278] sm:$0xff] }
 0x37e   :  { %1578 = vmatpush2.msra.mxu1 %v9517_v1  ;;  %15581 = vst [vmem:[#allocation53_spill] sm:$0xff] %v9547_v58  ;;  %v9553_v1 = vld [vmem:[%s14580_s2 + $0x270] sm:$0xff] }
 0x37f   :  { %1579 = vmatprep.subr.mxu1 %v9523_v23  ;;  %15582 = vst [vmem:[#allocation85_spill] sm:$0xff] %v9553_v1  ;;  %v9559_v23 = vld [vmem:[%s14580_s2 + $0x258] sm:$0xff] }
 0x380   :  { %1580 = vmatpush2.msra.mxu1 %v9529_v51  ;;  %15583 = vst [vmem:[#allocation55_spill] sm:$0xff] %v9559_v23  ;;  %v9565_v51 = vld [vmem:[%s14580_s2 + $0x250] sm:$0xff] }
 0x381   :  { %1581 = vmatprep.subr.mxu1 %v9535_v55  ;;  %15584 = vst [vmem:[#allocation86_spill] sm:$0xff] %v9565_v51  ;;  %v9571_v55 = vld [vmem:[%s14580_s2 + $0x238] sm:$0xff] }
 0x382   :  { %1582 = vmatpush2.msra.mxu1 %v9541_v13  ;;  %15585 = vst [vmem:[#allocation57_spill] sm:$0xff] %v9571_v55  ;;  %v9577_v13 = vld [vmem:[%s14580_s2 + $0x230] sm:$0xff] }
 0x383   :  { %1583 = vmatprep.subr.mxu1 %v9547_v58  ;;  %15586 = vst [vmem:[#allocation87_spill] sm:$0xff] %v9577_v13  ;;  %v9583_v58 = vld [vmem:[%s14580_s2 + $0x218] sm:$0xff] }
 0x384   :  { %1584 = vmatpush2.msra.mxu1 %v9553_v1  ;;  %15587 = vst [vmem:[#allocation59_spill] sm:$0xff] %v9583_v58  ;;  %v9589_v1 = vld [vmem:[%s14580_s2 + $0x210] sm:$0xff] }
 0x385   :  { %1585 = vmatprep.subr.mxu1 %v9559_v23  ;;  %15588 = vst [vmem:[#allocation88_spill] sm:$0xff] %v9589_v1 }
 0x386   :  { %1586 = vmatpush2.msra.mxu1 %v9565_v51  ;;  %v1117_v51 = vld [vmem:[%s14582_s3] sm:$0xf] }
 0x387   :  { %1587 = vmatprep.subr.mxu1 %v9571_v55  ;;  %v1122_v23 = vrot.slane %v1117_v51, %v15504_v2  ;;  %v1126_v50 = vrot.slane %v1117_v51, %v15505_v63  ;;  %v1134_v6 = vrot.slane %v1117_v51, %v7891_v18  ;;  %v1130_v2 = vrot.slane %v1117_v51, %v7894_v20  ;;  %v15615_v51 = vld [vmem:[#allocation74_spill] sm:$0xff] }
 0x388   :  { %1588 = vmatpush2.msra.mxu1 %v9577_v13 }
 0x389   :  { %1589 = vmatprep.subr.mxu1 %v9583_v58 }
 0x38a   :  { %1590 = vmatpush2.msra.mxu1 %v9589_v1 }
 0x38b   :  { %1844 = vmatprep.subr.mxu1 %v9001_v53 }
 0x3f0   :  { %v1205_v55 = vpop.f32.mrf.mxu0  ;;  %v1276_v53 = vpop.f32.mrf.mxu1 }
 0x3f1   :  { %v1206_v52 = vadd.f32 %v1205_v55, %v1122_v23  ;;  %v1277_v55 = vadd.f32 %v1276_v53, %v1130_v2  ;;  %v15589_v2 = vld [vmem:[#allocation61_spill] sm:$0xff]  ;;  %v15639_v53 = vld [vmem:[#allocation80_spill] sm:$0xff] }
 0x3f2   :  { %v1207_v49 = vpop.f32.mrf.mxu0  ;;  %v1278_v47 = vpop.f32.mrf.mxu1 }
 0x3f3   :  { %v6079_v54 = vmul.f32 -1.442695, %v1206_v52  ;;  %v1208_v13 = vadd.f32 %v1207_v49, %v1126_v50  ;;  %v1279_v23 = vadd.f32 %v1278_v47, %v1134_v6  ;;  %v15614_v47 = vld [vmem:[#allocation46_spill] sm:$0xff]  ;;  %v15618_v6 = vld [vmem:[#allocation48_spill] sm:$0xff] }
 0x3f5   :  { %6805 = vpow2.f32 %v6079_v54  ;;  %v6080_v4 = vmul.f32 -1.442695, %v1208_v13 }
 0x3f7   :  { %6807 = vpow2.f32 %v6080_v4 }
 0x402   :  { %v6806_v58 = vpop.eup %6805 }
 0x403   :  { %v1284_v1 = vadd.f32 1.0, %v6806_v58 }
 0x404   :  { %v6808_v48 = vpop.eup %6807 }
 0x405   :  { %6809 = vrcp.f32 %v1284_v1  ;;  %v1290_v26 = vadd.f32 1.0, %v6808_v48  ;;  %v6081_v48 = vld [vmem:[%s14581_s0 + $0x20] sm:$0xff] }
 0x407   :  { %6811 = vrcp.f32 %v1290_v26  ;;  %v15627_v26 = vld [vmem:[#allocation77_spill] sm:$0xff] }
 0x412   :  { %v6810_v52 = vpop.eup %6809 }
 0x413   :  { %v1293_v63 = vmul.f32 %v6810_v52, %v1279_v23  ;;  %v15640_v23 = vld [vmem:[#allocation18_spill] sm:$0xff]  ;;  %v15641_v52 = vld [vmem:[#allocation45_spill] sm:$0xff] }
 0x414   :  { %v6812_v49 = vpop.eup %6811 }
 0x415   :  { %v1294_v54 = vadd.f32 %v1293_v63, %v1277_v55  ;;  %v1296_v50 = vsub.f32 1.0, %v6812_v49  ;;  %v1298_v1 = vmul.f32 %v6812_v49, %v8824_v11  ;;  %v15590_v63 = vld [vmem:[#allocation34_spill] sm:$0xff]  ;;  %v15642_v55 = vld [vmem:[#allocation60_spill] sm:$0xff]  ;;  %v15644_v49 = vld [vmem:[#allocation19_spill] sm:$0xff] }
 0x416   :  { %v15591_v11 = vld [vmem:[#allocation62_spill] sm:$0xff] }
 0x417   :  { %6813 = vtanh.f32 %v1294_v54  ;;  %v15643_v54 = vld [vmem:[#allocation81_spill] sm:$0xff] }
 0x424   :  { %v6814_v4 = vpop.eup %6813 }
 0x425   :  { %v1297_v13 = vmul.f32 %v6814_v4, %v1296_v50  ;;  %v15645_v50 = vld [vmem:[#allocation47_spill] sm:$0xff]  ;;  %v15646_v4 = vld [vmem:[#allocation20_spill] sm:$0xff] }
 0x427   :  { %v9603_v58 = vadd.f32 %v1298_v1, %v1297_v13  ;;  %v15647_v13 = vld [vmem:[#allocation82_spill] sm:$0xff]  ;;  %v15648_v1 = vld [vmem:[#allocation21_spill] sm:$0xff] }
 0x429   :  { %1520 = vmatprep.mubr.f32.mxu0 %v9603_v58  ;;  %1591 = vmatprep.mubr.f32.mxu1 %v9603_v58 }
 0x42a   :  { %1521 = vmatmul.mubr.f32.vlgmr.msra.gmra.mxu0 %v6081_v48  ;;  %1592 = vmatmul.mubr.f32.vlgmr.msra.gmra.mxu1 %v6081_v48  ;;  %v15649_v48 = vld [vmem:[#allocation49_spill] sm:$0xff] }
 0x42b   :  { %1774 = vmatpush1.msra.mxu0 %v8832_v59  ;;  %1845 = vmatpush1.msra.mxu1 %v9013_v57  ;;  %v15592_v59 = vld [vmem:[#allocation6_spill] sm:$0xff]  ;;  %v15616_v57 = vld [vmem:[#allocation12_spill] sm:$0xff] }
 0x42c   :  { %1775 = vmatprep.subr.mxu0 %v8839_v8  ;;  %1846 = vmatprep.subr.mxu1 %v9025_v5  ;;  %v15593_v8 = vld [vmem:[#allocation63_spill] sm:$0xff]  ;;  %v15617_v5 = vld [vmem:[#allocation33_spill] sm:$0xff] }
 0x42d   :  { %1776 = vmatpush1.msra.mxu0 %v8844_v37  ;;  %1847 = vmatpush1.msra.mxu1 %v9037_v10  ;;  %v15594_v37 = vld [vmem:[#allocation36_spill] sm:$0xff]  ;;  %v15619_v10 = vld [vmem:[#allocation75_spill] sm:$0xff] }
 0x42e   :  { %1777 = vmatprep.subr.mxu0 %v8850_v9  ;;  %1848 = vmatprep.subr.mxu1 %v9047_v12  ;;  %v15595_v9 = vld [vmem:[#allocation64_spill] sm:$0xff]  ;;  %v15620_v12 = vld [vmem:[#allocation13_spill] sm:$0xff] }
 0x42f   :  { %1778 = vmatpush1.msra.mxu0 %v8856_v0  ;;  %1849 = vmatpush1.msra.mxu1 %v9059_v15  ;;  %v15596_v0 = vld [vmem:[#allocation7_spill] sm:$0xff] }
 0x430   :  { %1779 = vmatprep.subr.mxu0 %v8864_v16  ;;  %1850 = vmatprep.subr.mxu1 %v9071_v19  ;;  %v15597_v16 = vld [vmem:[#allocation65_spill] sm:$0xff]  ;;  %v15621_v15 = vld [vmem:[#allocation35_spill] sm:$0xff]  ;;  %v15623_v19 = vld [vmem:[#allocation76_spill] sm:$0xff] }
 0x431   :  { %1780 = vmatpush1.msra.mxu0 %v8870_v14  ;;  %1851 = vmatpush1.msra.mxu1 %v9081_v22  ;;  %v15598_v14 = vld [vmem:[#allocation38_spill] sm:$0xff]  ;;  %v15625_v22 = vld [vmem:[#allocation37_spill] sm:$0xff] }
 0x432   :  { %1781 = vmatprep.subr.mxu0 %v8876_v7  ;;  %1852 = vmatprep.subr.mxu1 %v9097_v25  ;;  %v15599_v7 = vld [vmem:[#allocation66_spill] sm:$0xff]  ;;  %v15626_v25 = vld [vmem:[#allocation52_spill] sm:$0xff] }
 0x433   :  { %1782 = vmatpush1.msra.mxu0 %v8882_v60  ;;  %1853 = vmatpush1.msra.mxu1 %v9109_v27  ;;  %v15600_v60 = vld [vmem:[#allocation8_spill] sm:$0xff]  ;;  %v15628_v27 = vld [vmem:[#allocation15_spill] sm:$0xff] }
 0x434   :  { %1783 = vmatprep.subr.mxu0 %v8888_v3  ;;  %1854 = vmatprep.subr.mxu1 %v9121_v29  ;;  %v15601_v3 = vld [vmem:[#allocation67_spill] sm:$0xff]  ;;  %v15630_v29 = vld [vmem:[#allocation54_spill] sm:$0xff] }
 0x435   :  { %1784 = vmatpush1.msra.mxu0 %v8894_v62  ;;  %1855 = vmatpush1.msra.mxu1 %v9133_v31  ;;  %v15602_v62 = vld [vmem:[#allocation40_spill] sm:$0xff] }
 0x436   :  { %1785 = vmatprep.subr.mxu0 %v8900_v36  ;;  %1856 = vmatprep.subr.mxu1 %v9145_v33  ;;  %v15603_v36 = vld [vmem:[#allocation68_spill] sm:$0xff] }
 0x437   :  { %1786 = vmatpush1.msra.mxu0 %v8906_v38  ;;  %1857 = vmatpush1.msra.mxu1 %v9157_v35  ;;  %v15604_v38 = vld [vmem:[#allocation9_spill] sm:$0xff]  ;;  %v15632_v31 = vld [vmem:[#allocation16_spill] sm:$0xff] }
 0x438   :  { %1787 = vmatprep.subr.mxu0 %v8912_v61  ;;  %1858 = vmatprep.subr.mxu1 %v9169_v24  ;;  %v15605_v61 = vld [vmem:[#allocation69_spill] sm:$0xff]  ;;  %v15634_v33 = vld [vmem:[#allocation56_spill] sm:$0xff]  ;;  %v15637_v24 = vld [vmem:[#allocation43_spill] sm:$0xff] }
 0x439   :  { %1788 = vmatpush1.msra.mxu0 %v8918_v39  ;;  %1859 = vmatpush1.msra.mxu1 %v9181_v34  ;;  %v15606_v39 = vld [vmem:[#allocation42_spill] sm:$0xff]  ;;  %v15635_v34 = vld [vmem:[#allocation79_spill] sm:$0xff]  ;;  %v15636_v35 = vld [vmem:[#allocation17_spill] sm:$0xff] }
 0x43a   :  { %1789 = vmatprep.subr.mxu0 %v8924_v40  ;;  %1860 = vmatprep.subr.mxu1 %v9193_v32  ;;  %v15607_v40 = vld [vmem:[#allocation70_spill] sm:$0xff]  ;;  %v15633_v32 = vld [vmem:[#allocation41_spill] sm:$0xff] }
 0x43b   :  { %1790 = vmatpush1.msra.mxu0 %v8930_v41  ;;  %1861 = vmatpush1.msra.mxu1 %v9205_v30  ;;  %v15608_v41 = vld [vmem:[#allocation10_spill] sm:$0xff] }
 0x43c   :  { %1791 = vmatprep.subr.mxu0 %v8936_v42  ;;  %1862 = vmatprep.subr.mxu1 %v9217_v28  ;;  %v15609_v42 = vld [vmem:[#allocation71_spill] sm:$0xff]  ;;  %v15631_v30 = vld [vmem:[#allocation78_spill] sm:$0xff] }
 0x43d   :  { %1792 = vmatpush1.msra.mxu0 %v8942_v43  ;;  %1863 = vmatpush1.msra.mxu1 %v9229_v56  ;;  %v15610_v43 = vld [vmem:[#allocation44_spill] sm:$0xff]  ;;  %v15629_v28 = vld [vmem:[#allocation39_spill] sm:$0xff]  ;;  %v15638_v56 = vld [vmem:[#allocation58_spill] sm:$0xff] }
 0x43e   :  { %1793 = vmatprep.subr.mxu0 %v8948_v44  ;;  %1864 = vmatprep.subr.mxu1 %v9239_v21  ;;  %v15611_v44 = vld [vmem:[#allocation72_spill] sm:$0xff]  ;;  %v15624_v21 = vld [vmem:[#allocation14_spill] sm:$0xff] }
 0x43f   :  { %1794 = vmatpush1.msra.mxu0 %v8954_v45  ;;  %1865 = vmatpush1.msra.mxu1 %v9251_v17  ;;  %v15612_v45 = vld [vmem:[#allocation11_spill] sm:$0xff]  ;;  %v15622_v17 = vld [vmem:[#allocation50_spill] sm:$0xff] }
 0x440   :  { %1795 = vmatprep.subr.mxu0 %v8960_v46  ;;  %1866 = vmatprep.subr.mxu1 %v15589_v2  ;;  %v15613_v46 = vld [vmem:[#allocation73_spill] sm:$0xff]  ;;  %v15650_v2 = vld [vmem:[#allocation22_spill] sm:$0xff] }
 0x441   :  { %1796 = vmatpush1.msra.mxu0 %v15590_v63  ;;  %1867 = vmatpush1.msra.mxu1 %v15591_v11  ;;  %v15651_v63 = vld [vmem:[#allocation83_spill] sm:$0xff] }
 0x442   :  { %1797 = vmatprep.subr.mxu0 %v15592_v59  ;;  %1868 = vmatprep.subr.mxu1 %v15593_v8  ;;  %v15652_v11 = vld [vmem:[#allocation23_spill] sm:$0xff]  ;;  %v15654_v8 = vld [vmem:[#allocation24_spill] sm:$0xff] }
 0x443   :  { %1798 = vmatpush1.msra.mxu0 %v15594_v37  ;;  %1869 = vmatpush1.msra.mxu1 %v15595_v9  ;;  %v15653_v59 = vld [vmem:[#allocation51_spill] sm:$0xff]  ;;  %v15655_v37 = vld [vmem:[#allocation84_spill] sm:$0xff]  ;;  %v15656_v9 = vld [vmem:[#allocation25_spill] sm:$0xff] }
 0x444   :  { %1799 = vmatprep.subr.mxu0 %v15596_v0  ;;  %1870 = vmatprep.subr.mxu1 %v15597_v16  ;;  %v15657_v0 = vld [vmem:[#allocation53_spill] sm:$0xff]  ;;  %v15658_v16 = vld [vmem:[#allocation26_spill] sm:$0xff] }
 0x445   :  { %1800 = vmatpush1.msra.mxu0 %v15598_v14  ;;  %1871 = vmatpush1.msra.mxu1 %v15599_v7  ;;  %v15659_v14 = vld [vmem:[#allocation85_spill] sm:$0xff]  ;;  %v15660_v7 = vld [vmem:[#allocation27_spill] sm:$0xff] }
 0x446   :  { %1801 = vmatprep.subr.mxu0 %v15600_v60  ;;  %1872 = vmatprep.subr.mxu1 %v15601_v3  ;;  %v15661_v60 = vld [vmem:[#allocation55_spill] sm:$0xff]  ;;  %v15662_v3 = vld [vmem:[#allocation28_spill] sm:$0xff] }
 0x447   :  { %1802 = vmatpush1.msra.mxu0 %v15602_v62  ;;  %1873 = vmatpush1.msra.mxu1 %v15603_v36  ;;  %v15663_v62 = vld [vmem:[#allocation86_spill] sm:$0xff]  ;;  %v15664_v36 = vld [vmem:[#allocation29_spill] sm:$0xff] }
 0x448   :  { %1803 = vmatprep.subr.mxu0 %v15604_v38  ;;  %1874 = vmatprep.subr.mxu1 %v15605_v61  ;;  %v15665_v38 = vld [vmem:[#allocation57_spill] sm:$0xff]  ;;  %v15666_v61 = vld [vmem:[#allocation30_spill] sm:$0xff] }
 0x449   :  { %1804 = vmatpush1.msra.mxu0 %v15606_v39  ;;  %1875 = vmatpush1.msra.mxu1 %v15607_v40  ;;  %v15667_v39 = vld [vmem:[#allocation87_spill] sm:$0xff] }
 0x44a   :  { %1805 = vmatprep.subr.mxu0 %v15608_v41  ;;  %1876 = vmatprep.subr.mxu1 %v15609_v42  ;;  %v15668_v40 = vld [vmem:[#allocation31_spill] sm:$0xff]  ;;  %v15670_v42 = vld [vmem:[#allocation32_spill] sm:$0xff] }
 0x44b   :  { %1806 = vmatpush2.msra.mxu0 %v15610_v43  ;;  %1877 = vmatpush2.msra.mxu1 %v15611_v44  ;;  %v15669_v41 = vld [vmem:[#allocation59_spill] sm:$0xff]  ;;  %v15671_v43 = vld [vmem:[#allocation88_spill] sm:$0xff] }
 0x44c   :  { %1807 = vmatprep.subr.mxu0 %v15612_v45  ;;  %1878 = vmatprep.subr.mxu1 %v15613_v46  ;;  %v9739_v44 = vld [vmem:[%s14580_s2 + $0x1e8] sm:$0xff]  ;;  %v1434_v45 = vld [vmem:[%s14582_s3] sm:$0xf] }
 0x44d   :  { %1808 = vmatpush2.msra.mxu0 %v15614_v47  ;;  %1879 = vmatpush2.msra.mxu1 %v15615_v51  ;;  %v15672_v46 = vld [vmem:[#allocation4_spill] sm:$0xff] }
 0x44e   :  { %1809 = vmatprep.subr.mxu0 %v15616_v57  ;;  %1880 = vmatprep.subr.mxu1 %v15617_v5  ;;  %v1439_v47 = vrot.slane %v1434_v45, %v15672_v46 }
 0x44f   :  { %1810 = vmatpush2.msra.mxu0 %v15618_v6  ;;  %1881 = vmatpush2.msra.mxu1 %v15619_v10  ;;  %v15673_v6 = vld [vmem:[#allocation5_spill] sm:$0xff] }
 0x450   :  { %1811 = vmatprep.subr.mxu0 %v15620_v12  ;;  %1882 = vmatprep.subr.mxu1 %v15621_v15  ;;  %v1443_v10 = vrot.slane %v1434_v45, %v15673_v6 }
 0x451   :  { %1812 = vmatpush2.msra.mxu0 %v15622_v17  ;;  %1883 = vmatpush2.msra.mxu1 %v15623_v19 }
 0x452   :  { %1813 = vmatprep.subr.mxu0 %v15624_v21  ;;  %1884 = vmatprep.subr.mxu1 %v15625_v22 }
 0x453   :  { %1814 = vmatpush2.msra.mxu0 %v15626_v25  ;;  %1885 = vmatpush2.msra.mxu1 %v15627_v26  ;;  %v1451_v26 = vrot.slane %v1434_v45, %v7891_v18 }
 0x454   :  { %1815 = vmatprep.subr.mxu0 %v15628_v27  ;;  %1886 = vmatprep.subr.mxu1 %v15629_v28 }
 0x455   :  { %1816 = vmatpush2.msra.mxu0 %v15630_v29  ;;  %1887 = vmatpush2.msra.mxu1 %v15631_v30  ;;  %v1447_v29 = vrot.slane %v1434_v45, %v7894_v20  ;;  %v9939_v45 = vld [vmem:[%s14580_s2 + $0x1f0] sm:$0xff] }
 0x456   :  { %1817 = vmatprep.subr.mxu0 %v15632_v31  ;;  %1888 = vmatprep.subr.mxu1 %v15633_v32 }
 0x457   :  { %1818 = vmatpush2.msra.mxu0 %v15634_v33  ;;  %1889 = vmatpush2.msra.mxu1 %v15635_v34 }
 0x458   :  { %1819 = vmatprep.subr.mxu0 %v15636_v35  ;;  %1890 = vmatprep.subr.mxu1 %v15637_v24 }
 0x459   :  { %1820 = vmatpush2.msra.mxu0 %v15638_v56  ;;  %1891 = vmatpush2.msra.mxu1 %v15639_v53 }
 0x45a   :  { %1821 = vmatprep.subr.mxu0 %v15640_v23  ;;  %1892 = vmatprep.subr.mxu1 %v15641_v52 }
 0x45b   :  { %1822 = vmatpush2.msra.mxu0 %v15642_v55  ;;  %1893 = vmatpush2.msra.mxu1 %v15643_v54  ;;  %v6084_v55 = vld [vmem:[%s14581_s0 + $0x28] sm:$0xff]  ;;  %v9758_v54 = vld [vmem:[%s14580_s2 + $0x1e0] sm:$0xff] }
 0x45c   :  { %1823 = vmatprep.subr.mxu0 %v15644_v49  ;;  %1894 = vmatprep.subr.mxu1 %v15645_v50  ;;  %v9765_v49 = vld [vmem:[%s14580_s2 + $0x1c8] sm:$0xff] }
 0x45d   :  { %1824 = vmatpush2.msra.mxu0 %v15646_v4  ;;  %1895 = vmatpush2.msra.mxu1 %v15647_v13  ;;  %v9776_v50 = vld [vmem:[%s14580_s2 + $0x1a8] sm:$0xff]  ;;  %v9782_v4 = vld [vmem:[%s14580_s2 + $0x1a0] sm:$0xff] }
 0x45e   :  { %1825 = vmatprep.subr.mxu0 %v15648_v1  ;;  %1896 = vmatprep.subr.mxu1 %v15649_v48  ;;  %v9790_v13 = vld [vmem:[%s14580_s2 + $0x188] sm:$0xff]  ;;  %v9796_v1 = vld [vmem:[%s14580_s2 + $0x180] sm:$0xff] }
 0x45f   :  { %1826 = vmatpush2.msra.mxu0 %v15650_v2  ;;  %1897 = vmatpush2.msra.mxu1 %v15651_v63  ;;  %v9802_v48 = vld [vmem:[%s14580_s2 + $0x168] sm:$0xff]  ;;  %v9808_v2 = vld [vmem:[%s14580_s2 + $0x160] sm:$0xff] }
 0x460   :  { %1827 = vmatprep.subr.mxu0 %v15652_v11  ;;  %1898 = vmatprep.subr.mxu1 %v15653_v59  ;;  %v9814_v63 = vld [vmem:[%s14580_s2 + $0x148] sm:$0xff]  ;;  %v9820_v11 = vld [vmem:[%s14580_s2 + $0x140] sm:$0xff] }
 0x461   :  { %1828 = vmatpush2.msra.mxu0 %v15654_v8  ;;  %1899 = vmatpush2.msra.mxu1 %v15655_v37  ;;  %v9826_v59 = vld [vmem:[%s14580_s2 + $0x128] sm:$0xff]  ;;  %v9832_v8 = vld [vmem:[%s14580_s2 + $0x120] sm:$0xff] }
 0x462   :  { %1829 = vmatprep.subr.mxu0 %v15656_v9  ;;  %1900 = vmatprep.subr.mxu1 %v15657_v0  ;;  %v9838_v37 = vld [vmem:[%s14580_s2 + $0x108] sm:$0xff]  ;;  %v9844_v9 = vld [vmem:[%s14580_s2 + $0x100] sm:$0xff] }
 0x463   :  { %1830 = vmatpush2.msra.mxu0 %v15658_v16  ;;  %1901 = vmatpush2.msra.mxu1 %v15659_v14  ;;  %v9850_v0 = vld [vmem:[%s14580_s2 + $0xe8] sm:$0xff]  ;;  %v9856_v16 = vld [vmem:[%s14580_s2 + $0xe0] sm:$0xff] }
 0x464   :  { %1831 = vmatprep.subr.mxu0 %v15660_v7  ;;  %1902 = vmatprep.subr.mxu1 %v15661_v60  ;;  %v9862_v14 = vld [vmem:[%s14580_s2 + $0xc8] sm:$0xff]  ;;  %v9868_v7 = vld [vmem:[%s14580_s2 + $0xc0] sm:$0xff] }
 0x465   :  { %1832 = vmatpush2.msra.mxu0 %v15662_v3  ;;  %1903 = vmatpush2.msra.mxu1 %v15663_v62  ;;  %v9874_v60 = vld [vmem:[%s14580_s2 + $0xa8] sm:$0xff]  ;;  %v9880_v3 = vld [vmem:[%s14580_s2 + $0xa0] sm:$0xff] }
 0x466   :  { %1833 = vmatprep.subr.mxu0 %v15664_v36  ;;  %1904 = vmatprep.subr.mxu1 %v15665_v38  ;;  %v9886_v62 = vld [vmem:[%s14580_s2 + $0x88] sm:$0xff]  ;;  %v9892_v36 = vld [vmem:[%s14580_s2 + $0x80] sm:$0xff] }
 0x467   :  { %1834 = vmatpush2.msra.mxu0 %v15666_v61  ;;  %1905 = vmatpush2.msra.mxu1 %v15667_v39  ;;  %15674 = vst [vmem:[#allocation61_spill] sm:$0xff] %v9892_v36  ;;  %v9898_v38 = vld [vmem:[%s14580_s2 + $0x68] sm:$0xff]  ;;  %v9904_v61 = vld [vmem:[%s14580_s2 + $0x60] sm:$0xff] }
 0x468   :  { %1835 = vmatprep.subr.mxu0 %v15668_v40  ;;  %1906 = vmatprep.subr.mxu1 %v15669_v41  ;;  %15675 = vst [vmem:[#allocation34_spill] sm:$0xff] %v9898_v38  ;;  %15676 = vst [vmem:[#allocation62_spill] sm:$0xff] %v9904_v61  ;;  %v9910_v39 = vld [vmem:[%s14580_s2 + $0x48] sm:$0xff]  ;;  %v9916_v40 = vld [vmem:[%s14580_s2 + $0x40] sm:$0xff] }
 0x469   :  { %1836 = vmatpush2.msra.mxu0 %v15670_v42  ;;  %1907 = vmatpush2.msra.mxu1 %v15671_v43  ;;  %15677 = vst [vmem:[#allocation6_spill] sm:$0xff] %v9910_v39  ;;  %15678 = vst [vmem:[#allocation63_spill] sm:$0xff] %v9916_v40  ;;  %v9922_v41 = vld [vmem:[%s14580_s2 + $0x28] sm:$0xff]  ;;  %v9927_v42 = vld [vmem:[%s14580_s2 + $0x1f8] sm:$0xff] }
 0x46a   :  { %2090 = vmatprep.subr.mxu0 %v9739_v44  ;;  %15679 = vst [vmem:[#allocation36_spill] sm:$0xff] %v9922_v41  ;;  %2161 = vmatprep.subr.mxu1 %v9927_v42  ;;  %v9934_v43 = vld [vmem:[%s14580_s2 + $0x20] sm:$0xff] }
 0x46b   :  { %15680 = vst [vmem:[#allocation64_spill] sm:$0xff] %v9934_v43 }
 0x4ea   :  { %v1522_v51 = vpop.f32.mrf.mxu0  ;;  %v1593_v22 = vpop.f32.mrf.mxu1 }
 0x4eb   :  { %v1523_v57 = vadd.f32 %v1522_v51, %v1439_v47  ;;  %v1594_v32 = vadd.f32 %v1593_v22, %v1447_v29  ;;  %v9946_v47 = vld [vmem:[%s14580_s2 + $0x8] sm:$0xff]  ;;  %v9951_v51 = vld [vmem:[%s14580_s2 + $0x1d8] sm:$0xff]  ;;  %v10002_v22 = vld [vmem:[%s14580_s2 + $0x3c0] sm:$0xff] }
 0x4ec   :  { %v1524_v12 = vpop.f32.mrf.mxu0  ;;  %v1595_v27 = vpop.f32.mrf.mxu1  ;;  %15681 = vst [vmem:[#allocation7_spill] sm:$0xff] %v9946_v47  ;;  %15686 = vst [vmem:[#allocation67_spill] sm:$0xff] %v10002_v22  ;;  %v10035_v29 = vld [vmem:[%s14580_s2 + $0x170] sm:$0xff] }
 0x4ed   :  { %v6082_v5 = vmul.f32 -1.442695, %v1523_v57  ;;  %v1525_v15 = vadd.f32 %v1524_v12, %v1443_v10  ;;  %v1596_v30 = vadd.f32 %v1595_v27, %v1451_v26  ;;  %v9956_v57 = vld [vmem:[%s14580_s2] sm:$0xff]  ;;  %v9968_v10 = vld [vmem:[%s14580_s2 + $0x3e8] sm:$0xff]  ;;  %v9973_v12 = vld [vmem:[%s14580_s2 + $0x1b8] sm:$0xff] }
 0x4ee   :  { %15682 = vst [vmem:[#allocation65_spill] sm:$0xff] %v9956_v57  ;;  %15683 = vst [vmem:[#allocation38_spill] sm:$0xff] %v9968_v10  ;;  %v10018_v26 = vld [vmem:[%s14580_s2 + $0x3a8] sm:$0xff]  ;;  %v10023_v27 = vld [vmem:[%s14580_s2 + $0x178] sm:$0xff] }
 0x4ef   :  { %6815 = vpow2.f32 %v6082_v5  ;;  %v6083_v17 = vmul.f32 -1.442695, %v1525_v15  ;;  %v9963_v5 = vld [vmem:[%s14580_s2 + $0x1d0] sm:$0xff]  ;;  %v9980_v15 = vld [vmem:[%s14580_s2 + $0x3e0] sm:$0xff]  ;;  %15687 = vst [vmem:[#allocation40_spill] sm:$0xff] %v10018_v26 }
 0x4f0   :  { %15684 = vst [vmem:[#allocation66_spill] sm:$0xff] %v9980_v15 }
 0x4f1   :  { %6817 = vpow2.f32 %v6083_v17  ;;  %v9985_v17 = vld [vmem:[%s14580_s2 + $0x1b0] sm:$0xff] }
 0x4fc   :  { %v6816_v19 = vpop.eup %6815 }
 0x4fd   :  { %v1601_v21 = vadd.f32 1.0, %v6816_v19  ;;  %v9990_v19 = vld [vmem:[%s14580_s2 + $0x3c8] sm:$0xff] }
 0x4fe   :  { %v6818_v25 = vpop.eup %6817  ;;  %15685 = vst [vmem:[#allocation8_spill] sm:$0xff] %v9990_v19 }
 0x4ff   :  { %6819 = vrcp.f32 %v1601_v21  ;;  %v1607_v28 = vadd.f32 1.0, %v6818_v25  ;;  %v9997_v21 = vld [vmem:[%s14580_s2 + $0x198] sm:$0xff]  ;;  %v10007_v25 = vld [vmem:[%s14580_s2 + $0x190] sm:$0xff] }
 0x501   :  { %6821 = vrcp.f32 %v1607_v28  ;;  %v10030_v28 = vld [vmem:[%s14580_s2 + $0x3a0] sm:$0xff] }
 0x502   :  { %15688 = vst [vmem:[#allocation68_spill] sm:$0xff] %v10030_v28 }
 0x50c   :  { %v6820_v31 = vpop.eup %6819 }
 0x50d   :  { %v1610_v33 = vmul.f32 %v6820_v31, %v1596_v30  ;;  %v10042_v30 = vld [vmem:[%s14580_s2 + $0x388] sm:$0xff]  ;;  %v10047_v31 = vld [vmem:[%s14580_s2 + $0x158] sm:$0xff] }
 0x50e   :  { %v6822_v35 = vpop.eup %6821  ;;  %15689 = vst [vmem:[#allocation9_spill] sm:$0xff] %v10042_v30 }
 0x50f   :  { %v1611_v34 = vadd.f32 %v1610_v33, %v1594_v32  ;;  %v1613_v24 = vsub.f32 1.0, %v6822_v35  ;;  %v1615_v23 = vmul.f32 %v6822_v35, %v9603_v58  ;;  %v9770_v58 = vld [vmem:[%s14580_s2 + $0x1c0] sm:$0xff]  ;;  %v10059_v33 = vld [vmem:[%s14580_s2 + $0x150] sm:$0xff]  ;;  %v10071_v35 = vld [vmem:[%s14580_s2 + $0x138] sm:$0xff] }
 0x510   :  { %v10054_v32 = vld [vmem:[%s14580_s2 + $0x380] sm:$0xff] }
 0x511   :  { %6823 = vtanh.f32 %v1611_v34  ;;  %15690 = vst [vmem:[#allocation69_spill] sm:$0xff] %v10054_v32  ;;  %v10066_v34 = vld [vmem:[%s14580_s2 + $0x368] sm:$0xff] }
 0x512   :  { %15691 = vst [vmem:[#allocation42_spill] sm:$0xff] %v10066_v34 }
 0x51e   :  { %v6824_v56 = vpop.eup %6823 }
 0x51f   :  { %v1614_v53 = vmul.f32 %v6824_v56, %v1613_v24  ;;  %v10078_v24 = vld [vmem:[%s14580_s2 + $0x360] sm:$0xff]  ;;  %v10083_v56 = vld [vmem:[%s14580_s2 + $0x130] sm:$0xff] }
 0x520   :  { %15692 = vst [vmem:[#allocation70_spill] sm:$0xff] %v10078_v24 }
 0x521   :  { %v9750_v52 = vadd.f32 %v1615_v23, %v1614_v53  ;;  %v10090_v53 = vld [vmem:[%s14580_s2 + $0x348] sm:$0xff]  ;;  %v10095_v23 = vld [vmem:[%s14580_s2 + $0x118] sm:$0xff] }
 0x522   :  { %15693 = vst [vmem:[#allocation10_spill] sm:$0xff] %v10090_v53 }
 0x523   :  { %1837 = vmatprep.mubr.f32.mxu0 %v9750_v52  ;;  %1908 = vmatprep.mubr.f32.mxu1 %v9750_v52 }
 0x524   :  { %1838 = vmatmul.mubr.f32.vlgmr.msra.gmra.mxu0 %v6084_v55  ;;  %1909 = vmatmul.mubr.f32.vlgmr.msra.gmra.mxu1 %v6084_v55  ;;  %v10102_v55 = vld [vmem:[%s14580_s2 + $0x340] sm:$0xff] }
 0x525   :  { %2091 = vmatpush1.msra.mxu0 %v9758_v54  ;;  %2162 = vmatpush1.msra.mxu1 %v9939_v45  ;;  %15694 = vst [vmem:[#allocation71_spill] sm:$0xff] %v10102_v55 }
 0x526   :  { %2092 = vmatprep.subr.mxu0 %v9765_v49  ;;  %2163 = vmatprep.subr.mxu1 %v9951_v51 }
 0x527   :  { %2093 = vmatpush1.msra.mxu0 %v9770_v58  ;;  %2164 = vmatpush1.msra.mxu1 %v9963_v5 }
 0x528   :  { %2094 = vmatprep.subr.mxu0 %v9776_v50  ;;  %2165 = vmatprep.subr.mxu1 %v9973_v12 }
 0x529   :  { %2095 = vmatpush1.msra.mxu0 %v9782_v4  ;;  %2166 = vmatpush1.msra.mxu1 %v9985_v17 }
 0x52a   :  { %2096 = vmatprep.subr.mxu0 %v9790_v13  ;;  %2167 = vmatprep.subr.mxu1 %v9997_v21 }
 0x52b   :  { %2097 = vmatpush1.msra.mxu0 %v9796_v1  ;;  %2168 = vmatpush1.msra.mxu1 %v10007_v25 }
 0x52c   :  { %2098 = vmatprep.subr.mxu0 %v9802_v48  ;;  %2169 = vmatprep.subr.mxu1 %v10023_v27 }
 0x52d   :  { %2099 = vmatpush1.msra.mxu0 %v9808_v2  ;;  %2170 = vmatpush1.msra.mxu1 %v10035_v29 }
 0x52e   :  { %2100 = vmatprep.subr.mxu0 %v9814_v63  ;;  %2171 = vmatprep.subr.mxu1 %v10047_v31 }
 0x52f   :  { %2101 = vmatpush1.msra.mxu0 %v9820_v11  ;;  %2172 = vmatpush1.msra.mxu1 %v10059_v33 }
 0x530   :  { %2102 = vmatprep.subr.mxu0 %v9826_v59  ;;  %2173 = vmatprep.subr.mxu1 %v10071_v35 }
 0x531   :  { %2103 = vmatpush1.msra.mxu0 %v9832_v8  ;;  %2174 = vmatpush1.msra.mxu1 %v10083_v56 }
 0x532   :  { %2104 = vmatprep.subr.mxu0 %v9838_v37  ;;  %2175 = vmatprep.subr.mxu1 %v10095_v23 }
 0x533   :  { %2105 = vmatpush1.msra.mxu0 %v9844_v9 }
 0x534   :  { %2106 = vmatprep.subr.mxu0 %v9850_v0 }
 0x535   :  { %2107 = vmatpush1.msra.mxu0 %v9856_v16 }
 0x536   :  { %2108 = vmatprep.subr.mxu0 %v9862_v14 }
 0x537   :  { %2109 = vmatpush1.msra.mxu0 %v9868_v7 }
 0x538   :  { %2110 = vmatprep.subr.mxu0 %v9874_v60 }
 0x539   :  { %2111 = vmatpush1.msra.mxu0 %v9880_v3 }
 0x53a   :  { %2112 = vmatprep.subr.mxu0 %v9886_v62 }
 0x53b   :  { %2113 = vmatpush1.msra.mxu0 %v9892_v36 }
 0x53c   :  { %2114 = vmatprep.subr.mxu0 %v9898_v38 }
 0x53d   :  { %2115 = vmatpush1.msra.mxu0 %v9904_v61 }
 0x53e   :  { %2116 = vmatprep.subr.mxu0 %v9910_v39  ;;  %v10259_v39 = vld [vmem:[%s14580_s2 + $0x38] sm:$0xff] }
 0x53f   :  { %2117 = vmatpush1.msra.mxu0 %v9916_v40  ;;  %v10247_v40 = vld [vmem:[%s14580_s2 + $0x50] sm:$0xff]  ;;  %15714 = vst [vmem:[#allocation39_spill] sm:$0xff] %v10259_v39 }
 0x540   :  { %2118 = vmatprep.subr.mxu0 %v9922_v41  ;;  %v10235_v41 = vld [vmem:[%s14580_s2 + $0x58] sm:$0xff]  ;;  %15712 = vst [vmem:[#allocation77_spill] sm:$0xff] %v10247_v40 }
 0x541   :  { %2119 = vmatpush1.msra.mxu0 %v9934_v43  ;;  %v10223_v43 = vld [vmem:[%s14580_s2 + $0x70] sm:$0xff]  ;;  %15710 = vst [vmem:[#allocation37_spill] sm:$0xff] %v10235_v41 }
 0x542   :  { %2120 = vmatprep.subr.mxu0 %v9946_v47  ;;  %v10211_v47 = vld [vmem:[%s14580_s2 + $0x78] sm:$0xff]  ;;  %15708 = vst [vmem:[#allocation76_spill] sm:$0xff] %v10223_v43 }
 0x543   :  { %2121 = vmatpush1.msra.mxu0 %v9956_v57  ;;  %v10199_v57 = vld [vmem:[%s14580_s2 + $0x90] sm:$0xff]  ;;  %15706 = vst [vmem:[#allocation35_spill] sm:$0xff] %v10211_v47 }
 0x544   :  { %2122 = vmatprep.subr.mxu0 %v9968_v10  ;;  %v10194_v10 = vld [vmem:[%s14580_s2 + $0x2c0] sm:$0xff]  ;;  %15704 = vst [vmem:[#allocation75_spill] sm:$0xff] %v10199_v57 }
 0x545   :  { %2123 = vmatpush2.msra.mxu0 %v9980_v15  ;;  %v10182_v15 = vld [vmem:[%s14580_s2 + $0x2c8] sm:$0xff]  ;;  %15703 = vst [vmem:[#allocation48_spill] sm:$0xff] %v10194_v10 }
 0x546   :  { %2124 = vmatprep.subr.mxu0 %v9990_v19  ;;  %v10177_v19 = vld [vmem:[%s14580_s2 + $0xb0] sm:$0xff]  ;;  %15701 = vst [vmem:[#allocation12_spill] sm:$0xff] %v10182_v15 }
 0x547   :  { %2125 = vmatpush2.msra.mxu0 %v10002_v22  ;;  %v10165_v22 = vld [vmem:[%s14580_s2 + $0xb8] sm:$0xff] }
 0x548   :  { %2126 = vmatprep.subr.mxu0 %v10018_v26  ;;  %v10160_v26 = vld [vmem:[%s14580_s2 + $0x2e8] sm:$0xff] }
 0x549   :  { %2127 = vmatpush2.msra.mxu0 %v10030_v28  ;;  %v10148_v28 = vld [vmem:[%s14580_s2 + $0x300] sm:$0xff]  ;;  %15699 = vst [vmem:[#allocation46_spill] sm:$0xff] %v10160_v26 }
 0x54a   :  { %2128 = vmatprep.subr.mxu0 %v10042_v30  ;;  %v10143_v30 = vld [vmem:[%s14580_s2 + $0xd8] sm:$0xff]  ;;  %15698 = vst [vmem:[#allocation73_spill] sm:$0xff] %v10148_v28 }
 0x54b   :  { %2129 = vmatpush2.msra.mxu0 %v10054_v32  ;;  %v10131_v32 = vld [vmem:[%s14580_s2 + $0xf0] sm:$0xff] }
 0x54c   :  { %2130 = vmatprep.subr.mxu0 %v10066_v34  ;;  %v10119_v34 = vld [vmem:[%s14580_s2 + $0xf8] sm:$0xff] }
 0x54d   :  { %2131 = vmatpush2.msra.mxu0 %v10078_v24  ;;  %v10107_v24 = vld [vmem:[%s14580_s2 + $0x110] sm:$0xff] }
 0x54e   :  { %2132 = vmatprep.subr.mxu0 %v10090_v53  ;;  %2176 = vmatpush1.msra.mxu1 %v10107_v24  ;;  %v10114_v53 = vld [vmem:[%s14580_s2 + $0x328] sm:$0xff] }
 0x54f   :  { %2133 = vmatpush2.msra.mxu0 %v10102_v55  ;;  %15695 = vst [vmem:[#allocation44_spill] sm:$0xff] %v10114_v53  ;;  %2177 = vmatprep.subr.mxu1 %v10119_v34  ;;  %v10126_v55 = vld [vmem:[%s14580_s2 + $0x320] sm:$0xff] }
 0x550   :  { %2134 = vmatprep.subr.mxu0 %v10114_v53  ;;  %15696 = vst [vmem:[#allocation72_spill] sm:$0xff] %v10126_v55  ;;  %2178 = vmatpush1.msra.mxu1 %v10131_v32  ;;  %v10138_v53 = vld [vmem:[%s14580_s2 + $0x308] sm:$0xff] }
 0x551   :  { %2135 = vmatpush2.msra.mxu0 %v10126_v55  ;;  %15697 = vst [vmem:[#allocation11_spill] sm:$0xff] %v10138_v53  ;;  %2179 = vmatprep.subr.mxu1 %v10143_v30  ;;  %v10155_v55 = vld [vmem:[%s14580_s2 + $0xd0] sm:$0xff] }
 0x552   :  { %2136 = vmatprep.subr.mxu0 %v10138_v53  ;;  %2180 = vmatpush1.msra.mxu1 %v10155_v55  ;;  %v10172_v53 = vld [vmem:[%s14580_s2 + $0x2e0] sm:$0xff] }
 0x553   :  { %2137 = vmatpush2.msra.mxu0 %v10148_v28  ;;  %15700 = vst [vmem:[#allocation74_spill] sm:$0xff] %v10172_v53  ;;  %2181 = vmatprep.subr.mxu1 %v10165_v22  ;;  %v10189_v28 = vld [vmem:[%s14580_s2 + $0x98] sm:$0xff] }
 0x554   :  { %2138 = vmatprep.subr.mxu0 %v10160_v26  ;;  %15702 = vst [vmem:[#allocation33_spill] sm:$0xff] %v10189_v28  ;;  %2182 = vmatpush1.msra.mxu1 %v10177_v19  ;;  %v10206_v26 = vld [vmem:[%s14580_s2 + $0x2a8] sm:$0xff] }
 0x555   :  { %2139 = vmatpush2.msra.mxu0 %v10172_v53  ;;  %15705 = vst [vmem:[#allocation13_spill] sm:$0xff] %v10206_v26  ;;  %2183 = vmatprep.subr.mxu1 %v10189_v28  ;;  %v10218_v53 = vld [vmem:[%s14580_s2 + $0x2a0] sm:$0xff] }
 0x556   :  { %2140 = vmatprep.subr.mxu0 %v10182_v15  ;;  %15707 = vst [vmem:[#allocation50_spill] sm:$0xff] %v10218_v53  ;;  %2184 = vmatpush1.msra.mxu1 %v10199_v57  ;;  %v10230_v15 = vld [vmem:[%s14580_s2 + $0x288] sm:$0xff] }
 0x557   :  { %2141 = vmatpush2.msra.mxu0 %v10194_v10  ;;  %15709 = vst [vmem:[#allocation14_spill] sm:$0xff] %v10230_v15  ;;  %2185 = vmatprep.subr.mxu1 %v10211_v47  ;;  %v10242_v10 = vld [vmem:[%s14580_s2 + $0x280] sm:$0xff] }
 0x558   :  { %2142 = vmatprep.subr.mxu0 %v10206_v26  ;;  %15711 = vst [vmem:[#allocation52_spill] sm:$0xff] %v10242_v10  ;;  %2186 = vmatpush1.msra.mxu1 %v10223_v43  ;;  %v10254_v26 = vld [vmem:[%s14580_s2 + $0x268] sm:$0xff]  ;;  %v10271_v43 = vld [vmem:[%s14580_s2 + $0x30] sm:$0xff] }
 0x559   :  { %2143 = vmatpush2.msra.mxu0 %v10218_v53  ;;  %15713 = vst [vmem:[#allocation15_spill] sm:$0xff] %v10254_v26  ;;  %2187 = vmatprep.subr.mxu1 %v10235_v41  ;;  %v10266_v53 = vld [vmem:[%s14580_s2 + $0x260] sm:$0xff]  ;;  %15716 = vst [vmem:[#allocation78_spill] sm:$0xff] %v10271_v43  ;;  %v10283_v41 = vld [vmem:[%s14580_s2 + $0x18] sm:$0xff] }
 0x55a   :  { %2144 = vmatprep.subr.mxu0 %v10230_v15  ;;  %15715 = vst [vmem:[#allocation54_spill] sm:$0xff] %v10266_v53  ;;  %2188 = vmatpush1.msra.mxu1 %v10247_v40  ;;  %v10278_v15 = vld [vmem:[%s14580_s2 + $0x248] sm:$0xff]  ;;  %15718 = vst [vmem:[#allocation41_spill] sm:$0xff] %v10283_v41  ;;  %v10295_v40 = vld [vmem:[%s14580_s2 + $0x10] sm:$0xff] }
 0x55b   :  { %2145 = vmatpush2.msra.mxu0 %v10242_v10  ;;  %15717 = vst [vmem:[#allocation16_spill] sm:$0xff] %v10278_v15  ;;  %2189 = vmatprep.subr.mxu1 %v10259_v39  ;;  %v10290_v10 = vld [vmem:[%s14580_s2 + $0x240] sm:$0xff]  ;;  %15720 = vst [vmem:[#allocation79_spill] sm:$0xff] %v10295_v40  ;;  %v10307_v39 = vld [vmem:[%s14580_s2 + $0x3f8] sm:$0xff] }
 0x55c   :  { %2146 = vmatprep.subr.mxu0 %v10254_v26  ;;  %15719 = vst [vmem:[#allocation56_spill] sm:$0xff] %v10290_v10  ;;  %2190 = vmatpush1.msra.mxu1 %v10271_v43  ;;  %v10302_v26 = vld [vmem:[%s14580_s2 + $0x228] sm:$0xff]  ;;  %15722 = vst [vmem:[#allocation43_spill] sm:$0xff] %v10307_v39  ;;  %v10319_v43 = vld [vmem:[%s14580_s2 + $0x3f0] sm:$0xff] }
 0x55d   :  { %2147 = vmatpush2.msra.mxu0 %v10266_v53  ;;  %15721 = vst [vmem:[#allocation17_spill] sm:$0xff] %v10302_v26  ;;  %2191 = vmatprep.subr.mxu1 %v10283_v41  ;;  %v10314_v53 = vld [vmem:[%s14580_s2 + $0x220] sm:$0xff]  ;;  %15724 = vst [vmem:[#allocation80_spill] sm:$0xff] %v10319_v43  ;;  %v10331_v41 = vld [vmem:[%s14580_s2 + $0x3d8] sm:$0xff] }
 0x55e   :  { %2148 = vmatprep.subr.mxu0 %v10278_v15  ;;  %15723 = vst [vmem:[#allocation58_spill] sm:$0xff] %v10314_v53  ;;  %2192 = vmatpush1.msra.mxu1 %v10295_v40  ;;  %v10326_v15 = vld [vmem:[%s14580_s2 + $0x208] sm:$0xff]  ;;  %15726 = vst [vmem:[#allocation45_spill] sm:$0xff] %v10331_v41  ;;  %v10347_v40 = vld [vmem:[%s14580_s2 + $0x3d0] sm:$0xff] }
 0x55f   :  { %2149 = vmatpush2.msra.mxu0 %v10290_v10  ;;  %15725 = vst [vmem:[#allocation18_spill] sm:$0xff] %v10326_v15  ;;  %2193 = vmatprep.subr.mxu1 %v10307_v39  ;;  %v10338_v10 = vld [vmem:[%s14580_s2 + $0x200] sm:$0xff]  ;;  %15728 = vst [vmem:[#allocation81_spill] sm:$0xff] %v10347_v40 }
 0x560   :  { %2150 = vmatprep.subr.mxu0 %v10302_v26  ;;  %15727 = vst [vmem:[#allocation60_spill] sm:$0xff] %v10338_v10  ;;  %2194 = vmatpush2.msra.mxu1 %v10319_v43  ;;  %v10354_v26 = vld [vmem:[%s14580_s2 + $0x3b8] sm:$0xff] }
 0x561   :  { %2151 = vmatpush2.msra.mxu0 %v10314_v53  ;;  %2195 = vmatprep.subr.mxu1 %v10331_v41  ;;  %15729 = vst [vmem:[#allocation19_spill] sm:$0xff] %v10354_v26  ;;  %v10365_v53 = vld [vmem:[%s14580_s2 + $0x398] sm:$0xff] }
 0x562   :  { %2152 = vmatprep.subr.mxu0 %v10326_v15  ;;  %2196 = vmatpush2.msra.mxu1 %v10347_v40  ;;  %v10360_v15 = vld [vmem:[%s14580_s2 + $0x3b0] sm:$0xff]  ;;  %15731 = vst [vmem:[#allocation20_spill] sm:$0xff] %v10365_v53 }
 0x563   :  { %2153 = vmatpush2.msra.mxu0 %v10338_v10  ;;  %2197 = vmatprep.subr.mxu1 %v10354_v26  ;;  %15730 = vst [vmem:[#allocation47_spill] sm:$0xff] %v10360_v15  ;;  %v10370_v10 = vld [vmem:[%s14580_s2 + $0x390] sm:$0xff]  ;;  %v10377_v26 = vld [vmem:[%s14580_s2 + $0x378] sm:$0xff] }
 0x564   :  { %15732 = vst [vmem:[#allocation82_spill] sm:$0xff] %v10370_v10  ;;  %2407 = vmatprep.subr.mxu0 %v9739_v44  ;;  %2198 = vmatpush2.msra.mxu1 %v10360_v15  ;;  %15733 = vst [vmem:[#allocation21_spill] sm:$0xff] %v10377_v26  ;;  %v10383_v40 = vld [vmem:[%s14580_s2 + $0x370] sm:$0xff]  ;;  %v10389_v44 = vld [vmem:[%s14580_s2 + $0x358] sm:$0xff] }
 0x565   :  { %2199 = vmatprep.subr.mxu1 %v10365_v53  ;;  %15734 = vst [vmem:[#allocation49_spill] sm:$0xff] %v10383_v40  ;;  %15735 = vst [vmem:[#allocation22_spill] sm:$0xff] %v10389_v44  ;;  %v10395_v15 = vld [vmem:[%s14580_s2 + $0x350] sm:$0xff]  ;;  %v10401_v53 = vld [vmem:[%s14580_s2 + $0x338] sm:$0xff] }
 0x566   :  { %2200 = vmatpush2.msra.mxu1 %v10370_v10  ;;  %15736 = vst [vmem:[#allocation83_spill] sm:$0xff] %v10395_v15  ;;  %15737 = vst [vmem:[#allocation23_spill] sm:$0xff] %v10401_v53  ;;  %v10407_v10 = vld [vmem:[%s14580_s2 + $0x330] sm:$0xff] }
 0x567   :  { %2201 = vmatprep.subr.mxu1 %v10377_v26  ;;  %15738 = vst [vmem:[#allocation51_spill] sm:$0xff] %v10407_v10  ;;  %v10413_v26 = vld [vmem:[%s14580_s2 + $0x318] sm:$0xff] }
 0x568   :  { %2202 = vmatpush2.msra.mxu1 %v10383_v40  ;;  %15739 = vst [vmem:[#allocation24_spill] sm:$0xff] %v10413_v26  ;;  %v10419_v40 = vld [vmem:[%s14580_s2 + $0x310] sm:$0xff] }
 0x569   :  { %2203 = vmatprep.subr.mxu1 %v10389_v44  ;;  %15740 = vst [vmem:[#allocation84_spill] sm:$0xff] %v10419_v40  ;;  %v10425_v44 = vld [vmem:[%s14580_s2 + $0x2f8] sm:$0xff] }
 0x56a   :  { %2204 = vmatpush2.msra.mxu1 %v10395_v15  ;;  %15741 = vst [vmem:[#allocation25_spill] sm:$0xff] %v10425_v44  ;;  %v10431_v15 = vld [vmem:[%s14580_s2 + $0x2f0] sm:$0xff] }
 0x56b   :  { %2205 = vmatprep.subr.mxu1 %v10401_v53  ;;  %15742 = vst [vmem:[#allocation53_spill] sm:$0xff] %v10431_v15  ;;  %v10437_v53 = vld [vmem:[%s14580_s2 + $0x2d8] sm:$0xff] }
 0x56c   :  { %2206 = vmatpush2.msra.mxu1 %v10407_v10  ;;  %15743 = vst [vmem:[#allocation26_spill] sm:$0xff] %v10437_v53  ;;  %v10443_v10 = vld [vmem:[%s14580_s2 + $0x2d0] sm:$0xff] }
 0x56d   :  { %2207 = vmatprep.subr.mxu1 %v10413_v26  ;;  %15744 = vst [vmem:[#allocation85_spill] sm:$0xff] %v10443_v10  ;;  %v10449_v26 = vld [vmem:[%s14580_s2 + $0x2b8] sm:$0xff] }
 0x56e   :  { %2208 = vmatpush2.msra.mxu1 %v10419_v40  ;;  %15745 = vst [vmem:[#allocation27_spill] sm:$0xff] %v10449_v26  ;;  %v10455_v40 = vld [vmem:[%s14580_s2 + $0x2b0] sm:$0xff] }
 0x56f   :  { %2209 = vmatprep.subr.mxu1 %v10425_v44  ;;  %15746 = vst [vmem:[#allocation55_spill] sm:$0xff] %v10455_v40  ;;  %v10461_v44 = vld [vmem:[%s14580_s2 + $0x298] sm:$0xff] }
 0x570   :  { %2210 = vmatpush2.msra.mxu1 %v10431_v15  ;;  %15747 = vst [vmem:[#allocation28_spill] sm:$0xff] %v10461_v44  ;;  %v10467_v15 = vld [vmem:[%s14580_s2 + $0x290] sm:$0xff] }
 0x571   :  { %2211 = vmatprep.subr.mxu1 %v10437_v53  ;;  %15748 = vst [vmem:[#allocation86_spill] sm:$0xff] %v10467_v15  ;;  %v10473_v53 = vld [vmem:[%s14580_s2 + $0x278] sm:$0xff] }
 0x572   :  { %2212 = vmatpush2.msra.mxu1 %v10443_v10  ;;  %15749 = vst [vmem:[#allocation29_spill] sm:$0xff] %v10473_v53  ;;  %v10479_v10 = vld [vmem:[%s14580_s2 + $0x270] sm:$0xff] }
 0x573   :  { %2213 = vmatprep.subr.mxu1 %v10449_v26  ;;  %15750 = vst [vmem:[#allocation57_spill] sm:$0xff] %v10479_v10  ;;  %v10485_v26 = vld [vmem:[%s14580_s2 + $0x258] sm:$0xff] }
 0x574   :  { %2214 = vmatpush2.msra.mxu1 %v10455_v40  ;;  %15751 = vst [vmem:[#allocation30_spill] sm:$0xff] %v10485_v26  ;;  %v10491_v40 = vld [vmem:[%s14580_s2 + $0x250] sm:$0xff] }
 0x575   :  { %2215 = vmatprep.subr.mxu1 %v10461_v44  ;;  %15752 = vst [vmem:[#allocation87_spill] sm:$0xff] %v10491_v40  ;;  %v10497_v44 = vld [vmem:[%s14580_s2 + $0x238] sm:$0xff] }
 0x576   :  { %2216 = vmatpush2.msra.mxu1 %v10467_v15  ;;  %15753 = vst [vmem:[#allocation31_spill] sm:$0xff] %v10497_v44  ;;  %v10503_v15 = vld [vmem:[%s14580_s2 + $0x230] sm:$0xff] }
 0x577   :  { %2217 = vmatprep.subr.mxu1 %v10473_v53  ;;  %15754 = vst [vmem:[#allocation59_spill] sm:$0xff] %v10503_v15  ;;  %v10509_v53 = vld [vmem:[%s14580_s2 + $0x218] sm:$0xff] }
 0x578   :  { %2218 = vmatpush2.msra.mxu1 %v10479_v10  ;;  %15755 = vst [vmem:[#allocation32_spill] sm:$0xff] %v10509_v53  ;;  %v10515_v10 = vld [vmem:[%s14580_s2 + $0x210] sm:$0xff] }
 0x579   :  { %2219 = vmatprep.subr.mxu1 %v10485_v26  ;;  %15756 = vst [vmem:[#allocation88_spill] sm:$0xff] %v10515_v10 }
 0x57a   :  { %2220 = vmatpush2.msra.mxu1 %v10491_v40  ;;  %v1751_v40 = vld [vmem:[%s14582_s3] sm:$0xf] }
 0x57b   :  { %2221 = vmatprep.subr.mxu1 %v10497_v44  ;;  %v1756_v26 = vrot.slane %v1751_v40, %v15672_v46  ;;  %v1760_v39 = vrot.slane %v1751_v40, %v15673_v6  ;;  %v1768_v57 = vrot.slane %v1751_v40, %v7891_v18  ;;  %v1764_v46 = vrot.slane %v1751_v40, %v7894_v20  ;;  %v15783_v40 = vld [vmem:[#allocation81_spill] sm:$0xff] }
 0x57c   :  { %2222 = vmatpush2.msra.mxu1 %v10503_v15 }
 0x57d   :  { %2223 = vmatprep.subr.mxu1 %v10509_v53 }
 0x57e   :  { %2224 = vmatpush2.msra.mxu1 %v10515_v10 }
 0x57f   :  { %2478 = vmatprep.subr.mxu1 %v9927_v42 }
 0x5e4   :  { %v1839_v44 = vpop.f32.mrf.mxu0  ;;  %v1910_v42 = vpop.f32.mrf.mxu1 }
 0x5e5   :  { %v1840_v41 = vadd.f32 %v1839_v44, %v1756_v26  ;;  %v1911_v44 = vadd.f32 %v1910_v42, %v1764_v46  ;;  %v15757_v46 = vld [vmem:[#allocation33_spill] sm:$0xff]  ;;  %v15807_v42 = vld [vmem:[#allocation84_spill] sm:$0xff] }
 0x5e6   :  { %v1841_v61 = vpop.f32.mrf.mxu0  ;;  %v1912_v36 = vpop.f32.mrf.mxu1 }
 0x5e7   :  { %v6085_v43 = vmul.f32 -1.442695, %v1840_v41  ;;  %v1842_v15 = vadd.f32 %v1841_v61, %v1760_v39  ;;  %v1913_v26 = vadd.f32 %v1912_v36, %v1768_v57  ;;  %v15782_v36 = vld [vmem:[#allocation67_spill] sm:$0xff]  ;;  %v15786_v57 = vld [vmem:[#allocation68_spill] sm:$0xff] }
 0x5e9   :  { %6825 = vpow2.f32 %v6085_v43  ;;  %v6086_v47 = vmul.f32 -1.442695, %v1842_v15 }
 0x5eb   :  { %6827 = vpow2.f32 %v6086_v47 }
 0x5f6   :  { %v6826_v53 = vpop.eup %6825 }
 0x5f7   :  { %v1918_v10 = vadd.f32 1.0, %v6826_v53 }
 0x5f8   :  { %v6828_v38 = vpop.eup %6827 }
 0x5f9   :  { %6829 = vrcp.f32 %v1918_v10  ;;  %v1924_v28 = vadd.f32 1.0, %v6828_v38  ;;  %v6087_v38 = vld [vmem:[%s14581_s0 + $0x30] sm:$0xff] }
 0x5fb   :  { %6831 = vrcp.f32 %v1924_v28  ;;  %v15795_v28 = vld [vmem:[#allocation49_spill] sm:$0xff] }
 0x606   :  { %v6830_v41 = vpop.eup %6829 }
 0x607   :  { %v1927_v6 = vmul.f32 %v6830_v41, %v1913_v26  ;;  %v15808_v26 = vld [vmem:[#allocation46_spill] sm:$0xff]  ;;  %v15809_v41 = vld [vmem:[#allocation25_spill] sm:$0xff] }
 0x608   :  { %v6832_v61 = vpop.eup %6831 }
 0x609   :  { %v1928_v43 = vadd.f32 %v1927_v6, %v1911_v44  ;;  %v1930_v39 = vsub.f32 1.0, %v6832_v61  ;;  %v1932_v10 = vmul.f32 %v6832_v61, %v9750_v52  ;;  %v15758_v6 = vld [vmem:[#allocation61_spill] sm:$0xff]  ;;  %v15759_v52 = vld [vmem:[#allocation75_spill] sm:$0xff]  ;;  %v15810_v44 = vld [vmem:[#allocation74_spill] sm:$0xff] }
 0x60a   :  { %v15812_v61 = vld [vmem:[#allocation12_spill] sm:$0xff] }
 0x60b   :  { %6833 = vtanh.f32 %v1928_v43  ;;  %v15811_v43 = vld [vmem:[#allocation53_spill] sm:$0xff] }
 0x618   :  { %v6834_v47 = vpop.eup %6833 }
 0x619   :  { %v1931_v15 = vmul.f32 %v6834_v47, %v1930_v39  ;;  %v15813_v39 = vld [vmem:[#allocation26_spill] sm:$0xff]  ;;  %v15814_v47 = vld [vmem:[#allocation48_spill] sm:$0xff] }
 0x61b   :  { %v10529_v53 = vadd.f32 %v1932_v10, %v1931_v15  ;;  %v15815_v15 = vld [vmem:[#allocation85_spill] sm:$0xff] }
 0x61c   :  { %v15816_v10 = vld [vmem:[#allocation13_spill] sm:$0xff] }
 0x61d   :  { %2154 = vmatprep.mubr.f32.mxu0 %v10529_v53  ;;  %2225 = vmatprep.mubr.f32.mxu1 %v10529_v53 }
 0x61e   :  { %2155 = vmatmul.mubr.f32.vlgmr.msra.gmra.mxu0 %v6087_v38  ;;  %2226 = vmatmul.mubr.f32.vlgmr.msra.gmra.mxu1 %v6087_v38  ;;  %v15817_v38 = vld [vmem:[#allocation27_spill] sm:$0xff] }
 0x61f   :  { %2408 = vmatpush1.msra.mxu0 %v9758_v54  ;;  %2479 = vmatpush1.msra.mxu1 %v9939_v45  ;;  %v15760_v54 = vld [vmem:[#allocation34_spill] sm:$0xff]  ;;  %v15784_v45 = vld [vmem:[#allocation40_spill] sm:$0xff] }
 0x620   :  { %2409 = vmatprep.subr.mxu0 %v9765_v49  ;;  %2480 = vmatprep.subr.mxu1 %v9951_v51  ;;  %v15761_v49 = vld [vmem:[#allocation35_spill] sm:$0xff] }
 0x621   :  { %2410 = vmatpush1.msra.mxu0 %v9770_v58  ;;  %2481 = vmatpush1.msra.mxu1 %v9963_v5  ;;  %v15762_v58 = vld [vmem:[#allocation62_spill] sm:$0xff]  ;;  %v15785_v51 = vld [vmem:[#allocation19_spill] sm:$0xff] }
 0x622   :  { %2411 = vmatprep.subr.mxu0 %v9776_v50  ;;  %2482 = vmatprep.subr.mxu1 %v9973_v12  ;;  %v15763_v50 = vld [vmem:[#allocation76_spill] sm:$0xff]  ;;  %v15787_v5 = vld [vmem:[#allocation47_spill] sm:$0xff]  ;;  %v15788_v12 = vld [vmem:[#allocation9_spill] sm:$0xff] }
 0x623   :  { %2412 = vmatpush1.msra.mxu0 %v9782_v4  ;;  %2483 = vmatpush1.msra.mxu1 %v9985_v17  ;;  %v15764_v4 = vld [vmem:[#allocation6_spill] sm:$0xff]  ;;  %v15789_v17 = vld [vmem:[#allocation20_spill] sm:$0xff] }
 0x624   :  { %2413 = vmatprep.subr.mxu0 %v9790_v13  ;;  %2484 = vmatprep.subr.mxu1 %v9997_v21  ;;  %v15765_v13 = vld [vmem:[#allocation37_spill] sm:$0xff]  ;;  %v15791_v21 = vld [vmem:[#allocation82_spill] sm:$0xff] }
 0x625   :  { %2414 = vmatpush1.msra.mxu0 %v9796_v1  ;;  %2485 = vmatpush1.msra.mxu1 %v10007_v25  ;;  %v15766_v1 = vld [vmem:[#allocation63_spill] sm:$0xff]  ;;  %v15793_v25 = vld [vmem:[#allocation21_spill] sm:$0xff] }
 0x626   :  { %2415 = vmatprep.subr.mxu0 %v9802_v48  ;;  %2486 = vmatprep.subr.mxu1 %v10023_v27  ;;  %v15767_v48 = vld [vmem:[#allocation77_spill] sm:$0xff]  ;;  %v15794_v27 = vld [vmem:[#allocation70_spill] sm:$0xff] }
 0x627   :  { %2416 = vmatpush1.msra.mxu0 %v9808_v2  ;;  %2487 = vmatpush1.msra.mxu1 %v10035_v29  ;;  %v15768_v2 = vld [vmem:[#allocation36_spill] sm:$0xff]  ;;  %v15796_v29 = vld [vmem:[#allocation10_spill] sm:$0xff] }
 0x628   :  { %2417 = vmatprep.subr.mxu0 %v9814_v63  ;;  %2488 = vmatprep.subr.mxu1 %v10047_v31  ;;  %v15769_v63 = vld [vmem:[#allocation39_spill] sm:$0xff] }
 0x629   :  { %2418 = vmatpush1.msra.mxu0 %v9820_v11  ;;  %2489 = vmatpush1.msra.mxu1 %v10059_v33  ;;  %v15770_v11 = vld [vmem:[#allocation64_spill] sm:$0xff]  ;;  %v15798_v31 = vld [vmem:[#allocation71_spill] sm:$0xff] }
 0x62a   :  { %2419 = vmatprep.subr.mxu0 %v9826_v59  ;;  %2490 = vmatprep.subr.mxu1 %v10071_v35  ;;  %v15771_v59 = vld [vmem:[#allocation78_spill] sm:$0xff]  ;;  %v15800_v33 = vld [vmem:[#allocation44_spill] sm:$0xff] }
 0x62b   :  { %2420 = vmatpush1.msra.mxu0 %v9832_v8  ;;  %2491 = vmatpush1.msra.mxu1 %v10083_v56  ;;  %v15772_v8 = vld [vmem:[#allocation7_spill] sm:$0xff]  ;;  %v15802_v35 = vld [vmem:[#allocation72_spill] sm:$0xff] }
 0x62c   :  { %2421 = vmatprep.subr.mxu0 %v9838_v37  ;;  %2492 = vmatprep.subr.mxu1 %v10095_v23  ;;  %v15773_v37 = vld [vmem:[#allocation41_spill] sm:$0xff]  ;;  %v15804_v56 = vld [vmem:[#allocation11_spill] sm:$0xff]  ;;  %v15805_v23 = vld [vmem:[#allocation24_spill] sm:$0xff] }
 0x62d   :  { %2422 = vmatpush1.msra.mxu0 %v9844_v9  ;;  %2493 = vmatpush1.msra.mxu1 %v10107_v24  ;;  %v15774_v9 = vld [vmem:[#allocation65_spill] sm:$0xff]  ;;  %v15803_v24 = vld [vmem:[#allocation51_spill] sm:$0xff] }
 0x62e   :  { %2423 = vmatprep.subr.mxu0 %v9850_v0  ;;  %2494 = vmatprep.subr.mxu1 %v10119_v34  ;;  %v15775_v0 = vld [vmem:[#allocation79_spill] sm:$0xff] }
 0x62f   :  { %2424 = vmatpush1.msra.mxu0 %v9856_v16  ;;  %2495 = vmatpush1.msra.mxu1 %v10131_v32  ;;  %v15776_v16 = vld [vmem:[#allocation38_spill] sm:$0xff]  ;;  %v15799_v32 = vld [vmem:[#allocation83_spill] sm:$0xff] }
 0x630   :  { %2425 = vmatprep.subr.mxu0 %v9862_v14  ;;  %2496 = vmatprep.subr.mxu1 %v10143_v30  ;;  %v15777_v14 = vld [vmem:[#allocation43_spill] sm:$0xff]  ;;  %v15797_v30 = vld [vmem:[#allocation22_spill] sm:$0xff] }
 0x631   :  { %2426 = vmatpush1.msra.mxu0 %v9868_v7  ;;  %2497 = vmatpush1.msra.mxu1 %v10155_v55  ;;  %v15778_v7 = vld [vmem:[#allocation66_spill] sm:$0xff]  ;;  %v15801_v34 = vld [vmem:[#allocation23_spill] sm:$0xff]  ;;  %v15806_v55 = vld [vmem:[#allocation73_spill] sm:$0xff] }
 0x632   :  { %2427 = vmatprep.subr.mxu0 %v9874_v60  ;;  %2498 = vmatprep.subr.mxu1 %v10165_v22  ;;  %v15779_v60 = vld [vmem:[#allocation80_spill] sm:$0xff]  ;;  %v15792_v22 = vld [vmem:[#allocation42_spill] sm:$0xff] }
 0x633   :  { %2428 = vmatpush1.msra.mxu0 %v9880_v3  ;;  %2499 = vmatpush1.msra.mxu1 %v10177_v19  ;;  %v15780_v3 = vld [vmem:[#allocation8_spill] sm:$0xff]  ;;  %v15790_v19 = vld [vmem:[#allocation69_spill] sm:$0xff] }
 0x634   :  { %2429 = vmatprep.subr.mxu0 %v9886_v62  ;;  %2500 = vmatprep.subr.mxu1 %v15757_v46  ;;  %v15781_v62 = vld [vmem:[#allocation45_spill] sm:$0xff]  ;;  %v15818_v46 = vld [vmem:[#allocation50_spill] sm:$0xff] }
 0x635   :  { %2430 = vmatpush1.msra.mxu0 %v15758_v6  ;;  %2501 = vmatpush1.msra.mxu1 %v15759_v52  ;;  %v15819_v6 = vld [vmem:[#allocation55_spill] sm:$0xff]  ;;  %v15820_v52 = vld [vmem:[#allocation14_spill] sm:$0xff] }
 0x636   :  { %2431 = vmatprep.subr.mxu0 %v15760_v54  ;;  %2502 = vmatprep.subr.mxu1 %v15761_v49  ;;  %v15821_v54 = vld [vmem:[#allocation28_spill] sm:$0xff] }
 0x637   :  { %2432 = vmatpush1.msra.mxu0 %v15762_v58  ;;  %2503 = vmatpush1.msra.mxu1 %v15763_v50  ;;  %v15822_v49 = vld [vmem:[#allocation52_spill] sm:$0xff]  ;;  %v15823_v58 = vld [vmem:[#allocation86_spill] sm:$0xff]  ;;  %v15824_v50 = vld [vmem:[#allocation15_spill] sm:$0xff] }
 0x638   :  { %2433 = vmatprep.subr.mxu0 %v15764_v4  ;;  %2504 = vmatprep.subr.mxu1 %v15765_v13  ;;  %v15825_v4 = vld [vmem:[#allocation29_spill] sm:$0xff]  ;;  %v15826_v13 = vld [vmem:[#allocation54_spill] sm:$0xff] }
 0x639   :  { %2434 = vmatpush1.msra.mxu0 %v15766_v1  ;;  %2505 = vmatpush1.msra.mxu1 %v15767_v48  ;;  %v15827_v1 = vld [vmem:[#allocation57_spill] sm:$0xff]  ;;  %v15828_v48 = vld [vmem:[#allocation16_spill] sm:$0xff] }
 0x63a   :  { %2435 = vmatprep.subr.mxu0 %v15768_v2  ;;  %2506 = vmatprep.subr.mxu1 %v15769_v63  ;;  %v15829_v2 = vld [vmem:[#allocation30_spill] sm:$0xff]  ;;  %v15830_v63 = vld [vmem:[#allocation56_spill] sm:$0xff] }
 0x63b   :  { %2436 = vmatpush1.msra.mxu0 %v15770_v11  ;;  %2507 = vmatpush1.msra.mxu1 %v15771_v59  ;;  %v15831_v11 = vld [vmem:[#allocation87_spill] sm:$0xff]  ;;  %v15832_v59 = vld [vmem:[#allocation17_spill] sm:$0xff] }
 0x63c   :  { %2437 = vmatprep.subr.mxu0 %v15772_v8  ;;  %2508 = vmatprep.subr.mxu1 %v15773_v37  ;;  %v15833_v8 = vld [vmem:[#allocation31_spill] sm:$0xff]  ;;  %v15834_v37 = vld [vmem:[#allocation58_spill] sm:$0xff] }
 0x63d   :  { %2438 = vmatpush1.msra.mxu0 %v15774_v9  ;;  %2509 = vmatpush1.msra.mxu1 %v15775_v0  ;;  %v15835_v9 = vld [vmem:[#allocation59_spill] sm:$0xff]  ;;  %v15836_v0 = vld [vmem:[#allocation18_spill] sm:$0xff] }
 0x63e   :  { %2439 = vmatprep.subr.mxu0 %v15776_v16  ;;  %2510 = vmatprep.subr.mxu1 %v15777_v14  ;;  %v15837_v16 = vld [vmem:[#allocation32_spill] sm:$0xff] }
 0x63f   :  { %2440 = vmatpush2.msra.mxu0 %v15778_v7  ;;  %2511 = vmatpush2.msra.mxu1 %v15779_v60  ;;  %v15838_v14 = vld [vmem:[#allocation60_spill] sm:$0xff] }
 0x640   :  { %2441 = vmatprep.subr.mxu0 %v15780_v3  ;;  %2512 = vmatprep.subr.mxu1 %v15781_v62  ;;  %v15839_v7 = vld [vmem:[#allocation88_spill] sm:$0xff]  ;;  %v2068_v3 = vld [vmem:[%s14582_s3] sm:$0xf] }
 0x641   :  { %2442 = vmatpush2.msra.mxu0 %v15782_v36  ;;  %2513 = vmatpush2.msra.mxu1 %v15783_v40  ;;  %v10665_v60 = vld [vmem:[%s14583_s4 + $0x1e8] sm:$0xff] }
 0x642   :  { %2443 = vmatprep.subr.mxu0 %v15784_v45  ;;  %2514 = vmatprep.subr.mxu1 %v15785_v51  ;;  %v15840_v62 = vld [vmem:[#allocation4_spill] sm:$0xff] }
 0x643   :  { %2444 = vmatpush2.msra.mxu0 %v15786_v57  ;;  %2515 = vmatpush2.msra.mxu1 %v15787_v5  ;;  %v2073_v36 = vrot.slane %v2068_v3, %v15840_v62  ;;  %v15841_v57 = vld [vmem:[#allocation5_spill] sm:$0xff] }
 0x644   :  { %2445 = vmatprep.subr.mxu0 %v15788_v12  ;;  %2516 = vmatprep.subr.mxu1 %v15789_v17  ;;  %v2077_v5 = vrot.slane %v2068_v3, %v15841_v57 }
 0x645   :  { %2446 = vmatpush2.msra.mxu0 %v15790_v19  ;;  %2517 = vmatpush2.msra.mxu1 %v15791_v21 }
 0x646   :  { %2447 = vmatprep.subr.mxu0 %v15792_v22  ;;  %2518 = vmatprep.subr.mxu1 %v15793_v25 }
 0x647   :  { %2448 = vmatpush2.msra.mxu0 %v15794_v27  ;;  %2519 = vmatpush2.msra.mxu1 %v15795_v28  ;;  %v2085_v28 = vrot.slane %v2068_v3, %v7891_v18 }
 0x648   :  { %2449 = vmatprep.subr.mxu0 %v15796_v29  ;;  %2520 = vmatprep.subr.mxu1 %v15797_v30 }
 0x649   :  { %2450 = vmatpush2.msra.mxu0 %v15798_v31  ;;  %2521 = vmatpush2.msra.mxu1 %v15799_v32  ;;  %v2081_v31 = vrot.slane %v2068_v3, %v7894_v20  ;;  %v10857_v3 = vld [vmem:[%s14583_s4 + $0x1f0] sm:$0xff] }
 0x64a   :  { %2451 = vmatprep.subr.mxu0 %v15800_v33  ;;  %2522 = vmatprep.subr.mxu1 %v15801_v34  ;;  %15842 = vst [vmem:[#allocation33_spill] sm:$0xff] %v10857_v3 }
 0x64b   :  { %2452 = vmatpush2.msra.mxu0 %v15802_v35  ;;  %2523 = vmatpush2.msra.mxu1 %v15803_v24 }
 0x64c   :  { %2453 = vmatprep.subr.mxu0 %v15804_v56  ;;  %2524 = vmatprep.subr.mxu1 %v15805_v23 }
 0x64d   :  { %2454 = vmatpush2.msra.mxu0 %v15806_v55  ;;  %2525 = vmatpush2.msra.mxu1 %v15807_v42 }
 0x64e   :  { %2455 = vmatprep.subr.mxu0 %v15808_v26  ;;  %2526 = vmatprep.subr.mxu1 %v15809_v41 }
 0x64f   :  { %2456 = vmatpush2.msra.mxu0 %v15810_v44  ;;  %2527 = vmatpush2.msra.mxu1 %v15811_v43  ;;  %v6090_v44 = vld [vmem:[%s14581_s0 + $0x38] sm:$0xff]  ;;  %v10684_v43 = vld [vmem:[%s14583_s4 + $0x1e0] sm:$0xff] }
 0x650   :  { %2457 = vmatprep.subr.mxu0 %v15812_v61  ;;  %2528 = vmatprep.subr.mxu1 %v15813_v39  ;;  %v10691_v61 = vld [vmem:[%s14583_s4 + $0x1c8] sm:$0xff] }
 0x651   :  { %2458 = vmatpush2.msra.mxu0 %v15814_v47  ;;  %2529 = vmatpush2.msra.mxu1 %v15815_v15  ;;  %v10702_v39 = vld [vmem:[%s14583_s4 + $0x1a8] sm:$0xff]  ;;  %v10708_v47 = vld [vmem:[%s14583_s4 + $0x1a0] sm:$0xff] }
 0x652   :  { %2459 = vmatprep.subr.mxu0 %v15816_v10  ;;  %2530 = vmatprep.subr.mxu1 %v15817_v38  ;;  %v10716_v15 = vld [vmem:[%s14583_s4 + $0x188] sm:$0xff]  ;;  %v10722_v10 = vld [vmem:[%s14583_s4 + $0x180] sm:$0xff] }
 0x653   :  { %2460 = vmatpush2.msra.mxu0 %v15818_v46  ;;  %2531 = vmatpush2.msra.mxu1 %v15819_v6  ;;  %v10728_v38 = vld [vmem:[%s14583_s4 + $0x168] sm:$0xff]  ;;  %v10734_v46 = vld [vmem:[%s14583_s4 + $0x160] sm:$0xff] }
 0x654   :  { %2461 = vmatprep.subr.mxu0 %v15820_v52  ;;  %2532 = vmatprep.subr.mxu1 %v15821_v54  ;;  %v10740_v6 = vld [vmem:[%s14583_s4 + $0x148] sm:$0xff]  ;;  %v10746_v52 = vld [vmem:[%s14583_s4 + $0x140] sm:$0xff] }
 0x655   :  { %2462 = vmatpush2.msra.mxu0 %v15822_v49  ;;  %2533 = vmatpush2.msra.mxu1 %v15823_v58  ;;  %v10752_v54 = vld [vmem:[%s14583_s4 + $0x128] sm:$0xff]  ;;  %v10758_v49 = vld [vmem:[%s14583_s4 + $0x120] sm:$0xff] }
 0x656   :  { %2463 = vmatprep.subr.mxu0 %v15824_v50  ;;  %2534 = vmatprep.subr.mxu1 %v15825_v4  ;;  %v10764_v58 = vld [vmem:[%s14583_s4 + $0x108] sm:$0xff]  ;;  %v10770_v50 = vld [vmem:[%s14583_s4 + $0x100] sm:$0xff] }
 0x657   :  { %2464 = vmatpush2.msra.mxu0 %v15826_v13  ;;  %2535 = vmatpush2.msra.mxu1 %v15827_v1  ;;  %v10776_v4 = vld [vmem:[%s14583_s4 + $0xe8] sm:$0xff]  ;;  %v10782_v13 = vld [vmem:[%s14583_s4 + $0xe0] sm:$0xff] }
 0x658   :  { %2465 = vmatprep.subr.mxu0 %v15828_v48  ;;  %2536 = vmatprep.subr.mxu1 %v15829_v2  ;;  %v10788_v1 = vld [vmem:[%s14583_s4 + $0xc8] sm:$0xff]  ;;  %v10794_v48 = vld [vmem:[%s14583_s4 + $0xc0] sm:$0xff] }
 0x659   :  { %2466 = vmatpush2.msra.mxu0 %v15830_v63  ;;  %2537 = vmatpush2.msra.mxu1 %v15831_v11  ;;  %v10800_v2 = vld [vmem:[%s14583_s4 + $0xa8] sm:$0xff]  ;;  %v10806_v63 = vld [vmem:[%s14583_s4 + $0xa0] sm:$0xff] }
 0x65a   :  { %2467 = vmatprep.subr.mxu0 %v15832_v59  ;;  %2538 = vmatprep.subr.mxu1 %v15833_v8  ;;  %v10812_v11 = vld [vmem:[%s14583_s4 + $0x88] sm:$0xff]  ;;  %v10818_v59 = vld [vmem:[%s14583_s4 + $0x80] sm:$0xff] }
 0x65b   :  { %2468 = vmatpush2.msra.mxu0 %v15834_v37  ;;  %2539 = vmatpush2.msra.mxu1 %v15835_v9  ;;  %v10824_v8 = vld [vmem:[%s14583_s4 + $0x68] sm:$0xff]  ;;  %v10830_v37 = vld [vmem:[%s14583_s4 + $0x60] sm:$0xff] }
 0x65c   :  { %2469 = vmatprep.subr.mxu0 %v15836_v0  ;;  %2540 = vmatprep.subr.mxu1 %v15837_v16  ;;  %v10836_v9 = vld [vmem:[%s14583_s4 + $0x48] sm:$0xff]  ;;  %v2583_v0 = vld [vmem:[%s14583_s4 + $0x40] sm:$0xff] }
 0x65d   :  { %2470 = vmatpush2.msra.mxu0 %v15838_v14  ;;  %2541 = vmatpush2.msra.mxu1 %v15839_v7  ;;  %v2580_v16 = vld [vmem:[%s14583_s4 + $0x28] sm:$0xff]  ;;  %v10848_v14 = vld [vmem:[%s14583_s4 + $0x1f8] sm:$0xff]  ;;  %v2579_v7 = vld [vmem:[%s14583_s4 + $0x20] sm:$0xff] }
 0x65e   :  { %2725 = vmatprep.subr.mxu0 %v10665_v60  ;;  %2796 = vmatprep.subr.mxu1 %v10848_v14 }
 0x6de   :  { %v2156_v40 = vpop.f32.mrf.mxu0  ;;  %v2227_v25 = vpop.f32.mrf.mxu1 }
 0x6df   :  { %v2157_v45 = vadd.f32 %v2156_v40, %v2073_v36  ;;  %v2228_v34 = vadd.f32 %v2227_v25, %v2081_v31  ;;  %v2576_v36 = vld [vmem:[%s14583_s4 + $0x8] sm:$0xff]  ;;  %v10866_v40 = vld [vmem:[%s14583_s4 + $0x1d8] sm:$0xff]  ;;  %v10908_v25 = vld [vmem:[%s14583_s4 + $0x3c0] sm:$0xff] }
 0x6e0   :  { %v2158_v12 = vpop.f32.mrf.mxu0  ;;  %v2229_v29 = vpop.f32.mrf.mxu1  ;;  %15843 = vst [vmem:[#allocation61_spill] sm:$0xff] %v10866_v40  ;;  %v10940_v31 = vld [vmem:[%s14583_s4 + $0x170] sm:$0xff] }
 0x6e1   :  { %v6088_v51 = vmul.f32 -1.442695, %v2157_v45  ;;  %v2159_v17 = vadd.f32 %v2158_v12, %v2077_v5  ;;  %v2230_v32 = vadd.f32 %v2229_v29, %v2085_v28  ;;  %v2575_v45 = vld [vmem:[%s14583_s4] sm:$0xff]  ;;  %v2700_v5 = vld [vmem:[%s14583_s4 + $0x3e8] sm:$0xff]  ;;  %v10883_v12 = vld [vmem:[%s14583_s4 + $0x1b8] sm:$0xff]  ;;  %15850 = vst [vmem:[#allocation37_spill] sm:$0xff] %v10940_v31 }
 0x6e2   :  { %15845 = vst [vmem:[#allocation34_spill] sm:$0xff] %v10883_v12  ;;  %v10923_v28 = vld [vmem:[%s14583_s4 + $0x3a8] sm:$0xff]  ;;  %v10928_v29 = vld [vmem:[%s14583_s4 + $0x178] sm:$0xff] }
 0x6e3   :  { %6835 = vpow2.f32 %v6088_v51  ;;  %v6089_v19 = vmul.f32 -1.442695, %v2159_v17  ;;  %v10875_v51 = vld [vmem:[%s14583_s4 + $0x1d0] sm:$0xff]  ;;  %v2699_v17 = vld [vmem:[%s14583_s4 + $0x3e0] sm:$0xff]  ;;  %15849 = vst [vmem:[#allocation6_spill] sm:$0xff] %v10928_v29 }
 0x6e4   :  { %15844 = vst [vmem:[#allocation75_spill] sm:$0xff] %v10875_v51 }
 0x6e5   :  { %6837 = vpow2.f32 %v6089_v19  ;;  %v10892_v19 = vld [vmem:[%s14583_s4 + $0x1b0] sm:$0xff] }
 0x6e6   :  { %15846 = vst [vmem:[#allocation35_spill] sm:$0xff] %v10892_v19 }
 0x6f0   :  { %v6836_v21 = vpop.eup %6835 }
 0x6f1   :  { %v2235_v22 = vadd.f32 1.0, %v6836_v21  ;;  %v10897_v21 = vld [vmem:[%s14583_s4 + $0x3c8] sm:$0xff] }
 0x6f2   :  { %v6838_v27 = vpop.eup %6837 }
 0x6f3   :  { %6839 = vrcp.f32 %v2235_v22  ;;  %v2241_v30 = vadd.f32 1.0, %v6838_v27  ;;  %v10903_v22 = vld [vmem:[%s14583_s4 + $0x198] sm:$0xff]  ;;  %v10913_v27 = vld [vmem:[%s14583_s4 + $0x190] sm:$0xff] }
 0x6f4   :  { %15847 = vst [vmem:[#allocation62_spill] sm:$0xff] %v10903_v22  ;;  %15848 = vst [vmem:[#allocation76_spill] sm:$0xff] %v10913_v27 }
 0x6f5   :  { %6841 = vrcp.f32 %v2241_v30  ;;  %v10935_v30 = vld [vmem:[%s14583_s4 + $0x3a0] sm:$0xff] }
 0x700   :  { %v6840_v33 = vpop.eup %6839 }
 0x701   :  { %v2244_v35 = vmul.f32 %v6840_v33, %v2230_v32  ;;  %v10947_v32 = vld [vmem:[%s14583_s4 + $0x388] sm:$0xff]  ;;  %v10952_v33 = vld [vmem:[%s14583_s4 + $0x158] sm:$0xff] }
 0x702   :  { %v6842_v56 = vpop.eup %6841  ;;  %15851 = vst [vmem:[#allocation63_spill] sm:$0xff] %v10952_v33 }
 0x703   :  { %v2245_v24 = vadd.f32 %v2244_v35, %v2228_v34  ;;  %v2247_v23 = vsub.f32 1.0, %v6842_v56  ;;  %v2249_v26 = vmul.f32 %v6842_v56, %v10529_v53  ;;  %v10696_v53 = vld [vmem:[%s14583_s4 + $0x1c0] sm:$0xff]  ;;  %v10964_v35 = vld [vmem:[%s14583_s4 + $0x150] sm:$0xff]  ;;  %v10976_v56 = vld [vmem:[%s14583_s4 + $0x138] sm:$0xff] }
 0x704   :  { %v10959_v34 = vld [vmem:[%s14583_s4 + $0x380] sm:$0xff]  ;;  %15852 = vst [vmem:[#allocation77_spill] sm:$0xff] %v10964_v35  ;;  %15853 = vst [vmem:[#allocation36_spill] sm:$0xff] %v10976_v56 }
 0x705   :  { %6843 = vtanh.f32 %v2245_v24  ;;  %v10971_v24 = vld [vmem:[%s14583_s4 + $0x368] sm:$0xff] }
 0x712   :  { %v6844_v55 = vpop.eup %6843 }
 0x713   :  { %v2248_v42 = vmul.f32 %v6844_v55, %v2247_v23  ;;  %v10983_v23 = vld [vmem:[%s14583_s4 + $0x360] sm:$0xff]  ;;  %v10988_v55 = vld [vmem:[%s14583_s4 + $0x130] sm:$0xff] }
 0x714   :  { %15854 = vst [vmem:[#allocation39_spill] sm:$0xff] %v10988_v55 }
 0x715   :  { %v10676_v41 = vadd.f32 %v2249_v26, %v2248_v42  ;;  %v10995_v42 = vld [vmem:[%s14583_s4 + $0x348] sm:$0xff]  ;;  %v11000_v26 = vld [vmem:[%s14583_s4 + $0x118] sm:$0xff] }
 0x716   :  { %15855 = vst [vmem:[#allocation64_spill] sm:$0xff] %v11000_v26 }
 0x717   :  { %2471 = vmatprep.mubr.f32.mxu0 %v10676_v41  ;;  %2542 = vmatprep.mubr.f32.mxu1 %v10676_v41 }
 0x718   :  { %2472 = vmatmul.mubr.f32.vlgmr.msra.gmra.mxu0 %v6090_v44  ;;  %2543 = vmatmul.mubr.f32.vlgmr.msra.gmra.mxu1 %v6090_v44  ;;  %v11007_v44 = vld [vmem:[%s14583_s4 + $0x340] sm:$0xff] }
 0x719   :  { %2726 = vmatpush1.msra.mxu0 %v10684_v43  ;;  %2797 = vmatpush1.msra.mxu1 %v10857_v3  ;;  %v11207_v3 = vld [vmem:[%s14583_s4 + $0x228] sm:$0xff] }
 0x71a   :  { %2727 = vmatprep.subr.mxu0 %v10691_v61  ;;  %2798 = vmatprep.subr.mxu1 %v10866_v40  ;;  %v11195_v40 = vld [vmem:[%s14583_s4 + $0x240] sm:$0xff]  ;;  %15887 = vst [vmem:[#allocation72_spill] sm:$0xff] %v11207_v3 }
 0x71b   :  { %2728 = vmatpush1.msra.mxu0 %v10696_v53  ;;  %2799 = vmatpush1.msra.mxu1 %v10875_v51  ;;  %v11183_v51 = vld [vmem:[%s14583_s4 + $0x248] sm:$0xff]  ;;  %15885 = vst [vmem:[#allocation44_spill] sm:$0xff] %v11195_v40 }
 0x71c   :  { %2729 = vmatprep.subr.mxu0 %v10702_v39  ;;  %2800 = vmatprep.subr.mxu1 %v10883_v12  ;;  %v11171_v12 = vld [vmem:[%s14583_s4 + $0x260] sm:$0xff]  ;;  %15883 = vst [vmem:[#allocation71_spill] sm:$0xff] %v11183_v51 }
 0x71d   :  { %2730 = vmatpush1.msra.mxu0 %v10708_v47  ;;  %2801 = vmatpush1.msra.mxu1 %v10892_v19  ;;  %v11159_v19 = vld [vmem:[%s14583_s4 + $0x268] sm:$0xff]  ;;  %15881 = vst [vmem:[#allocation10_spill] sm:$0xff] %v11171_v12 }
 0x71e   :  { %2731 = vmatprep.subr.mxu0 %v10716_v15  ;;  %2802 = vmatprep.subr.mxu1 %v10903_v22  ;;  %v11147_v22 = vld [vmem:[%s14583_s4 + $0x280] sm:$0xff]  ;;  %15879 = vst [vmem:[#allocation70_spill] sm:$0xff] %v11159_v19 }
 0x71f   :  { %2732 = vmatpush1.msra.mxu0 %v10722_v10  ;;  %2803 = vmatpush1.msra.mxu1 %v10913_v27  ;;  %v11135_v27 = vld [vmem:[%s14583_s4 + $0x288] sm:$0xff]  ;;  %15877 = vst [vmem:[#allocation42_spill] sm:$0xff] %v11147_v22 }
 0x720   :  { %2733 = vmatprep.subr.mxu0 %v10728_v38  ;;  %2804 = vmatprep.subr.mxu1 %v10928_v29  ;;  %v11123_v29 = vld [vmem:[%s14583_s4 + $0x2a0] sm:$0xff]  ;;  %15875 = vst [vmem:[#allocation69_spill] sm:$0xff] %v11135_v27 }
 0x721   :  { %2734 = vmatpush1.msra.mxu0 %v10734_v46  ;;  %2805 = vmatpush1.msra.mxu1 %v10940_v31  ;;  %v11116_v31 = vld [vmem:[%s14583_s4 + $0x78] sm:$0xff]  ;;  %15873 = vst [vmem:[#allocation9_spill] sm:$0xff] %v11123_v29 }
 0x722   :  { %2735 = vmatprep.subr.mxu0 %v10740_v6  ;;  %2806 = vmatprep.subr.mxu1 %v10952_v33  ;;  %v11104_v33 = vld [vmem:[%s14583_s4 + $0x90] sm:$0xff]  ;;  %15872 = vst [vmem:[#allocation47_spill] sm:$0xff] %v11116_v31 }
 0x723   :  { %2736 = vmatpush1.msra.mxu0 %v10746_v52  ;;  %2807 = vmatpush1.msra.mxu1 %v10964_v35  ;;  %v11099_v35 = vld [vmem:[%s14583_s4 + $0x2c0] sm:$0xff]  ;;  %15870 = vst [vmem:[#allocation19_spill] sm:$0xff] %v11104_v33 }
 0x724   :  { %2737 = vmatprep.subr.mxu0 %v10752_v54  ;;  %2808 = vmatprep.subr.mxu1 %v10976_v56  ;;  %v11087_v56 = vld [vmem:[%s14583_s4 + $0x2c8] sm:$0xff]  ;;  %15869 = vst [vmem:[#allocation40_spill] sm:$0xff] %v11099_v35 }
 0x725   :  { %2738 = vmatpush1.msra.mxu0 %v10758_v49  ;;  %2809 = vmatpush1.msra.mxu1 %v10988_v55  ;;  %v11082_v55 = vld [vmem:[%s14583_s4 + $0xb0] sm:$0xff]  ;;  %15867 = vst [vmem:[#allocation67_spill] sm:$0xff] %v11087_v56 }
 0x726   :  { %2739 = vmatprep.subr.mxu0 %v10764_v58  ;;  %2810 = vmatprep.subr.mxu1 %v11000_v26  ;;  %v11070_v26 = vld [vmem:[%s14583_s4 + $0xb8] sm:$0xff]  ;;  %15866 = vst [vmem:[#allocation45_spill] sm:$0xff] %v11082_v55 }
 0x727   :  { %2740 = vmatpush1.msra.mxu0 %v10770_v50  ;;  %15864 = vst [vmem:[#allocation80_spill] sm:$0xff] %v11070_v26 }
 0x728   :  { %2741 = vmatprep.subr.mxu0 %v10776_v4 }
 0x729   :  { %2742 = vmatpush1.msra.mxu0 %v10782_v13 }
 0x72a   :  { %2743 = vmatprep.subr.mxu0 %v10788_v1 }
 0x72b   :  { %2744 = vmatpush1.msra.mxu0 %v10794_v48 }
 0x72c   :  { %2745 = vmatprep.subr.mxu0 %v10800_v2 }
 0x72d   :  { %2746 = vmatpush1.msra.mxu0 %v10806_v63 }
 0x72e   :  { %2747 = vmatprep.subr.mxu0 %v10812_v11 }
 0x72f   :  { %2748 = vmatpush1.msra.mxu0 %v10818_v59 }
 0x730   :  { %2749 = vmatprep.subr.mxu0 %v10824_v8 }
 0x731   :  { %2750 = vmatpush1.msra.mxu0 %v10830_v37 }
 0x732   :  { %2751 = vmatprep.subr.mxu0 %v10836_v9 }
 0x733   :  { %2752 = vmatpush1.msra.mxu0 %v2583_v0  ;;  %v11012_v0 = vld [vmem:[%s14583_s4 + $0x110] sm:$0xff] }
 0x734   :  { %2753 = vmatprep.subr.mxu0 %v2580_v16  ;;  %15856 = vst [vmem:[#allocation78_spill] sm:$0xff] %v11012_v0  ;;  %2811 = vmatpush1.msra.mxu1 %v11012_v0  ;;  %v11019_v16 = vld [vmem:[%s14583_s4 + $0x328] sm:$0xff] }
 0x735   :  { %2754 = vmatpush1.msra.mxu0 %v2579_v7  ;;  %v11024_v7 = vld [vmem:[%s14583_s4 + $0xf8] sm:$0xff]  ;;  %v11065_v0 = vld [vmem:[%s14583_s4 + $0x2e8] sm:$0xff] }
 0x736   :  { %2755 = vmatprep.subr.mxu0 %v2576_v36  ;;  %15857 = vst [vmem:[#allocation7_spill] sm:$0xff] %v11024_v7  ;;  %2812 = vmatprep.subr.mxu1 %v11024_v7  ;;  %v11031_v36 = vld [vmem:[%s14583_s4 + $0x320] sm:$0xff]  ;;  %15863 = vst [vmem:[#allocation66_spill] sm:$0xff] %v11065_v0 }
 0x737   :  { %2756 = vmatpush1.msra.mxu0 %v2575_v45  ;;  %v11036_v45 = vld [vmem:[%s14583_s4 + $0xf0] sm:$0xff]  ;;  %v11053_v7 = vld [vmem:[%s14583_s4 + $0x300] sm:$0xff] }
 0x738   :  { %2757 = vmatprep.subr.mxu0 %v2700_v5  ;;  %15858 = vst [vmem:[#allocation41_spill] sm:$0xff] %v11036_v45  ;;  %2813 = vmatpush1.msra.mxu1 %v11036_v45  ;;  %v11043_v5 = vld [vmem:[%s14583_s4 + $0x308] sm:$0xff]  ;;  %15861 = vst [vmem:[#allocation38_spill] sm:$0xff] %v11053_v7  ;;  %v11060_v45 = vld [vmem:[%s14583_s4 + $0xd0] sm:$0xff] }
 0x739   :  { %2758 = vmatpush2.msra.mxu0 %v2699_v17  ;;  %15859 = vst [vmem:[#allocation65_spill] sm:$0xff] %v11043_v5  ;;  %v11048_v17 = vld [vmem:[%s14583_s4 + $0xd8] sm:$0xff]  ;;  %15862 = vst [vmem:[#allocation43_spill] sm:$0xff] %v11060_v45 }
 0x73a   :  { %2759 = vmatprep.subr.mxu0 %v10897_v21  ;;  %15860 = vst [vmem:[#allocation79_spill] sm:$0xff] %v11048_v17  ;;  %2814 = vmatprep.subr.mxu1 %v11048_v17  ;;  %v11077_v17 = vld [vmem:[%s14583_s4 + $0x2e0] sm:$0xff] }
 0x73b   :  { %2760 = vmatpush2.msra.mxu0 %v10908_v25  ;;  %2815 = vmatpush1.msra.mxu1 %v11060_v45  ;;  %15865 = vst [vmem:[#allocation8_spill] sm:$0xff] %v11077_v17  ;;  %v11094_v45 = vld [vmem:[%s14583_s4 + $0x98] sm:$0xff] }
 0x73c   :  { %2761 = vmatprep.subr.mxu0 %v10923_v28  ;;  %2816 = vmatprep.subr.mxu1 %v11070_v26  ;;  %15868 = vst [vmem:[#allocation81_spill] sm:$0xff] %v11094_v45  ;;  %v11111_v26 = vld [vmem:[%s14583_s4 + $0x2a8] sm:$0xff] }
 0x73d   :  { %2762 = vmatpush2.msra.mxu0 %v10935_v30  ;;  %2817 = vmatpush1.msra.mxu1 %v11082_v55  ;;  %15871 = vst [vmem:[#allocation68_spill] sm:$0xff] %v11111_v26  ;;  %v11128_v55 = vld [vmem:[%s14583_s4 + $0x70] sm:$0xff] }
 0x73e   :  { %2763 = vmatprep.subr.mxu0 %v10947_v32  ;;  %2818 = vmatprep.subr.mxu1 %v11094_v45  ;;  %15874 = vst [vmem:[#allocation20_spill] sm:$0xff] %v11128_v55  ;;  %v11140_v45 = vld [vmem:[%s14583_s4 + $0x58] sm:$0xff] }
 0x73f   :  { %2764 = vmatpush2.msra.mxu0 %v10959_v34  ;;  %2819 = vmatpush1.msra.mxu1 %v11104_v33  ;;  %15876 = vst [vmem:[#allocation82_spill] sm:$0xff] %v11140_v45  ;;  %v11152_v33 = vld [vmem:[%s14583_s4 + $0x50] sm:$0xff] }
 0x740   :  { %2765 = vmatprep.subr.mxu0 %v10971_v24  ;;  %2820 = vmatprep.subr.mxu1 %v11116_v31  ;;  %15878 = vst [vmem:[#allocation21_spill] sm:$0xff] %v11152_v33  ;;  %v11164_v31 = vld [vmem:[%s14583_s4 + $0x38] sm:$0xff] }
 0x741   :  { %2766 = vmatpush2.msra.mxu0 %v10983_v23  ;;  %2821 = vmatpush1.msra.mxu1 %v11128_v55  ;;  %15880 = vst [vmem:[#allocation49_spill] sm:$0xff] %v11164_v31  ;;  %v11176_v55 = vld [vmem:[%s14583_s4 + $0x30] sm:$0xff] }
 0x742   :  { %2767 = vmatprep.subr.mxu0 %v10995_v42  ;;  %2822 = vmatprep.subr.mxu1 %v11140_v45  ;;  %15882 = vst [vmem:[#allocation22_spill] sm:$0xff] %v11176_v55  ;;  %v11188_v45 = vld [vmem:[%s14583_s4 + $0x18] sm:$0xff] }
 0x743   :  { %2768 = vmatpush2.msra.mxu0 %v11007_v44  ;;  %2823 = vmatpush1.msra.mxu1 %v11152_v33  ;;  %15884 = vst [vmem:[#allocation83_spill] sm:$0xff] %v11188_v45  ;;  %v11200_v33 = vld [vmem:[%s14583_s4 + $0x10] sm:$0xff] }
 0x744   :  { %2769 = vmatprep.subr.mxu0 %v11019_v16  ;;  %2824 = vmatprep.subr.mxu1 %v11164_v31  ;;  %15886 = vst [vmem:[#allocation23_spill] sm:$0xff] %v11200_v33  ;;  %v11212_v31 = vld [vmem:[%s14583_s4 + $0x3f8] sm:$0xff] }
 0x745   :  { %2770 = vmatpush2.msra.mxu0 %v11031_v36  ;;  %2825 = vmatpush1.msra.mxu1 %v11176_v55  ;;  %15888 = vst [vmem:[#allocation51_spill] sm:$0xff] %v11212_v31  ;;  %v11224_v55 = vld [vmem:[%s14583_s4 + $0x3f0] sm:$0xff] }
 0x746   :  { %2771 = vmatprep.subr.mxu0 %v11043_v5  ;;  %2826 = vmatprep.subr.mxu1 %v11188_v45  ;;  %15890 = vst [vmem:[#allocation24_spill] sm:$0xff] %v11224_v55  ;;  %v11236_v45 = vld [vmem:[%s14583_s4 + $0x3d8] sm:$0xff] }
 0x747   :  { %2772 = vmatpush2.msra.mxu0 %v11053_v7  ;;  %2827 = vmatpush1.msra.mxu1 %v11200_v33  ;;  %15892 = vst [vmem:[#allocation84_spill] sm:$0xff] %v11236_v45  ;;  %v11252_v33 = vld [vmem:[%s14583_s4 + $0x3d0] sm:$0xff] }
 0x748   :  { %2773 = vmatprep.subr.mxu0 %v11065_v0  ;;  %2828 = vmatprep.subr.mxu1 %v11212_v31  ;;  %15894 = vst [vmem:[#allocation25_spill] sm:$0xff] %v11252_v33  ;;  %v11259_v31 = vld [vmem:[%s14583_s4 + $0x3b8] sm:$0xff] }
 0x749   :  { %2774 = vmatpush2.msra.mxu0 %v11077_v17  ;;  %2829 = vmatpush2.msra.mxu1 %v11224_v55  ;;  %15895 = vst [vmem:[#allocation74_spill] sm:$0xff] %v11259_v31  ;;  %v11270_v55 = vld [vmem:[%s14583_s4 + $0x398] sm:$0xff] }
 0x74a   :  { %2775 = vmatprep.subr.mxu0 %v11087_v56  ;;  %2830 = vmatprep.subr.mxu1 %v11236_v45  ;;  %v11265_v45 = vld [vmem:[%s14583_s4 + $0x3b0] sm:$0xff]  ;;  %15897 = vst [vmem:[#allocation12_spill] sm:$0xff] %v11270_v55 }
 0x74b   :  { %2776 = vmatpush2.msra.mxu0 %v11099_v35  ;;  %2831 = vmatpush2.msra.mxu1 %v11252_v33  ;;  %15896 = vst [vmem:[#allocation53_spill] sm:$0xff] %v11265_v45  ;;  %v11275_v33 = vld [vmem:[%s14583_s4 + $0x390] sm:$0xff] }
 0x74c   :  { %2777 = vmatprep.subr.mxu0 %v11111_v26  ;;  %2832 = vmatprep.subr.mxu1 %v11259_v31  ;;  %15898 = vst [vmem:[#allocation26_spill] sm:$0xff] %v11275_v33  ;;  %v11282_v31 = vld [vmem:[%s14583_s4 + $0x378] sm:$0xff] }
 0x74d   :  { %2778 = vmatpush2.msra.mxu0 %v11123_v29  ;;  %2833 = vmatpush2.msra.mxu1 %v11265_v45  ;;  %15900 = vst [vmem:[#allocation48_spill] sm:$0xff] %v11282_v31  ;;  %v11300_v45 = vld [vmem:[%s14583_s4 + $0x350] sm:$0xff] }
 0x74e   :  { %2779 = vmatprep.subr.mxu0 %v11135_v27  ;;  %2834 = vmatprep.subr.mxu1 %v11270_v55  ;;  %15903 = vst [vmem:[#allocation27_spill] sm:$0xff] %v11300_v45  ;;  %v11306_v55 = vld [vmem:[%s14583_s4 + $0x338] sm:$0xff] }
 0x74f   :  { %2780 = vmatpush2.msra.mxu0 %v11147_v22  ;;  %2835 = vmatpush2.msra.mxu1 %v11275_v33  ;;  %15904 = vst [vmem:[#allocation50_spill] sm:$0xff] %v11306_v55  ;;  %v11312_v33 = vld [vmem:[%s14583_s4 + $0x330] sm:$0xff] }
 0x750   :  { %2781 = vmatprep.subr.mxu0 %v11159_v19  ;;  %2836 = vmatprep.subr.mxu1 %v11282_v31  ;;  %15905 = vst [vmem:[#allocation55_spill] sm:$0xff] %v11312_v33  ;;  %v11318_v31 = vld [vmem:[%s14583_s4 + $0x318] sm:$0xff] }
 0x751   :  { %2782 = vmatpush2.msra.mxu0 %v11171_v12  ;;  %v11219_v12 = vld [vmem:[%s14583_s4 + $0x220] sm:$0xff]  ;;  %15906 = vst [vmem:[#allocation14_spill] sm:$0xff] %v11318_v31 }
 0x752   :  { %2783 = vmatprep.subr.mxu0 %v11183_v51  ;;  %15889 = vst [vmem:[#allocation11_spill] sm:$0xff] %v11219_v12  ;;  %v11231_v51 = vld [vmem:[%s14583_s4 + $0x208] sm:$0xff] }
 0x753   :  { %2784 = vmatpush2.msra.mxu0 %v11195_v40  ;;  %15891 = vst [vmem:[#allocation73_spill] sm:$0xff] %v11231_v51  ;;  %v11243_v40 = vld [vmem:[%s14583_s4 + $0x200] sm:$0xff] }
 0x754   :  { %2785 = vmatprep.subr.mxu0 %v11207_v3  ;;  %15893 = vst [vmem:[#allocation46_spill] sm:$0xff] %v11243_v40 }
 0x755   :  { %2786 = vmatpush2.msra.mxu0 %v11219_v12  ;;  %v11294_v12 = vld [vmem:[%s14583_s4 + $0x358] sm:$0xff] }
 0x756   :  { %2787 = vmatprep.subr.mxu0 %v11231_v51  ;;  %v11288_v51 = vld [vmem:[%s14583_s4 + $0x370] sm:$0xff]  ;;  %15902 = vst [vmem:[#allocation13_spill] sm:$0xff] %v11294_v12 }
 0x757   :  { %2788 = vmatpush2.msra.mxu0 %v11243_v40  ;;  %v15899_v40 = vmov 0.0   ;;  %15901 = vst [vmem:[#allocation85_spill] sm:$0xff] %v11288_v51  ;;  %2837 = vmatpush2.msra.mxu1 %v11288_v51  ;;  %v11324_v51 = vld [vmem:[%s14583_s4 + $0x310] sm:$0xff] }
 0x758   :  { %6351 = vmatprep.subr.mxu0 %v15899_v40  ;;  %2838 = vmatprep.subr.mxu1 %v11294_v12  ;;  %15907 = vst [vmem:[#allocation28_spill] sm:$0xff] %v11324_v51  ;;  %v11330_v12 = vld [vmem:[%s14583_s4 + $0x2f8] sm:$0xff] }
 0x759   :  { %2839 = vmatpush2.msra.mxu1 %v11300_v45  ;;  %15908 = vst [vmem:[#allocation52_spill] sm:$0xff] %v11330_v12  ;;  %v11336_v45 = vld [vmem:[%s14583_s4 + $0x2f0] sm:$0xff] }
 0x75a   :  { %2840 = vmatprep.subr.mxu1 %v11306_v55  ;;  %15909 = vst [vmem:[#allocation86_spill] sm:$0xff] %v11336_v45  ;;  %v11342_v55 = vld [vmem:[%s14583_s4 + $0x2d8] sm:$0xff] }
 0x75b   :  { %2841 = vmatpush2.msra.mxu1 %v11312_v33  ;;  %15910 = vst [vmem:[#allocation15_spill] sm:$0xff] %v11342_v55  ;;  %v11348_v33 = vld [vmem:[%s14583_s4 + $0x2d0] sm:$0xff] }
 0x75c   :  { %2842 = vmatprep.subr.mxu1 %v11318_v31  ;;  %15911 = vst [vmem:[#allocation29_spill] sm:$0xff] %v11348_v33  ;;  %v11354_v31 = vld [vmem:[%s14583_s4 + $0x2b8] sm:$0xff] }
 0x75d   :  { %2843 = vmatpush2.msra.mxu1 %v11324_v51  ;;  %15912 = vst [vmem:[#allocation54_spill] sm:$0xff] %v11354_v31  ;;  %v11360_v51 = vld [vmem:[%s14583_s4 + $0x2b0] sm:$0xff] }
 0x75e   :  { %2844 = vmatprep.subr.mxu1 %v11330_v12  ;;  %15913 = vst [vmem:[#allocation57_spill] sm:$0xff] %v11360_v51  ;;  %v11366_v12 = vld [vmem:[%s14583_s4 + $0x298] sm:$0xff] }
 0x75f   :  { %2845 = vmatpush2.msra.mxu1 %v11336_v45  ;;  %15914 = vst [vmem:[#allocation16_spill] sm:$0xff] %v11366_v12  ;;  %v11372_v45 = vld [vmem:[%s14583_s4 + $0x290] sm:$0xff] }
 0x760   :  { %2846 = vmatprep.subr.mxu1 %v11342_v55  ;;  %15915 = vst [vmem:[#allocation30_spill] sm:$0xff] %v11372_v45  ;;  %v11378_v55 = vld [vmem:[%s14583_s4 + $0x278] sm:$0xff] }
 0x761   :  { %2847 = vmatpush2.msra.mxu1 %v11348_v33  ;;  %15916 = vst [vmem:[#allocation56_spill] sm:$0xff] %v11378_v55  ;;  %v11384_v33 = vld [vmem:[%s14583_s4 + $0x270] sm:$0xff] }
 0x762   :  { %2848 = vmatprep.subr.mxu1 %v11354_v31  ;;  %15917 = vst [vmem:[#allocation87_spill] sm:$0xff] %v11384_v33  ;;  %v11390_v31 = vld [vmem:[%s14583_s4 + $0x258] sm:$0xff] }
 0x763   :  { %2849 = vmatpush2.msra.mxu1 %v11360_v51  ;;  %15918 = vst [vmem:[#allocation17_spill] sm:$0xff] %v11390_v31  ;;  %v11396_v51 = vld [vmem:[%s14583_s4 + $0x250] sm:$0xff] }
 0x764   :  { %2850 = vmatprep.subr.mxu1 %v11366_v12  ;;  %15919 = vst [vmem:[#allocation31_spill] sm:$0xff] %v11396_v51  ;;  %v11402_v12 = vld [vmem:[%s14583_s4 + $0x238] sm:$0xff] }
 0x765   :  { %2851 = vmatpush2.msra.mxu1 %v11372_v45  ;;  %15920 = vst [vmem:[#allocation58_spill] sm:$0xff] %v11402_v12  ;;  %v11408_v45 = vld [vmem:[%s14583_s4 + $0x230] sm:$0xff] }
 0x766   :  { %2852 = vmatprep.subr.mxu1 %v11378_v55  ;;  %15921 = vst [vmem:[#allocation59_spill] sm:$0xff] %v11408_v45  ;;  %v11414_v55 = vld [vmem:[%s14583_s4 + $0x218] sm:$0xff] }
 0x767   :  { %2853 = vmatpush2.msra.mxu1 %v11384_v33  ;;  %15922 = vst [vmem:[#allocation18_spill] sm:$0xff] %v11414_v55  ;;  %v11420_v33 = vld [vmem:[%s14583_s4 + $0x210] sm:$0xff] }
 0x768   :  { %2854 = vmatprep.subr.mxu1 %v11390_v31  ;;  %15923 = vst [vmem:[#allocation32_spill] sm:$0xff] %v11420_v33 }
 0x769   :  { %2855 = vmatpush2.msra.mxu1 %v11396_v51  ;;  %v2385_v51 = vld [vmem:[%s14582_s3] sm:$0xf] }
 0x76a   :  { %2856 = vmatprep.subr.mxu1 %v11402_v12  ;;  %v2390_v31 = vrot.slane %v2385_v51, %v15840_v62  ;;  %v2394_v22 = vrot.slane %v2385_v51, %v15841_v57  ;;  %v2402_v56 = vrot.slane %v2385_v51, %v7891_v18  ;;  %v2398_v7 = vrot.slane %v2385_v51, %v7894_v20  ;;  %v11444_v51 = vld [vmem:[%s14585_s6 + $0x78] sm:$0xff] }
 0x76b   :  { %2857 = vmatpush2.msra.mxu1 %v11408_v45 }
 0x76c   :  { %2858 = vmatprep.subr.mxu1 %v11414_v55 }
 0x76d   :  { %2859 = vmatpush2.msra.mxu1 %v11420_v33 }
 0x76e   :  { %6386 = vmatprep.subr.mxu1 %v15899_v40 }
 0x7d8   :  { %v2473_v12 = vpop.f32.mrf.mxu0  ;;  %v2544_v26 = vpop.f32.mrf.mxu1 }
 0x7d9   :  { %v2474_v3 = vadd.f32 %v2473_v12, %v2390_v31  ;;  %v2545_v31 = vadd.f32 %v2544_v26, %v2398_v7  ;;  %v11465_v26 = vld [vmem:[%s14585_s6 + $0x60] sm:$0xff]  ;;  %v11479_v7 = vld [vmem:[%s14585_s6 + $0x50] sm:$0xff] }
 0x7da   :  { %v2475_v27 = vpop.f32.mrf.mxu0  ;;  %v2546_v17 = vpop.f32.mrf.mxu1  ;;  %15924 = vst [vmem:[#allocation60_spill] sm:$0xff] %v11465_v26  ;;  %15926 = vst [vmem:[#allocation89_spill] sm:$0xff] %v11479_v7 }
 0x7db   :  { %v6091_v19 = vmul.f32 -1.442695, %v2474_v3  ;;  %v2476_v45 = vadd.f32 %v2475_v27, %v2394_v22  ;;  %v2547_v12 = vadd.f32 %v2546_v17, %v2402_v56  ;;  %v11458_v56 = vld [vmem:[%s14585_s6 + $0x68] sm:$0xff]  ;;  %v11493_v17 = vld [vmem:[%s14585_s6 + $0x40] sm:$0xff] }
 0x7dc   :  { %15928 = vst [vmem:[#allocation91_spill] sm:$0xff] %v11493_v17 }
 0x7dd   :  { %6845 = vpow2.f32 %v6091_v19  ;;  %v6092_v29 = vmul.f32 -1.442695, %v2476_v45 }
 0x7df   :  { %6847 = vpow2.f32 %v6092_v29 }
 0x7ea   :  { %v6846_v55 = vpop.eup %6845 }
 0x7eb   :  { %v2552_v33 = vadd.f32 1.0, %v6846_v55 }
 0x7ec   :  { %v6848_v35 = vpop.eup %6847 }
 0x7ed   :  { %6849 = vrcp.f32 %v2552_v33  ;;  %v2558_v0 = vadd.f32 1.0, %v6848_v35  ;;  %v2569_v35 = vld [vmem:[%s14584_s1] sm:$0xff] }
 0x7ef   :  { %6851 = vrcp.f32 %v2558_v0  ;;  %v11472_v0 = vld [vmem:[%s14585_s6 + $0x58] sm:$0xff] }
 0x7f0   :  { %15925 = vst [vmem:[#allocation88_spill] sm:$0xff] %v11472_v0 }
 0x7fa   :  { %v6850_v3 = vpop.eup %6849 }
 0x7fb   :  { %v2561_v5 = vmul.f32 %v6850_v3, %v2547_v12  ;;  %v11498_v12 = vld [vmem:[%s14585_s6 + $0x38] sm:$0xff]  ;;  %v11507_v3 = vld [vmem:[%s14585_s6 + $0x30] sm:$0xff] }
 0x7fc   :  { %v6852_v22 = vpop.eup %6851  ;;  %15929 = vst [vmem:[#allocation92_spill] sm:$0xff] %v11498_v12  ;;  %15930 = vst [vmem:[#allocation93_spill] sm:$0xff] %v11507_v3 }
 0x7fd   :  { %v2562_v19 = vadd.f32 %v2561_v5, %v2545_v31  ;;  %v2564_v27 = vsub.f32 1.0, %v6852_v22  ;;  %v2566_v33 = vmul.f32 %v6852_v22, %v10676_v41  ;;  %v11449_v41 = vld [vmem:[%s14585_s6 + $0x70] sm:$0xff]  ;;  %v11486_v5 = vld [vmem:[%s14585_s6 + $0x48] sm:$0xff]  ;;  %v11530_v22 = vld [vmem:[%s14585_s6 + $0x18] sm:$0xff] }
 0x7fe   :  { %15927 = vst [vmem:[#allocation90_spill] sm:$0xff] %v11486_v5  ;;  %v11516_v31 = vld [vmem:[%s14585_s6 + $0x28] sm:$0xff]  ;;  %15933 = vst [vmem:[#allocation96_spill] sm:$0xff] %v11530_v22 }
 0x7ff   :  { %6853 = vtanh.f32 %v2562_v19  ;;  %15931 = vst [vmem:[#allocation94_spill] sm:$0xff] %v11516_v31  ;;  %v11523_v19 = vld [vmem:[%s14585_s6 + $0x20] sm:$0xff] }
 0x800   :  { %15932 = vst [vmem:[#allocation95_spill] sm:$0xff] %v11523_v19 }
 0x80c   :  { %v6854_v29 = vpop.eup %6853 }
 0x80d   :  { %v2565_v55 = vmul.f32 %v6854_v29, %v2564_v27  ;;  %v11537_v27 = vld [vmem:[%s14585_s6 + $0x10] sm:$0xff]  ;;  %v11544_v29 = vld [vmem:[%s14585_s6 + $0x8] sm:$0xff] }
 0x80e   :  { %15934 = vst [vmem:[#allocation97_spill] sm:$0xff] %v11537_v27  ;;  %15935 = vst [vmem:[#allocation98_spill] sm:$0xff] %v11544_v29 }
 0x80f   :  { %v11434_v45 = vadd.f32 %v2566_v33, %v2565_v55  ;;  %v11551_v55 = vld [vmem:[%s14585_s6] sm:$0xff] }
 0x810   :  { %15936 = vst [vmem:[#allocation99_spill] sm:$0xff] %v11551_v55  ;;  %v2703_v33 = vld [vmem:[%s14586_s5] sm:$0xf] }
 0x811   :  { %2789 = vmatprep.mubr.f32.mxu0 %v11434_v45  ;;  %2860 = vmatprep.mubr.f32.mxu1 %v11434_v45 }
 0x812   :  { %2790 = vmatmul.mubr.f32.vlgmr.msra.gmra.mxu0 %v2569_v35  ;;  %2861 = vmatmul.mubr.f32.vlgmr.msra.gmra.mxu1 %v2569_v35  ;;  %v2708_v35 = vrot.slane %v2703_v33, %v15840_v62  ;;  %v2716_v62 = vrot.slane %v2703_v33, %v7894_v20 }
 0x813   :  { %6352 = vmatpush3.msra.mxu0 %v11444_v51  ;;  %6383 = vmatprep.mubr.msk.f32.mxu0 %vm6916_vm0, %v15899_v40 }
 0x814   :  { %6353 = vmatprep.subr.mxu0 %v15899_v40  ;;  %6418 = vmatprep.mubr.msk.f32.mxu1 %vm6916_vm0, %v15899_v40 }
 0x815   :  { %6354 = vmatpush3.msra.mxu0 %v11449_v41 }
 0x816   :  { %6355 = vmatprep.subr.mxu0 %v15899_v40 }
 0x817   :  { %6356 = vmatpush3.msra.mxu0 %v11458_v56 }
 0x818   :  { %6357 = vmatprep.subr.mxu0 %v15899_v40 }
 0x819   :  { %6358 = vmatpush3.msra.mxu0 %v11465_v26 }
 0x81a   :  { %6359 = vmatprep.subr.mxu0 %v15899_v40 }
 0x81b   :  { %6360 = vmatpush3.msra.mxu0 %v11472_v0 }
 0x81c   :  { %6361 = vmatprep.subr.mxu0 %v15899_v40 }
 0x81d   :  { %6362 = vmatpush3.msra.mxu0 %v11479_v7  ;;  %v2720_v7 = vrot.slane %v2703_v33, %v7891_v18 }
 0x81e   :  { %6363 = vmatprep.subr.mxu0 %v15899_v40 }
 0x81f   :  { %6364 = vmatpush3.msra.mxu0 %v11486_v5 }
 0x820   :  { %6365 = vmatprep.subr.mxu0 %v15899_v40 }
 0x821   :  { %6366 = vmatpush3.msra.mxu0 %v11493_v17 }
 0x822   :  { %6367 = vmatprep.subr.mxu0 %v15899_v40 }
 0x823   :  { %6368 = vmatpush3.msra.mxu0 %v11498_v12 }
 0x824   :  { %6369 = vmatprep.subr.mxu0 %v15899_v40 }
 0x825   :  { %6370 = vmatpush3.msra.mxu0 %v11507_v3 }
 0x826   :  { %6371 = vmatprep.subr.mxu0 %v15899_v40 }
 0x827   :  { %6372 = vmatpush3.msra.mxu0 %v11516_v31  ;;  %v2712_v31 = vrot.slane %v2703_v33, %v15841_v57  ;;  %v11670_v33 = vld [vmem:[%s14589_s8 + $0x58] sm:$0xff] }
 0x828   :  { %6373 = vmatprep.subr.mxu0 %v15899_v40 }
 0x829   :  { %6374 = vmatpush3.msra.mxu0 %v11523_v19 }
 0x82a   :  { %6375 = vmatprep.subr.mxu0 %v15899_v40 }
 0x82b   :  { %6376 = vmatpush3.msra.mxu0 %v11530_v22 }
 0x82c   :  { %6377 = vmatprep.subr.mxu0 %v15899_v40 }
 0x82d   :  { %6378 = vmatpush3.msra.mxu0 %v11537_v27 }
 0x82e   :  { %6379 = vmatprep.subr.mxu0 %v15899_v40 }
 0x82f   :  { %6380 = vmatpush3.msra.mxu0 %v11544_v29 }
 0x830   :  { %6381 = vmatprep.subr.mxu0 %v15899_v40 }
 0x831   :  { %6382 = vmatpush3.msra.mxu0 %v11551_v55 }
 0x832   :  { %3308 = vmatprep.subr.mxu0 %v10665_v60 }
 0x8d2   :  { %v2791_v27 = vpop.f32.mrf.mxu0  ;;  %v2862_v60 = vpop.f32.mrf.mxu1 }
 0x8d3   :  { %v2792_v22 = vadd.f32 %v2791_v27, %v2708_v35  ;;  %v2863_v35 = vadd.f32 %v2862_v60, %v2716_v62  ;;  %v6917_v62 = vmov 1966171168   ;;  %v11677_v60 = vld [vmem:[%s14589_s8 + $0x50] sm:$0xff] }
 0x8d4   :  { %v2793_v3 = vpop.f32.mrf.mxu0  ;;  %v2864_v0 = vpop.f32.mrf.mxu1 }
 0x8d5   :  { %v6093_v19 = vmul.f32 -1.442695, %v2792_v22  ;;  %v2794_v29 = vadd.f32 %v2793_v3, %v2712_v31  ;;  %v2865_v27 = vadd.f32 %v2864_v0, %v2720_v7  ;;  %v11649_v0 = vld [vmem:[%s14589_s8 + $0x70] sm:$0xff]  ;;  %v11656_v7 = vld [vmem:[%s14589_s8 + $0x68] sm:$0xff] }
 0x8d7   :  { %6855 = vpow2.f32 %v6093_v19  ;;  %v6094_v12 = vmul.f32 -1.442695, %v2794_v29 }
 0x8d9   :  { %6857 = vpow2.f32 %v6094_v12 }
 0x8e4   :  { %v6856_v17 = vpop.eup %6855 }
 0x8e5   :  { %v2870_v55 = vadd.f32 1.0, %v6856_v17 }
 0x8e6   :  { %v6858_v5 = vpop.eup %6857 }
 0x8e7   :  { %6859 = vrcp.f32 %v2870_v55  ;;  %v2876_v26 = vadd.f32 1.0, %v6858_v5  ;;  %v11663_v5 = vld [vmem:[%s14589_s8 + $0x60] sm:$0xff] }
 0x8e9   :  { %6861 = vrcp.f32 %v2876_v26  ;;  %v11644_v26 = vld [vmem:[%s14589_s8 + $0x78] sm:$0xff] }
 0x8ea   :  { %6387 = vmatpush3.msra.mxu1 %v11644_v26 }
 0x8eb   :  { %6388 = vmatprep.subr.mxu1 %v15899_v40 }
 0x8ec   :  { %6389 = vmatpush3.msra.mxu1 %v11649_v0 }
 0x8ed   :  { %6390 = vmatprep.subr.mxu1 %v15899_v40 }
 0x8ee   :  { %6391 = vmatpush3.msra.mxu1 %v11656_v7 }
 0x8ef   :  { %6392 = vmatprep.subr.mxu1 %v15899_v40 }
 0x8f0   :  { %6393 = vmatpush3.msra.mxu1 %v11663_v5 }
 0x8f1   :  { %6394 = vmatprep.subr.mxu1 %v15899_v40 }
 0x8f2   :  { %6395 = vmatpush3.msra.mxu1 %v11670_v33 }
 0x8f3   :  { %6396 = vmatprep.subr.mxu1 %v15899_v40 }
 0x8f4   :  { %v6860_v22 = vpop.eup %6859  ;;  %6397 = vmatpush3.msra.mxu1 %v11677_v60 }
 0x8f5   :  { %v2879_v57 = vmul.f32 %v6860_v22, %v2865_v27  ;;  %v11684_v27 = vld [vmem:[%s14589_s8 + $0x48] sm:$0xff]  ;;  %6398 = vmatprep.subr.mxu1 %v15899_v40  ;;  %v11691_v22 = vld [vmem:[%s14589_s8 + $0x40] sm:$0xff] }
 0x8f6   :  { %v6862_v3 = vpop.eup %6861  ;;  %6399 = vmatpush3.msra.mxu1 %v11684_v27 }
 0x8f7   :  { %v2880_v19 = vadd.f32 %v2879_v57, %v2863_v35  ;;  %v2882_v12 = vsub.f32 1.0, %v6862_v3  ;;  %v2884_v29 = vmul.f32 %v6862_v3, %v11434_v45  ;;  %v2983_v57 = vunpack.c.l.s4 %v6917_v62  ;;  %6400 = vmatprep.subr.mxu1 %v15899_v40  ;;  %v11698_v35 = vld [vmem:[%s14589_s8 + $0x38] sm:$0xff]  ;;  %v11712_v3 = vld [vmem:[%s14589_s8 + $0x28] sm:$0xff] }
 0x8f8   :  { %6401 = vmatpush3.msra.mxu1 %v11691_v22 }
 0x8f9   :  { %6863 = vtanh.f32 %v2880_v19  ;;  %6402 = vmatprep.subr.mxu1 %v15899_v40  ;;  %v11705_v19 = vld [vmem:[%s14589_s8 + $0x30] sm:$0xff] }
 0x8fa   :  { %6403 = vmatpush3.msra.mxu1 %v11698_v35 }
 0x8fb   :  { %6404 = vmatprep.subr.mxu1 %v15899_v40 }
 0x8fc   :  { %6405 = vmatpush3.msra.mxu1 %v11705_v19 }
 0x8fd   :  { %6406 = vmatprep.subr.mxu1 %v15899_v40 }
 0x8fe   :  { %6407 = vmatpush3.msra.mxu1 %v11712_v3 }
 0x8ff   :  { %6408 = vmatprep.subr.mxu1 %v15899_v40 }
 0x906   :  { %v6864_v31 = vpop.eup %6863 }
 0x907   :  { %v2883_v17 = vmul.f32 %v6864_v31, %v2882_v12  ;;  %v11719_v12 = vld [vmem:[%s14589_s8 + $0x20] sm:$0xff]  ;;  %v11726_v31 = vld [vmem:[%s14589_s8 + $0x18] sm:$0xff] }
 0x908   :  { %6409 = vmatpush3.msra.mxu1 %v11719_v12 }
 0x909   :  { %v11565_v55 = vadd.f32 %v2884_v29, %v2883_v17  ;;  %6410 = vmatprep.subr.mxu1 %v15899_v40 }
 0x90a   :  { %6411 = vmatpush3.msra.mxu1 %v11726_v31 }
 0x90b   :  { %6384 = vmatmul.mubr.f32.vlgmr.msra.gmra.mxu0 %v11565_v55  ;;  %6412 = vmatprep.subr.mxu1 %v15899_v40 }
 0x90c   :  { %3372 = vmatprep.mubr.f32.mxu0 %v11565_v55  ;;  %3309 = vmatpush1.msra.mxu0 %v10684_v43  ;;  %v2984_v43 = vunpack.c.0.s8 %v2983_v57 }
 0x90d   :  { %3310 = vmatprep.subr.mxu0 %v10691_v61  ;;  %v15937_v61 = vlaneseq }
 0x90e   :  { %3311 = vmatpush1.msra.mxu0 %v10696_v53 }
 0x90f   :  { %3312 = vmatprep.subr.mxu0 %v10702_v39  ;;  %v11596_v53 = vand.u32 127, %v15937_v61  ;;  %v11601_v39 = vld [vmem:[%s14587_s7] ss:$0 sm:$0xff]  ;;  %v11742_v61 = vld [vmem:[%s14589_s8 + $0x8] sm:$0xff] }
 0x910   :  { %3313 = vmatpush1.msra.mxu0 %v10708_v47  ;;  %v15938_v47 = vld [vmem:[#allocation3_spill] sm:$0xff] }
 0x911   :  { %3314 = vmatprep.subr.mxu0 %v10716_v15  ;;  %v11604_v15 = vsub.s32 %v2984_v43, %v15938_v47  ;;  %vm3046_vm1 = vcmp.lt.s32.totalorder %v11596_v53, 16  ;;  %v11735_v43 = vld [vmem:[%s14589_s8 + $0x10] sm:$0xff]  ;;  %v11749_v47 = vld [vmem:[%s14589_s8] sm:$0xff] }
 0x912   :  { %3315 = vmatpush1.msra.mxu0 %v10722_v10  ;;  %6413 = vmatpush3.msra.mxu1 %v11735_v43 }
 0x913   :  { %3316 = vmatprep.subr.mxu0 %v10728_v38  ;;  %6414 = vmatprep.subr.mxu1 %v15899_v40 }
 0x914   :  { %3317 = vmatpush1.msra.mxu0 %v10734_v46  ;;  %6415 = vmatpush3.msra.mxu1 %v11742_v61 }
 0x915   :  { %3318 = vmatprep.subr.mxu0 %v10740_v6  ;;  %6416 = vmatprep.subr.mxu1 %v15899_v40 }
 0x916   :  { %3319 = vmatpush1.msra.mxu0 %v10746_v52  ;;  %6417 = vmatpush3.msra.mxu1 %v11749_v47 }
 0x917   :  { %3320 = vmatprep.subr.mxu0 %v10752_v54  ;;  %3379 = vmatprep.subr.mxu1 %v10848_v14  ;;  %v11774_v14 = vld [vmem:[%s14583_s4 + $0x8] sm:$0xff] }
 0x918   :  { %3321 = vmatpush1.msra.mxu0 %v10758_v49 }
 0x919   :  { %3322 = vmatprep.subr.mxu0 %v10764_v58 }
 0x91a   :  { %3323 = vmatpush1.msra.mxu0 %v10770_v50 }
 0x91b   :  { %3324 = vmatprep.subr.mxu0 %v10776_v4 }
 0x91c   :  { %3325 = vmatpush1.msra.mxu0 %v10782_v13 }
 0x91d   :  { %3326 = vmatprep.subr.mxu0 %v10788_v1 }
 0x91e   :  { %3327 = vmatpush1.msra.mxu0 %v10794_v48 }
 0x91f   :  { %3328 = vmatprep.subr.mxu0 %v10800_v2 }
 0x920   :  { %3329 = vmatpush1.msra.mxu0 %v10806_v63 }
 0x921   :  { %3330 = vmatprep.subr.mxu0 %v10812_v11 }
 0x922   :  { %3331 = vmatpush1.msra.mxu0 %v10818_v59 }
 0x923   :  { %3332 = vmatprep.subr.mxu0 %v10824_v8 }
 0x924   :  { %3333 = vmatpush1.msra.mxu0 %v10830_v37 }
 0x925   :  { %3334 = vmatprep.subr.mxu0 %v10836_v9 }
 0x9cb   :  { %v2976_v10 = vpop.f32.mrf.mxu0 }
 0x9cc   :  { %v2977_v38 = vadd.f32 %v11601_v39, %v2976_v10  ;;  %v11756_v10 = vld [vmem:[%s14583_s4 + $0x40] sm:$0xff] }
 0x9cd   :  { %v6385_v46 = vpop.f32.mrf.mxu0  ;;  %3335 = vmatpush1.msra.mxu0 %v11756_v10 }
 0x9ce   :  { %v2981_v6 = vcombine.high %v2977_v38, %v2977_v38  ;;  %v2988_v52 = vrot.slane %v2977_v38, %v11604_v15  ;;  %v3047_v54 = vsel %vm3046_vm1, %v2977_v38, -inf  ;;  %v11762_v38 = vld [vmem:[%s14583_s4 + $0x28] sm:$0xff]  ;;  %v11768_v46 = vld [vmem:[%s14583_s4 + $0x20] sm:$0xff] }
 0x9cf   :  { %3048 = vmax.xlane.f32.xlu0 %v3047_v54  ;;  %3336 = vmatprep.subr.mxu0 %v11762_v38 }
 0x9d0   :  { %v2995_v49 = vrot.slane %v2981_v6, %v11604_v15  ;;  %v2996_v58 = vcombine.high %v2988_v52, %v2988_v52  ;;  %v3004_v50 = vrot.slane %v2988_v52, %v11604_v15  ;;  %6096 = vst.sshfl [vmem:[%s14588_s9] sm:$0x1 pattern:$0x73625140] %v2988_v52  ;;  %3337 = vmatpush1.msra.mxu0 %v11768_v46  ;;  %v11780_v6 = vld [vmem:[%s14583_s4] sm:$0xff]  ;;  %v11786_v52 = vld [vmem:[%s14583_s4 + $0x3e8] sm:$0xff] }
 0x9d1   :  { %3338 = vmatprep.subr.mxu0 %v11774_v14 }
 0x9d2   :  { %v2997_v4 = vcombine.high %v2995_v49, %v2995_v49  ;;  %v3011_v13 = vrot.slane %v2995_v49, %v11604_v15  ;;  %v3018_v1 = vrot.slane %v2996_v58, %v11604_v15  ;;  %v3026_v48 = vcombine.high %v3004_v50, %v3004_v50  ;;  %6097 = vst.sshfl [vmem:[%s14588_s9 + $0x8] sm:$0x1 pattern:$0x73625140] %v2996_v58  ;;  %v15952_v58 = vld [vmem:[#allocation44_spill] sm:$0xff] }
 0x9d3   :  { %6098 = vst.sshfl [vmem:[%s14588_s9 + $0x20] sm:$0x1 pattern:$0x73625140] %v2995_v49  ;;  %3339 = vmatpush1.msra.mxu0 %v11780_v6  ;;  %v15951_v49 = vld [vmem:[#allocation71_spill] sm:$0xff]  ;;  %v15953_v50 = vld [vmem:[#allocation72_spill] sm:$0xff] }
 0x9d4   :  { %v3025_v2 = vrot.slane %v2997_v4, %v11604_v15  ;;  %v3027_v63 = vcombine.high %v3011_v13, %v3011_v13  ;;  %v3028_v11 = vcombine.high %v3018_v1, %v3018_v1  ;;  %3040 = vst [vmem:[%s14588_s9 + $0x10] sm:$0x1] %v3026_v48  ;;  %6099 = vst.sshfl [vmem:[%s14588_s9 + $0x28] sm:$0x1 pattern:$0x73625140] %v2997_v4  ;;  %3340 = vmatprep.subr.mxu0 %v11786_v52 }
 0x9d5   :  { %v15954_v4 = vld [vmem:[#allocation11_spill] sm:$0xff]  ;;  %v15955_v13 = vld [vmem:[#allocation73_spill] sm:$0xff]  ;;  %v15956_v1 = vld [vmem:[#allocation46_spill] sm:$0xff] }
 0x9d6   :  { %v3029_v59 = vcombine.high %v3025_v2, %v3025_v2  ;;  %3041 = vst [vmem:[%s14588_s9 + $0x18] sm:$0x1] %v3028_v11  ;;  %3044 = vst [vmem:[%s14588_s9 + $0x30] sm:$0x1] %v3027_v63 }
 0x9d8   :  { %3045 = vst [vmem:[%s14588_s9 + $0x38] sm:$0x1] %v3029_v59 }
 0xa58   :  { %v3049_v8 = vpop.xlane.xlu0 %3048 }
 0xa59   :  { %vm3050_vm2 = vcmp.eq.f32.partialorder %v3047_v54, %v3049_v8  ;;  %v11792_v54 = vld [vmem:[%s14583_s4 + $0x3e0] sm:$0xff]  ;;  %v15010_v8 = vmov 1.0  }
 0xa5a   :  { %v3051_v37 = vsel %vm3050_vm2, %v11596_v53, 128  ;;  %3341 = vmatpush2.msra.mxu0 %v11792_v54 }
 0xa5b   :  { %v3053_v9 = vshra.s32 %v3051_v37, 16  ;;  %v3052_v17 = vand.u32 65535, %v3051_v37  ;;  %3342 = vmatprep.subr.mxu0 %v10897_v21  ;;  %v15939_v21 = vld [vmem:[#allocation65_spill] sm:$0xff] }
 0xa5c   :  { %3343 = vmatpush2.msra.mxu0 %v10908_v25  ;;  %v15940_v25 = vld [vmem:[#allocation38_spill] sm:$0xff]  ;;  %v15957_v37 = vld [vmem:[#allocation33_spill] sm:$0xff] }
 0xa5d   :  { %v3055_v45 = vcvt.s32.f32 %v3053_v9  ;;  %v3054_v62 = vcvt.s32.f32 %v3052_v17  ;;  %3344 = vmatprep.subr.mxu0 %v10923_v28  ;;  %v15941_v28 = vld [vmem:[#allocation66_spill] sm:$0xff]  ;;  %v15958_v9 = vld [vmem:[#allocation61_spill] sm:$0xff] }
 0xa5e   :  { %3345 = vmatpush2.msra.mxu0 %v10935_v30  ;;  %v15942_v30 = vld [vmem:[#allocation8_spill] sm:$0xff]  ;;  %v15960_v17 = vld [vmem:[#allocation34_spill] sm:$0xff] }
 0xa5f   :  { %3056 = vmin.xlane.f32.xlu0 %v3055_v45  ;;  %3346 = vmatprep.subr.mxu0 %v10947_v32  ;;  %v15943_v32 = vld [vmem:[#allocation67_spill] sm:$0xff] }
 0xa60   :  { %3347 = vmatpush2.msra.mxu0 %v10959_v34  ;;  %v15944_v34 = vld [vmem:[#allocation40_spill] sm:$0xff] }
 0xa61   :  { %3348 = vmatprep.subr.mxu0 %v10971_v24  ;;  %v15945_v24 = vld [vmem:[#allocation68_spill] sm:$0xff] }
 0xa62   :  { %3349 = vmatpush2.msra.mxu0 %v10983_v23  ;;  %v15946_v23 = vld [vmem:[#allocation9_spill] sm:$0xff] }
 0xa63   :  { %3350 = vmatprep.subr.mxu0 %v10995_v42  ;;  %v15947_v42 = vld [vmem:[#allocation69_spill] sm:$0xff] }
 0xa64   :  { %3351 = vmatpush2.msra.mxu0 %v11007_v44  ;;  %v15948_v44 = vld [vmem:[#allocation42_spill] sm:$0xff] }
 0xa65   :  { %3352 = vmatprep.subr.mxu0 %v11019_v16  ;;  %v15949_v16 = vld [vmem:[#allocation70_spill] sm:$0xff] }
 0xa66   :  { %3353 = vmatpush2.msra.mxu0 %v11031_v36  ;;  %v15950_v36 = vld [vmem:[#allocation10_spill] sm:$0xff] }
 0xa67   :  { %3354 = vmatprep.subr.mxu0 %v15939_v21  ;;  %v15964_v21 = vld [vmem:[#allocation6_spill] sm:$0xff] }
 0xa68   :  { %3355 = vmatpush2.msra.mxu0 %v15940_v25  ;;  %v15965_v25 = vld [vmem:[#allocation37_spill] sm:$0xff] }
 0xa69   :  { %3356 = vmatprep.subr.mxu0 %v15941_v28  ;;  %v15966_v28 = vld [vmem:[#allocation63_spill] sm:$0xff] }
 0xa6a   :  { %3357 = vmatpush2.msra.mxu0 %v15942_v30  ;;  %v15967_v30 = vld [vmem:[#allocation77_spill] sm:$0xff] }
 0xa6b   :  { %3358 = vmatprep.subr.mxu0 %v15943_v32  ;;  %v15968_v32 = vld [vmem:[#allocation36_spill] sm:$0xff] }
 0xa6c   :  { %3359 = vmatpush2.msra.mxu0 %v15944_v34  ;;  %v15969_v34 = vld [vmem:[#allocation39_spill] sm:$0xff] }
 0xa6d   :  { %3360 = vmatprep.subr.mxu0 %v15945_v24  ;;  %v15970_v24 = vld [vmem:[#allocation64_spill] sm:$0xff] }
 0xa6e   :  { %3361 = vmatpush2.msra.mxu0 %v15946_v23  ;;  %v15971_v23 = vld [vmem:[#allocation78_spill] sm:$0xff] }
 0xa6f   :  { %3362 = vmatprep.subr.mxu0 %v15947_v42  ;;  %v15972_v42 = vld [vmem:[#allocation7_spill] sm:$0xff] }
 0xa70   :  { %3363 = vmatpush2.msra.mxu0 %v15948_v44  ;;  %v15973_v44 = vld [vmem:[#allocation41_spill] sm:$0xff] }
 0xa71   :  { %3364 = vmatprep.subr.mxu0 %v15949_v16  ;;  %v15974_v16 = vld [vmem:[#allocation79_spill] sm:$0xff] }
 0xa72   :  { %3365 = vmatpush2.msra.mxu0 %v15950_v36  ;;  %v15975_v36 = vld [vmem:[#allocation43_spill] sm:$0xff] }
 0xa73   :  { %3366 = vmatprep.subr.mxu0 %v15951_v49  ;;  %v15976_v49 = vld [vmem:[#allocation80_spill] sm:$0xff] }
 0xa74   :  { %3367 = vmatpush2.msra.mxu0 %v15952_v58  ;;  %v15977_v58 = vld [vmem:[#allocation45_spill] sm:$0xff] }
 0xa75   :  { %3368 = vmatprep.subr.mxu0 %v15953_v50  ;;  %v15978_v50 = vld [vmem:[#allocation81_spill] sm:$0xff] }
 0xa76   :  { %3369 = vmatpush2.msra.mxu0 %v15954_v4  ;;  %v15979_v4 = vld [vmem:[#allocation19_spill] sm:$0xff] }
 0xa77   :  { %3370 = vmatprep.subr.mxu0 %v15955_v13  ;;  %v15980_v13 = vld [vmem:[#allocation47_spill] sm:$0xff] }
 0xa78   :  { %3371 = vmatpush2.msra.mxu0 %v15956_v1  ;;  %v15981_v1 = vld [vmem:[#allocation20_spill] sm:$0xff] }
 0xa79   :  { %6421 = vmatprep.subr.mxu0 %v15899_v40 }
 0xae8   :  { %v3057_v29 = vpop.xlane.xlu0 %3056 }
 0xae9   :  { %vm3058_vm3 = vcmp.eq.f32.partialorder %v3055_v45, %v3057_v29  ;;  %v3063_v48 = vcvt.f32.s32 %v3057_v29  ;;  %v15959_v45 = vld [vmem:[#allocation75_spill] sm:$0xff] }
 0xaea   :  { %v3059_v57 = vsel %vm3058_vm3, %v3054_v62, inf  ;;  %v15961_v29 = vld [vmem:[#allocation35_spill] sm:$0xff]  ;;  %v15962_v62 = vld [vmem:[#allocation62_spill] sm:$0xff] }
 0xaeb   :  { %3060 = vmin.xlane.f32.xlu1 %v3059_v57  ;;  %v3064_v63 = vshll.u32 %v3063_v48, 16  ;;  %v15963_v57 = vld [vmem:[#allocation76_spill] sm:$0xff]  ;;  %v15982_v48 = vld [vmem:[#allocation82_spill] sm:$0xff] }
 0xb74   :  { %v3061_v2 = vpop.xlane.xlu1 %3060 }
 0xb75   :  { %v3062_v11 = vcvt.f32.s32 %v3061_v2  ;;  %v15983_v2 = vld [vmem:[#allocation21_spill] sm:$0xff] }
 0xb77   :  { %v3065_v59 = vadd.s32 %v3064_v63, %v3062_v11  ;;  %v15984_v63 = vld [vmem:[#allocation49_spill] sm:$0xff]  ;;  %v15985_v11 = vld [vmem:[#allocation22_spill] sm:$0xff] }
 0xb79   :  { %vm3066_vm4 = vcmp.eq.s32.totalorder %v11596_v53, %v3065_v59  ;;  %v15986_v59 = vld [vmem:[#allocation83_spill] sm:$0xff] }
 0xb7a   :  { %6419 = vmatmul.mubr.msk.f32.vlgmr.msra.gmra.mxu1 %vm3066_vm4, %v15010_v8  ;;  %v12340_v8 = vld [vmem:[%s14583_s4 + $0x228] sm:$0xff] }
 0xb7b   :  { %3443 = vmatprep.mubr.f32.mxu1 %v11565_v55  ;;  %3380 = vmatpush1.msra.mxu1 %v15957_v37  ;;  %v15987_v37 = vld [vmem:[#allocation23_spill] sm:$0xff]  ;;  %16048 = vst [vmem:[#allocation71_spill] sm:$0xff] %v12340_v8 }
 0xb7c   :  { %3381 = vmatprep.subr.mxu1 %v15958_v9  ;;  %v15988_v9 = vld [vmem:[#allocation51_spill] sm:$0xff] }
 0xb7d   :  { %3382 = vmatpush1.msra.mxu1 %v15959_v45  ;;  %v15989_v45 = vld [vmem:[#allocation24_spill] sm:$0xff] }
 0xb7e   :  { %3383 = vmatprep.subr.mxu1 %v15960_v17  ;;  %v15990_v17 = vld [vmem:[#allocation84_spill] sm:$0xff] }
 0xb7f   :  { %3384 = vmatpush1.msra.mxu1 %v15961_v29  ;;  %v15991_v29 = vld [vmem:[#allocation25_spill] sm:$0xff] }
 0xb80   :  { %3385 = vmatprep.subr.mxu1 %v15962_v62  ;;  %v15992_v62 = vld [vmem:[#allocation74_spill] sm:$0xff] }
 0xb81   :  { %3386 = vmatpush1.msra.mxu1 %v15963_v57  ;;  %v15993_v57 = vld [vmem:[#allocation53_spill] sm:$0xff] }
 0xb82   :  { %3387 = vmatprep.subr.mxu1 %v15964_v21  ;;  %v15994_v21 = vld [vmem:[#allocation12_spill] sm:$0xff] }
 0xb83   :  { %3388 = vmatpush1.msra.mxu1 %v15965_v25  ;;  %v15995_v25 = vld [vmem:[#allocation26_spill] sm:$0xff] }
 0xb84   :  { %3389 = vmatprep.subr.mxu1 %v15966_v28  ;;  %v15996_v28 = vld [vmem:[#allocation48_spill] sm:$0xff] }
 0xb85   :  { %3390 = vmatpush1.msra.mxu1 %v15967_v30  ;;  %v15997_v30 = vld [vmem:[#allocation85_spill] sm:$0xff] }
 0xb86   :  { %3391 = vmatprep.subr.mxu1 %v15968_v32  ;;  %v15998_v32 = vld [vmem:[#allocation13_spill] sm:$0xff] }
 0xb87   :  { %3392 = vmatpush1.msra.mxu1 %v15969_v34  ;;  %v15999_v34 = vld [vmem:[#allocation27_spill] sm:$0xff] }
 0xb88   :  { %3393 = vmatprep.subr.mxu1 %v15970_v24  ;;  %v16000_v24 = vld [vmem:[#allocation50_spill] sm:$0xff] }
 0xb89   :  { %3394 = vmatpush1.msra.mxu1 %v15971_v23  ;;  %v16001_v23 = vld [vmem:[#allocation55_spill] sm:$0xff] }
 0xb8a   :  { %3395 = vmatprep.subr.mxu1 %v15972_v42  ;;  %v16002_v42 = vld [vmem:[#allocation14_spill] sm:$0xff] }
 0xb8b   :  { %3396 = vmatpush1.msra.mxu1 %v15973_v44  ;;  %v16003_v44 = vld [vmem:[#allocation28_spill] sm:$0xff] }
 0xb8c   :  { %3397 = vmatprep.subr.mxu1 %v15974_v16  ;;  %v16004_v16 = vld [vmem:[#allocation52_spill] sm:$0xff] }
 0xb8d   :  { %3398 = vmatpush1.msra.mxu1 %v15975_v36  ;;  %v16005_v36 = vld [vmem:[#allocation86_spill] sm:$0xff] }
 0xb8e   :  { %3399 = vmatprep.subr.mxu1 %v15976_v49  ;;  %v16006_v49 = vld [vmem:[#allocation15_spill] sm:$0xff] }
 0xb8f   :  { %3400 = vmatpush1.msra.mxu1 %v15977_v58  ;;  %v16007_v58 = vld [vmem:[#allocation29_spill] sm:$0xff] }
 0xb90   :  { %3401 = vmatprep.subr.mxu1 %v15978_v50  ;;  %v16008_v50 = vld [vmem:[#allocation54_spill] sm:$0xff] }
 0xb91   :  { %3402 = vmatpush1.msra.mxu1 %v15979_v4  ;;  %v16009_v4 = vld [vmem:[#allocation57_spill] sm:$0xff] }
 0xb92   :  { %3403 = vmatprep.subr.mxu1 %v15980_v13  ;;  %v16010_v13 = vld [vmem:[#allocation16_spill] sm:$0xff] }
 0xb93   :  { %3404 = vmatpush1.msra.mxu1 %v15981_v1  ;;  %v16011_v1 = vld [vmem:[#allocation30_spill] sm:$0xff] }
 0xb94   :  { %3405 = vmatprep.subr.mxu1 %v15982_v48  ;;  %v16012_v48 = vld [vmem:[#allocation56_spill] sm:$0xff] }
 0xb95   :  { %3406 = vmatpush1.msra.mxu1 %v15983_v2  ;;  %v16013_v2 = vld [vmem:[#allocation87_spill] sm:$0xff] }
 0xb96   :  { %3407 = vmatprep.subr.mxu1 %v15984_v63  ;;  %v16014_v63 = vld [vmem:[#allocation17_spill] sm:$0xff] }
 0xb97   :  { %3408 = vmatpush1.msra.mxu1 %v15985_v11  ;;  %v16015_v11 = vld [vmem:[#allocation31_spill] sm:$0xff] }
 0xb98   :  { %3409 = vmatprep.subr.mxu1 %v15986_v59  ;;  %v16016_v59 = vld [vmem:[#allocation58_spill] sm:$0xff] }
 0xb99   :  { %3410 = vmatpush1.msra.mxu1 %v15987_v37  ;;  %v16017_v37 = vld [vmem:[#allocation59_spill] sm:$0xff] }
 0xb9a   :  { %3411 = vmatprep.subr.mxu1 %v15988_v9  ;;  %v16018_v9 = vld [vmem:[#allocation18_spill] sm:$0xff] }
 0xb9b   :  { %3412 = vmatpush2.msra.mxu1 %v15989_v45  ;;  %v16019_v45 = vld [vmem:[#allocation32_spill] sm:$0xff] }
 0xb9c   :  { %3413 = vmatprep.subr.mxu1 %v15990_v17 }
 0xb9d   :  { %3414 = vmatpush2.msra.mxu1 %v15991_v29 }
 0xb9e   :  { %3415 = vmatprep.subr.mxu1 %v15992_v62 }
 0xb9f   :  { %3416 = vmatpush2.msra.mxu1 %v15993_v57 }
 0xba0   :  { %3417 = vmatprep.subr.mxu1 %v15994_v21  ;;  %v16034_v21 = vld [vmem:[#allocation5_spill] sm:$0xff] }
 0xba1   :  { %3418 = vmatpush2.msra.mxu1 %v15995_v25 }
 0xba2   :  { %3419 = vmatprep.subr.mxu1 %v15996_v28 }
 0xba3   :  { %3420 = vmatpush2.msra.mxu1 %v15997_v30 }
 0xba4   :  { %3421 = vmatprep.subr.mxu1 %v15998_v32 }
 0xba5   :  { %3422 = vmatpush2.msra.mxu1 %v15999_v34 }
 0xba6   :  { %3423 = vmatprep.subr.mxu1 %v16000_v24 }
 0xba7   :  { %3424 = vmatpush2.msra.mxu1 %v16001_v23 }
 0xba8   :  { %3425 = vmatprep.subr.mxu1 %v16002_v42 }
 0xba9   :  { %3426 = vmatpush2.msra.mxu1 %v16003_v44 }
 0xbaa   :  { %3427 = vmatprep.subr.mxu1 %v16004_v16 }
 0xbab   :  { %3428 = vmatpush2.msra.mxu1 %v16005_v36 }
 0xbac   :  { %3429 = vmatprep.subr.mxu1 %v16006_v49 }
 0xbad   :  { %3430 = vmatpush2.msra.mxu1 %v16007_v58 }
 0xbae   :  { %3431 = vmatprep.subr.mxu1 %v16008_v50 }
 0xbaf   :  { %3432 = vmatpush2.msra.mxu1 %v16009_v4 }
 0xbb0   :  { %3433 = vmatprep.subr.mxu1 %v16010_v13 }
 0xbb1   :  { %3434 = vmatpush2.msra.mxu1 %v16011_v1 }
 0xbb2   :  { %3435 = vmatprep.subr.mxu1 %v16012_v48 }
 0xbb3   :  { %3436 = vmatpush2.msra.mxu1 %v16013_v2 }
 0xbb4   :  { %3437 = vmatprep.subr.mxu1 %v16014_v63 }
 0xbb5   :  { %3438 = vmatpush2.msra.mxu1 %v16015_v11 }
 0xbb6   :  { %3439 = vmatprep.subr.mxu1 %v16016_v59 }
 0xbb7   :  { %3440 = vmatpush2.msra.mxu1 %v16017_v37 }
 0xbb8   :  { %3441 = vmatprep.subr.mxu1 %v16018_v9 }
 0xbb9   :  { %3442 = vmatpush2.msra.mxu1 %v16019_v45 }
 0xbba   :  { %6456 = vmatprep.subr.mxu1 %v15899_v40 }
 0xc3a   :  { %v3151_v17 = vpop.f32.mrf.mxu1 }
 0xc3b   :  { %3373 = vmatmul.mubr.f32.vlgmr.msra.gmra.mxu0 %v3151_v17  ;;  %3444 = vmatmul.mubr.f32.vlgmr.msra.gmra.mxu1 %v3151_v17 }
 0xc3c   :  { %v6420_v29 = vpop.f32.mrf.mxu1  ;;  %6422 = vmatpush3.msra.mxu0 %v11444_v51  ;;  %6453 = vmatprep.mubr.msk.f32.mxu0 %vm6916_vm0, %v15899_v40  ;;  %v16020_v51 = vld [vmem:[#allocation60_spill] sm:$0xff] }
 0xc3d   :  { %6423 = vmatprep.subr.mxu0 %v15899_v40  ;;  %6457 = vmatpush3.msra.mxu1 %v11644_v26  ;;  %v16023_v26 = vld [vmem:[#allocation90_spill] sm:$0xff] }
 0xc3e   :  { %6424 = vmatpush3.msra.mxu0 %v11449_v41  ;;  %6458 = vmatprep.subr.mxu1 %v15899_v40  ;;  %v16021_v41 = vld [vmem:[#allocation88_spill] sm:$0xff] }
 0xc3f   :  { %6425 = vmatprep.subr.mxu0 %v15899_v40  ;;  %6459 = vmatpush3.msra.mxu1 %v11649_v0  ;;  %v16024_v0 = vld [vmem:[#allocation91_spill] sm:$0xff] }
 0xc40   :  { %6426 = vmatpush3.msra.mxu0 %v11458_v56  ;;  %6460 = vmatprep.subr.mxu1 %v15899_v40  ;;  %v16022_v56 = vld [vmem:[#allocation89_spill] sm:$0xff] }
 0xc41   :  { %6427 = vmatprep.subr.mxu0 %v15899_v40  ;;  %6461 = vmatpush3.msra.mxu1 %v11656_v7  ;;  %v16025_v7 = vld [vmem:[#allocation92_spill] sm:$0xff] }
 0xc42   :  { %6428 = vmatpush3.msra.mxu0 %v16020_v51  ;;  %6462 = vmatprep.subr.mxu1 %v15899_v40 }
 0xc43   :  { %6429 = vmatprep.subr.mxu0 %v15899_v40  ;;  %6463 = vmatpush3.msra.mxu1 %v11663_v5  ;;  %v16026_v5 = vld [vmem:[#allocation93_spill] sm:$0xff] }
 0xc44   :  { %6430 = vmatpush3.msra.mxu0 %v16021_v41  ;;  %6464 = vmatprep.subr.mxu1 %v15899_v40 }
 0xc45   :  { %6431 = vmatprep.subr.mxu0 %v15899_v40  ;;  %6465 = vmatpush3.msra.mxu1 %v11670_v33  ;;  %v16027_v33 = vld [vmem:[#allocation94_spill] sm:$0xff] }
 0xc46   :  { %6432 = vmatpush3.msra.mxu0 %v16022_v56  ;;  %6466 = vmatprep.subr.mxu1 %v15899_v40 }
 0xc47   :  { %6433 = vmatprep.subr.mxu0 %v15899_v40  ;;  %6467 = vmatpush3.msra.mxu1 %v11677_v60  ;;  %v16028_v60 = vld [vmem:[#allocation95_spill] sm:$0xff] }
 0xc48   :  { %6434 = vmatpush3.msra.mxu0 %v16023_v26  ;;  %6468 = vmatprep.subr.mxu1 %v15899_v40 }
 0xc49   :  { %6435 = vmatprep.subr.mxu0 %v15899_v40  ;;  %6469 = vmatpush3.msra.mxu1 %v11684_v27  ;;  %v16029_v27 = vld [vmem:[#allocation96_spill] sm:$0xff] }
 0xc4a   :  { %6436 = vmatpush3.msra.mxu0 %v16024_v0  ;;  %6470 = vmatprep.subr.mxu1 %v15899_v40 }
 0xc4b   :  { %6437 = vmatprep.subr.mxu0 %v15899_v40  ;;  %6471 = vmatpush3.msra.mxu1 %v11691_v22  ;;  %v16030_v22 = vld [vmem:[#allocation97_spill] sm:$0xff] }
 0xc4c   :  { %6438 = vmatpush3.msra.mxu0 %v16025_v7  ;;  %6472 = vmatprep.subr.mxu1 %v15899_v40 }
 0xc4d   :  { %6439 = vmatprep.subr.mxu0 %v15899_v40  ;;  %6473 = vmatpush3.msra.mxu1 %v11698_v35  ;;  %v16031_v35 = vld [vmem:[#allocation98_spill] sm:$0xff] }
 0xc4e   :  { %6440 = vmatpush3.msra.mxu0 %v16026_v5  ;;  %6474 = vmatprep.subr.mxu1 %v15899_v40 }
 0xc4f   :  { %6441 = vmatprep.subr.mxu0 %v15899_v40  ;;  %6475 = vmatpush3.msra.mxu1 %v11705_v19  ;;  %v16032_v19 = vld [vmem:[#allocation99_spill] sm:$0xff] }
 0xc50   :  { %6442 = vmatpush3.msra.mxu0 %v16027_v33  ;;  %6476 = vmatprep.subr.mxu1 %v15899_v40 }
 0xc51   :  { %6443 = vmatprep.subr.mxu0 %v15899_v40  ;;  %6477 = vmatpush3.msra.mxu1 %v11712_v3  ;;  %v3286_v3 = vld [vmem:[%s14586_s5] sm:$0xf] }
 0xc52   :  { %6444 = vmatpush3.msra.mxu0 %v16028_v60  ;;  %6478 = vmatprep.subr.mxu1 %v15899_v40  ;;  %v3303_v23 = vrot.slane %v3286_v3, %v7891_v18  ;;  %v3299_v44 = vrot.slane %v3286_v3, %v7894_v20 }
 0xc53   :  { %6445 = vmatprep.subr.mxu0 %v15899_v40  ;;  %6479 = vmatpush3.msra.mxu1 %v11719_v12  ;;  %v16033_v12 = vld [vmem:[#allocation4_spill] sm:$0xff] }
 0xc54   :  { %6446 = vmatpush3.msra.mxu0 %v16029_v27  ;;  %6480 = vmatprep.subr.mxu1 %v15899_v40 }
 0xc55   :  { %6447 = vmatprep.subr.mxu0 %v15899_v40  ;;  %6481 = vmatpush3.msra.mxu1 %v11726_v31  ;;  %v3291_v31 = vrot.slane %v3286_v3, %v16033_v12 }
 0xc56   :  { %6448 = vmatpush3.msra.mxu0 %v16030_v22  ;;  %6482 = vmatprep.subr.mxu1 %v15899_v40 }
 0xc57   :  { %6449 = vmatprep.subr.mxu0 %v15899_v40  ;;  %6483 = vmatpush3.msra.mxu1 %v11735_v43 }
 0xc58   :  { %6450 = vmatpush3.msra.mxu0 %v16031_v35  ;;  %6484 = vmatprep.subr.mxu1 %v15899_v40 }
 0xc59   :  { %6451 = vmatprep.subr.mxu0 %v15899_v40  ;;  %6485 = vmatpush3.msra.mxu1 %v11742_v61  ;;  %v3295_v61 = vrot.slane %v3286_v3, %v16034_v21 }
 0xc5a   :  { %6452 = vmatpush3.msra.mxu0 %v16032_v19  ;;  %6486 = vmatprep.subr.mxu1 %v15899_v40 }
 0xc5b   :  { %6487 = vmatpush3.msra.mxu1 %v11749_v47  ;;  %6488 = vmatprep.mubr.msk.f32.mxu1 %vm6916_vm0, %v15899_v40 }
 0xcfb   :  { %v3374_v43 = vpop.f32.mrf.mxu0  ;;  %v3445_v34 = vpop.f32.mrf.mxu1 }
 0xcfc   :  { %v3375_v62 = vadd.f32 %v3374_v43, %v3291_v31  ;;  %v3446_v58 = vadd.f32 %v3445_v34, %v3299_v44  ;;  %v12051_v34 = vld [vmem:[%s14583_s4 + $0x188] sm:$0xff] }
 0xcfd   :  { %v3376_v25 = vpop.f32.mrf.mxu0  ;;  %v3447_v42 = vpop.f32.mrf.mxu1  ;;  %v12075_v44 = vld [vmem:[%s14583_s4 + $0x148] sm:$0xff] }
 0xcfe   :  { %v6102_v57 = vmul.f32 -1.442695, %v3375_v62  ;;  %v3377_v28 = vadd.f32 %v3376_v25, %v3295_v61  ;;  %v3448_v36 = vadd.f32 %v3447_v42, %v3303_v23  ;;  %v12016_v61 = vld [vmem:[%s14583_s4 + $0x1f8] sm:$0xff]  ;;  %v12021_v25 = vld [vmem:[%s14583_s4 + $0x1e0] sm:$0xff]  ;;  %v12063_v23 = vld [vmem:[%s14583_s4 + $0x168] sm:$0xff] }
 0xcff   :  { %3961 = vmatprep.subr.mxu1 %v12016_v61  ;;  %v12069_v42 = vld [vmem:[%s14583_s4 + $0x160] sm:$0xff] }
 0xd00   :  { %6865 = vpow2.f32 %v6102_v57  ;;  %v6103_v30 = vmul.f32 -1.442695, %v3377_v28  ;;  %v12011_v57 = vld [vmem:[%s14583_s4 + $0x1e8] sm:$0xff] }
 0xd01   :  { %3890 = vmatprep.subr.mxu0 %v12011_v57  ;;  %v12028_v28 = vld [vmem:[%s14583_s4 + $0x1c8] sm:$0xff] }
 0xd02   :  { %6867 = vpow2.f32 %v6103_v30  ;;  %v12034_v30 = vld [vmem:[%s14583_s4 + $0x1c0] sm:$0xff] }
 0xd0d   :  { %v6866_v47 = vpop.eup %6865 }
 0xd0e   :  { %v3453_v32 = vadd.f32 1.0, %v6866_v47  ;;  %v12039_v47 = vld [vmem:[%s14583_s4 + $0x1a8] sm:$0xff] }
 0xd0f   :  { %v6868_v24 = vpop.eup %6867 }
 0xd10   :  { %6869 = vrcp.f32 %v3453_v32  ;;  %v3459_v16 = vadd.f32 1.0, %v6868_v24  ;;  %v12045_v32 = vld [vmem:[%s14583_s4 + $0x1a0] sm:$0xff] }
 0xd11   :  { %v12057_v24 = vld [vmem:[%s14583_s4 + $0x180] sm:$0xff] }
 0xd12   :  { %6871 = vrcp.f32 %v3459_v16  ;;  %v12081_v16 = vld [vmem:[%s14583_s4 + $0x140] sm:$0xff] }
 0xd1d   :  { %v6870_v49 = vpop.eup %6869 }
 0xd1e   :  { %v3462_v50 = vmul.f32 %v6870_v49, %v3448_v36  ;;  %v12087_v36 = vld [vmem:[%s14583_s4 + $0x128] sm:$0xff]  ;;  %v12093_v49 = vld [vmem:[%s14583_s4 + $0x120] sm:$0xff] }
 0xd1f   :  { %v6872_v13 = vpop.eup %6871 }
 0xd20   :  { %v3463_v4 = vadd.f32 %v3462_v50, %v3446_v58  ;;  %v3465_v1 = vsub.f32 1.0, %v6872_v13  ;;  %v3467_v63 = vmul.f32 %v6872_v13, %v11565_v55  ;;  %v12099_v58 = vld [vmem:[%s14583_s4 + $0x108] sm:$0xff]  ;;  %v12105_v50 = vld [vmem:[%s14583_s4 + $0x100] sm:$0xff] }
 0xd21   :  { %v12117_v13 = vld [vmem:[%s14583_s4 + $0xe0] sm:$0xff] }
 0xd22   :  { %6873 = vtanh.f32 %v3463_v4  ;;  %v12111_v4 = vld [vmem:[%s14583_s4 + $0xe8] sm:$0xff] }
 0xd2f   :  { %v6874_v48 = vpop.eup %6873 }
 0xd30   :  { %v3466_v2 = vmul.f32 %v6874_v48, %v3465_v1  ;;  %v12123_v1 = vld [vmem:[%s14583_s4 + $0xc8] sm:$0xff]  ;;  %v12129_v48 = vld [vmem:[%s14583_s4 + $0xc0] sm:$0xff] }
 0xd32   :  { %v11967_v11 = vadd.f32 %v3467_v63, %v3466_v2  ;;  %v12135_v2 = vld [vmem:[%s14583_s4 + $0xa8] sm:$0xff]  ;;  %v12141_v63 = vld [vmem:[%s14583_s4 + $0xa0] sm:$0xff] }
 0xd34   :  { %6454 = vmatmul.mubr.f32.vlgmr.msra.gmra.mxu0 %v11967_v11 }
 0xd35   :  { %3954 = vmatprep.mubr.f32.mxu0 %v11967_v11  ;;  %3891 = vmatpush1.msra.mxu0 %v12021_v25 }
 0xd36   :  { %3892 = vmatprep.subr.mxu0 %v12028_v28 }
 0xd37   :  { %3893 = vmatpush1.msra.mxu0 %v12034_v30 }
 0xd38   :  { %3894 = vmatprep.subr.mxu0 %v12039_v47 }
 0xd39   :  { %3895 = vmatpush1.msra.mxu0 %v12045_v32 }
 0xd3a   :  { %3896 = vmatprep.subr.mxu0 %v12051_v34 }
 0xd3b   :  { %3897 = vmatpush1.msra.mxu0 %v12057_v24 }
 0xd3c   :  { %3898 = vmatprep.subr.mxu0 %v12063_v23 }
 0xd3d   :  { %3899 = vmatpush1.msra.mxu0 %v12069_v42 }
 0xd3e   :  { %3900 = vmatprep.subr.mxu0 %v12075_v44 }
 0xd3f   :  { %3901 = vmatpush1.msra.mxu0 %v12081_v16 }
 0xd40   :  { %3902 = vmatprep.subr.mxu0 %v12087_v36 }
 0xd41   :  { %3903 = vmatpush1.msra.mxu0 %v12093_v49 }
 0xd42   :  { %3904 = vmatprep.subr.mxu0 %v12099_v58 }
 0xd43   :  { %3905 = vmatpush1.msra.mxu0 %v12105_v50 }
 0xd44   :  { %3906 = vmatprep.subr.mxu0 %v12111_v4 }
 0xd45   :  { %3907 = vmatpush1.msra.mxu0 %v12117_v13 }
 0xd46   :  { %3908 = vmatprep.subr.mxu0 %v12123_v1 }
 0xd47   :  { %3909 = vmatpush1.msra.mxu0 %v12129_v48 }
 0xd48   :  { %3910 = vmatprep.subr.mxu0 %v12135_v2 }
 0xd49   :  { %3911 = vmatpush1.msra.mxu0 %v12141_v63 }
 0xdf4   :  { %v3559_v59 = vpop.f32.mrf.mxu0 }
 0xdf5   :  { %v3560_v37 = vadd.f32 %v11601_v39, %v3559_v59  ;;  %v12147_v59 = vld [vmem:[%s14583_s4 + $0x88] sm:$0xff] }
 0xdf6   :  { %v6455_v9 = vpop.f32.mrf.mxu0  ;;  %3912 = vmatprep.subr.mxu0 %v12147_v59 }
 0xdf7   :  { %v3564_v45 = vcombine.high %v3560_v37, %v3560_v37  ;;  %v3571_v17 = vrot.slane %v3560_v37, %v11604_v15  ;;  %v3629_v29 = vsel %vm3046_vm1, %v3560_v37, -inf  ;;  %v12153_v37 = vld [vmem:[%s14583_s4 + $0x80] sm:$0xff]  ;;  %v12159_v9 = vld [vmem:[%s14583_s4 + $0x68] sm:$0xff] }
 0xdf8   :  { %3630 = vmax.xlane.f32.xlu1 %v3629_v29  ;;  %3913 = vmatpush1.msra.mxu0 %v12153_v37 }
 0xdf9   :  { %v3578_v51 = vrot.slane %v3564_v45, %v11604_v15  ;;  %v3579_v55 = vcombine.high %v3571_v17, %v3571_v17  ;;  %v3587_v41 = vrot.slane %v3571_v17, %v11604_v15  ;;  %6105 = vst.sshfl [vmem:[%s14588_s9 + $0x1] sm:$0x1 pattern:$0x73625140] %v3571_v17  ;;  %v12165_v45 = vld [vmem:[%s14583_s4 + $0x60] sm:$0xff]  ;;  %v12171_v17 = vld [vmem:[%s14583_s4 + $0x48] sm:$0xff]  ;;  %3914 = vmatprep.subr.mxu0 %v12159_v9 }
 0xdfa   :  { %3915 = vmatpush1.msra.mxu0 %v12165_v45 }
 0xdfb   :  { %v3580_v56 = vcombine.high %v3578_v51, %v3578_v51  ;;  %v3594_v39 = vrot.slane %v3578_v51, %v11604_v15  ;;  %v3601_v26 = vrot.slane %v3579_v55, %v11604_v15  ;;  %v3609_v0 = vcombine.high %v3587_v41, %v3587_v41  ;;  %6106 = vst.sshfl [vmem:[%s14588_s9 + $0x9] sm:$0x1 pattern:$0x73625140] %v3579_v55  ;;  %v12238_v55 = vld [vmem:[%s14583_s4 + $0x340] sm:$0xff]  ;;  %v12244_v41 = vld [vmem:[%s14583_s4 + $0x328] sm:$0xff] }
 0xdfc   :  { %6107 = vst.sshfl [vmem:[%s14588_s9 + $0x21] sm:$0x1 pattern:$0x73625140] %v3578_v51  ;;  %3916 = vmatprep.subr.mxu0 %v12171_v17  ;;  %v12190_v51 = vld [vmem:[%s14583_s4 + $0x3c0] sm:$0xff] }
 0xdfd   :  { %v3608_v7 = vrot.slane %v3580_v56, %v11604_v15  ;;  %v3610_v5 = vcombine.high %v3594_v39, %v3594_v39  ;;  %v3611_v33 = vcombine.high %v3601_v26, %v3601_v26  ;;  %3623 = vst [vmem:[%s14588_s9 + $0x11] sm:$0x1] %v3609_v0  ;;  %6108 = vst.sshfl [vmem:[%s14588_s9 + $0x29] sm:$0x1 pattern:$0x73625140] %v3580_v56  ;;  %3917 = vmatpush1.msra.mxu0 %v11756_v10 }
 0xdfe   :  { %3918 = vmatprep.subr.mxu0 %v11762_v38  ;;  %v12196_v10 = vld [vmem:[%s14583_s4 + $0x3a8] sm:$0xff]  ;;  %v12202_v38 = vld [vmem:[%s14583_s4 + $0x3a0] sm:$0xff] }
 0xdff   :  { %v3612_v60 = vcombine.high %v3608_v7, %v3608_v7  ;;  %3624 = vst [vmem:[%s14588_s9 + $0x19] sm:$0x1] %v3611_v33  ;;  %3627 = vst [vmem:[%s14588_s9 + $0x31] sm:$0x1] %v3610_v5  ;;  %3919 = vmatpush1.msra.mxu0 %v11768_v46  ;;  %v12208_v46 = vld [vmem:[%s14583_s4 + $0x388] sm:$0xff]  ;;  %v12250_v56 = vld [vmem:[%s14583_s4 + $0x320] sm:$0xff] }
 0xe00   :  { %3920 = vmatprep.subr.mxu0 %v11774_v14  ;;  %v12214_v14 = vld [vmem:[%s14583_s4 + $0x380] sm:$0xff]  ;;  %v12256_v39 = vld [vmem:[%s14583_s4 + $0x308] sm:$0xff] }
 0xe01   :  { %3628 = vst [vmem:[%s14588_s9 + $0x39] sm:$0x1] %v3612_v60  ;;  %3921 = vmatpush1.msra.mxu0 %v11780_v6  ;;  %v12220_v6 = vld [vmem:[%s14583_s4 + $0x368] sm:$0xff]  ;;  %v12262_v26 = vld [vmem:[%s14583_s4 + $0x300] sm:$0xff] }
 0xe02   :  { %3922 = vmatprep.subr.mxu0 %v11786_v52  ;;  %v12226_v52 = vld [vmem:[%s14583_s4 + $0x360] sm:$0xff]  ;;  %16035 = vst [vmem:[#allocation3_spill] sm:$0xff] %v12262_v26  ;;  %v12268_v0 = vld [vmem:[%s14583_s4 + $0x2e8] sm:$0xff] }
 0xe03   :  { %3923 = vmatpush2.msra.mxu0 %v11792_v54  ;;  %v12232_v54 = vld [vmem:[%s14583_s4 + $0x348] sm:$0xff]  ;;  %16036 = vst [vmem:[#allocation65_spill] sm:$0xff] %v12268_v0  ;;  %v12274_v7 = vld [vmem:[%s14583_s4 + $0x2e0] sm:$0xff] }
 0xe04   :  { %16037 = vst [vmem:[#allocation38_spill] sm:$0xff] %v12274_v7  ;;  %v12280_v5 = vld [vmem:[%s14583_s4 + $0x2c8] sm:$0xff]  ;;  %v12286_v33 = vld [vmem:[%s14583_s4 + $0x2c0] sm:$0xff] }
 0xe05   :  { %16038 = vst [vmem:[#allocation66_spill] sm:$0xff] %v12280_v5  ;;  %16039 = vst [vmem:[#allocation8_spill] sm:$0xff] %v12286_v33  ;;  %v12292_v60 = vld [vmem:[%s14583_s4 + $0x2a8] sm:$0xff] }
 0xe06   :  { %16040 = vst [vmem:[#allocation67_spill] sm:$0xff] %v12292_v60 }
 0xe81   :  { %v3631_v27 = vpop.xlane.xlu1 %3630 }
 0xe82   :  { %vm3632_vm5 = vcmp.eq.f32.partialorder %v3629_v29, %v3631_v27  ;;  %v12184_v29 = vld [vmem:[%s14583_s4 + $0x3c8] sm:$0xff]  ;;  %v12298_v27 = vld [vmem:[%s14583_s4 + $0x2a0] sm:$0xff] }
 0xe83   :  { %v3633_v22 = vsel %vm3632_vm5, %v11596_v53, 128  ;;  %3924 = vmatprep.subr.mxu0 %v12184_v29  ;;  %16041 = vst [vmem:[#allocation40_spill] sm:$0xff] %v12298_v27 }
 0xe84   :  { %v3635_v35 = vshra.s32 %v3633_v22, 16  ;;  %v3634_v3 = vand.u32 65535, %v3633_v22  ;;  %3925 = vmatpush2.msra.mxu0 %v12190_v51  ;;  %v12304_v22 = vld [vmem:[%s14583_s4 + $0x288] sm:$0xff] }
 0xe85   :  { %3926 = vmatprep.subr.mxu0 %v12196_v10  ;;  %16042 = vst [vmem:[#allocation68_spill] sm:$0xff] %v12304_v22 }
 0xe86   :  { %v3637_v19 = vcvt.s32.f32 %v3635_v35  ;;  %v3636_v43 = vcvt.s32.f32 %v3634_v3  ;;  %3927 = vmatpush2.msra.mxu0 %v12202_v38  ;;  %v12310_v35 = vld [vmem:[%s14583_s4 + $0x280] sm:$0xff] }
 0xe87   :  { %3928 = vmatprep.subr.mxu0 %v12208_v46  ;;  %16043 = vst [vmem:[#allocation9_spill] sm:$0xff] %v12310_v35  ;;  %v12322_v3 = vld [vmem:[%s14583_s4 + $0x260] sm:$0xff] }
 0xe88   :  { %3638 = vmin.xlane.f32.xlu0 %v3637_v19  ;;  %3929 = vmatpush2.msra.mxu0 %v12214_v14  ;;  %16045 = vst [vmem:[#allocation42_spill] sm:$0xff] %v12322_v3 }
 0xe89   :  { %3930 = vmatprep.subr.mxu0 %v12220_v6 }
 0xe8a   :  { %3931 = vmatpush2.msra.mxu0 %v12226_v52 }
 0xe8b   :  { %3932 = vmatprep.subr.mxu0 %v12232_v54 }
 0xe8c   :  { %3933 = vmatpush2.msra.mxu0 %v12238_v55 }
 0xe8d   :  { %3934 = vmatprep.subr.mxu0 %v12244_v41 }
 0xe8e   :  { %3935 = vmatpush2.msra.mxu0 %v12250_v56 }
 0xe8f   :  { %3936 = vmatprep.subr.mxu0 %v12256_v39 }
 0xe90   :  { %3937 = vmatpush2.msra.mxu0 %v12262_v26 }
 0xe91   :  { %3938 = vmatprep.subr.mxu0 %v12268_v0 }
 0xe92   :  { %3939 = vmatpush2.msra.mxu0 %v12274_v7 }
 0xe93   :  { %3940 = vmatprep.subr.mxu0 %v12280_v5 }
 0xe94   :  { %3941 = vmatpush2.msra.mxu0 %v12286_v33 }
 0xe95   :  { %3942 = vmatprep.subr.mxu0 %v12292_v60 }
 0xe96   :  { %3943 = vmatpush2.msra.mxu0 %v12298_v27 }
 0xe97   :  { %3944 = vmatprep.subr.mxu0 %v12304_v22 }
 0xe98   :  { %3945 = vmatpush2.msra.mxu0 %v12310_v35  ;;  %v12346_v35 = vld [vmem:[%s14583_s4 + $0x220] sm:$0xff] }
 0xe99   :  { %16049 = vst [vmem:[#allocation44_spill] sm:$0xff] %v12346_v35 }
 0xf11   :  { %v12005_v31 = vpop.xlane.xlu0 %3638 }
 0xf12   :  { %vm3640_vm6 = vcmp.eq.f32.partialorder %v3637_v19, %v12005_v31  ;;  %v12316_v19 = vld [vmem:[%s14583_s4 + $0x268] sm:$0xff] }
 0xf13   :  { %v3641_v62 = vsel %vm3640_vm6, %v3636_v43, inf  ;;  %16044 = vst [vmem:[#allocation69_spill] sm:$0xff] %v12316_v19  ;;  %v12328_v43 = vld [vmem:[%s14583_s4 + $0x248] sm:$0xff]  ;;  %3946 = vmatprep.subr.mxu0 %v12316_v19 }
 0xf14   :  { %3642 = vmin.xlane.f32.xlu1 %v3641_v62  ;;  %16046 = vst [vmem:[#allocation70_spill] sm:$0xff] %v12328_v43  ;;  %v12334_v62 = vld [vmem:[%s14583_s4 + $0x240] sm:$0xff]  ;;  %3947 = vmatpush2.msra.mxu0 %v12322_v3  ;;  %v12352_v19 = vld [vmem:[%s14583_s4 + $0x208] sm:$0xff] }
 0xf15   :  { %16047 = vst [vmem:[#allocation10_spill] sm:$0xff] %v12334_v62  ;;  %3948 = vmatprep.subr.mxu0 %v12328_v43  ;;  %16050 = vst [vmem:[#allocation72_spill] sm:$0xff] %v12352_v19  ;;  %v3645_v43 = vcvt.f32.s32 %v12005_v31  ;;  %v12373_v31 = vld [vmem:[%s14583_s4 + $0x1d0] sm:$0xff] }
 0xf16   :  { %3949 = vmatpush2.msra.mxu0 %v12334_v62  ;;  %v12361_v62 = vld [vmem:[%s14583_s4 + $0x1f0] sm:$0xff]  ;;  %16054 = vst [vmem:[#allocation46_spill] sm:$0xff] %v12373_v31 }
 0xf17   :  { %3950 = vmatprep.subr.mxu0 %v12340_v8  ;;  %v3646_v22 = vshll.u32 %v3645_v43, 16  ;;  %16051 = vst [vmem:[#allocation11_spill] sm:$0xff] %v12361_v62  ;;  %v12367_v8 = vld [vmem:[%s14583_s4 + $0x1d8] sm:$0xff] }
 0xf18   :  { %3951 = vmatpush2.msra.mxu0 %v12346_v35  ;;  %16052 = vst [vmem:[#allocation73_spill] sm:$0xff] %v12367_v8  ;;  %v16053_v35 = vmov 1.0   ;;  %v12404_v43 = vld [vmem:[%s14583_s4 + $0x178] sm:$0xff] }
 0xf19   :  { %3952 = vmatprep.subr.mxu0 %v12352_v19  ;;  %16059 = vst [vmem:[#allocation35_spill] sm:$0xff] %v12404_v43 }
 0xf9d   :  { %v3643_v3 = vpop.xlane.xlu1 %3642 }
 0xf9e   :  { %v3644_v27 = vcvt.f32.s32 %v3643_v3  ;;  %v12398_v3 = vld [vmem:[%s14583_s4 + $0x190] sm:$0xff] }
 0xf9f   :  { %16058 = vst [vmem:[#allocation34_spill] sm:$0xff] %v12398_v3 }
 0xfa0   :  { %v3647_v60 = vadd.s32 %v3646_v22, %v3644_v27  ;;  %v12386_v27 = vld [vmem:[%s14583_s4 + $0x1b0] sm:$0xff]  ;;  %v12392_v22 = vld [vmem:[%s14583_s4 + $0x198] sm:$0xff] }
 0xfa1   :  { %16056 = vst [vmem:[#allocation61_spill] sm:$0xff] %v12386_v27  ;;  %16057 = vst [vmem:[#allocation75_spill] sm:$0xff] %v12392_v22 }
 0xfa2   :  { %vm3648_vm7 = vcmp.eq.s32.totalorder %v11596_v53, %v3647_v60  ;;  %v12380_v60 = vld [vmem:[%s14583_s4 + $0x1b8] sm:$0xff] }
 0xfa3   :  { %6489 = vmatmul.mubr.msk.f32.vlgmr.msra.gmra.mxu1 %vm3648_vm7, %v16053_v35  ;;  %16055 = vst [vmem:[#allocation33_spill] sm:$0xff] %v12380_v60 }
 0xfa4   :  { %4025 = vmatprep.mubr.f32.mxu1 %v11967_v11  ;;  %3962 = vmatpush1.msra.mxu1 %v12361_v62 }
 0xfa5   :  { %3963 = vmatprep.subr.mxu1 %v12367_v8 }
 0xfa6   :  { %3964 = vmatpush1.msra.mxu1 %v12373_v31  ;;  %v12410_v31 = vld [vmem:[%s14583_s4 + $0x170] sm:$0xff] }
 0xfa7   :  { %3965 = vmatprep.subr.mxu1 %v12380_v60  ;;  %16060 = vst [vmem:[#allocation62_spill] sm:$0xff] %v12410_v31  ;;  %v12416_v60 = vld [vmem:[%s14583_s4 + $0x158] sm:$0xff] }
 0xfa8   :  { %3966 = vmatpush1.msra.mxu1 %v12386_v27  ;;  %16061 = vst [vmem:[#allocation76_spill] sm:$0xff] %v12416_v60  ;;  %v12422_v27 = vld [vmem:[%s14583_s4 + $0x150] sm:$0xff] }
 0xfa9   :  { %3967 = vmatprep.subr.mxu1 %v12392_v22  ;;  %16062 = vst [vmem:[#allocation6_spill] sm:$0xff] %v12422_v27  ;;  %v12428_v22 = vld [vmem:[%s14583_s4 + $0x138] sm:$0xff] }
 0xfaa   :  { %3968 = vmatpush1.msra.mxu1 %v12398_v3  ;;  %16063 = vst [vmem:[#allocation37_spill] sm:$0xff] %v12428_v22  ;;  %v12434_v3 = vld [vmem:[%s14583_s4 + $0x130] sm:$0xff] }
 0xfab   :  { %3969 = vmatprep.subr.mxu1 %v12404_v43  ;;  %16064 = vst [vmem:[#allocation63_spill] sm:$0xff] %v12434_v3  ;;  %v12440_v43 = vld [vmem:[%s14583_s4 + $0x118] sm:$0xff] }
 0xfac   :  { %3970 = vmatpush1.msra.mxu1 %v12410_v31  ;;  %16065 = vst [vmem:[#allocation77_spill] sm:$0xff] %v12440_v43  ;;  %v12446_v31 = vld [vmem:[%s14583_s4 + $0x110] sm:$0xff] }
 0xfad   :  { %3971 = vmatprep.subr.mxu1 %v12416_v60  ;;  %16066 = vst [vmem:[#allocation36_spill] sm:$0xff] %v12446_v31  ;;  %v12452_v60 = vld [vmem:[%s14583_s4 + $0xf8] sm:$0xff] }
 0xfae   :  { %3972 = vmatpush1.msra.mxu1 %v12422_v27  ;;  %16067 = vst [vmem:[#allocation39_spill] sm:$0xff] %v12452_v60  ;;  %v12458_v27 = vld [vmem:[%s14583_s4 + $0xf0] sm:$0xff] }
 0xfaf   :  { %3973 = vmatprep.subr.mxu1 %v12428_v22  ;;  %16068 = vst [vmem:[#allocation64_spill] sm:$0xff] %v12458_v27  ;;  %v12464_v22 = vld [vmem:[%s14583_s4 + $0xd8] sm:$0xff] }
 0xfb0   :  { %3974 = vmatpush1.msra.mxu1 %v12434_v3  ;;  %16069 = vst [vmem:[#allocation78_spill] sm:$0xff] %v12464_v22  ;;  %v12470_v3 = vld [vmem:[%s14583_s4 + $0xd0] sm:$0xff] }
 0xfb1   :  { %3975 = vmatprep.subr.mxu1 %v12440_v43  ;;  %16070 = vst [vmem:[#allocation7_spill] sm:$0xff] %v12470_v3  ;;  %v12476_v43 = vld [vmem:[%s14583_s4 + $0xb8] sm:$0xff] }
 0xfb2   :  { %3976 = vmatpush1.msra.mxu1 %v12446_v31  ;;  %16071 = vst [vmem:[#allocation41_spill] sm:$0xff] %v12476_v43  ;;  %v12482_v31 = vld [vmem:[%s14583_s4 + $0xb0] sm:$0xff] }
 0xfb3   :  { %3977 = vmatprep.subr.mxu1 %v12452_v60  ;;  %16072 = vst [vmem:[#allocation79_spill] sm:$0xff] %v12482_v31  ;;  %v12488_v60 = vld [vmem:[%s14583_s4 + $0x98] sm:$0xff] }
 0xfb4   :  { %3978 = vmatpush1.msra.mxu1 %v12458_v27  ;;  %16073 = vst [vmem:[#allocation43_spill] sm:$0xff] %v12488_v60  ;;  %v12494_v27 = vld [vmem:[%s14583_s4 + $0x90] sm:$0xff] }
 0xfb5   :  { %3979 = vmatprep.subr.mxu1 %v12464_v22  ;;  %16074 = vst [vmem:[#allocation80_spill] sm:$0xff] %v12494_v27  ;;  %v12500_v22 = vld [vmem:[%s14583_s4 + $0x78] sm:$0xff] }
 0xfb6   :  { %3980 = vmatpush1.msra.mxu1 %v12470_v3  ;;  %16075 = vst [vmem:[#allocation45_spill] sm:$0xff] %v12500_v22  ;;  %v12506_v3 = vld [vmem:[%s14583_s4 + $0x70] sm:$0xff] }
 0xfb7   :  { %3981 = vmatprep.subr.mxu1 %v12476_v43  ;;  %16076 = vst [vmem:[#allocation81_spill] sm:$0xff] %v12506_v3  ;;  %v12512_v43 = vld [vmem:[%s14583_s4 + $0x58] sm:$0xff] }
 0xfb8   :  { %3982 = vmatpush1.msra.mxu1 %v12482_v31  ;;  %16077 = vst [vmem:[#allocation19_spill] sm:$0xff] %v12512_v43  ;;  %v12518_v31 = vld [vmem:[%s14583_s4 + $0x50] sm:$0xff] }
 0xfb9   :  { %3983 = vmatprep.subr.mxu1 %v12488_v60  ;;  %16078 = vst [vmem:[#allocation47_spill] sm:$0xff] %v12518_v31  ;;  %v12524_v60 = vld [vmem:[%s14583_s4 + $0x38] sm:$0xff] }
 0xfba   :  { %3984 = vmatpush1.msra.mxu1 %v12494_v27  ;;  %16079 = vst [vmem:[#allocation20_spill] sm:$0xff] %v12524_v60  ;;  %v12530_v27 = vld [vmem:[%s14583_s4 + $0x30] sm:$0xff] }
 0xfbb   :  { %3985 = vmatprep.subr.mxu1 %v12500_v22  ;;  %16080 = vst [vmem:[#allocation82_spill] sm:$0xff] %v12530_v27  ;;  %v12536_v22 = vld [vmem:[%s14583_s4 + $0x18] sm:$0xff] }
 0xfbc   :  { %3986 = vmatpush1.msra.mxu1 %v12506_v3  ;;  %16081 = vst [vmem:[#allocation21_spill] sm:$0xff] %v12536_v22  ;;  %v12542_v3 = vld [vmem:[%s14583_s4 + $0x10] sm:$0xff] }
 0xfbd   :  { %3987 = vmatprep.subr.mxu1 %v12512_v43  ;;  %16082 = vst [vmem:[#allocation49_spill] sm:$0xff] %v12542_v3  ;;  %v12548_v43 = vld [vmem:[%s14583_s4 + $0x3f8] sm:$0xff] }
 0xfbe   :  { %3988 = vmatpush1.msra.mxu1 %v12518_v31  ;;  %16083 = vst [vmem:[#allocation22_spill] sm:$0xff] %v12548_v43  ;;  %v12554_v31 = vld [vmem:[%s14583_s4 + $0x3f0] sm:$0xff] }
 0xfbf   :  { %3989 = vmatprep.subr.mxu1 %v12524_v60  ;;  %16084 = vst [vmem:[#allocation83_spill] sm:$0xff] %v12554_v31  ;;  %v12560_v60 = vld [vmem:[%s14583_s4 + $0x3d8] sm:$0xff] }
 0xfc0   :  { %3990 = vmatpush1.msra.mxu1 %v12530_v27  ;;  %16085 = vst [vmem:[#allocation23_spill] sm:$0xff] %v12560_v60  ;;  %v12566_v27 = vld [vmem:[%s14583_s4 + $0x3d0] sm:$0xff] }
 0xfc1   :  { %3991 = vmatprep.subr.mxu1 %v12536_v22  ;;  %16086 = vst [vmem:[#allocation51_spill] sm:$0xff] %v12566_v27  ;;  %v12572_v22 = vld [vmem:[%s14583_s4 + $0x3b8] sm:$0xff] }
 0xfc2   :  { %3992 = vmatpush1.msra.mxu1 %v12542_v3  ;;  %16087 = vst [vmem:[#allocation24_spill] sm:$0xff] %v12572_v22  ;;  %v12578_v3 = vld [vmem:[%s14583_s4 + $0x3b0] sm:$0xff] }
 0xfc3   :  { %3993 = vmatprep.subr.mxu1 %v12548_v43  ;;  %16088 = vst [vmem:[#allocation84_spill] sm:$0xff] %v12578_v3  ;;  %v12584_v43 = vld [vmem:[%s14583_s4 + $0x398] sm:$0xff] }
 0xfc4   :  { %3994 = vmatpush2.msra.mxu1 %v12554_v31  ;;  %16089 = vst [vmem:[#allocation25_spill] sm:$0xff] %v12584_v43  ;;  %v12590_v31 = vld [vmem:[%s14583_s4 + $0x390] sm:$0xff] }
 0xfc5   :  { %3995 = vmatprep.subr.mxu1 %v12560_v60  ;;  %16090 = vst [vmem:[#allocation74_spill] sm:$0xff] %v12590_v31  ;;  %v12596_v60 = vld [vmem:[%s14583_s4 + $0x378] sm:$0xff] }
 0xfc6   :  { %3996 = vmatpush2.msra.mxu1 %v12566_v27  ;;  %16091 = vst [vmem:[#allocation53_spill] sm:$0xff] %v12596_v60  ;;  %v12602_v27 = vld [vmem:[%s14583_s4 + $0x370] sm:$0xff] }
 0xfc7   :  { %3997 = vmatprep.subr.mxu1 %v12572_v22  ;;  %16092 = vst [vmem:[#allocation12_spill] sm:$0xff] %v12602_v27  ;;  %v12608_v22 = vld [vmem:[%s14583_s4 + $0x358] sm:$0xff] }
 0xfc8   :  { %3998 = vmatpush2.msra.mxu1 %v12578_v3  ;;  %16093 = vst [vmem:[#allocation26_spill] sm:$0xff] %v12608_v22  ;;  %v12614_v3 = vld [vmem:[%s14583_s4 + $0x350] sm:$0xff] }
 0xfc9   :  { %3999 = vmatprep.subr.mxu1 %v12584_v43  ;;  %16094 = vst [vmem:[#allocation48_spill] sm:$0xff] %v12614_v3  ;;  %v12620_v43 = vld [vmem:[%s14583_s4 + $0x338] sm:$0xff] }
 0xfca   :  { %4000 = vmatpush2.msra.mxu1 %v12590_v31  ;;  %16095 = vst [vmem:[#allocation85_spill] sm:$0xff] %v12620_v43  ;;  %v12626_v31 = vld [vmem:[%s14583_s4 + $0x330] sm:$0xff] }
 0xfcb   :  { %4001 = vmatprep.subr.mxu1 %v12596_v60  ;;  %16096 = vst [vmem:[#allocation13_spill] sm:$0xff] %v12626_v31  ;;  %v12632_v60 = vld [vmem:[%s14583_s4 + $0x318] sm:$0xff] }
 0xfcc   :  { %4002 = vmatpush2.msra.mxu1 %v12602_v27  ;;  %16097 = vst [vmem:[#allocation27_spill] sm:$0xff] %v12632_v60  ;;  %v12638_v27 = vld [vmem:[%s14583_s4 + $0x310] sm:$0xff] }
 0xfcd   :  { %4003 = vmatprep.subr.mxu1 %v12608_v22  ;;  %16098 = vst [vmem:[#allocation50_spill] sm:$0xff] %v12638_v27  ;;  %v12644_v22 = vld [vmem:[%s14583_s4 + $0x2f8] sm:$0xff] }
 0xfce   :  { %4004 = vmatpush2.msra.mxu1 %v12614_v3  ;;  %16099 = vst [vmem:[#allocation55_spill] sm:$0xff] %v12644_v22  ;;  %v12650_v3 = vld [vmem:[%s14583_s4 + $0x2f0] sm:$0xff] }
 0xfcf   :  { %4005 = vmatprep.subr.mxu1 %v12620_v43  ;;  %16100 = vst [vmem:[#allocation14_spill] sm:$0xff] %v12650_v3  ;;  %v12656_v43 = vld [vmem:[%s14583_s4 + $0x2d8] sm:$0xff] }
 0xfd0   :  { %4006 = vmatpush2.msra.mxu1 %v12626_v31  ;;  %16101 = vst [vmem:[#allocation28_spill] sm:$0xff] %v12656_v43  ;;  %v12662_v31 = vld [vmem:[%s14583_s4 + $0x2d0] sm:$0xff] }
 0xfd1   :  { %4007 = vmatprep.subr.mxu1 %v12632_v60  ;;  %16102 = vst [vmem:[#allocation52_spill] sm:$0xff] %v12662_v31  ;;  %v12668_v60 = vld [vmem:[%s14583_s4 + $0x2b8] sm:$0xff] }
 0xfd2   :  { %4008 = vmatpush2.msra.mxu1 %v12638_v27  ;;  %16103 = vst [vmem:[#allocation86_spill] sm:$0xff] %v12668_v60  ;;  %v12674_v27 = vld [vmem:[%s14583_s4 + $0x2b0] sm:$0xff] }
 0xfd3   :  { %4009 = vmatprep.subr.mxu1 %v12644_v22  ;;  %16104 = vst [vmem:[#allocation15_spill] sm:$0xff] %v12674_v27  ;;  %v12680_v22 = vld [vmem:[%s14583_s4 + $0x298] sm:$0xff] }
 0xfd4   :  { %4010 = vmatpush2.msra.mxu1 %v12650_v3  ;;  %16105 = vst [vmem:[#allocation29_spill] sm:$0xff] %v12680_v22  ;;  %v12686_v3 = vld [vmem:[%s14583_s4 + $0x290] sm:$0xff] }
 0xfd5   :  { %4011 = vmatprep.subr.mxu1 %v12656_v43  ;;  %16106 = vst [vmem:[#allocation54_spill] sm:$0xff] %v12686_v3  ;;  %v12692_v43 = vld [vmem:[%s14583_s4 + $0x278] sm:$0xff] }
 0xfd6   :  { %4012 = vmatpush2.msra.mxu1 %v12662_v31  ;;  %16107 = vst [vmem:[#allocation57_spill] sm:$0xff] %v12692_v43  ;;  %v12698_v31 = vld [vmem:[%s14583_s4 + $0x270] sm:$0xff] }
 0xfd7   :  { %4013 = vmatprep.subr.mxu1 %v12668_v60  ;;  %16108 = vst [vmem:[#allocation16_spill] sm:$0xff] %v12698_v31  ;;  %v12704_v60 = vld [vmem:[%s14583_s4 + $0x258] sm:$0xff] }
 0xfd8   :  { %4014 = vmatpush2.msra.mxu1 %v12674_v27  ;;  %16109 = vst [vmem:[#allocation30_spill] sm:$0xff] %v12704_v60  ;;  %v12710_v27 = vld [vmem:[%s14583_s4 + $0x250] sm:$0xff] }
 0xfd9   :  { %4015 = vmatprep.subr.mxu1 %v12680_v22  ;;  %16110 = vst [vmem:[#allocation56_spill] sm:$0xff] %v12710_v27  ;;  %v12716_v22 = vld [vmem:[%s14583_s4 + $0x238] sm:$0xff] }
 0xfda   :  { %4016 = vmatpush2.msra.mxu1 %v12686_v3  ;;  %16111 = vst [vmem:[#allocation87_spill] sm:$0xff] %v12716_v22  ;;  %v12722_v3 = vld [vmem:[%s14583_s4 + $0x230] sm:$0xff] }
 0xfdb   :  { %4017 = vmatprep.subr.mxu1 %v12692_v43  ;;  %16112 = vst [vmem:[#allocation17_spill] sm:$0xff] %v12722_v3  ;;  %v12728_v43 = vld [vmem:[%s14583_s4 + $0x218] sm:$0xff] }
 0xfdc   :  { %4018 = vmatpush2.msra.mxu1 %v12698_v31  ;;  %16113 = vst [vmem:[#allocation31_spill] sm:$0xff] %v12728_v43 }
 0xfdd   :  { %4019 = vmatprep.subr.mxu1 %v12704_v60  ;;  %v12736_v60 = vld [vmem:[%s14583_s4 + $0x200] sm:$0xff] }
 0xfde   :  { %4020 = vmatpush2.msra.mxu1 %v12710_v27  ;;  %16114 = vst [vmem:[#allocation58_spill] sm:$0xff] %v12736_v60  ;;  %v12741_v27 = vld [vmem:[%s14583_s4 + $0x210] sm:$0xff]  ;;  %3953 = vmatpush2.msra.mxu0 %v12736_v60 }
 0xfdf   :  { %4021 = vmatprep.subr.mxu1 %v12716_v22  ;;  %16115 = vst [vmem:[#allocation59_spill] sm:$0xff] %v12741_v27  ;;  %6491 = vmatprep.subr.mxu0 %v15899_v40  ;;  %v12754_v22 = vld [vmem:[%s14585_s6 + $0x78] sm:$0xff] }
 0xfe0   :  { %4022 = vmatpush2.msra.mxu1 %v12722_v3  ;;  %16116 = vst [vmem:[#allocation18_spill] sm:$0xff] %v12754_v22 }
 0xfe1   :  { %4023 = vmatprep.subr.mxu1 %v12728_v43 }
 0xfe2   :  { %4024 = vmatpush2.msra.mxu1 %v12741_v27  ;;  %v12822_v27 = vld [vmem:[%s14585_s6 + $0x28] sm:$0xff] }
 0xfe3   :  { %6526 = vmatprep.subr.mxu1 %v15899_v40  ;;  %16126 = vst [vmem:[#allocation95_spill] sm:$0xff] %v12822_v27 }
0x1063   :  { %v3733_v3 = vpop.f32.mrf.mxu1 }
0x1064   :  { %3955 = vmatmul.mubr.f32.vlgmr.msra.gmra.mxu0 %v3733_v3  ;;  %4026 = vmatmul.mubr.f32.vlgmr.msra.gmra.mxu1 %v3733_v3  ;;  %v12761_v3 = vld [vmem:[%s14585_s6 + $0x70] sm:$0xff] }
0x1065   :  { %v6490_v43 = vpop.f32.mrf.mxu1  ;;  %6523 = vmatprep.mubr.msk.f32.mxu0 %vm6916_vm0, %v15899_v40  ;;  %6558 = vmatprep.mubr.msk.f32.mxu1 %vm6916_vm0, %v15899_v40  ;;  %16117 = vst [vmem:[#allocation32_spill] sm:$0xff] %v12761_v3 }
0x1066   :  { %6492 = vmatpush3.msra.mxu0 %v12754_v22  ;;  %v12768_v43 = vld [vmem:[%s14585_s6 + $0x68] sm:$0xff]  ;;  %v12775_v22 = vld [vmem:[%s14585_s6 + $0x60] sm:$0xff] }
0x1067   :  { %6493 = vmatprep.subr.mxu0 %v15899_v40  ;;  %16118 = vst [vmem:[#allocation60_spill] sm:$0xff] %v12768_v43  ;;  %16119 = vst [vmem:[#allocation88_spill] sm:$0xff] %v12775_v22 }
0x1068   :  { %6494 = vmatpush3.msra.mxu0 %v12761_v3  ;;  %v12782_v3 = vld [vmem:[%s14585_s6 + $0x58] sm:$0xff] }
0x1069   :  { %6495 = vmatprep.subr.mxu0 %v15899_v40  ;;  %16120 = vst [vmem:[#allocation89_spill] sm:$0xff] %v12782_v3 }
0x106a   :  { %6496 = vmatpush3.msra.mxu0 %v12768_v43  ;;  %v12789_v43 = vld [vmem:[%s14585_s6 + $0x50] sm:$0xff] }
0x106b   :  { %6497 = vmatprep.subr.mxu0 %v15899_v40  ;;  %16121 = vst [vmem:[#allocation90_spill] sm:$0xff] %v12789_v43 }
0x106c   :  { %6498 = vmatpush3.msra.mxu0 %v12775_v22  ;;  %v12796_v22 = vld [vmem:[%s14585_s6 + $0x48] sm:$0xff] }
0x106d   :  { %6499 = vmatprep.subr.mxu0 %v15899_v40  ;;  %16122 = vst [vmem:[#allocation91_spill] sm:$0xff] %v12796_v22 }
0x106e   :  { %6500 = vmatpush3.msra.mxu0 %v12782_v3  ;;  %v12803_v3 = vld [vmem:[%s14585_s6 + $0x40] sm:$0xff] }
0x106f   :  { %6501 = vmatprep.subr.mxu0 %v15899_v40  ;;  %16123 = vst [vmem:[#allocation92_spill] sm:$0xff] %v12803_v3 }
0x1070   :  { %6502 = vmatpush3.msra.mxu0 %v12789_v43  ;;  %v12808_v43 = vld [vmem:[%s14585_s6 + $0x38] sm:$0xff] }
0x1071   :  { %6503 = vmatprep.subr.mxu0 %v15899_v40  ;;  %16124 = vst [vmem:[#allocation93_spill] sm:$0xff] %v12808_v43 }
0x1072   :  { %6504 = vmatpush3.msra.mxu0 %v12796_v22  ;;  %v12815_v22 = vld [vmem:[%s14585_s6 + $0x30] sm:$0xff] }
0x1073   :  { %6505 = vmatprep.subr.mxu0 %v15899_v40  ;;  %16125 = vst [vmem:[#allocation94_spill] sm:$0xff] %v12815_v22 }
0x1074   :  { %6506 = vmatpush3.msra.mxu0 %v12803_v3  ;;  %v12829_v3 = vld [vmem:[%s14585_s6 + $0x20] sm:$0xff] }
0x1075   :  { %6507 = vmatprep.subr.mxu0 %v15899_v40  ;;  %16127 = vst [vmem:[#allocation96_spill] sm:$0xff] %v12829_v3 }
0x1076   :  { %6508 = vmatpush3.msra.mxu0 %v12808_v43  ;;  %v12836_v43 = vld [vmem:[%s14585_s6 + $0x18] sm:$0xff] }
0x1077   :  { %6509 = vmatprep.subr.mxu0 %v15899_v40  ;;  %16128 = vst [vmem:[#allocation97_spill] sm:$0xff] %v12836_v43 }
0x1078   :  { %6510 = vmatpush3.msra.mxu0 %v12815_v22  ;;  %v12843_v22 = vld [vmem:[%s14585_s6 + $0x10] sm:$0xff] }
0x1079   :  { %6511 = vmatprep.subr.mxu0 %v15899_v40  ;;  %16129 = vst [vmem:[#allocation98_spill] sm:$0xff] %v12843_v22 }
0x107a   :  { %6512 = vmatpush3.msra.mxu0 %v12822_v27  ;;  %v12850_v27 = vld [vmem:[%s14585_s6 + $0x8] sm:$0xff] }
0x107b   :  { %6513 = vmatprep.subr.mxu0 %v15899_v40  ;;  %16130 = vst [vmem:[#allocation99_spill] sm:$0xff] %v12850_v27 }
0x107c   :  { %6514 = vmatpush3.msra.mxu0 %v12829_v3  ;;  %v12857_v3 = vld [vmem:[%s14585_s6] sm:$0xff] }
0x107d   :  { %6515 = vmatprep.subr.mxu0 %v15899_v40  ;;  %16131 = vst [vmem:[#allocation100_spill] sm:$0xff] %v12857_v3 }
0x107e   :  { %6516 = vmatpush3.msra.mxu0 %v12836_v43  ;;  %v3868_v43 = vld [vmem:[%s14586_s5] sm:$0xf] }
0x107f   :  { %6517 = vmatprep.subr.mxu0 %v15899_v40  ;;  %v3877_v35 = vrot.slane %v3868_v43, %v16034_v21  ;;  %v3885_v7 = vrot.slane %v3868_v43, %v7891_v18 }
0x1080   :  { %6518 = vmatpush3.msra.mxu0 %v12843_v22  ;;  %v3873_v22 = vrot.slane %v3868_v43, %v16033_v12  ;;  %v3881_v12 = vrot.slane %v3868_v43, %v7894_v20  ;;  %v13018_v43 = vld [vmem:[%s14589_s8 + $0x20] sm:$0xff] }
0x1081   :  { %6519 = vmatprep.subr.mxu0 %v15899_v40 }
0x1082   :  { %6520 = vmatpush3.msra.mxu0 %v12850_v27 }
0x1083   :  { %6521 = vmatprep.subr.mxu0 %v15899_v40 }
0x1084   :  { %6522 = vmatpush3.msra.mxu0 %v12857_v3 }
0x1085   :  { %4472 = vmatprep.subr.mxu0 %v12011_v57 }
0x1124   :  { %v3956_v31 = vpop.f32.mrf.mxu0  ;;  %v4027_v57 = vpop.f32.mrf.mxu1 }
0x1125   :  { %v3957_v8 = vadd.f32 %v3956_v31, %v3873_v22  ;;  %v4028_v22 = vadd.f32 %v4027_v57, %v3881_v12  ;;  %v12904_v12 = vld [vmem:[%s14587_s7] ss:$0 sm:$0xff]  ;;  %v13025_v57 = vld [vmem:[%s14589_s8 + $0x18] sm:$0xff] }
0x1126   :  { %v3958_v60 = vpop.f32.mrf.mxu0  ;;  %v4029_v0 = vpop.f32.mrf.mxu1 }
0x1127   :  { %v6111_v62 = vmul.f32 -1.442695, %v3957_v8  ;;  %v3959_v27 = vadd.f32 %v3958_v60, %v3877_v35  ;;  %v4030_v31 = vadd.f32 %v4029_v0, %v3885_v7  ;;  %v12997_v0 = vld [vmem:[%s14589_s8 + $0x38] sm:$0xff]  ;;  %v13004_v7 = vld [vmem:[%s14589_s8 + $0x30] sm:$0xff] }
0x1129   :  { %6875 = vpow2.f32 %v6111_v62  ;;  %v6112_v19 = vmul.f32 -1.442695, %v3959_v27 }
0x112b   :  { %6877 = vpow2.f32 %v6112_v19 }
0x1136   :  { %v6876_v33 = vpop.eup %6875 }
0x1137   :  { %v4035_v3 = vadd.f32 1.0, %v6876_v33 }
0x1138   :  { %v6878_v5 = vpop.eup %6877 }
0x1139   :  { %6879 = vrcp.f32 %v4035_v3  ;;  %v4041_v26 = vadd.f32 1.0, %v6878_v5  ;;  %v13011_v5 = vld [vmem:[%s14589_s8 + $0x28] sm:$0xff] }
0x113b   :  { %6881 = vrcp.f32 %v4041_v26  ;;  %v12990_v26 = vld [vmem:[%s14589_s8 + $0x40] sm:$0xff] }
0x1146   :  { %v6880_v8 = vpop.eup %6879 }
0x1147   :  { %v4044_v21 = vmul.f32 %v6880_v8, %v4030_v31 }
0x1148   :  { %v6882_v35 = vpop.eup %6881 }
0x1149   :  { %v4045_v62 = vadd.f32 %v4044_v21, %v4028_v22  ;;  %v4047_v19 = vsub.f32 1.0, %v6882_v35  ;;  %v4049_v27 = vmul.f32 %v6882_v35, %v11967_v11  ;;  %v13034_v35 = vld [vmem:[%s14589_s8 + $0x10] sm:$0xff] }
0x114b   :  { %6883 = vtanh.f32 %v4045_v62 }
0x1158   :  { %v6884_v60 = vpop.eup %6883 }
0x1159   :  { %v4048_v33 = vmul.f32 %v6884_v60, %v4047_v19  ;;  %v13041_v19 = vld [vmem:[%s14589_s8 + $0x8] sm:$0xff]  ;;  %v13048_v60 = vld [vmem:[%s14589_s8] sm:$0xff] }
0x115b   :  { %v12871_v3 = vadd.f32 %v4049_v27, %v4048_v33  ;;  %v13055_v33 = vld [vmem:[%s14583_s4 + $0x40] sm:$0xff]  ;;  %v13061_v27 = vld [vmem:[%s14583_s4 + $0x28] sm:$0xff] }
0x115d   :  { %6524 = vmatmul.mubr.f32.vlgmr.msra.gmra.mxu0 %v12871_v3 }
0x115e   :  { %4536 = vmatprep.mubr.f32.mxu0 %v12871_v3  ;;  %4473 = vmatpush1.msra.mxu0 %v12021_v25 }
0x115f   :  { %4474 = vmatprep.subr.mxu0 %v12028_v28 }
0x1160   :  { %4475 = vmatpush1.msra.mxu0 %v12034_v30 }
0x1161   :  { %4476 = vmatprep.subr.mxu0 %v12039_v47 }
0x1162   :  { %4477 = vmatpush1.msra.mxu0 %v12045_v32 }
0x1163   :  { %4478 = vmatprep.subr.mxu0 %v12051_v34 }
0x1164   :  { %4479 = vmatpush1.msra.mxu0 %v12057_v24 }
0x1165   :  { %4480 = vmatprep.subr.mxu0 %v12063_v23 }
0x1166   :  { %4481 = vmatpush1.msra.mxu0 %v12069_v42 }
0x1167   :  { %4482 = vmatprep.subr.mxu0 %v12075_v44 }
0x1168   :  { %4483 = vmatpush1.msra.mxu0 %v12081_v16 }
0x1169   :  { %4484 = vmatprep.subr.mxu0 %v12087_v36 }
0x116a   :  { %4485 = vmatpush1.msra.mxu0 %v12093_v49 }
0x116b   :  { %4486 = vmatprep.subr.mxu0 %v12099_v58 }
0x116c   :  { %4487 = vmatpush1.msra.mxu0 %v12105_v50 }
0x116d   :  { %4488 = vmatprep.subr.mxu0 %v12111_v4 }
0x116e   :  { %4489 = vmatpush1.msra.mxu0 %v12117_v13 }
0x116f   :  { %4490 = vmatprep.subr.mxu0 %v12123_v1 }
0x1170   :  { %4491 = vmatpush1.msra.mxu0 %v12129_v48 }
0x1171   :  { %4492 = vmatprep.subr.mxu0 %v12135_v2  ;;  %v12943_v2 = vld [vmem:[%s14589_s8 + $0x78] sm:$0xff] }
0x1172   :  { %4493 = vmatpush1.msra.mxu0 %v12141_v63  ;;  %v12948_v63 = vld [vmem:[%s14589_s8 + $0x70] sm:$0xff]  ;;  %6527 = vmatpush3.msra.mxu1 %v12943_v2 }
0x1173   :  { %4494 = vmatprep.subr.mxu0 %v12147_v59  ;;  %6528 = vmatprep.subr.mxu1 %v15899_v40  ;;  %v12955_v59 = vld [vmem:[%s14589_s8 + $0x68] sm:$0xff] }
0x1174   :  { %4495 = vmatpush1.msra.mxu0 %v12153_v37  ;;  %6529 = vmatpush3.msra.mxu1 %v12948_v63  ;;  %v12962_v37 = vld [vmem:[%s14589_s8 + $0x60] sm:$0xff] }
0x1175   :  { %4496 = vmatprep.subr.mxu0 %v12159_v9  ;;  %6530 = vmatprep.subr.mxu1 %v15899_v40  ;;  %v12969_v9 = vld [vmem:[%s14589_s8 + $0x58] sm:$0xff] }
0x1176   :  { %4497 = vmatpush1.msra.mxu0 %v12165_v45  ;;  %6531 = vmatpush3.msra.mxu1 %v12955_v59  ;;  %v12976_v45 = vld [vmem:[%s14589_s8 + $0x50] sm:$0xff] }
0x1177   :  { %4498 = vmatprep.subr.mxu0 %v12171_v17  ;;  %6532 = vmatprep.subr.mxu1 %v15899_v40  ;;  %v12983_v17 = vld [vmem:[%s14589_s8 + $0x48] sm:$0xff] }
0x1178   :  { %6533 = vmatpush3.msra.mxu1 %v12962_v37  ;;  %4499 = vmatpush1.msra.mxu0 %v13055_v33 }
0x1179   :  { %6534 = vmatprep.subr.mxu1 %v15899_v40  ;;  %4500 = vmatprep.subr.mxu0 %v13061_v27 }
0x117a   :  { %6535 = vmatpush3.msra.mxu1 %v12969_v9 }
0x117b   :  { %6536 = vmatprep.subr.mxu1 %v15899_v40 }
0x117c   :  { %6537 = vmatpush3.msra.mxu1 %v12976_v45 }
0x117d   :  { %6538 = vmatprep.subr.mxu1 %v15899_v40 }
0x117e   :  { %6539 = vmatpush3.msra.mxu1 %v12983_v17 }
0x117f   :  { %6540 = vmatprep.subr.mxu1 %v15899_v40 }
0x1180   :  { %6541 = vmatpush3.msra.mxu1 %v12990_v26 }
0x1181   :  { %6542 = vmatprep.subr.mxu1 %v15899_v40 }
0x1182   :  { %6543 = vmatpush3.msra.mxu1 %v12997_v0 }
0x1183   :  { %6544 = vmatprep.subr.mxu1 %v15899_v40 }
0x1184   :  { %6545 = vmatpush3.msra.mxu1 %v13004_v7 }
0x1185   :  { %6546 = vmatprep.subr.mxu1 %v15899_v40 }
0x1186   :  { %6547 = vmatpush3.msra.mxu1 %v13011_v5 }
0x1187   :  { %6548 = vmatprep.subr.mxu1 %v15899_v40 }
0x1188   :  { %6549 = vmatpush3.msra.mxu1 %v13018_v43 }
0x1189   :  { %6550 = vmatprep.subr.mxu1 %v15899_v40 }
0x118a   :  { %6551 = vmatpush3.msra.mxu1 %v13025_v57 }
0x118b   :  { %6552 = vmatprep.subr.mxu1 %v15899_v40 }
0x118c   :  { %6553 = vmatpush3.msra.mxu1 %v13034_v35 }
0x118d   :  { %6554 = vmatprep.subr.mxu1 %v15899_v40 }
0x118e   :  { %6555 = vmatpush3.msra.mxu1 %v13041_v19 }
0x118f   :  { %6556 = vmatprep.subr.mxu1 %v15899_v40 }
0x1190   :  { %6557 = vmatpush3.msra.mxu1 %v13048_v60 }
0x1191   :  { %4543 = vmatprep.subr.mxu1 %v12016_v61  ;;  %v13073_v61 = vld [vmem:[%s14583_s4 + $0x8] sm:$0xff] }
0x121d   :  { %v4141_v21 = vpop.f32.mrf.mxu0 }
0x121e   :  { %v4142_v11 = vadd.f32 %v12904_v12, %v4141_v21  ;;  %v13067_v21 = vld [vmem:[%s14583_s4 + $0x20] sm:$0xff] }
0x121f   :  { %v6525_v25 = vpop.f32.mrf.mxu0  ;;  %4501 = vmatpush1.msra.mxu0 %v13067_v21 }
0x1220   :  { %v4146_v28 = vcombine.high %v4142_v11, %v4142_v11  ;;  %v4153_v30 = vrot.slane %v4142_v11, %v11604_v15  ;;  %v4211_v47 = vsel %vm3046_vm1, %v4142_v11, -inf  ;;  %4502 = vmatprep.subr.mxu0 %v13073_v61  ;;  %v13079_v11 = vld [vmem:[%s14583_s4] sm:$0xff]  ;;  %v13085_v25 = vld [vmem:[%s14583_s4 + $0x3e8] sm:$0xff] }
0x1221   :  { %4212 = vmax.xlane.f32.xlu0 %v4211_v47  ;;  %4503 = vmatpush1.msra.mxu0 %v13079_v11 }
0x1222   :  { %v4160_v32 = vrot.slane %v4146_v28, %v11604_v15  ;;  %v4161_v34 = vcombine.high %v4153_v30, %v4153_v30  ;;  %v4169_v24 = vrot.slane %v4153_v30, %v11604_v15  ;;  %6114 = vst.sshfl [vmem:[%s14588_s9 + $0x2] sm:$0x1 pattern:$0x73625140] %v4153_v30  ;;  %4504 = vmatprep.subr.mxu0 %v13085_v25  ;;  %v13091_v28 = vld [vmem:[%s14583_s4 + $0x3e0] sm:$0xff] }
0x1223   :  { %4505 = vmatpush2.msra.mxu0 %v13091_v28  ;;  %v16145_v30 = vld [vmem:[#allocation71_spill] sm:$0xff] }
0x1224   :  { %v4162_v23 = vcombine.high %v4160_v32, %v4160_v32  ;;  %v4176_v42 = vrot.slane %v4160_v32, %v11604_v15  ;;  %v4183_v44 = vrot.slane %v4161_v34, %v11604_v15  ;;  %v4191_v16 = vcombine.high %v4169_v24, %v4169_v24  ;;  %6115 = vst.sshfl [vmem:[%s14588_s9 + $0xa] sm:$0x1 pattern:$0x73625140] %v4161_v34  ;;  %v16148_v34 = vld [vmem:[#allocation58_spill] sm:$0xff] }
0x1225   :  { %6116 = vst.sshfl [vmem:[%s14588_s9 + $0x22] sm:$0x1 pattern:$0x73625140] %v4160_v32  ;;  %4506 = vmatprep.subr.mxu0 %v12184_v29  ;;  %v16132_v29 = vld [vmem:[#allocation3_spill] sm:$0xff]  ;;  %v16147_v32 = vld [vmem:[#allocation72_spill] sm:$0xff] }
0x1226   :  { %v4190_v36 = vrot.slane %v4162_v23, %v11604_v15  ;;  %v4192_v49 = vcombine.high %v4176_v42, %v4176_v42  ;;  %v4193_v58 = vcombine.high %v4183_v44, %v4183_v44  ;;  %4205 = vst [vmem:[%s14588_s9 + $0x12] sm:$0x1] %v4191_v16  ;;  %6117 = vst.sshfl [vmem:[%s14588_s9 + $0x2a] sm:$0x1 pattern:$0x73625140] %v4162_v23  ;;  %4507 = vmatpush2.msra.mxu0 %v12190_v51 }
0x1227   :  { %4508 = vmatprep.subr.mxu0 %v12196_v10  ;;  %v16133_v51 = vld [vmem:[#allocation65_spill] sm:$0xff]  ;;  %v16134_v10 = vld [vmem:[#allocation38_spill] sm:$0xff] }
0x1228   :  { %v4194_v50 = vcombine.high %v4190_v36, %v4190_v36  ;;  %4206 = vst [vmem:[%s14588_s9 + $0x1a] sm:$0x1] %v4193_v58  ;;  %4209 = vst [vmem:[%s14588_s9 + $0x32] sm:$0x1] %v4192_v49  ;;  %4509 = vmatpush2.msra.mxu0 %v12202_v38  ;;  %v16135_v38 = vld [vmem:[#allocation66_spill] sm:$0xff]  ;;  %v16149_v36 = vmov 1.0  }
0x1229   :  { %4510 = vmatprep.subr.mxu0 %v12208_v46  ;;  %v16136_v46 = vld [vmem:[#allocation8_spill] sm:$0xff]  ;;  %v16150_v49 = vld [vmem:[#allocation11_spill] sm:$0xff]  ;;  %v16151_v58 = vld [vmem:[#allocation73_spill] sm:$0xff] }
0x122a   :  { %4210 = vst [vmem:[%s14588_s9 + $0x3a] sm:$0x1] %v4194_v50  ;;  %4511 = vmatpush2.msra.mxu0 %v12214_v14  ;;  %v16137_v14 = vld [vmem:[#allocation67_spill] sm:$0xff]  ;;  %v16152_v50 = vld [vmem:[#allocation46_spill] sm:$0xff] }
0x122b   :  { %4512 = vmatprep.subr.mxu0 %v12220_v6  ;;  %v16138_v6 = vld [vmem:[#allocation40_spill] sm:$0xff] }
0x122c   :  { %4513 = vmatpush2.msra.mxu0 %v12226_v52  ;;  %v16139_v52 = vld [vmem:[#allocation68_spill] sm:$0xff] }
0x122d   :  { %4514 = vmatprep.subr.mxu0 %v12232_v54  ;;  %v16140_v54 = vld [vmem:[#allocation9_spill] sm:$0xff] }
0x122e   :  { %4515 = vmatpush2.msra.mxu0 %v12238_v55  ;;  %v16141_v55 = vld [vmem:[#allocation69_spill] sm:$0xff] }
0x122f   :  { %4516 = vmatprep.subr.mxu0 %v12244_v41  ;;  %v16142_v41 = vld [vmem:[#allocation42_spill] sm:$0xff] }
0x1230   :  { %4517 = vmatpush2.msra.mxu0 %v12250_v56  ;;  %v16143_v56 = vld [vmem:[#allocation70_spill] sm:$0xff] }
0x1231   :  { %4518 = vmatprep.subr.mxu0 %v12256_v39  ;;  %v16144_v39 = vld [vmem:[#allocation10_spill] sm:$0xff] }
0x1232   :  { %4519 = vmatpush2.msra.mxu0 %v16132_v29  ;;  %v16161_v29 = vld [vmem:[#allocation37_spill] sm:$0xff] }
0x1233   :  { %4520 = vmatprep.subr.mxu0 %v16133_v51  ;;  %v16162_v51 = vld [vmem:[#allocation63_spill] sm:$0xff] }
0x1234   :  { %4521 = vmatpush2.msra.mxu0 %v16134_v10  ;;  %v16163_v10 = vld [vmem:[#allocation77_spill] sm:$0xff] }
0x1235   :  { %4522 = vmatprep.subr.mxu0 %v16135_v38  ;;  %v16164_v38 = vld [vmem:[#allocation36_spill] sm:$0xff] }
0x1236   :  { %4523 = vmatpush2.msra.mxu0 %v16136_v46  ;;  %v16165_v46 = vld [vmem:[#allocation39_spill] sm:$0xff] }
0x1237   :  { %4524 = vmatprep.subr.mxu0 %v16137_v14  ;;  %v16166_v14 = vld [vmem:[#allocation64_spill] sm:$0xff] }
0x1238   :  { %4525 = vmatpush2.msra.mxu0 %v16138_v6  ;;  %v16167_v6 = vld [vmem:[#allocation78_spill] sm:$0xff] }
0x1239   :  { %4526 = vmatprep.subr.mxu0 %v16139_v52  ;;  %v16168_v52 = vld [vmem:[#allocation7_spill] sm:$0xff] }
0x123a   :  { %4527 = vmatpush2.msra.mxu0 %v16140_v54  ;;  %v16169_v54 = vld [vmem:[#allocation41_spill] sm:$0xff] }
0x123b   :  { %4528 = vmatprep.subr.mxu0 %v16141_v55  ;;  %v16170_v55 = vld [vmem:[#allocation79_spill] sm:$0xff] }
0x123c   :  { %4529 = vmatpush2.msra.mxu0 %v16142_v41  ;;  %v16171_v41 = vld [vmem:[#allocation43_spill] sm:$0xff] }
0x123d   :  { %4530 = vmatprep.subr.mxu0 %v16143_v56  ;;  %v16172_v56 = vld [vmem:[#allocation80_spill] sm:$0xff] }
0x123e   :  { %4531 = vmatpush2.msra.mxu0 %v16144_v39  ;;  %v16173_v39 = vld [vmem:[#allocation45_spill] sm:$0xff] }
0x123f   :  { %4532 = vmatprep.subr.mxu0 %v16145_v30  ;;  %v16174_v30 = vld [vmem:[#allocation81_spill] sm:$0xff] }
0x12aa   :  { %v4213_v4 = vpop.xlane.xlu0 %4212 }
0x12ab   :  { %vm4214_vm8 = vcmp.eq.f32.partialorder %v4211_v47, %v4213_v4  ;;  %v16146_v47 = vld [vmem:[#allocation44_spill] sm:$0xff]  ;;  %v16153_v4 = vld [vmem:[#allocation33_spill] sm:$0xff] }
0x12ac   :  { %v4215_v13 = vsel %vm4214_vm8, %v11596_v53, 128  ;;  %4533 = vmatpush2.msra.mxu0 %v16146_v47  ;;  %v16175_v47 = vld [vmem:[#allocation19_spill] sm:$0xff] }
0x12ad   :  { %v4217_v1 = vshra.s32 %v4215_v13, 16  ;;  %v4216_v31 = vand.u32 65535, %v4215_v13  ;;  %4534 = vmatprep.subr.mxu0 %v16147_v32  ;;  %v16154_v13 = vld [vmem:[#allocation61_spill] sm:$0xff]  ;;  %v16176_v32 = vld [vmem:[#allocation47_spill] sm:$0xff] }
0x12ae   :  { %4535 = vmatpush2.msra.mxu0 %v16148_v34  ;;  %v16177_v34 = vld [vmem:[#allocation20_spill] sm:$0xff] }
0x12af   :  { %v4219_v48 = vcvt.s32.f32 %v4217_v1  ;;  %v4218_v22 = vcvt.s32.f32 %v4216_v31  ;;  %6561 = vmatprep.subr.mxu0 %v15899_v40  ;;  %v16155_v1 = vld [vmem:[#allocation75_spill] sm:$0xff] }
0x12b0   :  { %v16157_v31 = vld [vmem:[#allocation35_spill] sm:$0xff] }
0x12b1   :  { %4220 = vmin.xlane.f32.xlu1 %v4219_v48 }
0x133a   :  { %v4221_v8 = vpop.xlane.xlu1 %4220 }
0x133b   :  { %vm4222_vm9 = vcmp.eq.f32.partialorder %v4219_v48, %v4221_v8  ;;  %v4227_v24 = vcvt.f32.s32 %v4221_v8  ;;  %v16156_v48 = vld [vmem:[#allocation34_spill] sm:$0xff] }
0x133c   :  { %v4223_v62 = vsel %vm4222_vm9, %v4218_v22, inf  ;;  %v16158_v8 = vld [vmem:[#allocation62_spill] sm:$0xff]  ;;  %v16159_v22 = vld [vmem:[#allocation76_spill] sm:$0xff] }
0x133d   :  { %4224 = vmin.xlane.f32.xlu0 %v4223_v62  ;;  %v4228_v42 = vshll.u32 %v4227_v24, 16  ;;  %v16160_v62 = vld [vmem:[#allocation6_spill] sm:$0xff] }
0x133e   :  { %v16178_v24 = vld [vmem:[#allocation82_spill] sm:$0xff] }
0x13c6   :  { %v4225_v23 = vpop.xlane.xlu0 %4224 }
0x13c7   :  { %v4226_v44 = vcvt.f32.s32 %v4225_v23  ;;  %v16179_v23 = vld [vmem:[#allocation21_spill] sm:$0xff] }
0x13c9   :  { %v4229_v16 = vadd.s32 %v4228_v42, %v4226_v44  ;;  %v16180_v42 = vld [vmem:[#allocation49_spill] sm:$0xff]  ;;  %v16181_v44 = vld [vmem:[#allocation22_spill] sm:$0xff] }
0x13cb   :  { %vm4230_vm10 = vcmp.eq.s32.totalorder %v11596_v53, %v4229_v16  ;;  %v16182_v16 = vld [vmem:[#allocation83_spill] sm:$0xff] }
0x13cc   :  { %6559 = vmatmul.mubr.msk.f32.vlgmr.msra.gmra.mxu1 %vm4230_vm10, %v16149_v36 }
0x13cd   :  { %4607 = vmatprep.mubr.f32.mxu1 %v12871_v3  ;;  %4544 = vmatpush1.msra.mxu1 %v16150_v49  ;;  %v16183_v49 = vld [vmem:[#allocation23_spill] sm:$0xff] }
0x13ce   :  { %4545 = vmatprep.subr.mxu1 %v16151_v58  ;;  %v16184_v58 = vld [vmem:[#allocation51_spill] sm:$0xff] }
0x13cf   :  { %4546 = vmatpush1.msra.mxu1 %v16152_v50  ;;  %v16185_v50 = vld [vmem:[#allocation24_spill] sm:$0xff] }
0x13d0   :  { %4547 = vmatprep.subr.mxu1 %v16153_v4  ;;  %v16186_v4 = vld [vmem:[#allocation84_spill] sm:$0xff] }
0x13d1   :  { %4548 = vmatpush1.msra.mxu1 %v16154_v13  ;;  %v16187_v13 = vld [vmem:[#allocation25_spill] sm:$0xff] }
0x13d2   :  { %4549 = vmatprep.subr.mxu1 %v16155_v1  ;;  %v16188_v1 = vld [vmem:[#allocation74_spill] sm:$0xff] }
0x13d3   :  { %4550 = vmatpush1.msra.mxu1 %v16156_v48  ;;  %v16189_v48 = vld [vmem:[#allocation53_spill] sm:$0xff] }
0x13d4   :  { %4551 = vmatprep.subr.mxu1 %v16157_v31  ;;  %v16190_v31 = vld [vmem:[#allocation12_spill] sm:$0xff] }
0x13d5   :  { %4552 = vmatpush1.msra.mxu1 %v16158_v8  ;;  %v16191_v8 = vld [vmem:[#allocation26_spill] sm:$0xff] }
0x13d6   :  { %4553 = vmatprep.subr.mxu1 %v16159_v22  ;;  %v16192_v22 = vld [vmem:[#allocation48_spill] sm:$0xff] }
0x13d7   :  { %4554 = vmatpush1.msra.mxu1 %v16160_v62  ;;  %v16193_v62 = vld [vmem:[#allocation85_spill] sm:$0xff] }
0x13d8   :  { %4555 = vmatprep.subr.mxu1 %v16161_v29  ;;  %v16194_v29 = vld [vmem:[#allocation13_spill] sm:$0xff] }
0x13d9   :  { %4556 = vmatpush1.msra.mxu1 %v16162_v51  ;;  %v16195_v51 = vld [vmem:[#allocation27_spill] sm:$0xff] }
0x13da   :  { %4557 = vmatprep.subr.mxu1 %v16163_v10  ;;  %v16196_v10 = vld [vmem:[#allocation50_spill] sm:$0xff] }
0x13db   :  { %4558 = vmatpush1.msra.mxu1 %v16164_v38  ;;  %v16197_v38 = vld [vmem:[#allocation55_spill] sm:$0xff] }
0x13dc   :  { %4559 = vmatprep.subr.mxu1 %v16165_v46  ;;  %v16198_v46 = vld [vmem:[#allocation14_spill] sm:$0xff] }
0x13dd   :  { %4560 = vmatpush1.msra.mxu1 %v16166_v14  ;;  %v16199_v14 = vld [vmem:[#allocation28_spill] sm:$0xff] }
0x13de   :  { %4561 = vmatprep.subr.mxu1 %v16167_v6  ;;  %v16200_v6 = vld [vmem:[#allocation52_spill] sm:$0xff] }
0x13df   :  { %4562 = vmatpush1.msra.mxu1 %v16168_v52  ;;  %v16201_v52 = vld [vmem:[#allocation86_spill] sm:$0xff] }
0x13e0   :  { %4563 = vmatprep.subr.mxu1 %v16169_v54  ;;  %v16202_v54 = vld [vmem:[#allocation15_spill] sm:$0xff] }
0x13e1   :  { %4564 = vmatpush1.msra.mxu1 %v16170_v55  ;;  %v16203_v55 = vld [vmem:[#allocation29_spill] sm:$0xff] }
0x13e2   :  { %4565 = vmatprep.subr.mxu1 %v16171_v41  ;;  %v16204_v41 = vld [vmem:[#allocation54_spill] sm:$0xff] }
0x13e3   :  { %4566 = vmatpush1.msra.mxu1 %v16172_v56  ;;  %v16205_v56 = vld [vmem:[#allocation57_spill] sm:$0xff] }
0x13e4   :  { %4567 = vmatprep.subr.mxu1 %v16173_v39  ;;  %v16206_v39 = vld [vmem:[#allocation16_spill] sm:$0xff] }
0x13e5   :  { %4568 = vmatpush1.msra.mxu1 %v16174_v30  ;;  %v16207_v30 = vld [vmem:[#allocation30_spill] sm:$0xff] }
0x13e6   :  { %4569 = vmatprep.subr.mxu1 %v16175_v47  ;;  %v16208_v47 = vld [vmem:[#allocation56_spill] sm:$0xff] }
0x13e7   :  { %4570 = vmatpush1.msra.mxu1 %v16176_v32  ;;  %v16209_v32 = vld [vmem:[#allocation87_spill] sm:$0xff] }
0x13e8   :  { %4571 = vmatprep.subr.mxu1 %v16177_v34  ;;  %v16210_v34 = vld [vmem:[#allocation17_spill] sm:$0xff] }
0x13e9   :  { %4572 = vmatpush1.msra.mxu1 %v16178_v24  ;;  %v16211_v24 = vld [vmem:[#allocation31_spill] sm:$0xff] }
0x13ea   :  { %4573 = vmatprep.subr.mxu1 %v16179_v23  ;;  %v16212_v23 = vld [vmem:[#allocation59_spill] sm:$0xff] }
0x13eb   :  { %4574 = vmatpush1.msra.mxu1 %v16180_v42 }
0x13ec   :  { %4575 = vmatprep.subr.mxu1 %v16181_v44 }
0x13ed   :  { %4576 = vmatpush2.msra.mxu1 %v16182_v16  ;;  %v16213_v16 = vld [vmem:[#allocation18_spill] sm:$0xff] }
0x13ee   :  { %4577 = vmatprep.subr.mxu1 %v16183_v49  ;;  %v16214_v49 = vld [vmem:[#allocation32_spill] sm:$0xff] }
0x13ef   :  { %4578 = vmatpush2.msra.mxu1 %v16184_v58  ;;  %v16215_v58 = vld [vmem:[#allocation60_spill] sm:$0xff] }
0x13f0   :  { %4579 = vmatprep.subr.mxu1 %v16185_v50  ;;  %v16216_v50 = vld [vmem:[#allocation88_spill] sm:$0xff] }
0x13f1   :  { %4580 = vmatpush2.msra.mxu1 %v16186_v4 }
0x13f2   :  { %4581 = vmatprep.subr.mxu1 %v16187_v13 }
0x13f3   :  { %4582 = vmatpush2.msra.mxu1 %v16188_v1 }
0x13f4   :  { %4583 = vmatprep.subr.mxu1 %v16189_v48 }
0x13f5   :  { %4584 = vmatpush2.msra.mxu1 %v16190_v31  ;;  %v16230_v31 = vld [vmem:[#allocation5_spill] sm:$0xff] }
0x13f6   :  { %4585 = vmatprep.subr.mxu1 %v16191_v8 }
0x13f7   :  { %4586 = vmatpush2.msra.mxu1 %v16192_v22 }
0x13f8   :  { %4587 = vmatprep.subr.mxu1 %v16193_v62 }
0x13f9   :  { %4588 = vmatpush2.msra.mxu1 %v16194_v29 }
0x13fa   :  { %4589 = vmatprep.subr.mxu1 %v16195_v51 }
0x13fb   :  { %4590 = vmatpush2.msra.mxu1 %v16196_v10 }
0x13fc   :  { %4591 = vmatprep.subr.mxu1 %v16197_v38 }
0x13fd   :  { %4592 = vmatpush2.msra.mxu1 %v16198_v46 }
0x13fe   :  { %4593 = vmatprep.subr.mxu1 %v16199_v14 }
0x13ff   :  { %4594 = vmatpush2.msra.mxu1 %v16200_v6 }
0x1400   :  { %4595 = vmatprep.subr.mxu1 %v16201_v52 }
0x1401   :  { %4596 = vmatpush2.msra.mxu1 %v16202_v54 }
0x1402   :  { %4597 = vmatprep.subr.mxu1 %v16203_v55 }
0x1403   :  { %4598 = vmatpush2.msra.mxu1 %v16204_v41 }
0x1404   :  { %4599 = vmatprep.subr.mxu1 %v16205_v56 }
0x1405   :  { %4600 = vmatpush2.msra.mxu1 %v16206_v39 }
0x1406   :  { %4601 = vmatprep.subr.mxu1 %v16207_v30 }
0x1407   :  { %4602 = vmatpush2.msra.mxu1 %v16208_v47 }
0x1408   :  { %4603 = vmatprep.subr.mxu1 %v16209_v32 }
0x1409   :  { %4604 = vmatpush2.msra.mxu1 %v16210_v34 }
0x140a   :  { %4605 = vmatprep.subr.mxu1 %v16211_v24 }
0x140b   :  { %4606 = vmatpush2.msra.mxu1 %v16212_v23 }
0x140c   :  { %6596 = vmatprep.subr.mxu1 %v15899_v40 }
0x148c   :  { %v4315_v42 = vpop.f32.mrf.mxu1 }
0x148d   :  { %4537 = vmatmul.mubr.f32.vlgmr.msra.gmra.mxu0 %v4315_v42  ;;  %4608 = vmatmul.mubr.f32.vlgmr.msra.gmra.mxu1 %v4315_v42 }
0x148e   :  { %v6560_v44 = vpop.f32.mrf.mxu1  ;;  %6562 = vmatpush3.msra.mxu0 %v16213_v16  ;;  %6593 = vmatprep.mubr.msk.f32.mxu0 %vm6916_vm0, %v15899_v40 }
0x148f   :  { %6563 = vmatprep.subr.mxu0 %v15899_v40  ;;  %6597 = vmatpush3.msra.mxu1 %v12943_v2  ;;  %v16217_v2 = vld [vmem:[#allocation89_spill] sm:$0xff] }
0x1490   :  { %6564 = vmatpush3.msra.mxu0 %v16214_v49  ;;  %6598 = vmatprep.subr.mxu1 %v15899_v40 }
0x1491   :  { %6565 = vmatprep.subr.mxu0 %v15899_v40  ;;  %6599 = vmatpush3.msra.mxu1 %v12948_v63  ;;  %v16218_v63 = vld [vmem:[#allocation90_spill] sm:$0xff] }
0x1492   :  { %6566 = vmatpush3.msra.mxu0 %v16215_v58  ;;  %6600 = vmatprep.subr.mxu1 %v15899_v40 }
0x1493   :  { %6567 = vmatprep.subr.mxu0 %v15899_v40  ;;  %6601 = vmatpush3.msra.mxu1 %v12955_v59  ;;  %v16219_v59 = vld [vmem:[#allocation91_spill] sm:$0xff] }
0x1494   :  { %6568 = vmatpush3.msra.mxu0 %v16216_v50  ;;  %6602 = vmatprep.subr.mxu1 %v15899_v40 }
0x1495   :  { %6569 = vmatprep.subr.mxu0 %v15899_v40  ;;  %6603 = vmatpush3.msra.mxu1 %v12962_v37  ;;  %v16220_v37 = vld [vmem:[#allocation92_spill] sm:$0xff] }
0x1496   :  { %6570 = vmatpush3.msra.mxu0 %v16217_v2  ;;  %6604 = vmatprep.subr.mxu1 %v15899_v40 }
0x1497   :  { %6571 = vmatprep.subr.mxu0 %v15899_v40  ;;  %6605 = vmatpush3.msra.mxu1 %v12969_v9  ;;  %v16221_v9 = vld [vmem:[#allocation93_spill] sm:$0xff] }
0x1498   :  { %6572 = vmatpush3.msra.mxu0 %v16218_v63  ;;  %6606 = vmatprep.subr.mxu1 %v15899_v40 }
0x1499   :  { %6573 = vmatprep.subr.mxu0 %v15899_v40  ;;  %6607 = vmatpush3.msra.mxu1 %v12976_v45  ;;  %v16222_v45 = vld [vmem:[#allocation94_spill] sm:$0xff] }
0x149a   :  { %6574 = vmatpush3.msra.mxu0 %v16219_v59  ;;  %6608 = vmatprep.subr.mxu1 %v15899_v40 }
0x149b   :  { %6575 = vmatprep.subr.mxu0 %v15899_v40  ;;  %6609 = vmatpush3.msra.mxu1 %v12983_v17  ;;  %v16223_v17 = vld [vmem:[#allocation95_spill] sm:$0xff] }
0x149c   :  { %6576 = vmatpush3.msra.mxu0 %v16220_v37  ;;  %6610 = vmatprep.subr.mxu1 %v15899_v40 }
0x149d   :  { %6577 = vmatprep.subr.mxu0 %v15899_v40  ;;  %6611 = vmatpush3.msra.mxu1 %v12990_v26  ;;  %v16224_v26 = vld [vmem:[#allocation96_spill] sm:$0xff] }
0x149e   :  { %6578 = vmatpush3.msra.mxu0 %v16221_v9  ;;  %6612 = vmatprep.subr.mxu1 %v15899_v40 }
0x149f   :  { %6579 = vmatprep.subr.mxu0 %v15899_v40  ;;  %6613 = vmatpush3.msra.mxu1 %v12997_v0  ;;  %v16225_v0 = vld [vmem:[#allocation97_spill] sm:$0xff] }
0x14a0   :  { %6580 = vmatpush3.msra.mxu0 %v16222_v45  ;;  %6614 = vmatprep.subr.mxu1 %v15899_v40 }
0x14a1   :  { %6581 = vmatprep.subr.mxu0 %v15899_v40  ;;  %6615 = vmatpush3.msra.mxu1 %v13004_v7  ;;  %v16226_v7 = vld [vmem:[#allocation98_spill] sm:$0xff] }
0x14a2   :  { %6582 = vmatpush3.msra.mxu0 %v16223_v17  ;;  %6616 = vmatprep.subr.mxu1 %v15899_v40 }
0x14a3   :  { %6583 = vmatprep.subr.mxu0 %v15899_v40  ;;  %6617 = vmatpush3.msra.mxu1 %v13011_v5  ;;  %v16227_v5 = vld [vmem:[#allocation99_spill] sm:$0xff] }
0x14a4   :  { %6584 = vmatpush3.msra.mxu0 %v16224_v26  ;;  %6618 = vmatprep.subr.mxu1 %v15899_v40 }
0x14a5   :  { %6585 = vmatprep.subr.mxu0 %v15899_v40  ;;  %6619 = vmatpush3.msra.mxu1 %v13018_v43  ;;  %v16228_v43 = vld [vmem:[#allocation100_spill] sm:$0xff] }
0x14a6   :  { %6586 = vmatpush3.msra.mxu0 %v16225_v0  ;;  %6620 = vmatprep.subr.mxu1 %v15899_v40 }
0x14a7   :  { %6587 = vmatprep.subr.mxu0 %v15899_v40  ;;  %6621 = vmatpush3.msra.mxu1 %v13025_v57  ;;  %v4450_v57 = vld [vmem:[%s14586_s5] sm:$0xf] }
0x14a8   :  { %6588 = vmatpush3.msra.mxu0 %v16226_v7  ;;  %6622 = vmatprep.subr.mxu1 %v15899_v40  ;;  %v4467_v38 = vrot.slane %v4450_v57, %v7891_v18  ;;  %v4463_v14 = vrot.slane %v4450_v57, %v7894_v20 }
0x14a9   :  { %6589 = vmatprep.subr.mxu0 %v15899_v40  ;;  %6623 = vmatpush3.msra.mxu1 %v13034_v35  ;;  %v16229_v35 = vld [vmem:[#allocation4_spill] sm:$0xff] }
0x14aa   :  { %6590 = vmatpush3.msra.mxu0 %v16227_v5  ;;  %6624 = vmatprep.subr.mxu1 %v15899_v40  ;;  %v4455_v4 = vrot.slane %v4450_v57, %v16229_v35 }
0x14ab   :  { %6591 = vmatprep.subr.mxu0 %v15899_v40  ;;  %6625 = vmatpush3.msra.mxu1 %v13041_v19  ;;  %v4459_v19 = vrot.slane %v4450_v57, %v16230_v31 }
0x14ac   :  { %6592 = vmatpush3.msra.mxu0 %v16228_v43  ;;  %6626 = vmatprep.subr.mxu1 %v15899_v40 }
0x14ad   :  { %6627 = vmatpush3.msra.mxu1 %v13048_v60  ;;  %6628 = vmatprep.mubr.msk.f32.mxu1 %vm6916_vm0, %v15899_v40 }
0x154d   :  { %v4538_v13 = vpop.f32.mrf.mxu0  ;;  %v4609_v51 = vpop.f32.mrf.mxu1 }
0x154e   :  { %v4539_v1 = vadd.f32 %v4538_v13, %v4455_v4  ;;  %v4610_v55 = vadd.f32 %v4609_v51, %v4463_v14  ;;  %v13350_v51 = vld [vmem:[%s14583_s4 + $0x188] sm:$0xff] }
0x154f   :  { %v4540_v8 = vpop.f32.mrf.mxu0  ;;  %v4611_v46 = vpop.f32.mrf.mxu1  ;;  %v13374_v14 = vld [vmem:[%s14583_s4 + $0x148] sm:$0xff] }
0x1550   :  { %v6120_v48 = vmul.f32 -1.442695, %v4539_v1  ;;  %v4541_v22 = vadd.f32 %v4540_v8, %v4459_v19  ;;  %v4612_v52 = vadd.f32 %v4611_v46, %v4467_v38  ;;  %v13315_v19 = vld [vmem:[%s14583_s4 + $0x1f8] sm:$0xff]  ;;  %v13320_v8 = vld [vmem:[%s14583_s4 + $0x1e0] sm:$0xff]  ;;  %v13362_v38 = vld [vmem:[%s14583_s4 + $0x168] sm:$0xff] }
0x1551   :  { %5125 = vmatprep.subr.mxu1 %v13315_v19  ;;  %v13368_v46 = vld [vmem:[%s14583_s4 + $0x160] sm:$0xff] }
0x1552   :  { %6885 = vpow2.f32 %v6120_v48  ;;  %v6121_v62 = vmul.f32 -1.442695, %v4541_v22  ;;  %v13310_v48 = vld [vmem:[%s14583_s4 + $0x1e8] sm:$0xff] }
0x1553   :  { %5054 = vmatprep.subr.mxu0 %v13310_v48  ;;  %v13327_v22 = vld [vmem:[%s14583_s4 + $0x1c8] sm:$0xff] }
0x1554   :  { %6887 = vpow2.f32 %v6121_v62  ;;  %v13333_v62 = vld [vmem:[%s14583_s4 + $0x1c0] sm:$0xff] }
0x155f   :  { %v6886_v60 = vpop.eup %6885 }
0x1560   :  { %v4617_v29 = vadd.f32 1.0, %v6886_v60  ;;  %v13338_v60 = vld [vmem:[%s14583_s4 + $0x1a8] sm:$0xff] }
0x1561   :  { %v6888_v10 = vpop.eup %6887 }
0x1562   :  { %6889 = vrcp.f32 %v4617_v29  ;;  %v4623_v6 = vadd.f32 1.0, %v6888_v10  ;;  %v13344_v29 = vld [vmem:[%s14583_s4 + $0x1a0] sm:$0xff] }
0x1563   :  { %v13356_v10 = vld [vmem:[%s14583_s4 + $0x180] sm:$0xff] }
0x1564   :  { %6891 = vrcp.f32 %v4623_v6  ;;  %v13380_v6 = vld [vmem:[%s14583_s4 + $0x140] sm:$0xff] }
0x156f   :  { %v6890_v54 = vpop.eup %6889 }
0x1570   :  { %v4626_v41 = vmul.f32 %v6890_v54, %v4612_v52  ;;  %v13386_v52 = vld [vmem:[%s14583_s4 + $0x128] sm:$0xff]  ;;  %v13392_v54 = vld [vmem:[%s14583_s4 + $0x120] sm:$0xff] }
0x1571   :  { %v6892_v39 = vpop.eup %6891 }
0x1572   :  { %v4627_v56 = vadd.f32 %v4626_v41, %v4610_v55  ;;  %v4629_v30 = vsub.f32 1.0, %v6892_v39  ;;  %v4631_v34 = vmul.f32 %v6892_v39, %v12871_v3  ;;  %v13398_v55 = vld [vmem:[%s14583_s4 + $0x108] sm:$0xff]  ;;  %v13404_v41 = vld [vmem:[%s14583_s4 + $0x100] sm:$0xff] }
0x1573   :  { %v13416_v39 = vld [vmem:[%s14583_s4 + $0xe0] sm:$0xff] }
0x1574   :  { %6893 = vtanh.f32 %v4627_v56  ;;  %v13410_v56 = vld [vmem:[%s14583_s4 + $0xe8] sm:$0xff] }
0x1581   :  { %v6894_v47 = vpop.eup %6893 }
0x1582   :  { %v4630_v32 = vmul.f32 %v6894_v47, %v4629_v30  ;;  %v13422_v30 = vld [vmem:[%s14583_s4 + $0xc8] sm:$0xff]  ;;  %v13428_v47 = vld [vmem:[%s14583_s4 + $0xc0] sm:$0xff] }
0x1584   :  { %v13266_v24 = vadd.f32 %v4631_v34, %v4630_v32  ;;  %v13434_v32 = vld [vmem:[%s14583_s4 + $0xa8] sm:$0xff]  ;;  %v13440_v34 = vld [vmem:[%s14583_s4 + $0xa0] sm:$0xff] }
0x1586   :  { %6594 = vmatmul.mubr.f32.vlgmr.msra.gmra.mxu0 %v13266_v24 }
0x1587   :  { %5118 = vmatprep.mubr.f32.mxu0 %v13266_v24  ;;  %5055 = vmatpush1.msra.mxu0 %v13320_v8 }
0x1588   :  { %5056 = vmatprep.subr.mxu0 %v13327_v22 }
0x1589   :  { %5057 = vmatpush1.msra.mxu0 %v13333_v62 }
0x158a   :  { %5058 = vmatprep.subr.mxu0 %v13338_v60 }
0x158b   :  { %5059 = vmatpush1.msra.mxu0 %v13344_v29 }
0x158c   :  { %5060 = vmatprep.subr.mxu0 %v13350_v51 }
0x158d   :  { %5061 = vmatpush1.msra.mxu0 %v13356_v10 }
0x158e   :  { %5062 = vmatprep.subr.mxu0 %v13362_v38 }
0x158f   :  { %5063 = vmatpush1.msra.mxu0 %v13368_v46 }
0x1590   :  { %5064 = vmatprep.subr.mxu0 %v13374_v14 }
0x1591   :  { %5065 = vmatpush1.msra.mxu0 %v13380_v6 }
0x1592   :  { %5066 = vmatprep.subr.mxu0 %v13386_v52 }
0x1593   :  { %5067 = vmatpush1.msra.mxu0 %v13392_v54 }
0x1594   :  { %5068 = vmatprep.subr.mxu0 %v13398_v55 }
0x1595   :  { %5069 = vmatpush1.msra.mxu0 %v13404_v41 }
0x1596   :  { %5070 = vmatprep.subr.mxu0 %v13410_v56 }
0x1597   :  { %5071 = vmatpush1.msra.mxu0 %v13416_v39 }
0x1598   :  { %5072 = vmatprep.subr.mxu0 %v13422_v30 }
0x1599   :  { %5073 = vmatpush1.msra.mxu0 %v13428_v47 }
0x159a   :  { %5074 = vmatprep.subr.mxu0 %v13434_v32 }
0x159b   :  { %5075 = vmatpush1.msra.mxu0 %v13440_v34 }
0x1646   :  { %v4723_v23 = vpop.f32.mrf.mxu0 }
0x1647   :  { %v4724_v42 = vadd.f32 %v12904_v12, %v4723_v23  ;;  %v13446_v23 = vld [vmem:[%s14583_s4 + $0x88] sm:$0xff] }
0x1648   :  { %v6595_v44 = vpop.f32.mrf.mxu0  ;;  %5076 = vmatprep.subr.mxu0 %v13446_v23 }
0x1649   :  { %v4728_v16 = vcombine.high %v4724_v42, %v4724_v42  ;;  %v4735_v49 = vrot.slane %v4724_v42, %v11604_v15  ;;  %v4793_v58 = vsel %vm3046_vm1, %v4724_v42, -inf  ;;  %v13452_v42 = vld [vmem:[%s14583_s4 + $0x80] sm:$0xff]  ;;  %v13458_v44 = vld [vmem:[%s14583_s4 + $0x68] sm:$0xff] }
0x164a   :  { %4794 = vmax.xlane.f32.xlu1 %v4793_v58  ;;  %5077 = vmatpush1.msra.mxu0 %v13452_v42 }
0x164b   :  { %v4742_v50 = vrot.slane %v4728_v16, %v11604_v15  ;;  %v4743_v3 = vcombine.high %v4735_v49, %v4735_v49  ;;  %v4751_v2 = vrot.slane %v4735_v49, %v11604_v15  ;;  %6123 = vst.sshfl [vmem:[%s14588_s9 + $0x3] sm:$0x1 pattern:$0x73625140] %v4735_v49  ;;  %v13464_v16 = vld [vmem:[%s14583_s4 + $0x60] sm:$0xff]  ;;  %v13470_v49 = vld [vmem:[%s14583_s4 + $0x48] sm:$0xff]  ;;  %5078 = vmatprep.subr.mxu0 %v13458_v44 }
0x164c   :  { %5079 = vmatpush1.msra.mxu0 %v13464_v16 }
0x164d   :  { %v4744_v63 = vcombine.high %v4742_v50, %v4742_v50  ;;  %v4758_v12 = vrot.slane %v4742_v50, %v11604_v15  ;;  %v4765_v59 = vrot.slane %v4743_v3, %v11604_v15  ;;  %v4773_v37 = vcombine.high %v4751_v2, %v4751_v2  ;;  %6124 = vst.sshfl [vmem:[%s14588_s9 + $0xb] sm:$0x1 pattern:$0x73625140] %v4743_v3  ;;  %v13537_v3 = vld [vmem:[%s14583_s4 + $0x340] sm:$0xff]  ;;  %v13543_v2 = vld [vmem:[%s14583_s4 + $0x328] sm:$0xff] }
0x164e   :  { %6125 = vst.sshfl [vmem:[%s14588_s9 + $0x23] sm:$0x1 pattern:$0x73625140] %v4742_v50  ;;  %5080 = vmatprep.subr.mxu0 %v13470_v49  ;;  %v13489_v50 = vld [vmem:[%s14583_s4 + $0x3c0] sm:$0xff] }
0x164f   :  { %v4772_v9 = vrot.slane %v4744_v63, %v11604_v15  ;;  %v4774_v45 = vcombine.high %v4758_v12, %v4758_v12  ;;  %v4775_v17 = vcombine.high %v4765_v59, %v4765_v59  ;;  %4787 = vst [vmem:[%s14588_s9 + $0x13] sm:$0x1] %v4773_v37  ;;  %6126 = vst.sshfl [vmem:[%s14588_s9 + $0x2b] sm:$0x1 pattern:$0x73625140] %v4744_v63  ;;  %5081 = vmatpush1.msra.mxu0 %v13055_v33 }
0x1650   :  { %5082 = vmatprep.subr.mxu0 %v13061_v27  ;;  %v13495_v33 = vld [vmem:[%s14583_s4 + $0x3a8] sm:$0xff]  ;;  %v13501_v27 = vld [vmem:[%s14583_s4 + $0x3a0] sm:$0xff] }
0x1651   :  { %v4776_v26 = vcombine.high %v4772_v9, %v4772_v9  ;;  %4788 = vst [vmem:[%s14588_s9 + $0x1b] sm:$0x1] %v4775_v17  ;;  %4791 = vst [vmem:[%s14588_s9 + $0x33] sm:$0x1] %v4774_v45  ;;  %5083 = vmatpush1.msra.mxu0 %v13067_v21  ;;  %v13507_v21 = vld [vmem:[%s14583_s4 + $0x388] sm:$0xff]  ;;  %v13549_v63 = vld [vmem:[%s14583_s4 + $0x320] sm:$0xff] }
0x1652   :  { %5084 = vmatprep.subr.mxu0 %v13073_v61  ;;  %v13513_v61 = vld [vmem:[%s14583_s4 + $0x380] sm:$0xff]  ;;  %v13555_v12 = vld [vmem:[%s14583_s4 + $0x308] sm:$0xff] }
0x1653   :  { %4792 = vst [vmem:[%s14588_s9 + $0x3b] sm:$0x1] %v4776_v26  ;;  %5085 = vmatpush1.msra.mxu0 %v13079_v11  ;;  %v13519_v11 = vld [vmem:[%s14583_s4 + $0x368] sm:$0xff]  ;;  %v13561_v59 = vld [vmem:[%s14583_s4 + $0x300] sm:$0xff] }
0x1654   :  { %5086 = vmatprep.subr.mxu0 %v13085_v25  ;;  %v13525_v25 = vld [vmem:[%s14583_s4 + $0x360] sm:$0xff]  ;;  %16231 = vst [vmem:[#allocation3_spill] sm:$0xff] %v13561_v59  ;;  %v13567_v37 = vld [vmem:[%s14583_s4 + $0x2e8] sm:$0xff] }
0x1655   :  { %5087 = vmatpush2.msra.mxu0 %v13091_v28  ;;  %v13531_v28 = vld [vmem:[%s14583_s4 + $0x348] sm:$0xff]  ;;  %16232 = vst [vmem:[#allocation65_spill] sm:$0xff] %v13567_v37  ;;  %v13573_v9 = vld [vmem:[%s14583_s4 + $0x2e0] sm:$0xff] }
0x1656   :  { %16233 = vst [vmem:[#allocation38_spill] sm:$0xff] %v13573_v9  ;;  %v13579_v45 = vld [vmem:[%s14583_s4 + $0x2c8] sm:$0xff]  ;;  %v13585_v17 = vld [vmem:[%s14583_s4 + $0x2c0] sm:$0xff] }
0x1657   :  { %16234 = vst [vmem:[#allocation66_spill] sm:$0xff] %v13579_v45  ;;  %16235 = vst [vmem:[#allocation8_spill] sm:$0xff] %v13585_v17  ;;  %v13591_v26 = vld [vmem:[%s14583_s4 + $0x2a8] sm:$0xff] }
0x1658   :  { %16236 = vst [vmem:[#allocation67_spill] sm:$0xff] %v13591_v26 }
0x16d3   :  { %v4795_v0 = vpop.xlane.xlu1 %4794 }
0x16d4   :  { %vm4796_vm11 = vcmp.eq.f32.partialorder %v4793_v58, %v4795_v0  ;;  %v13483_v58 = vld [vmem:[%s14583_s4 + $0x3c8] sm:$0xff]  ;;  %v13597_v0 = vld [vmem:[%s14583_s4 + $0x2a0] sm:$0xff] }
0x16d5   :  { %v4797_v7 = vsel %vm4796_vm11, %v11596_v53, 128  ;;  %5088 = vmatprep.subr.mxu0 %v13483_v58  ;;  %16237 = vst [vmem:[#allocation40_spill] sm:$0xff] %v13597_v0 }
0x16d6   :  { %v4799_v5 = vshra.s32 %v4797_v7, 16  ;;  %v4798_v57 = vand.u32 65535, %v4797_v7  ;;  %5089 = vmatpush2.msra.mxu0 %v13489_v50  ;;  %v13603_v7 = vld [vmem:[%s14583_s4 + $0x288] sm:$0xff] }
0x16d7   :  { %5090 = vmatprep.subr.mxu0 %v13495_v33  ;;  %16238 = vst [vmem:[#allocation68_spill] sm:$0xff] %v13603_v7 }
0x16d8   :  { %v4801_v43 = vcvt.s32.f32 %v4799_v5  ;;  %v4800_v13 = vcvt.s32.f32 %v4798_v57  ;;  %5091 = vmatpush2.msra.mxu0 %v13501_v27  ;;  %v13609_v5 = vld [vmem:[%s14583_s4 + $0x280] sm:$0xff] }
0x16d9   :  { %5092 = vmatprep.subr.mxu0 %v13507_v21  ;;  %16239 = vst [vmem:[#allocation9_spill] sm:$0xff] %v13609_v5  ;;  %v13621_v57 = vld [vmem:[%s14583_s4 + $0x260] sm:$0xff] }
0x16da   :  { %4802 = vmin.xlane.f32.xlu0 %v4801_v43  ;;  %5093 = vmatpush2.msra.mxu0 %v13513_v61  ;;  %16241 = vst [vmem:[#allocation42_spill] sm:$0xff] %v13621_v57 }
0x16db   :  { %5094 = vmatprep.subr.mxu0 %v13519_v11 }
0x16dc   :  { %5095 = vmatpush2.msra.mxu0 %v13525_v25 }
0x16dd   :  { %5096 = vmatprep.subr.mxu0 %v13531_v28 }
0x16de   :  { %5097 = vmatpush2.msra.mxu0 %v13537_v3 }
0x16df   :  { %5098 = vmatprep.subr.mxu0 %v13543_v2 }
0x16e0   :  { %5099 = vmatpush2.msra.mxu0 %v13549_v63 }
0x16e1   :  { %5100 = vmatprep.subr.mxu0 %v13555_v12 }
0x16e2   :  { %5101 = vmatpush2.msra.mxu0 %v13561_v59 }
0x16e3   :  { %5102 = vmatprep.subr.mxu0 %v13567_v37 }
0x16e4   :  { %5103 = vmatpush2.msra.mxu0 %v13573_v9 }
0x16e5   :  { %5104 = vmatprep.subr.mxu0 %v13579_v45 }
0x16e6   :  { %5105 = vmatpush2.msra.mxu0 %v13585_v17 }
0x16e7   :  { %5106 = vmatprep.subr.mxu0 %v13591_v26 }
0x16e8   :  { %5107 = vmatpush2.msra.mxu0 %v13597_v0 }
0x16e9   :  { %5108 = vmatprep.subr.mxu0 %v13603_v7  ;;  %v13639_v7 = vld [vmem:[%s14583_s4 + $0x228] sm:$0xff] }
0x16ea   :  { %5109 = vmatpush2.msra.mxu0 %v13609_v5  ;;  %16244 = vst [vmem:[#allocation71_spill] sm:$0xff] %v13639_v7  ;;  %v13645_v5 = vld [vmem:[%s14583_s4 + $0x220] sm:$0xff] }
0x16eb   :  { %16245 = vst [vmem:[#allocation44_spill] sm:$0xff] %v13645_v5 }
0x1763   :  { %v13304_v4 = vpop.xlane.xlu0 %4802 }
0x1764   :  { %vm4804_vm12 = vcmp.eq.f32.partialorder %v4801_v43, %v13304_v4  ;;  %v13615_v43 = vld [vmem:[%s14583_s4 + $0x268] sm:$0xff] }
0x1765   :  { %v4805_v1 = vsel %vm4804_vm12, %v4800_v13, inf  ;;  %16240 = vst [vmem:[#allocation69_spill] sm:$0xff] %v13615_v43  ;;  %v13627_v13 = vld [vmem:[%s14583_s4 + $0x248] sm:$0xff]  ;;  %5110 = vmatprep.subr.mxu0 %v13615_v43 }
0x1766   :  { %4806 = vmin.xlane.f32.xlu1 %v4805_v1  ;;  %16242 = vst [vmem:[#allocation70_spill] sm:$0xff] %v13627_v13  ;;  %v13633_v1 = vld [vmem:[%s14583_s4 + $0x240] sm:$0xff]  ;;  %5111 = vmatpush2.msra.mxu0 %v13621_v57  ;;  %v13651_v43 = vld [vmem:[%s14583_s4 + $0x208] sm:$0xff] }
0x1767   :  { %16243 = vst [vmem:[#allocation10_spill] sm:$0xff] %v13633_v1  ;;  %5112 = vmatprep.subr.mxu0 %v13627_v13  ;;  %16246 = vst [vmem:[#allocation72_spill] sm:$0xff] %v13651_v43  ;;  %v4809_v13 = vcvt.f32.s32 %v13304_v4  ;;  %v13672_v4 = vld [vmem:[%s14583_s4 + $0x1d0] sm:$0xff] }
0x1768   :  { %5113 = vmatpush2.msra.mxu0 %v13633_v1  ;;  %v13660_v1 = vld [vmem:[%s14583_s4 + $0x1f0] sm:$0xff]  ;;  %16249 = vst [vmem:[#allocation73_spill] sm:$0xff] %v13672_v4 }
0x1769   :  { %5114 = vmatprep.subr.mxu0 %v13639_v7  ;;  %v4810_v0 = vshll.u32 %v4809_v13, 16  ;;  %16247 = vst [vmem:[#allocation58_spill] sm:$0xff] %v13660_v1  ;;  %v13666_v7 = vld [vmem:[%s14583_s4 + $0x1d8] sm:$0xff] }
0x176a   :  { %5115 = vmatpush2.msra.mxu0 %v13645_v5  ;;  %16248 = vst [vmem:[#allocation11_spill] sm:$0xff] %v13666_v7  ;;  %v13703_v13 = vld [vmem:[%s14583_s4 + $0x178] sm:$0xff] }
0x176b   :  { %5116 = vmatprep.subr.mxu0 %v13651_v43  ;;  %16254 = vst [vmem:[#allocation34_spill] sm:$0xff] %v13703_v13 }
0x17ef   :  { %v4807_v57 = vpop.xlane.xlu1 %4806 }
0x17f0   :  { %v4808_v26 = vcvt.f32.s32 %v4807_v57  ;;  %v13697_v57 = vld [vmem:[%s14583_s4 + $0x190] sm:$0xff] }
0x17f1   :  { %16253 = vst [vmem:[#allocation75_spill] sm:$0xff] %v13697_v57 }
0x17f2   :  { %v4811_v17 = vadd.s32 %v4810_v0, %v4808_v26  ;;  %v13685_v26 = vld [vmem:[%s14583_s4 + $0x1b0] sm:$0xff]  ;;  %v13691_v0 = vld [vmem:[%s14583_s4 + $0x198] sm:$0xff] }
0x17f3   :  { %16251 = vst [vmem:[#allocation33_spill] sm:$0xff] %v13685_v26  ;;  %16252 = vst [vmem:[#allocation61_spill] sm:$0xff] %v13691_v0 }
0x17f4   :  { %vm4812_vm13 = vcmp.eq.s32.totalorder %v11596_v53, %v4811_v17  ;;  %v13679_v17 = vld [vmem:[%s14583_s4 + $0x1b8] sm:$0xff] }
0x17f5   :  { %6629 = vmatmul.mubr.msk.f32.vlgmr.msra.gmra.mxu1 %vm4812_vm13, %v16149_v36  ;;  %16250 = vst [vmem:[#allocation46_spill] sm:$0xff] %v13679_v17 }
0x17f6   :  { %5189 = vmatprep.mubr.f32.mxu1 %v13266_v24  ;;  %5126 = vmatpush1.msra.mxu1 %v13660_v1 }
0x17f7   :  { %5127 = vmatprep.subr.mxu1 %v13666_v7 }
0x17f8   :  { %5128 = vmatpush1.msra.mxu1 %v13672_v4  ;;  %v13709_v4 = vld [vmem:[%s14583_s4 + $0x170] sm:$0xff] }
0x17f9   :  { %5129 = vmatprep.subr.mxu1 %v13679_v17  ;;  %16255 = vst [vmem:[#allocation35_spill] sm:$0xff] %v13709_v4  ;;  %v13715_v17 = vld [vmem:[%s14583_s4 + $0x158] sm:$0xff] }
0x17fa   :  { %5130 = vmatpush1.msra.mxu1 %v13685_v26  ;;  %16256 = vst [vmem:[#allocation62_spill] sm:$0xff] %v13715_v17  ;;  %v13721_v26 = vld [vmem:[%s14583_s4 + $0x150] sm:$0xff] }
0x17fb   :  { %5131 = vmatprep.subr.mxu1 %v13691_v0  ;;  %16257 = vst [vmem:[#allocation76_spill] sm:$0xff] %v13721_v26  ;;  %v13727_v0 = vld [vmem:[%s14583_s4 + $0x138] sm:$0xff] }
0x17fc   :  { %5132 = vmatpush1.msra.mxu1 %v13697_v57  ;;  %16258 = vst [vmem:[#allocation6_spill] sm:$0xff] %v13727_v0  ;;  %v13733_v57 = vld [vmem:[%s14583_s4 + $0x130] sm:$0xff] }
0x17fd   :  { %5133 = vmatprep.subr.mxu1 %v13703_v13  ;;  %16259 = vst [vmem:[#allocation37_spill] sm:$0xff] %v13733_v57  ;;  %v13739_v13 = vld [vmem:[%s14583_s4 + $0x118] sm:$0xff] }
0x17fe   :  { %5134 = vmatpush1.msra.mxu1 %v13709_v4  ;;  %16260 = vst [vmem:[#allocation63_spill] sm:$0xff] %v13739_v13  ;;  %v13745_v4 = vld [vmem:[%s14583_s4 + $0x110] sm:$0xff] }
0x17ff   :  { %5135 = vmatprep.subr.mxu1 %v13715_v17  ;;  %16261 = vst [vmem:[#allocation77_spill] sm:$0xff] %v13745_v4  ;;  %v13751_v17 = vld [vmem:[%s14583_s4 + $0xf8] sm:$0xff] }
0x1800   :  { %5136 = vmatpush1.msra.mxu1 %v13721_v26  ;;  %16262 = vst [vmem:[#allocation36_spill] sm:$0xff] %v13751_v17  ;;  %v13757_v26 = vld [vmem:[%s14583_s4 + $0xf0] sm:$0xff] }
0x1801   :  { %5137 = vmatprep.subr.mxu1 %v13727_v0  ;;  %16263 = vst [vmem:[#allocation39_spill] sm:$0xff] %v13757_v26  ;;  %v13763_v0 = vld [vmem:[%s14583_s4 + $0xd8] sm:$0xff] }
0x1802   :  { %5138 = vmatpush1.msra.mxu1 %v13733_v57  ;;  %16264 = vst [vmem:[#allocation64_spill] sm:$0xff] %v13763_v0  ;;  %v13769_v57 = vld [vmem:[%s14583_s4 + $0xd0] sm:$0xff] }
0x1803   :  { %5139 = vmatprep.subr.mxu1 %v13739_v13  ;;  %16265 = vst [vmem:[#allocation78_spill] sm:$0xff] %v13769_v57  ;;  %v13775_v13 = vld [vmem:[%s14583_s4 + $0xb8] sm:$0xff] }
0x1804   :  { %5140 = vmatpush1.msra.mxu1 %v13745_v4  ;;  %16266 = vst [vmem:[#allocation7_spill] sm:$0xff] %v13775_v13  ;;  %v13781_v4 = vld [vmem:[%s14583_s4 + $0xb0] sm:$0xff] }
0x1805   :  { %5141 = vmatprep.subr.mxu1 %v13751_v17  ;;  %16267 = vst [vmem:[#allocation41_spill] sm:$0xff] %v13781_v4  ;;  %v13787_v17 = vld [vmem:[%s14583_s4 + $0x98] sm:$0xff] }
0x1806   :  { %5142 = vmatpush1.msra.mxu1 %v13757_v26  ;;  %16268 = vst [vmem:[#allocation79_spill] sm:$0xff] %v13787_v17  ;;  %v13793_v26 = vld [vmem:[%s14583_s4 + $0x90] sm:$0xff] }
0x1807   :  { %5143 = vmatprep.subr.mxu1 %v13763_v0  ;;  %16269 = vst [vmem:[#allocation43_spill] sm:$0xff] %v13793_v26  ;;  %v13799_v0 = vld [vmem:[%s14583_s4 + $0x78] sm:$0xff] }
0x1808   :  { %5144 = vmatpush1.msra.mxu1 %v13769_v57  ;;  %16270 = vst [vmem:[#allocation80_spill] sm:$0xff] %v13799_v0  ;;  %v13805_v57 = vld [vmem:[%s14583_s4 + $0x70] sm:$0xff] }
0x1809   :  { %5145 = vmatprep.subr.mxu1 %v13775_v13  ;;  %16271 = vst [vmem:[#allocation45_spill] sm:$0xff] %v13805_v57  ;;  %v13811_v13 = vld [vmem:[%s14583_s4 + $0x58] sm:$0xff] }
0x180a   :  { %5146 = vmatpush1.msra.mxu1 %v13781_v4  ;;  %16272 = vst [vmem:[#allocation81_spill] sm:$0xff] %v13811_v13  ;;  %v13817_v4 = vld [vmem:[%s14583_s4 + $0x50] sm:$0xff] }
0x180b   :  { %5147 = vmatprep.subr.mxu1 %v13787_v17  ;;  %16273 = vst [vmem:[#allocation19_spill] sm:$0xff] %v13817_v4  ;;  %v13823_v17 = vld [vmem:[%s14583_s4 + $0x38] sm:$0xff] }
0x180c   :  { %5148 = vmatpush1.msra.mxu1 %v13793_v26  ;;  %16274 = vst [vmem:[#allocation47_spill] sm:$0xff] %v13823_v17  ;;  %v13829_v26 = vld [vmem:[%s14583_s4 + $0x30] sm:$0xff] }
0x180d   :  { %5149 = vmatprep.subr.mxu1 %v13799_v0  ;;  %16275 = vst [vmem:[#allocation20_spill] sm:$0xff] %v13829_v26  ;;  %v13835_v0 = vld [vmem:[%s14583_s4 + $0x18] sm:$0xff] }
0x180e   :  { %5150 = vmatpush1.msra.mxu1 %v13805_v57  ;;  %16276 = vst [vmem:[#allocation82_spill] sm:$0xff] %v13835_v0  ;;  %v13841_v57 = vld [vmem:[%s14583_s4 + $0x10] sm:$0xff] }
0x180f   :  { %5151 = vmatprep.subr.mxu1 %v13811_v13  ;;  %16277 = vst [vmem:[#allocation21_spill] sm:$0xff] %v13841_v57  ;;  %v13847_v13 = vld [vmem:[%s14583_s4 + $0x3f8] sm:$0xff] }
0x1810   :  { %5152 = vmatpush1.msra.mxu1 %v13817_v4  ;;  %16278 = vst [vmem:[#allocation49_spill] sm:$0xff] %v13847_v13  ;;  %v13853_v4 = vld [vmem:[%s14583_s4 + $0x3f0] sm:$0xff] }
0x1811   :  { %5153 = vmatprep.subr.mxu1 %v13823_v17  ;;  %16279 = vst [vmem:[#allocation22_spill] sm:$0xff] %v13853_v4  ;;  %v13859_v17 = vld [vmem:[%s14583_s4 + $0x3d8] sm:$0xff] }
0x1812   :  { %5154 = vmatpush1.msra.mxu1 %v13829_v26  ;;  %16280 = vst [vmem:[#allocation83_spill] sm:$0xff] %v13859_v17  ;;  %v13865_v26 = vld [vmem:[%s14583_s4 + $0x3d0] sm:$0xff] }
0x1813   :  { %5155 = vmatprep.subr.mxu1 %v13835_v0  ;;  %16281 = vst [vmem:[#allocation23_spill] sm:$0xff] %v13865_v26  ;;  %v13871_v0 = vld [vmem:[%s14583_s4 + $0x3b8] sm:$0xff] }
0x1814   :  { %5156 = vmatpush1.msra.mxu1 %v13841_v57  ;;  %16282 = vst [vmem:[#allocation51_spill] sm:$0xff] %v13871_v0  ;;  %v13877_v57 = vld [vmem:[%s14583_s4 + $0x3b0] sm:$0xff] }
0x1815   :  { %5157 = vmatprep.subr.mxu1 %v13847_v13  ;;  %16283 = vst [vmem:[#allocation24_spill] sm:$0xff] %v13877_v57  ;;  %v13883_v13 = vld [vmem:[%s14583_s4 + $0x398] sm:$0xff] }
0x1816   :  { %5158 = vmatpush2.msra.mxu1 %v13853_v4  ;;  %16284 = vst [vmem:[#allocation84_spill] sm:$0xff] %v13883_v13  ;;  %v13889_v4 = vld [vmem:[%s14583_s4 + $0x390] sm:$0xff] }
0x1817   :  { %5159 = vmatprep.subr.mxu1 %v13859_v17  ;;  %16285 = vst [vmem:[#allocation25_spill] sm:$0xff] %v13889_v4  ;;  %v13895_v17 = vld [vmem:[%s14583_s4 + $0x378] sm:$0xff] }
0x1818   :  { %5160 = vmatpush2.msra.mxu1 %v13865_v26  ;;  %16286 = vst [vmem:[#allocation74_spill] sm:$0xff] %v13895_v17  ;;  %v13901_v26 = vld [vmem:[%s14583_s4 + $0x370] sm:$0xff] }
0x1819   :  { %5161 = vmatprep.subr.mxu1 %v13871_v0  ;;  %16287 = vst [vmem:[#allocation53_spill] sm:$0xff] %v13901_v26  ;;  %v13907_v0 = vld [vmem:[%s14583_s4 + $0x358] sm:$0xff] }
0x181a   :  { %5162 = vmatpush2.msra.mxu1 %v13877_v57  ;;  %16288 = vst [vmem:[#allocation12_spill] sm:$0xff] %v13907_v0  ;;  %v13913_v57 = vld [vmem:[%s14583_s4 + $0x350] sm:$0xff] }
0x181b   :  { %5163 = vmatprep.subr.mxu1 %v13883_v13  ;;  %16289 = vst [vmem:[#allocation26_spill] sm:$0xff] %v13913_v57  ;;  %v13919_v13 = vld [vmem:[%s14583_s4 + $0x338] sm:$0xff] }
0x181c   :  { %5164 = vmatpush2.msra.mxu1 %v13889_v4  ;;  %16290 = vst [vmem:[#allocation48_spill] sm:$0xff] %v13919_v13  ;;  %v13925_v4 = vld [vmem:[%s14583_s4 + $0x330] sm:$0xff] }
0x181d   :  { %5165 = vmatprep.subr.mxu1 %v13895_v17  ;;  %16291 = vst [vmem:[#allocation85_spill] sm:$0xff] %v13925_v4  ;;  %v13931_v17 = vld [vmem:[%s14583_s4 + $0x318] sm:$0xff] }
0x181e   :  { %5166 = vmatpush2.msra.mxu1 %v13901_v26  ;;  %16292 = vst [vmem:[#allocation13_spill] sm:$0xff] %v13931_v17  ;;  %v13937_v26 = vld [vmem:[%s14583_s4 + $0x310] sm:$0xff] }
0x181f   :  { %5167 = vmatprep.subr.mxu1 %v13907_v0  ;;  %16293 = vst [vmem:[#allocation27_spill] sm:$0xff] %v13937_v26  ;;  %v13943_v0 = vld [vmem:[%s14583_s4 + $0x2f8] sm:$0xff] }
0x1820   :  { %5168 = vmatpush2.msra.mxu1 %v13913_v57  ;;  %16294 = vst [vmem:[#allocation50_spill] sm:$0xff] %v13943_v0  ;;  %v13949_v57 = vld [vmem:[%s14583_s4 + $0x2f0] sm:$0xff] }
0x1821   :  { %5169 = vmatprep.subr.mxu1 %v13919_v13  ;;  %16295 = vst [vmem:[#allocation55_spill] sm:$0xff] %v13949_v57  ;;  %v13955_v13 = vld [vmem:[%s14583_s4 + $0x2d8] sm:$0xff] }
0x1822   :  { %5170 = vmatpush2.msra.mxu1 %v13925_v4  ;;  %16296 = vst [vmem:[#allocation14_spill] sm:$0xff] %v13955_v13  ;;  %v13961_v4 = vld [vmem:[%s14583_s4 + $0x2d0] sm:$0xff] }
0x1823   :  { %5171 = vmatprep.subr.mxu1 %v13931_v17  ;;  %16297 = vst [vmem:[#allocation28_spill] sm:$0xff] %v13961_v4  ;;  %v13967_v17 = vld [vmem:[%s14583_s4 + $0x2b8] sm:$0xff] }
0x1824   :  { %5172 = vmatpush2.msra.mxu1 %v13937_v26  ;;  %16298 = vst [vmem:[#allocation52_spill] sm:$0xff] %v13967_v17  ;;  %v13973_v26 = vld [vmem:[%s14583_s4 + $0x2b0] sm:$0xff] }
0x1825   :  { %5173 = vmatprep.subr.mxu1 %v13943_v0  ;;  %16299 = vst [vmem:[#allocation86_spill] sm:$0xff] %v13973_v26  ;;  %v13979_v0 = vld [vmem:[%s14583_s4 + $0x298] sm:$0xff] }
0x1826   :  { %5174 = vmatpush2.msra.mxu1 %v13949_v57  ;;  %16300 = vst [vmem:[#allocation15_spill] sm:$0xff] %v13979_v0  ;;  %v13985_v57 = vld [vmem:[%s14583_s4 + $0x290] sm:$0xff] }
0x1827   :  { %5175 = vmatprep.subr.mxu1 %v13955_v13  ;;  %16301 = vst [vmem:[#allocation29_spill] sm:$0xff] %v13985_v57  ;;  %v13991_v13 = vld [vmem:[%s14583_s4 + $0x278] sm:$0xff] }
0x1828   :  { %5176 = vmatpush2.msra.mxu1 %v13961_v4  ;;  %16302 = vst [vmem:[#allocation54_spill] sm:$0xff] %v13991_v13  ;;  %v13997_v4 = vld [vmem:[%s14583_s4 + $0x270] sm:$0xff] }
0x1829   :  { %5177 = vmatprep.subr.mxu1 %v13967_v17  ;;  %16303 = vst [vmem:[#allocation57_spill] sm:$0xff] %v13997_v4  ;;  %v14003_v17 = vld [vmem:[%s14583_s4 + $0x258] sm:$0xff] }
0x182a   :  { %5178 = vmatpush2.msra.mxu1 %v13973_v26  ;;  %16304 = vst [vmem:[#allocation16_spill] sm:$0xff] %v14003_v17  ;;  %v14009_v26 = vld [vmem:[%s14583_s4 + $0x250] sm:$0xff] }
0x182b   :  { %5179 = vmatprep.subr.mxu1 %v13979_v0  ;;  %16305 = vst [vmem:[#allocation30_spill] sm:$0xff] %v14009_v26  ;;  %v14015_v0 = vld [vmem:[%s14583_s4 + $0x238] sm:$0xff] }
0x182c   :  { %5180 = vmatpush2.msra.mxu1 %v13985_v57  ;;  %16306 = vst [vmem:[#allocation56_spill] sm:$0xff] %v14015_v0  ;;  %v14021_v57 = vld [vmem:[%s14583_s4 + $0x230] sm:$0xff] }
0x182d   :  { %5181 = vmatprep.subr.mxu1 %v13991_v13  ;;  %16307 = vst [vmem:[#allocation87_spill] sm:$0xff] %v14021_v57  ;;  %v14027_v13 = vld [vmem:[%s14583_s4 + $0x218] sm:$0xff] }
0x182e   :  { %5182 = vmatpush2.msra.mxu1 %v13997_v4  ;;  %16308 = vst [vmem:[#allocation17_spill] sm:$0xff] %v14027_v13 }
0x182f   :  { %5183 = vmatprep.subr.mxu1 %v14003_v17  ;;  %v14035_v17 = vld [vmem:[%s14583_s4 + $0x200] sm:$0xff] }
0x1830   :  { %5184 = vmatpush2.msra.mxu1 %v14009_v26  ;;  %16309 = vst [vmem:[#allocation31_spill] sm:$0xff] %v14035_v17  ;;  %v14040_v26 = vld [vmem:[%s14583_s4 + $0x210] sm:$0xff]  ;;  %5117 = vmatpush2.msra.mxu0 %v14035_v17 }
0x1831   :  { %5185 = vmatprep.subr.mxu1 %v14015_v0  ;;  %16310 = vst [vmem:[#allocation59_spill] sm:$0xff] %v14040_v26  ;;  %6631 = vmatprep.subr.mxu0 %v15899_v40  ;;  %v14053_v0 = vld [vmem:[%s14585_s6 + $0x78] sm:$0xff] }
0x1832   :  { %5186 = vmatpush2.msra.mxu1 %v14021_v57  ;;  %16311 = vst [vmem:[#allocation18_spill] sm:$0xff] %v14053_v0 }
0x1833   :  { %5187 = vmatprep.subr.mxu1 %v14027_v13 }
0x1834   :  { %5188 = vmatpush2.msra.mxu1 %v14040_v26  ;;  %v14121_v26 = vld [vmem:[%s14585_s6 + $0x28] sm:$0xff] }
0x1835   :  { %6666 = vmatprep.subr.mxu1 %v15899_v40  ;;  %16321 = vst [vmem:[#allocation95_spill] sm:$0xff] %v14121_v26 }
0x18b5   :  { %v4897_v57 = vpop.f32.mrf.mxu1 }
0x18b6   :  { %5119 = vmatmul.mubr.f32.vlgmr.msra.gmra.mxu0 %v4897_v57  ;;  %5190 = vmatmul.mubr.f32.vlgmr.msra.gmra.mxu1 %v4897_v57  ;;  %v14060_v57 = vld [vmem:[%s14585_s6 + $0x70] sm:$0xff] }
0x18b7   :  { %v6630_v13 = vpop.f32.mrf.mxu1  ;;  %6663 = vmatprep.mubr.msk.f32.mxu0 %vm6916_vm0, %v15899_v40  ;;  %6698 = vmatprep.mubr.msk.f32.mxu1 %vm6916_vm0, %v15899_v40  ;;  %16312 = vst [vmem:[#allocation32_spill] sm:$0xff] %v14060_v57 }
0x18b8   :  { %6632 = vmatpush3.msra.mxu0 %v14053_v0  ;;  %v14067_v13 = vld [vmem:[%s14585_s6 + $0x68] sm:$0xff]  ;;  %v14074_v0 = vld [vmem:[%s14585_s6 + $0x60] sm:$0xff] }
0x18b9   :  { %6633 = vmatprep.subr.mxu0 %v15899_v40  ;;  %16313 = vst [vmem:[#allocation60_spill] sm:$0xff] %v14067_v13  ;;  %16314 = vst [vmem:[#allocation88_spill] sm:$0xff] %v14074_v0 }
0x18ba   :  { %6634 = vmatpush3.msra.mxu0 %v14060_v57  ;;  %v14081_v57 = vld [vmem:[%s14585_s6 + $0x58] sm:$0xff] }
0x18bb   :  { %6635 = vmatprep.subr.mxu0 %v15899_v40  ;;  %16315 = vst [vmem:[#allocation89_spill] sm:$0xff] %v14081_v57 }
0x18bc   :  { %6636 = vmatpush3.msra.mxu0 %v14067_v13  ;;  %v14088_v13 = vld [vmem:[%s14585_s6 + $0x50] sm:$0xff] }
0x18bd   :  { %6637 = vmatprep.subr.mxu0 %v15899_v40  ;;  %16316 = vst [vmem:[#allocation90_spill] sm:$0xff] %v14088_v13 }
0x18be   :  { %6638 = vmatpush3.msra.mxu0 %v14074_v0  ;;  %v14095_v0 = vld [vmem:[%s14585_s6 + $0x48] sm:$0xff] }
0x18bf   :  { %6639 = vmatprep.subr.mxu0 %v15899_v40  ;;  %16317 = vst [vmem:[#allocation91_spill] sm:$0xff] %v14095_v0 }
0x18c0   :  { %6640 = vmatpush3.msra.mxu0 %v14081_v57  ;;  %v14102_v57 = vld [vmem:[%s14585_s6 + $0x40] sm:$0xff] }
0x18c1   :  { %6641 = vmatprep.subr.mxu0 %v15899_v40  ;;  %16318 = vst [vmem:[#allocation92_spill] sm:$0xff] %v14102_v57 }
0x18c2   :  { %6642 = vmatpush3.msra.mxu0 %v14088_v13  ;;  %v14107_v13 = vld [vmem:[%s14585_s6 + $0x38] sm:$0xff] }
0x18c3   :  { %6643 = vmatprep.subr.mxu0 %v15899_v40  ;;  %16319 = vst [vmem:[#allocation93_spill] sm:$0xff] %v14107_v13 }
0x18c4   :  { %6644 = vmatpush3.msra.mxu0 %v14095_v0  ;;  %v14114_v0 = vld [vmem:[%s14585_s6 + $0x30] sm:$0xff] }
0x18c5   :  { %6645 = vmatprep.subr.mxu0 %v15899_v40  ;;  %16320 = vst [vmem:[#allocation94_spill] sm:$0xff] %v14114_v0 }
0x18c6   :  { %6646 = vmatpush3.msra.mxu0 %v14102_v57  ;;  %v14128_v57 = vld [vmem:[%s14585_s6 + $0x20] sm:$0xff] }
0x18c7   :  { %6647 = vmatprep.subr.mxu0 %v15899_v40  ;;  %16322 = vst [vmem:[#allocation96_spill] sm:$0xff] %v14128_v57 }
0x18c8   :  { %6648 = vmatpush3.msra.mxu0 %v14107_v13  ;;  %v14135_v13 = vld [vmem:[%s14585_s6 + $0x18] sm:$0xff] }
0x18c9   :  { %6649 = vmatprep.subr.mxu0 %v15899_v40  ;;  %16323 = vst [vmem:[#allocation97_spill] sm:$0xff] %v14135_v13 }
0x18ca   :  { %6650 = vmatpush3.msra.mxu0 %v14114_v0  ;;  %v14142_v0 = vld [vmem:[%s14585_s6 + $0x10] sm:$0xff] }
0x18cb   :  { %6651 = vmatprep.subr.mxu0 %v15899_v40  ;;  %16324 = vst [vmem:[#allocation98_spill] sm:$0xff] %v14142_v0 }
0x18cc   :  { %6652 = vmatpush3.msra.mxu0 %v14121_v26  ;;  %v14149_v26 = vld [vmem:[%s14585_s6 + $0x8] sm:$0xff] }
0x18cd   :  { %6653 = vmatprep.subr.mxu0 %v15899_v40  ;;  %16325 = vst [vmem:[#allocation99_spill] sm:$0xff] %v14149_v26 }
0x18ce   :  { %6654 = vmatpush3.msra.mxu0 %v14128_v57  ;;  %v14156_v57 = vld [vmem:[%s14585_s6] sm:$0xff] }
0x18cf   :  { %6655 = vmatprep.subr.mxu0 %v15899_v40  ;;  %16326 = vst [vmem:[#allocation100_spill] sm:$0xff] %v14156_v57 }
0x18d0   :  { %6656 = vmatpush3.msra.mxu0 %v14135_v13  ;;  %v5032_v13 = vld [vmem:[%s14586_s5] sm:$0xf] }
0x18d1   :  { %6657 = vmatprep.subr.mxu0 %v15899_v40  ;;  %v5041_v36 = vrot.slane %v5032_v13, %v16230_v31  ;;  %v5049_v9 = vrot.slane %v5032_v13, %v7891_v18 }
0x18d2   :  { %6658 = vmatpush3.msra.mxu0 %v14142_v0  ;;  %v5037_v0 = vrot.slane %v5032_v13, %v16229_v35  ;;  %v5045_v35 = vrot.slane %v5032_v13, %v7894_v20  ;;  %v14317_v13 = vld [vmem:[%s14589_s8 + $0x20] sm:$0xff] }
0x18d3   :  { %6659 = vmatprep.subr.mxu0 %v15899_v40 }
0x18d4   :  { %6660 = vmatpush3.msra.mxu0 %v14149_v26 }
0x18d5   :  { %6661 = vmatprep.subr.mxu0 %v15899_v40 }
0x18d6   :  { %6662 = vmatpush3.msra.mxu0 %v14156_v57 }
0x18d7   :  { %5636 = vmatprep.subr.mxu0 %v13310_v48 }
0x1976   :  { %v5120_v4 = vpop.f32.mrf.mxu0  ;;  %v5191_v48 = vpop.f32.mrf.mxu1 }
0x1977   :  { %v5121_v7 = vadd.f32 %v5120_v4, %v5037_v0  ;;  %v5192_v0 = vadd.f32 %v5191_v48, %v5045_v35  ;;  %v14203_v35 = vld [vmem:[%s14587_s7] ss:$0 sm:$0xff]  ;;  %v14324_v48 = vld [vmem:[%s14589_s8 + $0x18] sm:$0xff] }
0x1978   :  { %v5122_v17 = vpop.f32.mrf.mxu0  ;;  %v5193_v37 = vpop.f32.mrf.mxu1 }
0x1979   :  { %v6129_v1 = vmul.f32 -1.442695, %v5121_v7  ;;  %v5123_v26 = vadd.f32 %v5122_v17, %v5041_v36  ;;  %v5194_v4 = vadd.f32 %v5193_v37, %v5049_v9  ;;  %v14296_v37 = vld [vmem:[%s14589_s8 + $0x38] sm:$0xff]  ;;  %v14303_v9 = vld [vmem:[%s14589_s8 + $0x30] sm:$0xff] }
0x197b   :  { %6895 = vpow2.f32 %v6129_v1  ;;  %v6130_v43 = vmul.f32 -1.442695, %v5123_v26 }
0x197d   :  { %6897 = vpow2.f32 %v6130_v43 }
0x1988   :  { %v6896_v5 = vpop.eup %6895 }
0x1989   :  { %v5199_v57 = vadd.f32 1.0, %v6896_v5 }
0x198a   :  { %v6898_v45 = vpop.eup %6897 }
0x198b   :  { %6899 = vrcp.f32 %v5199_v57  ;;  %v5205_v59 = vadd.f32 1.0, %v6898_v45  ;;  %v14310_v45 = vld [vmem:[%s14589_s8 + $0x28] sm:$0xff] }
0x198d   :  { %6901 = vrcp.f32 %v5205_v59  ;;  %v14289_v59 = vld [vmem:[%s14589_s8 + $0x40] sm:$0xff] }
0x1998   :  { %v6900_v7 = vpop.eup %6899 }
0x1999   :  { %v5208_v31 = vmul.f32 %v6900_v7, %v5194_v4 }
0x199a   :  { %v6902_v36 = vpop.eup %6901 }
0x199b   :  { %v5209_v1 = vadd.f32 %v5208_v31, %v5192_v0  ;;  %v5211_v43 = vsub.f32 1.0, %v6902_v36  ;;  %v5213_v26 = vmul.f32 %v6902_v36, %v13266_v24  ;;  %v14333_v36 = vld [vmem:[%s14589_s8 + $0x10] sm:$0xff] }
0x199d   :  { %6903 = vtanh.f32 %v5209_v1 }
0x19aa   :  { %v6904_v17 = vpop.eup %6903 }
0x19ab   :  { %v5212_v5 = vmul.f32 %v6904_v17, %v5211_v43  ;;  %v14340_v43 = vld [vmem:[%s14589_s8 + $0x8] sm:$0xff]  ;;  %v14347_v17 = vld [vmem:[%s14589_s8] sm:$0xff] }
0x19ad   :  { %v14170_v57 = vadd.f32 %v5213_v26, %v5212_v5  ;;  %v5494_v5 = vld [vmem:[%s14583_s4 + $0x40] sm:$0xff]  ;;  %v5491_v26 = vld [vmem:[%s14583_s4 + $0x28] sm:$0xff] }
0x19af   :  { %6664 = vmatmul.mubr.f32.vlgmr.msra.gmra.mxu0 %v14170_v57 }
0x19b0   :  { %5700 = vmatprep.mubr.f32.mxu0 %v14170_v57  ;;  %5637 = vmatpush1.msra.mxu0 %v13320_v8 }
0x19b1   :  { %5638 = vmatprep.subr.mxu0 %v13327_v22 }
0x19b2   :  { %5639 = vmatpush1.msra.mxu0 %v13333_v62 }
0x19b3   :  { %5640 = vmatprep.subr.mxu0 %v13338_v60 }
0x19b4   :  { %5641 = vmatpush1.msra.mxu0 %v13344_v29 }
0x19b5   :  { %5642 = vmatprep.subr.mxu0 %v13350_v51 }
0x19b6   :  { %5643 = vmatpush1.msra.mxu0 %v13356_v10 }
0x19b7   :  { %5644 = vmatprep.subr.mxu0 %v13362_v38 }
0x19b8   :  { %5645 = vmatpush1.msra.mxu0 %v13368_v46 }
0x19b9   :  { %5646 = vmatprep.subr.mxu0 %v13374_v14 }
0x19ba   :  { %5647 = vmatpush1.msra.mxu0 %v13380_v6 }
0x19bb   :  { %5648 = vmatprep.subr.mxu0 %v13386_v52 }
0x19bc   :  { %5649 = vmatpush1.msra.mxu0 %v13392_v54 }
0x19bd   :  { %5650 = vmatprep.subr.mxu0 %v13398_v55 }
0x19be   :  { %5651 = vmatpush1.msra.mxu0 %v13404_v41 }
0x19bf   :  { %5652 = vmatprep.subr.mxu0 %v13410_v56 }
0x19c0   :  { %5653 = vmatpush1.msra.mxu0 %v13416_v39 }
0x19c1   :  { %5654 = vmatprep.subr.mxu0 %v13422_v30 }
0x19c2   :  { %5655 = vmatpush1.msra.mxu0 %v13428_v47 }
0x19c3   :  { %5656 = vmatprep.subr.mxu0 %v13434_v32  ;;  %v14242_v32 = vld [vmem:[%s14589_s8 + $0x78] sm:$0xff] }
0x19c4   :  { %5657 = vmatpush1.msra.mxu0 %v13440_v34  ;;  %v14247_v34 = vld [vmem:[%s14589_s8 + $0x70] sm:$0xff]  ;;  %6667 = vmatpush3.msra.mxu1 %v14242_v32 }
0x19c5   :  { %5658 = vmatprep.subr.mxu0 %v13446_v23  ;;  %6668 = vmatprep.subr.mxu1 %v15899_v40  ;;  %v14254_v23 = vld [vmem:[%s14589_s8 + $0x68] sm:$0xff] }
0x19c6   :  { %5659 = vmatpush1.msra.mxu0 %v13452_v42  ;;  %6669 = vmatpush3.msra.mxu1 %v14247_v34  ;;  %v14261_v42 = vld [vmem:[%s14589_s8 + $0x60] sm:$0xff] }
0x19c7   :  { %5660 = vmatprep.subr.mxu0 %v13458_v44  ;;  %6670 = vmatprep.subr.mxu1 %v15899_v40  ;;  %v14268_v44 = vld [vmem:[%s14589_s8 + $0x58] sm:$0xff] }
0x19c8   :  { %5661 = vmatpush1.msra.mxu0 %v13464_v16  ;;  %6671 = vmatpush3.msra.mxu1 %v14254_v23  ;;  %v14275_v16 = vld [vmem:[%s14589_s8 + $0x50] sm:$0xff] }
0x19c9   :  { %5662 = vmatprep.subr.mxu0 %v13470_v49  ;;  %6672 = vmatprep.subr.mxu1 %v15899_v40  ;;  %v14282_v49 = vld [vmem:[%s14589_s8 + $0x48] sm:$0xff] }
0x19ca   :  { %6673 = vmatpush3.msra.mxu1 %v14261_v42  ;;  %5663 = vmatpush1.msra.mxu0 %v5494_v5  ;;  %v16356_v5 = vld [vmem:[#allocation6_spill] sm:$0xff] }
0x19cb   :  { %6674 = vmatprep.subr.mxu1 %v15899_v40  ;;  %5664 = vmatprep.subr.mxu0 %v5491_v26  ;;  %v16357_v26 = vld [vmem:[#allocation37_spill] sm:$0xff] }
0x19cc   :  { %6675 = vmatpush3.msra.mxu1 %v14268_v44 }
0x19cd   :  { %6676 = vmatprep.subr.mxu1 %v15899_v40 }
0x19ce   :  { %6677 = vmatpush3.msra.mxu1 %v14275_v16 }
0x19cf   :  { %6678 = vmatprep.subr.mxu1 %v15899_v40 }
0x19d0   :  { %6679 = vmatpush3.msra.mxu1 %v14282_v49 }
0x19d1   :  { %6680 = vmatprep.subr.mxu1 %v15899_v40 }
0x19d2   :  { %6681 = vmatpush3.msra.mxu1 %v14289_v59 }
0x19d3   :  { %6682 = vmatprep.subr.mxu1 %v15899_v40 }
0x19d4   :  { %6683 = vmatpush3.msra.mxu1 %v14296_v37 }
0x19d5   :  { %6684 = vmatprep.subr.mxu1 %v15899_v40 }
0x19d6   :  { %6685 = vmatpush3.msra.mxu1 %v14303_v9 }
0x19d7   :  { %6686 = vmatprep.subr.mxu1 %v15899_v40 }
0x19d8   :  { %6687 = vmatpush3.msra.mxu1 %v14310_v45 }
0x19d9   :  { %6688 = vmatprep.subr.mxu1 %v15899_v40 }
0x19da   :  { %6689 = vmatpush3.msra.mxu1 %v14317_v13 }
0x19db   :  { %6690 = vmatprep.subr.mxu1 %v15899_v40 }
0x19dc   :  { %6691 = vmatpush3.msra.mxu1 %v14324_v48 }
0x19dd   :  { %6692 = vmatprep.subr.mxu1 %v15899_v40 }
0x19de   :  { %6693 = vmatpush3.msra.mxu1 %v14333_v36 }
0x19df   :  { %6694 = vmatprep.subr.mxu1 %v15899_v40 }
0x19e0   :  { %6695 = vmatpush3.msra.mxu1 %v14340_v43 }
0x19e1   :  { %6696 = vmatprep.subr.mxu1 %v15899_v40 }
0x19e2   :  { %6697 = vmatpush3.msra.mxu1 %v14347_v17 }
0x19e3   :  { %5707 = vmatprep.subr.mxu1 %v13315_v19  ;;  %v5486_v19 = vld [vmem:[%s14583_s4] sm:$0xff] }
0x1a6f   :  { %v5305_v31 = vpop.f32.mrf.mxu0 }
0x1a70   :  { %v5306_v24 = vadd.f32 %v14203_v35, %v5305_v31  ;;  %v5490_v31 = vld [vmem:[%s14583_s4 + $0x20] sm:$0xff] }
0x1a71   :  { %v6665_v8 = vpop.f32.mrf.mxu0  ;;  %5665 = vmatpush1.msra.mxu0 %v5490_v31  ;;  %v16358_v31 = vld [vmem:[#allocation63_spill] sm:$0xff] }
0x1a72   :  { %v5310_v22 = vcombine.high %v5306_v24, %v5306_v24  ;;  %v5317_v62 = vrot.slane %v5306_v24, %v11604_v15  ;;  %v5375_v60 = vsel %vm3046_vm1, %v5306_v24, -inf  ;;  %v5487_v24 = vld [vmem:[%s14583_s4 + $0x8] sm:$0xff] }
0x1a73   :  { %5376 = vmax.xlane.f32.xlu0 %v5375_v60  ;;  %5666 = vmatprep.subr.mxu0 %v5487_v24  ;;  %v5611_v8 = vld [vmem:[%s14583_s4 + $0x3e8] sm:$0xff]  ;;  %v16359_v24 = vld [vmem:[#allocation77_spill] sm:$0xff] }
0x1a74   :  { %v5324_v29 = vrot.slane %v5310_v22, %v11604_v15  ;;  %v5325_v51 = vcombine.high %v5317_v62, %v5317_v62  ;;  %v5333_v10 = vrot.slane %v5317_v62, %v11604_v15  ;;  %6132 = vst.sshfl [vmem:[%s14588_s9 + $0x4] sm:$0x1 pattern:$0x73625140] %v5317_v62  ;;  %5667 = vmatpush1.msra.mxu0 %v5486_v19  ;;  %v5610_v22 = vld [vmem:[%s14583_s4 + $0x3e0] sm:$0xff]  ;;  %v16360_v19 = vld [vmem:[#allocation36_spill] sm:$0xff] }
0x1a75   :  { %5668 = vmatprep.subr.mxu0 %v5611_v8  ;;  %v16340_v62 = vld [vmem:[#allocation71_spill] sm:$0xff] }
0x1a76   :  { %v5326_v38 = vcombine.high %v5324_v29, %v5324_v29  ;;  %v5340_v46 = vrot.slane %v5324_v29, %v11604_v15  ;;  %v5347_v14 = vrot.slane %v5325_v51, %v11604_v15  ;;  %v5355_v6 = vcombine.high %v5333_v10, %v5333_v10  ;;  %6133 = vst.sshfl [vmem:[%s14588_s9 + $0xc] sm:$0x1 pattern:$0x73625140] %v5325_v51  ;;  %v16343_v51 = vld [vmem:[#allocation31_spill] sm:$0xff] }
0x1a77   :  { %6134 = vst.sshfl [vmem:[%s14588_s9 + $0x24] sm:$0x1 pattern:$0x73625140] %v5324_v29  ;;  %5669 = vmatpush2.msra.mxu0 %v5610_v22  ;;  %v16342_v29 = vld [vmem:[#allocation72_spill] sm:$0xff]  ;;  %v16361_v8 = vld [vmem:[#allocation39_spill] sm:$0xff] }
0x1a78   :  { %v5354_v52 = vrot.slane %v5326_v38, %v11604_v15  ;;  %v5356_v54 = vcombine.high %v5340_v46, %v5340_v46  ;;  %v5357_v55 = vcombine.high %v5347_v14, %v5347_v14  ;;  %5369 = vst [vmem:[%s14588_s9 + $0x14] sm:$0x1] %v5355_v6  ;;  %6135 = vst.sshfl [vmem:[%s14588_s9 + $0x2c] sm:$0x1 pattern:$0x73625140] %v5326_v38  ;;  %5670 = vmatprep.subr.mxu0 %v13483_v58 }
0x1a79   :  { %5671 = vmatpush2.msra.mxu0 %v13489_v50  ;;  %v16327_v58 = vld [vmem:[#allocation3_spill] sm:$0xff]  ;;  %v16328_v50 = vld [vmem:[#allocation65_spill] sm:$0xff]  ;;  %v16362_v22 = vld [vmem:[#allocation64_spill] sm:$0xff] }
0x1a7a   :  { %v5358_v41 = vcombine.high %v5354_v52, %v5354_v52  ;;  %5370 = vst [vmem:[%s14588_s9 + $0x1c] sm:$0x1] %v5357_v55  ;;  %5373 = vst [vmem:[%s14588_s9 + $0x34] sm:$0x1] %v5356_v54  ;;  %5672 = vmatprep.subr.mxu0 %v13495_v33  ;;  %v16329_v33 = vld [vmem:[#allocation38_spill] sm:$0xff]  ;;  %v16344_v52 = vmov 1.0  }
0x1a7b   :  { %5673 = vmatpush2.msra.mxu0 %v13501_v27  ;;  %v16330_v27 = vld [vmem:[#allocation66_spill] sm:$0xff]  ;;  %v16346_v55 = vld [vmem:[#allocation11_spill] sm:$0xff] }
0x1a7c   :  { %5374 = vst [vmem:[%s14588_s9 + $0x3c] sm:$0x1] %v5358_v41  ;;  %5674 = vmatprep.subr.mxu0 %v13507_v21  ;;  %v16331_v21 = vld [vmem:[#allocation8_spill] sm:$0xff]  ;;  %v16345_v54 = vld [vmem:[#allocation58_spill] sm:$0xff]  ;;  %v16347_v41 = vld [vmem:[#allocation73_spill] sm:$0xff] }
0x1a7d   :  { %5675 = vmatpush2.msra.mxu0 %v13513_v61  ;;  %v16332_v61 = vld [vmem:[#allocation67_spill] sm:$0xff] }
0x1a7e   :  { %5676 = vmatprep.subr.mxu0 %v13519_v11  ;;  %v16333_v11 = vld [vmem:[#allocation40_spill] sm:$0xff] }
0x1a7f   :  { %5677 = vmatpush2.msra.mxu0 %v13525_v25  ;;  %v16334_v25 = vld [vmem:[#allocation68_spill] sm:$0xff] }
0x1a80   :  { %5678 = vmatprep.subr.mxu0 %v13531_v28  ;;  %v16335_v28 = vld [vmem:[#allocation9_spill] sm:$0xff] }
0x1a81   :  { %5679 = vmatpush2.msra.mxu0 %v13537_v3  ;;  %v16336_v3 = vld [vmem:[#allocation69_spill] sm:$0xff] }
0x1a82   :  { %5680 = vmatprep.subr.mxu0 %v13543_v2  ;;  %v16337_v2 = vld [vmem:[#allocation42_spill] sm:$0xff] }
0x1a83   :  { %5681 = vmatpush2.msra.mxu0 %v13549_v63  ;;  %v16338_v63 = vld [vmem:[#allocation70_spill] sm:$0xff] }
0x1a84   :  { %5682 = vmatprep.subr.mxu0 %v13555_v12  ;;  %v16339_v12 = vld [vmem:[#allocation10_spill] sm:$0xff] }
0x1a85   :  { %5683 = vmatpush2.msra.mxu0 %v16327_v58  ;;  %v16363_v58 = vld [vmem:[#allocation78_spill] sm:$0xff] }
0x1a86   :  { %5684 = vmatprep.subr.mxu0 %v16328_v50  ;;  %v16364_v50 = vld [vmem:[#allocation7_spill] sm:$0xff] }
0x1a87   :  { %5685 = vmatpush2.msra.mxu0 %v16329_v33  ;;  %v16365_v33 = vld [vmem:[#allocation41_spill] sm:$0xff] }
0x1a88   :  { %5686 = vmatprep.subr.mxu0 %v16330_v27  ;;  %v16366_v27 = vld [vmem:[#allocation79_spill] sm:$0xff] }
0x1a89   :  { %5687 = vmatpush2.msra.mxu0 %v16331_v21  ;;  %v16367_v21 = vld [vmem:[#allocation43_spill] sm:$0xff] }
0x1a8a   :  { %5688 = vmatprep.subr.mxu0 %v16332_v61  ;;  %v16368_v61 = vld [vmem:[#allocation80_spill] sm:$0xff] }
0x1a8b   :  { %5689 = vmatpush2.msra.mxu0 %v16333_v11  ;;  %v16369_v11 = vld [vmem:[#allocation45_spill] sm:$0xff] }
0x1a8c   :  { %5690 = vmatprep.subr.mxu0 %v16334_v25  ;;  %v16370_v25 = vld [vmem:[#allocation81_spill] sm:$0xff] }
0x1a8d   :  { %5691 = vmatpush2.msra.mxu0 %v16335_v28  ;;  %v16371_v28 = vld [vmem:[#allocation19_spill] sm:$0xff] }
0x1a8e   :  { %5692 = vmatprep.subr.mxu0 %v16336_v3  ;;  %v16372_v3 = vld [vmem:[#allocation47_spill] sm:$0xff] }
0x1a8f   :  { %5693 = vmatpush2.msra.mxu0 %v16337_v2  ;;  %v16373_v2 = vld [vmem:[#allocation20_spill] sm:$0xff] }
0x1a90   :  { %5694 = vmatprep.subr.mxu0 %v16338_v63  ;;  %v16374_v63 = vld [vmem:[#allocation82_spill] sm:$0xff] }
0x1a91   :  { %5695 = vmatpush2.msra.mxu0 %v16339_v12  ;;  %v16375_v12 = vld [vmem:[#allocation21_spill] sm:$0xff] }
0x1a92   :  { %5696 = vmatprep.subr.mxu0 %v16340_v62  ;;  %v16376_v62 = vld [vmem:[#allocation49_spill] sm:$0xff] }
0x1afc   :  { %v5377_v56 = vpop.xlane.xlu0 %5376 }
0x1afd   :  { %vm5378_vm14 = vcmp.eq.f32.partialorder %v5375_v60, %v5377_v56  ;;  %v16341_v60 = vld [vmem:[#allocation44_spill] sm:$0xff]  ;;  %v16348_v56 = vld [vmem:[#allocation46_spill] sm:$0xff] }
0x1afe   :  { %v5379_v39 = vsel %vm5378_vm14, %v11596_v53, 128  ;;  %5697 = vmatpush2.msra.mxu0 %v16341_v60  ;;  %v16377_v60 = vld [vmem:[#allocation22_spill] sm:$0xff] }
0x1aff   :  { %v5381_v30 = vshra.s32 %v5379_v39, 16  ;;  %v5380_v4 = vand.u32 65535, %v5379_v39  ;;  %5698 = vmatprep.subr.mxu0 %v16342_v29  ;;  %v16349_v39 = vld [vmem:[#allocation33_spill] sm:$0xff]  ;;  %v16378_v29 = vld [vmem:[#allocation83_spill] sm:$0xff] }
0x1b00   :  { %5699 = vmatpush2.msra.mxu0 %v16343_v51  ;;  %v16379_v51 = vld [vmem:[#allocation23_spill] sm:$0xff] }
0x1b01   :  { %v5383_v47 = vcvt.s32.f32 %v5381_v30  ;;  %v5382_v0 = vcvt.s32.f32 %v5380_v4  ;;  %6701 = vmatprep.subr.mxu0 %v15899_v40  ;;  %v16350_v30 = vld [vmem:[#allocation61_spill] sm:$0xff]  ;;  %v16352_v4 = vld [vmem:[#allocation34_spill] sm:$0xff] }
0x1b03   :  { %5384 = vmin.xlane.f32.xlu1 %v5383_v47 }
0x1b8c   :  { %v5385_v7 = vpop.xlane.xlu1 %5384 }
0x1b8d   :  { %vm5386_vm15 = vcmp.eq.f32.partialorder %v5383_v47, %v5385_v7  ;;  %v5391_v10 = vcvt.f32.s32 %v5385_v7  ;;  %v16351_v47 = vld [vmem:[#allocation75_spill] sm:$0xff] }
0x1b8e   :  { %v5387_v1 = vsel %vm5386_vm15, %v5382_v0, inf  ;;  %v16353_v7 = vld [vmem:[#allocation35_spill] sm:$0xff]  ;;  %v16354_v0 = vld [vmem:[#allocation62_spill] sm:$0xff] }
0x1b8f   :  { %5388 = vmin.xlane.f32.xlu0 %v5387_v1  ;;  %v5392_v46 = vshll.u32 %v5391_v10, 16  ;;  %v16355_v1 = vld [vmem:[#allocation76_spill] sm:$0xff]  ;;  %v16380_v10 = vld [vmem:[#allocation51_spill] sm:$0xff] }
0x1c18   :  { %v5389_v38 = vpop.xlane.xlu0 %5388 }
0x1c19   :  { %v5390_v14 = vcvt.f32.s32 %v5389_v38  ;;  %v16381_v38 = vld [vmem:[#allocation24_spill] sm:$0xff] }
0x1c1b   :  { %v5393_v6 = vadd.s32 %v5392_v46, %v5390_v14  ;;  %v16382_v46 = vld [vmem:[#allocation84_spill] sm:$0xff]  ;;  %v16383_v14 = vld [vmem:[#allocation25_spill] sm:$0xff] }
0x1c1d   :  { %vm5394_vm2 = vcmp.eq.s32.totalorder %v11596_v53, %v5393_v6  ;;  %v16384_v6 = vld [vmem:[#allocation74_spill] sm:$0xff] }
0x1c1e   :  { %6699 = vmatmul.mubr.msk.f32.vlgmr.msra.gmra.mxu1 %vm5394_vm2, %v16344_v52 }
0x1c1f   :  { %5771 = vmatprep.mubr.f32.mxu1 %v14170_v57  ;;  %5708 = vmatpush1.msra.mxu1 %v16345_v54  ;;  %v16385_v54 = vld [vmem:[#allocation53_spill] sm:$0xff] }
0x1c20   :  { %5709 = vmatprep.subr.mxu1 %v16346_v55  ;;  %v16386_v55 = vld [vmem:[#allocation12_spill] sm:$0xff] }
0x1c21   :  { %5710 = vmatpush1.msra.mxu1 %v16347_v41  ;;  %v16387_v41 = vld [vmem:[#allocation26_spill] sm:$0xff] }
0x1c22   :  { %5711 = vmatprep.subr.mxu1 %v16348_v56  ;;  %v16388_v56 = vld [vmem:[#allocation48_spill] sm:$0xff] }
0x1c23   :  { %5712 = vmatpush1.msra.mxu1 %v16349_v39  ;;  %v16389_v39 = vld [vmem:[#allocation85_spill] sm:$0xff] }
0x1c24   :  { %5713 = vmatprep.subr.mxu1 %v16350_v30  ;;  %v16390_v30 = vld [vmem:[#allocation13_spill] sm:$0xff] }
0x1c25   :  { %5714 = vmatpush1.msra.mxu1 %v16351_v47  ;;  %v16391_v47 = vld [vmem:[#allocation27_spill] sm:$0xff] }
0x1c26   :  { %5715 = vmatprep.subr.mxu1 %v16352_v4  ;;  %v16392_v4 = vld [vmem:[#allocation50_spill] sm:$0xff] }
0x1c27   :  { %5716 = vmatpush1.msra.mxu1 %v16353_v7  ;;  %v16393_v7 = vld [vmem:[#allocation55_spill] sm:$0xff] }
0x1c28   :  { %5717 = vmatprep.subr.mxu1 %v16354_v0  ;;  %v16394_v0 = vld [vmem:[#allocation14_spill] sm:$0xff] }
0x1c29   :  { %5718 = vmatpush1.msra.mxu1 %v16355_v1  ;;  %v16395_v1 = vld [vmem:[#allocation28_spill] sm:$0xff] }
0x1c2a   :  { %5719 = vmatprep.subr.mxu1 %v16356_v5  ;;  %v16396_v5 = vld [vmem:[#allocation52_spill] sm:$0xff] }
0x1c2b   :  { %5720 = vmatpush1.msra.mxu1 %v16357_v26  ;;  %v16397_v26 = vld [vmem:[#allocation86_spill] sm:$0xff] }
0x1c2c   :  { %5721 = vmatprep.subr.mxu1 %v16358_v31  ;;  %v16398_v31 = vld [vmem:[#allocation15_spill] sm:$0xff] }
0x1c2d   :  { %5722 = vmatpush1.msra.mxu1 %v16359_v24  ;;  %v16399_v24 = vld [vmem:[#allocation29_spill] sm:$0xff] }
0x1c2e   :  { %5723 = vmatprep.subr.mxu1 %v16360_v19  ;;  %v16400_v19 = vld [vmem:[#allocation54_spill] sm:$0xff] }
0x1c2f   :  { %5724 = vmatpush1.msra.mxu1 %v16361_v8  ;;  %v16401_v8 = vld [vmem:[#allocation57_spill] sm:$0xff] }
0x1c30   :  { %5725 = vmatprep.subr.mxu1 %v16362_v22  ;;  %v16402_v22 = vld [vmem:[#allocation16_spill] sm:$0xff] }
0x1c31   :  { %5726 = vmatpush1.msra.mxu1 %v16363_v58  ;;  %v16403_v58 = vld [vmem:[#allocation30_spill] sm:$0xff] }
0x1c32   :  { %5727 = vmatprep.subr.mxu1 %v16364_v50  ;;  %v16404_v50 = vld [vmem:[#allocation56_spill] sm:$0xff] }
0x1c33   :  { %5728 = vmatpush1.msra.mxu1 %v16365_v33  ;;  %v16405_v33 = vld [vmem:[#allocation87_spill] sm:$0xff] }
0x1c34   :  { %5729 = vmatprep.subr.mxu1 %v16366_v27  ;;  %v16406_v27 = vld [vmem:[#allocation17_spill] sm:$0xff] }
0x1c35   :  { %5730 = vmatpush1.msra.mxu1 %v16367_v21  ;;  %v16407_v21 = vld [vmem:[#allocation59_spill] sm:$0xff] }
0x1c36   :  { %5731 = vmatprep.subr.mxu1 %v16368_v61 }
0x1c37   :  { %5732 = vmatpush1.msra.mxu1 %v16369_v11 }
0x1c38   :  { %5733 = vmatprep.subr.mxu1 %v16370_v25  ;;  %v16408_v25 = vld [vmem:[#allocation18_spill] sm:$0xff] }
0x1c39   :  { %5734 = vmatpush1.msra.mxu1 %v16371_v28  ;;  %v16409_v28 = vld [vmem:[#allocation32_spill] sm:$0xff] }
0x1c3a   :  { %5735 = vmatprep.subr.mxu1 %v16372_v3  ;;  %v16410_v3 = vld [vmem:[#allocation60_spill] sm:$0xff] }
0x1c3b   :  { %5736 = vmatpush1.msra.mxu1 %v16373_v2  ;;  %v16411_v2 = vld [vmem:[#allocation88_spill] sm:$0xff] }
0x1c3c   :  { %5737 = vmatprep.subr.mxu1 %v16374_v63 }
0x1c3d   :  { %5738 = vmatpush1.msra.mxu1 %v16375_v12 }
0x1c3e   :  { %5739 = vmatprep.subr.mxu1 %v16376_v62 }
0x1c3f   :  { %5740 = vmatpush2.msra.mxu1 %v16377_v60 }
0x1c40   :  { %5741 = vmatprep.subr.mxu1 %v16378_v29  ;;  %v16425_v29 = vld [vmem:[#allocation5_spill] sm:$0xff] }
0x1c41   :  { %5742 = vmatpush2.msra.mxu1 %v16379_v51 }
0x1c42   :  { %5743 = vmatprep.subr.mxu1 %v16380_v10 }
0x1c43   :  { %5744 = vmatpush2.msra.mxu1 %v16381_v38 }
0x1c44   :  { %5745 = vmatprep.subr.mxu1 %v16382_v46 }
0x1c45   :  { %5746 = vmatpush2.msra.mxu1 %v16383_v14 }
0x1c46   :  { %5747 = vmatprep.subr.mxu1 %v16384_v6 }
0x1c47   :  { %5748 = vmatpush2.msra.mxu1 %v16385_v54 }
0x1c48   :  { %5749 = vmatprep.subr.mxu1 %v16386_v55 }
0x1c49   :  { %5750 = vmatpush2.msra.mxu1 %v16387_v41 }
0x1c4a   :  { %5751 = vmatprep.subr.mxu1 %v16388_v56 }
0x1c4b   :  { %5752 = vmatpush2.msra.mxu1 %v16389_v39 }
0x1c4c   :  { %5753 = vmatprep.subr.mxu1 %v16390_v30 }
0x1c4d   :  { %5754 = vmatpush2.msra.mxu1 %v16391_v47 }
0x1c4e   :  { %5755 = vmatprep.subr.mxu1 %v16392_v4 }
0x1c4f   :  { %5756 = vmatpush2.msra.mxu1 %v16393_v7 }
0x1c50   :  { %5757 = vmatprep.subr.mxu1 %v16394_v0 }
0x1c51   :  { %5758 = vmatpush2.msra.mxu1 %v16395_v1 }
0x1c52   :  { %5759 = vmatprep.subr.mxu1 %v16396_v5 }
0x1c53   :  { %5760 = vmatpush2.msra.mxu1 %v16397_v26 }
0x1c54   :  { %5761 = vmatprep.subr.mxu1 %v16398_v31 }
0x1c55   :  { %5762 = vmatpush2.msra.mxu1 %v16399_v24 }
0x1c56   :  { %5763 = vmatprep.subr.mxu1 %v16400_v19 }
0x1c57   :  { %5764 = vmatpush2.msra.mxu1 %v16401_v8 }
0x1c58   :  { %5765 = vmatprep.subr.mxu1 %v16402_v22 }
0x1c59   :  { %5766 = vmatpush2.msra.mxu1 %v16403_v58 }
0x1c5a   :  { %5767 = vmatprep.subr.mxu1 %v16404_v50 }
0x1c5b   :  { %5768 = vmatpush2.msra.mxu1 %v16405_v33 }
0x1c5c   :  { %5769 = vmatprep.subr.mxu1 %v16406_v27 }
0x1c5d   :  { %5770 = vmatpush2.msra.mxu1 %v16407_v21 }
0x1c5e   :  { %6736 = vmatprep.subr.mxu1 %v15899_v40 }
0x1cde   :  { %v5479_v61 = vpop.f32.mrf.mxu1 }
0x1cdf   :  { %5701 = vmatmul.mubr.f32.vlgmr.msra.gmra.mxu0 %v5479_v61  ;;  %5772 = vmatmul.mubr.f32.vlgmr.msra.gmra.mxu1 %v5479_v61 }
0x1ce0   :  { %v6700_v11 = vpop.f32.mrf.mxu1  ;;  %6702 = vmatpush3.msra.mxu0 %v16408_v25  ;;  %6733 = vmatprep.mubr.msk.f32.mxu0 %vm6916_vm0, %v15899_v40 }
0x1ce1   :  { %6703 = vmatprep.subr.mxu0 %v15899_v40  ;;  %6737 = vmatpush3.msra.mxu1 %v14242_v32  ;;  %v16412_v32 = vld [vmem:[#allocation89_spill] sm:$0xff] }
0x1ce2   :  { %6704 = vmatpush3.msra.mxu0 %v16409_v28  ;;  %6738 = vmatprep.subr.mxu1 %v15899_v40 }
0x1ce3   :  { %6705 = vmatprep.subr.mxu0 %v15899_v40  ;;  %6739 = vmatpush3.msra.mxu1 %v14247_v34  ;;  %v16413_v34 = vld [vmem:[#allocation90_spill] sm:$0xff] }
0x1ce4   :  { %6706 = vmatpush3.msra.mxu0 %v16410_v3  ;;  %6740 = vmatprep.subr.mxu1 %v15899_v40 }
0x1ce5   :  { %6707 = vmatprep.subr.mxu0 %v15899_v40  ;;  %6741 = vmatpush3.msra.mxu1 %v14254_v23  ;;  %v16414_v23 = vld [vmem:[#allocation91_spill] sm:$0xff] }
0x1ce6   :  { %6708 = vmatpush3.msra.mxu0 %v16411_v2  ;;  %6742 = vmatprep.subr.mxu1 %v15899_v40 }
0x1ce7   :  { %6709 = vmatprep.subr.mxu0 %v15899_v40  ;;  %6743 = vmatpush3.msra.mxu1 %v14261_v42  ;;  %v16415_v42 = vld [vmem:[#allocation92_spill] sm:$0xff] }
0x1ce8   :  { %6710 = vmatpush3.msra.mxu0 %v16412_v32  ;;  %6744 = vmatprep.subr.mxu1 %v15899_v40 }
0x1ce9   :  { %6711 = vmatprep.subr.mxu0 %v15899_v40  ;;  %6745 = vmatpush3.msra.mxu1 %v14268_v44  ;;  %v16416_v44 = vld [vmem:[#allocation93_spill] sm:$0xff] }
0x1cea   :  { %6712 = vmatpush3.msra.mxu0 %v16413_v34  ;;  %6746 = vmatprep.subr.mxu1 %v15899_v40 }
0x1ceb   :  { %6713 = vmatprep.subr.mxu0 %v15899_v40  ;;  %6747 = vmatpush3.msra.mxu1 %v14275_v16  ;;  %v16417_v16 = vld [vmem:[#allocation94_spill] sm:$0xff] }
0x1cec   :  { %6714 = vmatpush3.msra.mxu0 %v16414_v23  ;;  %6748 = vmatprep.subr.mxu1 %v15899_v40 }
0x1ced   :  { %6715 = vmatprep.subr.mxu0 %v15899_v40  ;;  %6749 = vmatpush3.msra.mxu1 %v14282_v49  ;;  %v16418_v49 = vld [vmem:[#allocation95_spill] sm:$0xff] }
0x1cee   :  { %6716 = vmatpush3.msra.mxu0 %v16415_v42  ;;  %6750 = vmatprep.subr.mxu1 %v15899_v40 }
0x1cef   :  { %6717 = vmatprep.subr.mxu0 %v15899_v40  ;;  %6751 = vmatpush3.msra.mxu1 %v14289_v59  ;;  %v16419_v59 = vld [vmem:[#allocation96_spill] sm:$0xff] }
0x1cf0   :  { %6718 = vmatpush3.msra.mxu0 %v16416_v44  ;;  %6752 = vmatprep.subr.mxu1 %v15899_v40 }
0x1cf1   :  { %6719 = vmatprep.subr.mxu0 %v15899_v40  ;;  %6753 = vmatpush3.msra.mxu1 %v14296_v37  ;;  %v16420_v37 = vld [vmem:[#allocation97_spill] sm:$0xff] }
0x1cf2   :  { %6720 = vmatpush3.msra.mxu0 %v16417_v16  ;;  %6754 = vmatprep.subr.mxu1 %v15899_v40 }
0x1cf3   :  { %6721 = vmatprep.subr.mxu0 %v15899_v40  ;;  %6755 = vmatpush3.msra.mxu1 %v14303_v9  ;;  %v16421_v9 = vld [vmem:[#allocation98_spill] sm:$0xff] }
0x1cf4   :  { %6722 = vmatpush3.msra.mxu0 %v16418_v49  ;;  %6756 = vmatprep.subr.mxu1 %v15899_v40 }
0x1cf5   :  { %6723 = vmatprep.subr.mxu0 %v15899_v40  ;;  %6757 = vmatpush3.msra.mxu1 %v14310_v45  ;;  %v16422_v45 = vld [vmem:[#allocation99_spill] sm:$0xff] }
0x1cf6   :  { %6724 = vmatpush3.msra.mxu0 %v16419_v59  ;;  %6758 = vmatprep.subr.mxu1 %v15899_v40 }
0x1cf7   :  { %6725 = vmatprep.subr.mxu0 %v15899_v40  ;;  %6759 = vmatpush3.msra.mxu1 %v14317_v13  ;;  %v16423_v13 = vld [vmem:[#allocation100_spill] sm:$0xff] }
0x1cf8   :  { %6726 = vmatpush3.msra.mxu0 %v16420_v37  ;;  %6760 = vmatprep.subr.mxu1 %v15899_v40 }
0x1cf9   :  { %6727 = vmatprep.subr.mxu0 %v15899_v40  ;;  %6761 = vmatpush3.msra.mxu1 %v14324_v48  ;;  %v5614_v48 = vld [vmem:[%s14586_s5] sm:$0xf] }
0x1cfa   :  { %6728 = vmatpush3.msra.mxu0 %v16421_v9  ;;  %6762 = vmatprep.subr.mxu1 %v15899_v40  ;;  %v5631_v6 = vrot.slane %v5614_v48, %v7891_v18  ;;  %v5627_v55 = vrot.slane %v5614_v48, %v7894_v20 }
0x1cfb   :  { %6729 = vmatprep.subr.mxu0 %v15899_v40  ;;  %6763 = vmatpush3.msra.mxu1 %v14333_v36  ;;  %v16424_v36 = vld [vmem:[#allocation4_spill] sm:$0xff] }
0x1cfc   :  { %6730 = vmatpush3.msra.mxu0 %v16422_v45  ;;  %6764 = vmatprep.subr.mxu1 %v15899_v40  ;;  %v5619_v63 = vrot.slane %v5614_v48, %v16424_v36 }
0x1cfd   :  { %6731 = vmatprep.subr.mxu0 %v15899_v40  ;;  %6765 = vmatpush3.msra.mxu1 %v14340_v43  ;;  %v5623_v43 = vrot.slane %v5614_v48, %v16425_v29 }
0x1cfe   :  { %6732 = vmatpush3.msra.mxu0 %v16423_v13  ;;  %6766 = vmatprep.subr.mxu1 %v15899_v40 }
0x1cff   :  { %6767 = vmatpush3.msra.mxu1 %v14347_v17  ;;  %6768 = vmatprep.mubr.msk.f32.mxu1 %vm6916_vm0, %v15899_v40 }
0x1d9f   :  { %v5702_v12 = vpop.f32.mrf.mxu0  ;;  %v5773_v40 = vpop.f32.mrf.mxu1 }
0x1da0   :  { %v5703_v62 = vadd.f32 %v5702_v12, %v5619_v63  ;;  %v5774_v30 = vadd.f32 %v5773_v40, %v5627_v55 }
0x1da1   :  { %v5704_v51 = vpop.f32.mrf.mxu0  ;;  %v5775_v54 = vpop.f32.mrf.mxu1 }
0x1da2   :  { %v6138_v60 = vmul.f32 -1.442695, %v5703_v62  ;;  %v5705_v10 = vadd.f32 %v5704_v51, %v5623_v43  ;;  %v5776_v56 = vadd.f32 %v5775_v54, %v5631_v6 }
0x1da4   :  { %6905 = vpow2.f32 %v6138_v60  ;;  %v6139_v38 = vmul.f32 -1.442695, %v5705_v10 }
0x1da6   :  { %6907 = vpow2.f32 %v6139_v38 }
0x1db1   :  { %v6906_v17 = vpop.eup %6905 }
0x1db2   :  { %v5781_v46 = vadd.f32 1.0, %v6906_v17 }
0x1db3   :  { %v6908_v14 = vpop.eup %6907 }
0x1db4   :  { %6909 = vrcp.f32 %v5781_v46  ;;  %v5787_v41 = vadd.f32 1.0, %v6908_v14 }
0x1db6   :  { %6911 = vrcp.f32 %v5787_v41 }
0x1dc1   :  { %v6910_v39 = vpop.eup %6909 }
0x1dc2   :  { %v5790_v47 = vmul.f32 %v6910_v39, %v5776_v56 }
0x1dc3   :  { %v6912_v7 = vpop.eup %6911 }
0x1dc4   :  { %v5791_v4 = vadd.f32 %v5790_v47, %v5774_v30  ;;  %v5793_v0 = vsub.f32 1.0, %v6912_v7  ;;  %v5795_v26 = vmul.f32 %v6912_v7, %v14170_v57 }
0x1dc6   :  { %6913 = vtanh.f32 %v5791_v4 }
0x1dd3   :  { %v6914_v1 = vpop.eup %6913 }
0x1dd4   :  { %v5794_v5 = vmul.f32 %v6914_v1, %v5793_v0 }
0x1dd6   :  { %v5796_v31 = vadd.f32 %v5795_v26, %v5794_v5 }
0x1dd8   :  { %6734 = vmatmul.mubr.f32.vlgmr.msra.gmra.mxu0 %v5796_v31 }
0x1e98   :  { %v5887_v18 = vpop.f32.mrf.mxu0 }
0x1e99   :  { %v5888_v24 = vadd.f32 %v14203_v35, %v5887_v18 }
0x1e9a   :  { %v6735_v20 = vpop.f32.mrf.mxu0 }
0x1e9b   :  { %v5892_v19 = vcombine.high %v5888_v24, %v5888_v24  ;;  %v5899_v8 = vrot.slane %v5888_v24, %v11604_v15  ;;  %v5957_v22 = vsel %vm3046_vm1, %v5888_v24, -inf }
0x1e9c   :  { %5958 = vmax.xlane.f32.xlu1 %v5957_v22 }
0x1e9d   :  { %v5906_v58 = vrot.slane %v5892_v19, %v11604_v15  ;;  %v5907_v50 = vcombine.high %v5899_v8, %v5899_v8  ;;  %v5915_v33 = vrot.slane %v5899_v8, %v11604_v15  ;;  %6141 = vst.sshfl [vmem:[%s14588_s9 + $0x5] sm:$0x1 pattern:$0x73625140] %v5899_v8 }
0x1e9f   :  { %v5908_v57 = vcombine.high %v5906_v58, %v5906_v58  ;;  %v5922_v35 = vrot.slane %v5906_v58, %v11604_v15  ;;  %v5929_v27 = vrot.slane %v5907_v50, %v11604_v15  ;;  %v5937_v21 = vcombine.high %v5915_v33, %v5915_v33  ;;  %6142 = vst.sshfl [vmem:[%s14588_s9 + $0xd] sm:$0x1 pattern:$0x73625140] %v5907_v50 }
0x1ea0   :  { %6143 = vst.sshfl [vmem:[%s14588_s9 + $0x25] sm:$0x1 pattern:$0x73625140] %v5906_v58 }
0x1ea1   :  { %v5936_v61 = vrot.slane %v5908_v57, %v11604_v15  ;;  %v5938_v11 = vcombine.high %v5922_v35, %v5922_v35  ;;  %v5939_v25 = vcombine.high %v5929_v27, %v5929_v27  ;;  %5951 = vst [vmem:[%s14588_s9 + $0x15] sm:$0x1] %v5937_v21  ;;  %6144 = vst.sshfl [vmem:[%s14588_s9 + $0x2d] sm:$0x1 pattern:$0x73625140] %v5908_v57 }
0x1ea3   :  { %v5940_v28 = vcombine.high %v5936_v61, %v5936_v61  ;;  %5952 = vst [vmem:[%s14588_s9 + $0x1d] sm:$0x1] %v5939_v25  ;;  %5955 = vst [vmem:[%s14588_s9 + $0x35] sm:$0x1] %v5938_v11 }
0x1ea5   :  { %5956 = vst [vmem:[%s14588_s9 + $0x3d] sm:$0x1] %v5940_v28 }
0x1f25   :  { %v5959_v15 = vpop.xlane.xlu1 %5958 }
0x1f26   :  { %vm5960_vm0 = vcmp.eq.f32.partialorder %v5957_v22, %v5959_v15 }
0x1f27   :  { %v5961_v3 = vsel %vm5960_vm0, %v11596_v53, 128 }
0x1f28   :  { %v5963_v2 = vshra.s32 %v5961_v3, 16  ;;  %v5962_v34 = vand.u32 65535, %v5961_v3 }
0x1f2a   :  { %v5965_v32 = vcvt.s32.f32 %v5963_v2  ;;  %v5964_v42 = vcvt.s32.f32 %v5962_v34 }
0x1f2c   :  { %5966 = vmin.xlane.f32.xlu0 %v5965_v32 }
0x1fb5   :  { %v5967_v23 = vpop.xlane.xlu0 %5966 }
0x1fb6   :  { %vm5968_vm1 = vcmp.eq.f32.partialorder %v5965_v32, %v5967_v23  ;;  %v5973_v16 = vcvt.f32.s32 %v5967_v23 }
0x1fb7   :  { %v5969_v44 = vsel %vm5968_vm1, %v5964_v42, inf }
0x1fb8   :  { %5970 = vmin.xlane.f32.xlu1 %v5969_v44  ;;  %v5974_v59 = vshll.u32 %v5973_v16, 16 }
0x2041   :  { %v5971_v49 = vpop.xlane.xlu1 %5970 }
0x2042   :  { %v5972_v37 = vcvt.f32.s32 %v5971_v49 }
0x2044   :  { %v5975_v9 = vadd.s32 %v5974_v59, %v5972_v37 }
0x2046   :  { %vm5976_vm3 = vcmp.eq.s32.totalorder %v11596_v53, %v5975_v9 }
0x2047   :  { %6769 = vmatmul.mubr.msk.f32.vlgmr.msra.gmra.mxu1 %vm5976_vm3, %v16344_v52 }
0x2107   :  { %v6061_v45 = vpop.f32.mrf.mxu1 }
0x2109   :  { %v6770_v13 = vpop.f32.mrf.mxu1 }

</bundles_post_ra>
